<compile_context>
chip_gen: v7x
topology: tpu7x:2x2x1
jax: 0.10.0
libtpu: 0.0.40
codegen_flags: <defaults>
</compile_context>

<pallas_src>
import math

import jax
import jax.numpy as jnp
from jax import lax
from jax.experimental import pallas as pl
from jax.experimental.pallas import tpu as pltpu


def _leaky(v):
    # LeakyReLU(negative_slope=0.1)
    return jnp.maximum(v, 0.1 * v)


def conv_attention_layer(x, y, pre_conv, params, *,
                         batch_block=None, mxu_dtype=jnp.float32):
    """Pallas forward of ConvAttentionLayer (eval mode, mask=None)."""
    (w1x, w1y, w1p, b1, w2, b2, ws, wl1, wl2) = params
    B, M, D = x.shape
    N = y.shape[1]
    Pc = pre_conv.shape[1]
    C = w1x.shape[1]
    H = ws.shape[1]
    hd = D // H
    MN = M * N

    # ---- batch-folding policy -------------------------------------------------
    if batch_block is None:
        bblk = 8 if (B > 8 and B % 8 == 0) else B
    else:
        bblk = batch_block
    if B % bblk != 0 or not (bblk == B or bblk % 8 == 0):
        raise ValueError("batch_block must divide B and be either B or a "
                         "multiple of 8 (output block tiling rule)")
    grid = (B // bblk,)

    # ---- wrapper-side glue (done once, outside the kernel) --------------------
    wdt = mxu_dtype
    pre_flat = jnp.transpose(pre_conv, (0, 2, 3, 1)).reshape(B, MN, Pc)
    wxf = jnp.concatenate([w1x, wl1], axis=1).astype(wdt)      # (D, C+D)
    wyf = jnp.concatenate([w1y, wl2], axis=1).astype(wdt)      # (D, C+D)
    w1p_c = w1p.astype(wdt)                                    # (Pc, C)
    w2f = w2.reshape(9 * C, C).astype(wdt)                     # (9C, C) im2col weight
    ws_c = ws.astype(wdt)                                      # (C, H)
    b1_2d = b1.reshape(1, C).astype(jnp.float32)
    b2_2d = b2.reshape(1, C).astype(jnp.float32)
    # head -> feature expansion mask (constant, DMA'd once as a resident input)
    e_mask = (jnp.arange(H)[:, None] == (jnp.arange(D)[None, :] // hd)).astype(wdt)

    def kernel(x_ref, y_ref, pre_ref,
               wxf_ref, wyf_ref, w1p_ref, b1_ref, w2f_ref, b2_ref, ws_ref, e_ref,
               out_ref, fea_ref,
               pad_ref, col_ref):
        f32 = jnp.float32
        dt = mxu_dtype

        xb = x_ref[...].reshape(bblk * M, D)            # (bM, D)
        yb = y_ref[...].reshape(bblk * N, D)            # (bN, D)
        pre_f = pre_ref[...].reshape(bblk * MN, Pc)     # (bMN, Pc)

        # ---- fused projections: [1x1-conv x block | linear1], [.. y | linear2]
        xp = jnp.dot(xb.astype(dt), wxf_ref[...], preferred_element_type=f32)
        yp = jnp.dot(yb.astype(dt), wyf_ref[...], preferred_element_type=f32)
        ap = jnp.dot(pre_f.astype(dt), w1p_ref[...], preferred_element_type=f32)
        ax, x_lin = xp[:, :C], xp[:, C:]                # (bM, C), (bM, D)
        ay, y_lin = yp[:, :C], yp[:, C:]                # (bN, C), (bN, D)

        # 1x1 conv over concat([x, y, pre]) channels == broadcast-add of blocks.
        h1 = _leaky(ax.reshape(bblk, M, 1, C)
                    + ay.reshape(bblk, 1, N, C)
                    + ap.reshape(bblk, M, N, C)
                    + b1_ref[...].reshape(1, 1, 1, C))  # (bblk, M, N, C)

        # ---- 3x3 conv, padding=1: im2col slab + one K=9C matmul.
        # Zero only the 1-wide border (interior is fully overwritten each step).
        zr = jnp.zeros((bblk, 1, N + 2, C), f32)
        zc = jnp.zeros((bblk, M, 1, C), f32)
        pad_ref[:, 0:1, :, :] = zr
        pad_ref[:, M + 1:M + 2, :, :] = zr
        pad_ref[:, 1:M + 1, 0:1, :] = zc
        pad_ref[:, 1:M + 1, N + 1:N + 2, :] = zc
        pad_ref[:, 1:M + 1, 1:N + 1, :] = h1
        for k in range(9):
            di, dj = divmod(k, 3)
            col_ref[:, k * C:(k + 1) * C] = (
                pad_ref[:, di:di + M, dj:dj + N, :]
                .reshape(bblk * MN, C).astype(dt))
        h2 = _leaky(jnp.dot(col_ref[...], w2f_ref[...],
                            preferred_element_type=f32) + b2_ref[...])   # (bMN, C)

        fea_ref[...] = h2.reshape(bblk, MN, C)          # fea_map, (m,n)-major HWC

        # ---- scores: one matmul for all heads + LeakyReLU.
        s = _leaky(jnp.dot(h2.astype(dt), ws_ref[...],
                           preferred_element_type=f32))                   # (bMN, H)
        s4 = s.reshape(bblk, M, N, H)

        # dual softmaxes (unnormalized): over N (keys of out_x), over M (out_y).
        ex4 = jnp.exp(s4 - jnp.max(s4, axis=2, keepdims=True))
        ey4 = jnp.exp(s4 - jnp.max(s4, axis=1, keepdims=True))
        den_x = jnp.sum(ex4, axis=2).reshape(bblk * M, H)                 # (bM, H)
        den_y = jnp.sum(ey4, axis=1).reshape(bblk * N, H)                 # (bN, H)

        # ---- head-batched attention: expand probs to feature lanes via E,
        # weight by values, then segment-sum with cheap reshape+sum reductions.
        e_m = e_ref[...]                                                  # (H, D)
        y_rep = jnp.broadcast_to(y_lin.reshape(bblk, 1, N, D),
                                 (bblk, M, N, D)).reshape(bblk * MN, D)
        x_rep = jnp.broadcast_to(x_lin.reshape(bblk, M, 1, D),
                                 (bblk, M, N, D)).reshape(bblk * MN, D)
        wx = jnp.dot(ex4.reshape(bblk * MN, H).astype(dt), e_m,
                     preferred_element_type=f32) * y_rep                  # (bMN, D)
        wy = jnp.dot(ey4.reshape(bblk * MN, H).astype(dt), e_m,
                     preferred_element_type=f32) * x_rep                  # (bMN, D)
        ox_num = jnp.sum(wx.reshape(bblk * M, N, D), axis=1)              # (bM, D)
        oy_num = jnp.sum(wy.reshape(bblk, M, N, D), axis=1).reshape(bblk * N, D)

        # reciprocal BEFORE head->feature expansion (H vs D EUP ops per row).
        inv_x = jnp.dot(pl.reciprocal(den_x, approx=True).astype(dt), e_m,
                        preferred_element_type=f32)                       # (bM, D)
        inv_y = jnp.dot(pl.reciprocal(den_y, approx=True).astype(dt), e_m,
                        preferred_element_type=f32)                       # (bN, D)
        ox = ox_num * inv_x
        oy = oy_num * inv_y

        # self_loop=True -> add projections; activation; residual=True -> add inputs.
        out_x = _leaky(ox + x_lin) + xb                                   # (bM, D)
        out_y = _leaky(oy + y_lin) + yb                                   # (bN, D)
        out_ref[:, 0:M, :] = out_x.reshape(bblk, M, D)
        out_ref[:, M:M + N, :] = out_y.reshape(bblk, N, D)

    grid_spec = pltpu.PrefetchScalarGridSpec(
        num_scalar_prefetch=0,
        grid=grid,
        in_specs=[
            pl.BlockSpec((bblk, M, D), lambda g: (g, 0, 0)),       # x
            pl.BlockSpec((bblk, N, D), lambda g: (g, 0, 0)),       # y
            pl.BlockSpec((bblk, MN, Pc), lambda g: (g, 0, 0)),     # pre_conv (flat HWC)
            pl.BlockSpec((D, C + D), lambda g: (0, 0)),            # [w1x | wl1]
            pl.BlockSpec((D, C + D), lambda g: (0, 0)),            # [w1y | wl2]
            pl.BlockSpec((Pc, C), lambda g: (0, 0)),               # w1p
            pl.BlockSpec((1, C), lambda g: (0, 0)),                # b1
            pl.BlockSpec((9 * C, C), lambda g: (0, 0)),            # w2 (im2col layout)
            pl.BlockSpec((1, C), lambda g: (0, 0)),                # b2
            pl.BlockSpec((C, H), lambda g: (0, 0)),                # score weight
            pl.BlockSpec((H, D), lambda g: (0, 0)),                # head-expansion E
        ],
        out_specs=[
            pl.BlockSpec((bblk, M + N, D), lambda g: (g, 0, 0)),   # [out_x ; out_y]
            pl.BlockSpec((bblk, MN, C), lambda g: (g, 0, 0)),      # fea_map (flat HWC)
        ],
        scratch_shapes=[
            pltpu.VMEM((bblk, M + 2, N + 2, C), jnp.float32),      # zero-padded h1
            pltpu.VMEM((bblk * MN, 9 * C), mxu_dtype),             # im2col slab
        ],
    )

    # NOTE: at scaled M*N, re-budget VMEM (pad + im2col + double-buffered blocks)
    # for v7x's 64 MiB and set pltpu.CompilerParams(vmem_limit_bytes=...) / add a
    # spatial grid axis.  At these sizes everything is far below the default limit.
    out_xy, fea_flat = pl.pallas_call(
        kernel,
        grid_spec=grid_spec,
        out_shape=(
            jax.ShapeDtypeStruct((B, M + N, D), jnp.float32),
            jax.ShapeDtypeStruct((B, MN, C), jnp.float32),
        ),
        compiler_params=pltpu.CompilerParams(
            dimension_semantics=("parallel",)),
    )(x, y, pre_flat, wxf, wyf, w1p_c, b1_2d, w2f, b2_2d, ws_c, e_mask)

    out_x = out_xy[:, :M, :]
    out_y = out_xy[:, M:, :]
    fea_nchw = jnp.transpose(fea_flat.reshape(B, M, N, C), (0, 3, 1, 2))  # NCHW
    return out_x, out_y, fea_nchw


def reference_forward(x, y, pre_nchw, params):
    """Pure-JAX mirror of the PyTorch forward (eval mode, mask=None)."""
    (w1x, w1y, w1p, b1, w2, b2, ws, wl1, wl2) = params
    B, M, D = x.shape
    N = y.shape[1]
    H = ws.shape[1]
    hd = D // H

    fea = jnp.concatenate([
        jnp.broadcast_to(x[:, :, None, :], (B, M, N, D)),
        jnp.broadcast_to(y[:, None, :, :], (B, M, N, D)),
    ], axis=-1)
    fea = jnp.transpose(fea, (0, 3, 1, 2))                       # (B, 2D, M, N)
    fea = jnp.concatenate([fea, pre_nchw], axis=1)               # (B, 2D+P, M, N)

    w1_full = jnp.concatenate([w1x, w1y, w1p], axis=0)           # (2D+P, C)
    h1 = jnp.einsum('bcmn,co->bomn', fea, w1_full) + b1.reshape(1, -1, 1, 1)
    h1 = _leaky(h1)
    h2 = lax.conv_general_dilated(h1, w2, (1, 1), 'SAME',
                                  dimension_numbers=('NCHW', 'HWIO', 'NCHW'))
    h2 = _leaky(h2 + b2.reshape(1, -1, 1, 1))                    # (B, C, M, N)

    scores = _leaky(jnp.einsum('bcmn,ch->bhmn', h2, ws))         # (B, H, M, N)

    xl = x @ wl1
    yl = y @ wl2
    px = jax.nn.softmax(scores, axis=-1)
    yh = jnp.transpose(yl.reshape(B, N, H, hd), (0, 2, 1, 3))
    ox = jnp.einsum('bhmn,bhnd->bhmd', px, yh)
    ox = jnp.transpose(ox, (0, 2, 1, 3)).reshape(B, M, D)
    py = jax.nn.softmax(jnp.transpose(scores, (0, 1, 3, 2)), axis=-1)
    xh = jnp.transpose(xl.reshape(B, M, H, hd), (0, 2, 1, 3))
    oy = jnp.einsum('bhnm,bhmd->bhnd', py, xh)
    oy = jnp.transpose(oy, (0, 2, 1, 3)).reshape(B, N, D)

    ox = _leaky(ox + xl) + x
    oy = _leaky(oy + yl) + y
    return ox, oy, h2


if __name__ == "__main__":
    B, M, N = 4, 8, 8
    hid_dim, n_heads = 32, 4
    pre_channels, channels = 4, 16

    key = jax.random.PRNGKey(0)
    ks = jax.random.split(key, 12)
    x = jax.random.normal(ks[0], (B, M, hid_dim), jnp.float32)
    y = jax.random.normal(ks[1], (B, N, hid_dim), jnp.float32)
    pre_conv = jax.random.normal(ks[2], (B, pre_channels, M, N), jnp.float32)

    cin = 2 * hid_dim + pre_channels
    s1 = 1.0 / math.sqrt(cin)
    w1x = jax.random.normal(ks[3], (hid_dim, channels), jnp.float32) * s1
    w1y = jax.random.normal(ks[4], (hid_dim, channels), jnp.float32) * s1
    w1p = jax.random.normal(ks[5], (pre_channels, channels), jnp.float32) * s1
    b1 = jax.random.normal(ks[6], (channels,), jnp.float32) * 0.1
    w2 = jax.random.normal(ks[7], (3, 3, channels, channels), jnp.float32) / math.sqrt(9 * channels)
    b2 = jax.random.normal(ks[8], (channels,), jnp.float32) * 0.1
    ws = jax.random.normal(ks[9], (channels, n_heads), jnp.float32) / math.sqrt(channels)
    wl1 = jax.random.normal(ks[10], (hid_dim, hid_dim), jnp.float32) / math.sqrt(hid_dim)
    wl2 = jax.random.normal(ks[11], (hid_dim, hid_dim), jnp.float32) / math.sqrt(hid_dim)
    params = (w1x, w1y, w1p, b1, w2, b2, ws, wl1, wl2)

    out_x, out_y, fea = conv_attention_layer(x, y, pre_conv, params)
    jax.block_until_ready((out_x, out_y, fea))

    ref_x, ref_y, ref_fea = reference_forward(x, y, pre_conv, params)
    assert out_x.shape == (B, M, hid_dim)
    assert out_y.shape == (B, N, hid_dim)
    assert fea.shape == (B, channels, M, N)
    assert jnp.allclose(out_x, ref_x, rtol=1e-2, atol=1e-2)
    assert jnp.allclose(out_y, ref_y, rtol=1e-2, atol=1e-2)
    assert jnp.allclose(fea, ref_fea, rtol=1e-2, atol=1e-2)
    print("KERNEL_OK")
</pallas_src>

<mosaic_0001>
module attributes {stable_mosaic.version = 11 : i64} {
  func.func @kernel(%arg0: i32, %arg1: memref<4x8x32xf32, #tpu.memory_space<vmem>>, %arg2: memref<4x8x32xf32, #tpu.memory_space<vmem>>, %arg3: memref<4x64x4xf32, #tpu.memory_space<vmem>>, %arg4: memref<32x48xf32, #tpu.memory_space<vmem>>, %arg5: memref<32x48xf32, #tpu.memory_space<vmem>>, %arg6: memref<4x16xf32, #tpu.memory_space<vmem>>, %arg7: memref<1x16xf32, #tpu.memory_space<vmem>>, %arg8: memref<144x16xf32, #tpu.memory_space<vmem>>, %arg9: memref<1x16xf32, #tpu.memory_space<vmem>>, %arg10: memref<16x4xf32, #tpu.memory_space<vmem>>, %arg11: memref<4x32xf32, #tpu.memory_space<vmem>>, %arg12: memref<4x16x32xf32, #tpu.memory_space<vmem>>, %arg13: memref<4x64x16xf32, #tpu.memory_space<vmem>>, %arg14: memref<4x10x10x16xf32, #tpu.memory_space<vmem>>, %arg15: memref<256x144xf32, #tpu.memory_space<vmem>>) attributes {dimension_semantics = [#tpu.dimension_semantics<parallel>], iteration_bounds = array<i64: 1>, scalar_prefetch = 0 : i64, scratch_operands = 2 : i64, tpu.core_type = #tpu.core_type<tc>, window_params = [{transform_indices = @transform_0, window_bounds = array<i64: 4, 8, 32>}, {transform_indices = @transform_1, window_bounds = array<i64: 4, 8, 32>}, {transform_indices = @transform_2, window_bounds = array<i64: 4, 64, 4>}, {pipeline_mode = #tpu.pipeline_mode<synchronous>, transform_indices = @transform_3, window_bounds = array<i64: 32, 48>}, {pipeline_mode = #tpu.pipeline_mode<synchronous>, transform_indices = @transform_4, window_bounds = array<i64: 32, 48>}, {pipeline_mode = #tpu.pipeline_mode<synchronous>, transform_indices = @transform_5, window_bounds = array<i64: 4, 16>}, {pipeline_mode = #tpu.pipeline_mode<synchronous>, transform_indices = @transform_6, window_bounds = array<i64: 1, 16>}, {pipeline_mode = #tpu.pipeline_mode<synchronous>, transform_indices = @transform_7, window_bounds = array<i64: 144, 16>}, {pipeline_mode = #tpu.pipeline_mode<synchronous>, transform_indices = @transform_8, window_bounds = array<i64: 1, 16>}, {pipeline_mode = #tpu.pipeline_mode<synchronous>, transform_indices = @transform_9, window_bounds = array<i64: 16, 4>}, {pipeline_mode = #tpu.pipeline_mode<synchronous>, transform_indices = @transform_10, window_bounds = array<i64: 4, 32>}, {transform_indices = @transform_11, window_bounds = array<i64: 4, 16, 32>}, {transform_indices = @transform_12, window_bounds = array<i64: 4, 64, 16>}]} {
    %c0 = arith.constant 0 : index
    %c0_0 = arith.constant 0 : index
    %c0_1 = arith.constant 0 : index
    %0 = vector.load %arg1[%c0, %c0_0, %c0_1] : memref<4x8x32xf32, #tpu.memory_space<vmem>>, vector<4x8x32xf32>
    %1 = vector.shape_cast %0 : vector<4x8x32xf32> to vector<32x32xf32>
    %c0_2 = arith.constant 0 : index
    %c0_3 = arith.constant 0 : index
    %c0_4 = arith.constant 0 : index
    %2 = vector.load %arg2[%c0_2, %c0_3, %c0_4] : memref<4x8x32xf32, #tpu.memory_space<vmem>>, vector<4x8x32xf32>
    %3 = vector.shape_cast %2 : vector<4x8x32xf32> to vector<32x32xf32>
    %c0_5 = arith.constant 0 : index
    %c0_6 = arith.constant 0 : index
    %c0_7 = arith.constant 0 : index
    %4 = vector.load %arg3[%c0_5, %c0_6, %c0_7] : memref<4x64x4xf32, #tpu.memory_space<vmem>>, vector<4x64x4xf32>
    %5 = vector.shape_cast %4 : vector<4x64x4xf32> to vector<256x4xf32>
    %c0_8 = arith.constant 0 : index
    %c0_9 = arith.constant 0 : index
    %6 = vector.load %arg4[%c0_8, %c0_9] : memref<32x48xf32, #tpu.memory_space<vmem>>, vector<32x48xf32>
    %cst = arith.constant dense<0.000000e+00> : vector<32x48xf32>
    %7 = tpu.matmul %1, %6, %cst {dimension_numbers = #tpu.dot_dimension_numbers<[1], [0], [0], [1], [0, 0, 1, 1], [], []>} : vector<32x32xf32>, vector<32x48xf32>, vector<32x48xf32> -> vector<32x48xf32>
    %c0_10 = arith.constant 0 : index
    %c0_11 = arith.constant 0 : index
    %8 = vector.load %arg5[%c0_10, %c0_11] : memref<32x48xf32, #tpu.memory_space<vmem>>, vector<32x48xf32>
    %cst_12 = arith.constant dense<0.000000e+00> : vector<32x48xf32>
    %9 = tpu.matmul %3, %8, %cst_12 {dimension_numbers = #tpu.dot_dimension_numbers<[1], [0], [0], [1], [0, 0, 1, 1], [], []>} : vector<32x32xf32>, vector<32x48xf32>, vector<32x48xf32> -> vector<32x48xf32>
    %c0_13 = arith.constant 0 : index
    %c0_14 = arith.constant 0 : index
    %10 = vector.load %arg6[%c0_13, %c0_14] : memref<4x16xf32, #tpu.memory_space<vmem>>, vector<4x16xf32>
    %cst_15 = arith.constant dense<0.000000e+00> : vector<256x16xf32>
    %11 = tpu.matmul %5, %10, %cst_15 {dimension_numbers = #tpu.dot_dimension_numbers<[1], [0], [0], [1], [0, 0, 1, 1], [], []>} : vector<256x4xf32>, vector<4x16xf32>, vector<256x16xf32> -> vector<256x16xf32>
    %12 = vector.extract_strided_slice %7 {offsets = [0, 0], sizes = [32, 16], strides = [1, 1]} : vector<32x48xf32> to vector<32x16xf32>
    %13 = vector.extract_strided_slice %7 {offsets = [0, 16], sizes = [32, 32], strides = [1, 1]} : vector<32x48xf32> to vector<32x32xf32>
    %14 = vector.extract_strided_slice %9 {offsets = [0, 0], sizes = [32, 16], strides = [1, 1]} : vector<32x48xf32> to vector<32x16xf32>
    %15 = vector.extract_strided_slice %9 {offsets = [0, 16], sizes = [32, 32], strides = [1, 1]} : vector<32x48xf32> to vector<32x32xf32>
    %16 = vector.shape_cast %12 : vector<32x16xf32> to vector<4x8x1x16xf32>
    %17 = vector.shape_cast %14 : vector<32x16xf32> to vector<4x1x8x16xf32>
    %18 = vector.broadcast %16 : vector<4x8x1x16xf32> to vector<4x8x8x16xf32>
    %19 = vector.broadcast %17 : vector<4x1x8x16xf32> to vector<4x8x8x16xf32>
    %20 = arith.addf %18, %19 : vector<4x8x8x16xf32>
    %21 = vector.shape_cast %11 : vector<256x16xf32> to vector<4x8x8x16xf32>
    %22 = arith.addf %20, %21 : vector<4x8x8x16xf32>
    %c0_16 = arith.constant 0 : index
    %c0_17 = arith.constant 0 : index
    %23 = vector.load %arg7[%c0_16, %c0_17] : memref<1x16xf32, #tpu.memory_space<vmem>>, vector<1x16xf32>
    %24 = vector.shape_cast %23 : vector<1x16xf32> to vector<1x1x1x16xf32>
    %25 = vector.broadcast %24 : vector<1x1x1x16xf32> to vector<4x8x8x16xf32>
    %26 = arith.addf %22, %25 : vector<4x8x8x16xf32>
    %cst_18 = arith.constant 1.000000e-01 : f32
    %27 = vector.broadcast %cst_18 : f32 to vector<4x8x8x16xf32>
    %28 = arith.mulf %27, %26 : vector<4x8x8x16xf32>
    %29 = arith.maximumf %26, %28 : vector<4x8x8x16xf32>
    %cst_19 = arith.constant 0.000000e+00 : f32
    %30 = vector.broadcast %cst_19 : f32 to vector<4x1x10x16xf32>
    %cst_20 = arith.constant 0.000000e+00 : f32
    %31 = vector.broadcast %cst_20 : f32 to vector<4x8x1x16xf32>
    %c0_21 = arith.constant 0 : index
    %c0_22 = arith.constant 0 : index
    %c0_23 = arith.constant 0 : index
    %c0_24 = arith.constant 0 : index
    %32 = vector.load %arg14[%c0_21, %c0_22, %c0_23, %c0_24] : memref<4x10x10x16xf32, #tpu.memory_space<vmem>>, vector<4x1x10x16xf32>
    tpu.vector_store %arg14[%c0_21, %c0_22, %c0_23, %c0_24], %30 {strides = array<i32>} : memref<4x10x10x16xf32, #tpu.memory_space<vmem>>, vector<4x1x10x16xf32>,
    %c0_25 = arith.constant 0 : index
    %c9 = arith.constant 9 : index
    %c0_26 = arith.constant 0 : index
    %c0_27 = arith.constant 0 : index
    %33 = vector.load %arg14[%c0_25, %c9, %c0_26, %c0_27] : memref<4x10x10x16xf32, #tpu.memory_space<vmem>>, vector<4x1x10x16xf32>
    tpu.vector_store %arg14[%c0_25, %c9, %c0_26, %c0_27], %30 {strides = array<i32>} : memref<4x10x10x16xf32, #tpu.memory_space<vmem>>, vector<4x1x10x16xf32>,
    %c0_28 = arith.constant 0 : index
    %c1 = arith.constant 1 : index
    %c0_29 = arith.constant 0 : index
    %c0_30 = arith.constant 0 : index
    %34 = vector.load %arg14[%c0_28, %c1, %c0_29, %c0_30] : memref<4x10x10x16xf32, #tpu.memory_space<vmem>>, vector<4x8x1x16xf32>
    tpu.vector_store %arg14[%c0_28, %c1, %c0_29, %c0_30], %31 {strides = array<i32>} : memref<4x10x10x16xf32, #tpu.memory_space<vmem>>, vector<4x8x1x16xf32>,
    %c0_31 = arith.constant 0 : index
    %c1_32 = arith.constant 1 : index
    %c9_33 = arith.constant 9 : index
    %c0_34 = arith.constant 0 : index
    %35 = vector.load %arg14[%c0_31, %c1_32, %c9_33, %c0_34] : memref<4x10x10x16xf32, #tpu.memory_space<vmem>>, vector<4x8x1x16xf32>
    tpu.vector_store %arg14[%c0_31, %c1_32, %c9_33, %c0_34], %31 {strides = array<i32>} : memref<4x10x10x16xf32, #tpu.memory_space<vmem>>, vector<4x8x1x16xf32>,
    %c0_35 = arith.constant 0 : index
    %c1_36 = arith.constant 1 : index
    %c1_37 = arith.constant 1 : index
    %c0_38 = arith.constant 0 : index
    %36 = vector.load %arg14[%c0_35, %c1_36, %c1_37, %c0_38] : memref<4x10x10x16xf32, #tpu.memory_space<vmem>>, vector<4x8x8x16xf32>
    tpu.vector_store %arg14[%c0_35, %c1_36, %c1_37, %c0_38], %29 {strides = array<i32>} : memref<4x10x10x16xf32, #tpu.memory_space<vmem>>, vector<4x8x8x16xf32>,
    %c0_39 = arith.constant 0 : index
    %c0_40 = arith.constant 0 : index
    %c0_41 = arith.constant 0 : index
    %c0_42 = arith.constant 0 : index
    %37 = vector.load %arg14[%c0_39, %c0_40, %c0_41, %c0_42] : memref<4x10x10x16xf32, #tpu.memory_space<vmem>>, vector<4x8x8x16xf32>
    %38 = vector.shape_cast %37 : vector<4x8x8x16xf32> to vector<256x16xf32>
    %c0_43 = arith.constant 0 : index
    %c0_44 = arith.constant 0 : index
    %39 = vector.load %arg15[%c0_43, %c0_44] : memref<256x144xf32, #tpu.memory_space<vmem>>, vector<256x16xf32>
    tpu.vector_store %arg15[%c0_43, %c0_44], %38 {strides = array<i32>} : memref<256x144xf32, #tpu.memory_space<vmem>>, vector<256x16xf32>,
    %c0_45 = arith.constant 0 : index
    %c0_46 = arith.constant 0 : index
    %c1_47 = arith.constant 1 : index
    %c0_48 = arith.constant 0 : index
    %40 = vector.load %arg14[%c0_45, %c0_46, %c1_47, %c0_48] : memref<4x10x10x16xf32, #tpu.memory_space<vmem>>, vector<4x8x8x16xf32>
    %41 = vector.shape_cast %40 : vector<4x8x8x16xf32> to vector<256x16xf32>
    %c0_49 = arith.constant 0 : index
    %c16 = arith.constant 16 : index
    %42 = vector.load %arg15[%c0_49, %c16] : memref<256x144xf32, #tpu.memory_space<vmem>>, vector<256x16xf32>
    tpu.vector_store %arg15[%c0_49, %c16], %41 {strides = array<i32>} : memref<256x144xf32, #tpu.memory_space<vmem>>, vector<256x16xf32>,
    %c0_50 = arith.constant 0 : index
    %c0_51 = arith.constant 0 : index
    %c2 = arith.constant 2 : index
    %c0_52 = arith.constant 0 : index
    %43 = vector.load %arg14[%c0_50, %c0_51, %c2, %c0_52] : memref<4x10x10x16xf32, #tpu.memory_space<vmem>>, vector<4x8x8x16xf32>
    %44 = vector.shape_cast %43 : vector<4x8x8x16xf32> to vector<256x16xf32>
    %c0_53 = arith.constant 0 : index
    %c32 = arith.constant 32 : index
    %45 = vector.load %arg15[%c0_53, %c32] : memref<256x144xf32, #tpu.memory_space<vmem>>, vector<256x16xf32>
    tpu.vector_store %arg15[%c0_53, %c32], %44 {strides = array<i32>} : memref<256x144xf32, #tpu.memory_space<vmem>>, vector<256x16xf32>,
    %c0_54 = arith.constant 0 : index
    %c1_55 = arith.constant 1 : index
    %c0_56 = arith.constant 0 : index
    %c0_57 = arith.constant 0 : index
    %46 = vector.load %arg14[%c0_54, %c1_55, %c0_56, %c0_57] : memref<4x10x10x16xf32, #tpu.memory_space<vmem>>, vector<4x8x8x16xf32>
    %47 = vector.shape_cast %46 : vector<4x8x8x16xf32> to vector<256x16xf32>
    %c0_58 = arith.constant 0 : index
    %c48 = arith.constant 48 : index
    %48 = vector.load %arg15[%c0_58, %c48] : memref<256x144xf32, #tpu.memory_space<vmem>>, vector<256x16xf32>
    tpu.vector_store %arg15[%c0_58, %c48], %47 {strides = array<i32>} : memref<256x144xf32, #tpu.memory_space<vmem>>, vector<256x16xf32>,
    %c0_59 = arith.constant 0 : index
    %c1_60 = arith.constant 1 : index
    %c1_61 = arith.constant 1 : index
    %c0_62 = arith.constant 0 : index
    %49 = vector.load %arg14[%c0_59, %c1_60, %c1_61, %c0_62] : memref<4x10x10x16xf32, #tpu.memory_space<vmem>>, vector<4x8x8x16xf32>
    %50 = vector.shape_cast %49 : vector<4x8x8x16xf32> to vector<256x16xf32>
    %c0_63 = arith.constant 0 : index
    %c64 = arith.constant 64 : index
    %51 = vector.load %arg15[%c0_63, %c64] : memref<256x144xf32, #tpu.memory_space<vmem>>, vector<256x16xf32>
    tpu.vector_store %arg15[%c0_63, %c64], %50 {strides = array<i32>} : memref<256x144xf32, #tpu.memory_space<vmem>>, vector<256x16xf32>,
    %c0_64 = arith.constant 0 : index
    %c1_65 = arith.constant 1 : index
    %c2_66 = arith.constant 2 : index
    %c0_67 = arith.constant 0 : index
    %52 = vector.load %arg14[%c0_64, %c1_65, %c2_66, %c0_67] : memref<4x10x10x16xf32, #tpu.memory_space<vmem>>, vector<4x8x8x16xf32>
    %53 = vector.shape_cast %52 : vector<4x8x8x16xf32> to vector<256x16xf32>
    %c0_68 = arith.constant 0 : index
    %c80 = arith.constant 80 : index
    %54 = vector.load %arg15[%c0_68, %c80] : memref<256x144xf32, #tpu.memory_space<vmem>>, vector<256x16xf32>
    tpu.vector_store %arg15[%c0_68, %c80], %53 {strides = array<i32>} : memref<256x144xf32, #tpu.memory_space<vmem>>, vector<256x16xf32>,
    %c0_69 = arith.constant 0 : index
    %c2_70 = arith.constant 2 : index
    %c0_71 = arith.constant 0 : index
    %c0_72 = arith.constant 0 : index
    %55 = vector.load %arg14[%c0_69, %c2_70, %c0_71, %c0_72] : memref<4x10x10x16xf32, #tpu.memory_space<vmem>>, vector<4x8x8x16xf32>
    %56 = vector.shape_cast %55 : vector<4x8x8x16xf32> to vector<256x16xf32>
    %c0_73 = arith.constant 0 : index
    %c96 = arith.constant 96 : index
    %57 = vector.load %arg15[%c0_73, %c96] : memref<256x144xf32, #tpu.memory_space<vmem>>, vector<256x16xf32>
    tpu.vector_store %arg15[%c0_73, %c96], %56 {strides = array<i32>} : memref<256x144xf32, #tpu.memory_space<vmem>>, vector<256x16xf32>,
    %c0_74 = arith.constant 0 : index
    %c2_75 = arith.constant 2 : index
    %c1_76 = arith.constant 1 : index
    %c0_77 = arith.constant 0 : index
    %58 = vector.load %arg14[%c0_74, %c2_75, %c1_76, %c0_77] : memref<4x10x10x16xf32, #tpu.memory_space<vmem>>, vector<4x8x8x16xf32>
    %59 = vector.shape_cast %58 : vector<4x8x8x16xf32> to vector<256x16xf32>
    %c0_78 = arith.constant 0 : index
    %c112 = arith.constant 112 : index
    %60 = vector.load %arg15[%c0_78, %c112] : memref<256x144xf32, #tpu.memory_space<vmem>>, vector<256x16xf32>
    tpu.vector_store %arg15[%c0_78, %c112], %59 {strides = array<i32>} : memref<256x144xf32, #tpu.memory_space<vmem>>, vector<256x16xf32>,
    %c0_79 = arith.constant 0 : index
    %c2_80 = arith.constant 2 : index
    %c2_81 = arith.constant 2 : index
    %c0_82 = arith.constant 0 : index
    %61 = vector.load %arg14[%c0_79, %c2_80, %c2_81, %c0_82] : memref<4x10x10x16xf32, #tpu.memory_space<vmem>>, vector<4x8x8x16xf32>
    %62 = vector.shape_cast %61 : vector<4x8x8x16xf32> to vector<256x16xf32>
    %c0_83 = arith.constant 0 : index
    %c128 = arith.constant 128 : index
    %63 = vector.load %arg15[%c0_83, %c128] : memref<256x144xf32, #tpu.memory_space<vmem>>, vector<256x16xf32>
    tpu.vector_store %arg15[%c0_83, %c128], %62 {strides = array<i32>} : memref<256x144xf32, #tpu.memory_space<vmem>>, vector<256x16xf32>,
    %c0_84 = arith.constant 0 : index
    %c0_85 = arith.constant 0 : index
    %64 = vector.load %arg15[%c0_84, %c0_85] : memref<256x144xf32, #tpu.memory_space<vmem>>, vector<256x144xf32>
    %c0_86 = arith.constant 0 : index
    %c0_87 = arith.constant 0 : index
    %65 = vector.load %arg8[%c0_86, %c0_87] : memref<144x16xf32, #tpu.memory_space<vmem>>, vector<144x16xf32>
    %cst_88 = arith.constant dense<0.000000e+00> : vector<256x16xf32>
    %66 = tpu.matmul %64, %65, %cst_88 {dimension_numbers = #tpu.dot_dimension_numbers<[1], [0], [0], [1], [0, 0, 1, 1], [], []>} : vector<256x144xf32>, vector<144x16xf32>, vector<256x16xf32> -> vector<256x16xf32>
    %c0_89 = arith.constant 0 : index
    %c0_90 = arith.constant 0 : index
    %67 = vector.load %arg9[%c0_89, %c0_90] : memref<1x16xf32, #tpu.memory_space<vmem>>, vector<1x16xf32>
    %68 = vector.broadcast %67 : vector<1x16xf32> to vector<256x16xf32>
    %69 = arith.addf %66, %68 : vector<256x16xf32>
    %cst_91 = arith.constant 1.000000e-01 : f32
    %70 = vector.broadcast %cst_91 : f32 to vector<256x16xf32>
    %71 = arith.mulf %70, %69 : vector<256x16xf32>
    %72 = arith.maximumf %69, %71 : vector<256x16xf32>
    %73 = vector.shape_cast %72 : vector<256x16xf32> to vector<4x64x16xf32>
    %c0_92 = arith.constant 0 : index
    %c0_93 = arith.constant 0 : index
    %c0_94 = arith.constant 0 : index
    %74 = vector.load %arg13[%c0_92, %c0_93, %c0_94] : memref<4x64x16xf32, #tpu.memory_space<vmem>>, vector<4x64x16xf32>
    tpu.vector_store %arg13[%c0_92, %c0_93, %c0_94], %73 {strides = array<i32>} : memref<4x64x16xf32, #tpu.memory_space<vmem>>, vector<4x64x16xf32>,
    %c0_95 = arith.constant 0 : index
    %c0_96 = arith.constant 0 : index
    %75 = vector.load %arg10[%c0_95, %c0_96] : memref<16x4xf32, #tpu.memory_space<vmem>>, vector<16x4xf32>
    %cst_97 = arith.constant dense<0.000000e+00> : vector<256x4xf32>
    %76 = tpu.matmul %72, %75, %cst_97 {dimension_numbers = #tpu.dot_dimension_numbers<[1], [0], [0], [1], [0, 0, 1, 1], [], []>} : vector<256x16xf32>, vector<16x4xf32>, vector<256x4xf32> -> vector<256x4xf32>
    %cst_98 = arith.constant 1.000000e-01 : f32
    %77 = vector.broadcast %cst_98 : f32 to vector<256x4xf32>
    %78 = arith.mulf %77, %76 : vector<256x4xf32>
    %79 = arith.maximumf %76, %78 : vector<256x4xf32>
    %80 = vector.shape_cast %79 : vector<256x4xf32> to vector<4x8x8x4xf32>
    %cst_99 = arith.constant dense<0xFF800000> : vector<4x8x4xf32>
    %81 = vector.multi_reduction <maximumf>, %80, %cst_99 [2] : vector<4x8x8x4xf32> to vector<4x8x4xf32>
    %82 = vector.shape_cast %81 : vector<4x8x4xf32> to vector<4x8x1x4xf32>
    %83 = vector.broadcast %82 : vector<4x8x1x4xf32> to vector<4x8x8x4xf32>
    %84 = arith.subf %80, %83 : vector<4x8x8x4xf32>
    %85 = math.exp %84 : vector<4x8x8x4xf32>
    %cst_100 = arith.constant dense<0xFF800000> : vector<4x8x4xf32>
    %86 = vector.multi_reduction <maximumf>, %80, %cst_100 [1] : vector<4x8x8x4xf32> to vector<4x8x4xf32>
    %87 = vector.shape_cast %86 : vector<4x8x4xf32> to vector<4x1x8x4xf32>
    %88 = vector.broadcast %87 : vector<4x1x8x4xf32> to vector<4x8x8x4xf32>
    %89 = arith.subf %80, %88 : vector<4x8x8x4xf32>
    %90 = math.exp %89 : vector<4x8x8x4xf32>
    %cst_101 = arith.constant dense<0.000000e+00> : vector<4x8x4xf32>
    %91 = vector.multi_reduction <add>, %85, %cst_101 [2] : vector<4x8x8x4xf32> to vector<4x8x4xf32>
    %92 = vector.shape_cast %91 : vector<4x8x4xf32> to vector<32x4xf32>
    %cst_102 = arith.constant dense<0.000000e+00> : vector<4x8x4xf32>
    %93 = vector.multi_reduction <add>, %90, %cst_102 [1] : vector<4x8x8x4xf32> to vector<4x8x4xf32>
    %94 = vector.shape_cast %93 : vector<4x8x4xf32> to vector<32x4xf32>
    %c0_103 = arith.constant 0 : index
    %c0_104 = arith.constant 0 : index
    %95 = vector.load %arg11[%c0_103, %c0_104] : memref<4x32xf32, #tpu.memory_space<vmem>>, vector<4x32xf32>
    %96 = vector.shape_cast %15 : vector<32x32xf32> to vector<4x1x8x32xf32>
    %97 = vector.shape_cast %96 : vector<4x1x8x32xf32> to vector<4x1x8x32xf32>
    %98 = vector.broadcast %97 : vector<4x1x8x32xf32> to vector<4x8x8x32xf32>
    %99 = vector.shape_cast %98 : vector<4x8x8x32xf32> to vector<256x32xf32>
    %100 = vector.shape_cast %13 : vector<32x32xf32> to vector<4x8x1x32xf32>
    %101 = vector.shape_cast %100 : vector<4x8x1x32xf32> to vector<4x8x1x32xf32>
    %102 = vector.broadcast %101 : vector<4x8x1x32xf32> to vector<4x8x8x32xf32>
    %103 = vector.shape_cast %102 : vector<4x8x8x32xf32> to vector<256x32xf32>
    %104 = vector.shape_cast %85 : vector<4x8x8x4xf32> to vector<256x4xf32>
    %cst_105 = arith.constant dense<0.000000e+00> : vector<256x32xf32>
    %105 = tpu.matmul %104, %95, %cst_105 {dimension_numbers = #tpu.dot_dimension_numbers<[1], [0], [0], [1], [0, 0, 1, 1], [], []>} : vector<256x4xf32>, vector<4x32xf32>, vector<256x32xf32> -> vector<256x32xf32>
    %106 = arith.mulf %105, %99 : vector<256x32xf32>
    %107 = vector.shape_cast %90 : vector<4x8x8x4xf32> to vector<256x4xf32>
    %cst_106 = arith.constant dense<0.000000e+00> : vector<256x32xf32>
    %108 = tpu.matmul %107, %95, %cst_106 {dimension_numbers = #tpu.dot_dimension_numbers<[1], [0], [0], [1], [0, 0, 1, 1], [], []>} : vector<256x4xf32>, vector<4x32xf32>, vector<256x32xf32> -> vector<256x32xf32>
    %109 = arith.mulf %108, %103 : vector<256x32xf32>
    %110 = vector.shape_cast %106 : vector<256x32xf32> to vector<32x8x32xf32>
    %cst_107 = arith.constant dense<0.000000e+00> : vector<32x32xf32>
    %111 = vector.multi_reduction <add>, %110, %cst_107 [1] : vector<32x8x32xf32> to vector<32x32xf32>
    %112 = vector.shape_cast %109 : vector<256x32xf32> to vector<4x8x8x32xf32>
    %cst_108 = arith.constant dense<0.000000e+00> : vector<4x8x32xf32>
    %113 = vector.multi_reduction <add>, %112, %cst_108 [1] : vector<4x8x8x32xf32> to vector<4x8x32xf32>
    %114 = vector.shape_cast %113 : vector<4x8x32xf32> to vector<32x32xf32>
    %115 = tpu.reciprocal %92 {approx = true} : vector<32x4xf32> -> vector<32x4xf32>
    %cst_109 = arith.constant dense<0.000000e+00> : vector<32x32xf32>
    %116 = tpu.matmul %115, %95, %cst_109 {dimension_numbers = #tpu.dot_dimension_numbers<[1], [0], [0], [1], [0, 0, 1, 1], [], []>} : vector<32x4xf32>, vector<4x32xf32>, vector<32x32xf32> -> vector<32x32xf32>
    %117 = tpu.reciprocal %94 {approx = true} : vector<32x4xf32> -> vector<32x4xf32>
    %cst_110 = arith.constant dense<0.000000e+00> : vector<32x32xf32>
    %118 = tpu.matmul %117, %95, %cst_110 {dimension_numbers = #tpu.dot_dimension_numbers<[1], [0], [0], [1], [0, 0, 1, 1], [], []>} : vector<32x4xf32>, vector<4x32xf32>, vector<32x32xf32> -> vector<32x32xf32>
    %119 = arith.mulf %111, %116 : vector<32x32xf32>
    %120 = arith.mulf %114, %118 : vector<32x32xf32>
    %121 = arith.addf %119, %13 : vector<32x32xf32>
    %cst_111 = arith.constant 1.000000e-01 : f32
    %122 = vector.broadcast %cst_111 : f32 to vector<32x32xf32>
    %123 = arith.mulf %122, %121 : vector<32x32xf32>
    %124 = arith.maximumf %121, %123 : vector<32x32xf32>
    %125 = arith.addf %124, %1 : vector<32x32xf32>
    %126 = arith.addf %120, %15 : vector<32x32xf32>
    %cst_112 = arith.constant 1.000000e-01 : f32
    %127 = vector.broadcast %cst_112 : f32 to vector<32x32xf32>
    %128 = arith.mulf %127, %126 : vector<32x32xf32>
    %129 = arith.maximumf %126, %128 : vector<32x32xf32>
    %130 = arith.addf %129, %3 : vector<32x32xf32>
    %131 = vector.shape_cast %125 : vector<32x32xf32> to vector<4x8x32xf32>
    %c0_113 = arith.constant 0 : index
    %c0_114 = arith.constant 0 : index
    %c0_115 = arith.constant 0 : index
    %132 = vector.load %arg12[%c0_113, %c0_114, %c0_115] : memref<4x16x32xf32, #tpu.memory_space<vmem>>, vector<4x8x32xf32>
    tpu.vector_store %arg12[%c0_113, %c0_114, %c0_115], %131 {strides = array<i32>} : memref<4x16x32xf32, #tpu.memory_space<vmem>>, vector<4x8x32xf32>,
    %133 = vector.shape_cast %130 : vector<32x32xf32> to vector<4x8x32xf32>
    %c0_116 = arith.constant 0 : index
    %c8 = arith.constant 8 : index
    %c0_117 = arith.constant 0 : index
    %134 = vector.load %arg12[%c0_116, %c8, %c0_117] : memref<4x16x32xf32, #tpu.memory_space<vmem>>, vector<4x8x32xf32>
    tpu.vector_store %arg12[%c0_116, %c8, %c0_117], %133 {strides = array<i32>} : memref<4x16x32xf32, #tpu.memory_space<vmem>>, vector<4x8x32xf32>,
    return
  }
  func.func @transform_0(%arg0: i32) -> (i32, i32, i32) {
    %c0_i32 = arith.constant 0 : i32
    %c0_i32_0 = arith.constant 0 : i32
    %c0_i32_1 = arith.constant 0 : i32
    return %arg0, %c0_i32, %c0_i32_0 : i32, i32, i32
  }
  func.func @transform_1(%arg0: i32) -> (i32, i32, i32) {
    %c0_i32 = arith.constant 0 : i32
    %c0_i32_0 = arith.constant 0 : i32
    %c0_i32_1 = arith.constant 0 : i32
    return %arg0, %c0_i32, %c0_i32_0 : i32, i32, i32
  }
  func.func @transform_2(%arg0: i32) -> (i32, i32, i32) {
    %c0_i32 = arith.constant 0 : i32
    %c0_i32_0 = arith.constant 0 : i32
    %c0_i32_1 = arith.constant 0 : i32
    return %arg0, %c0_i32, %c0_i32_0 : i32, i32, i32
  }
  func.func @transform_3(%arg0: i32) -> (i32, i32) {
    %c0_i32 = arith.constant 0 : i32
    %c0_i32_0 = arith.constant 0 : i32
    %c0_i32_1 = arith.constant 0 : i32
    return %c0_i32, %c0_i32_0 : i32, i32
  }
  func.func @transform_4(%arg0: i32) -> (i32, i32) {
    %c0_i32 = arith.constant 0 : i32
    %c0_i32_0 = arith.constant 0 : i32
    %c0_i32_1 = arith.constant 0 : i32
    return %c0_i32, %c0_i32_0 : i32, i32
  }
  func.func @transform_5(%arg0: i32) -> (i32, i32) {
    %c0_i32 = arith.constant 0 : i32
    %c0_i32_0 = arith.constant 0 : i32
    %c0_i32_1 = arith.constant 0 : i32
    return %c0_i32, %c0_i32_0 : i32, i32
  }
  func.func @transform_6(%arg0: i32) -> (i32, i32) {
    %c0_i32 = arith.constant 0 : i32
    %c0_i32_0 = arith.constant 0 : i32
    %c0_i32_1 = arith.constant 0 : i32
    return %c0_i32, %c0_i32_0 : i32, i32
  }
  func.func @transform_7(%arg0: i32) -> (i32, i32) {
    %c0_i32 = arith.constant 0 : i32
    %c0_i32_0 = arith.constant 0 : i32
    %c0_i32_1 = arith.constant 0 : i32
    return %c0_i32, %c0_i32_0 : i32, i32
  }
  func.func @transform_8(%arg0: i32) -> (i32, i32) {
    %c0_i32 = arith.constant 0 : i32
    %c0_i32_0 = arith.constant 0 : i32
    %c0_i32_1 = arith.constant 0 : i32
    return %c0_i32, %c0_i32_0 : i32, i32
  }
  func.func @transform_9(%arg0: i32) -> (i32, i32) {
    %c0_i32 = arith.constant 0 : i32
    %c0_i32_0 = arith.constant 0 : i32
    %c0_i32_1 = arith.constant 0 : i32
    return %c0_i32, %c0_i32_0 : i32, i32
  }
  func.func @transform_10(%arg0: i32) -> (i32, i32) {
    %c0_i32 = arith.constant 0 : i32
    %c0_i32_0 = arith.constant 0 : i32
    %c0_i32_1 = arith.constant 0 : i32
    return %c0_i32, %c0_i32_0 : i32, i32
  }
  func.func @transform_11(%arg0: i32) -> (i32, i32, i32) {
    %c0_i32 = arith.constant 0 : i32
    %c0_i32_0 = arith.constant 0 : i32
    %c0_i32_1 = arith.constant 0 : i32
    return %arg0, %c0_i32, %c0_i32_0 : i32, i32, i32
  }
  func.func @transform_12(%arg0: i32) -> (i32, i32, i32) {
    %c0_i32 = arith.constant 0 : i32
    %c0_i32_0 = arith.constant 0 : i32
    %c0_i32_1 = arith.constant 0 : i32
    return %arg0, %c0_i32, %c0_i32_0 : i32, i32, i32
  }
}

</mosaic_0001>

<bundles_post_ra>
// kernel: tpu_custom_call.1
= control target key start
LH: loop header
LB: loop body
LE: loop exit
PB: predicated region body
PF: predicated region fallthrough
CT: control target
= control target key end

     0   :  { %vm85_vm0 = vcmask 261120   ;;  %vm382_vm1 = vcmask 1043456   ;;  %s10423_s0 = inlined_call_operand.vmem [shape: f32[4,8,32], index: 0, kind: input, shape index: {}]   ;;  %s10424_s1 = inlined_call_operand.vmem [shape: f32[4,8,32], index: 1, kind: input, shape index: {}]   ;;  %s10425_s2 = inlined_call_operand.vmem [shape: f32[4,64,4], index: 2, kind: input, shape index: {}]   ;;  %s10426_s3 = inlined_call_operand.vmem [shape: f32[32,48], index: 3, kind: input, shape index: {}]   ;;  %s10427_s4 = inlined_call_operand.vmem [shape: f32[32,48], index: 4, kind: input, shape index: {}]   ;;  %s10428_s5 = inlined_call_operand.vmem [shape: f32[4,16], index: 5, kind: input, shape index: {}]   ;;  %s10429_s6 = inlined_call_operand.vmem [shape: f32[1,16], index: 6, kind: input, shape index: {}]   ;;  %s10430_s7 = inlined_call_operand.vmem [shape: f32[144,16], index: 7, kind: input, shape index: {}]   ;;  %s10431_s8 = inlined_call_operand.vmem [shape: f32[1,16], index: 8, kind: input, shape index: {}]   ;;  %s10432_s9 = inlined_call_operand.vmem [shape: f32[16,4], index: 9, kind: input, shape index: {}]   ;;  %s10433_s10 = inlined_call_operand.vmem [shape: f32[4,32], index: 10, kind: input, shape index: {}]   ;;  %s10434_s11 = inlined_call_operand.hbm [shape: f32[4,16,32], index: 11, kind: output, shape index: {0}]   ;;  %s10435_s12 = inlined_call_operand.vmem [shape: f32[4,64,16], index: 12, kind: output, shape index: {1}]  }
   0x1   :  { %v81_v0 = vld [vmem:[%s10426_s3] sm:$0xff]  ;;  %v82_v1 = vld [vmem:[%s10426_s3 + $0x8] sm:$0xff]  ;;  %v83_v2 = vld [vmem:[%s10426_s3 + $0x10] sm:$0xff] }
   0x2   :  { %v6891_v3 = vpack.c.bf16 %v82_v1, %v81_v0  ;;  %v84_v4 = vld [vmem:[%s10426_s3 + $0x18] sm:$0xff]  ;;  %v41_v5 = vld [vmem:[%s10423_s0] sm:$0xff]  ;;  %v184_v8 = vld [vmem:[%s10427_s4 + $0x8] sm:$0xff] }
   0x3   :  { %v6895_v6 = vpack.c.bf16 %v84_v4, %v83_v2  ;;  %6653 = vmatprep.mubr.msk.f32.mxu0 %vm85_vm0, %v41_v5  ;;  %v183_v7 = vld [vmem:[%s10427_s4] sm:$0xff]  ;;  %v185_v10 = vld [vmem:[%s10427_s4 + $0x10] sm:$0xff]  ;;  %v186_v11 = vld [vmem:[%s10427_s4 + $0x18] sm:$0xff] }
   0x4   :  { %6892 = vmatprep.subr.bf16.mxu0 %v6891_v3  ;;  %v6899_v9 = vpack.c.bf16 %v184_v8, %v183_v7  ;;  %v42_v12 = vld [vmem:[%s10423_s0 + $0x8] sm:$0xff]  ;;  %v43_v13 = vld [vmem:[%s10423_s0 + $0x10] sm:$0xff]  ;;  %v6903_v14 = vpack.c.bf16 %v186_v11, %v185_v10  ;;  %v44_v15 = vld [vmem:[%s10423_s0 + $0x18] sm:$0xff] }
   0x5   :  { %6894 = vmatpush3.bf16.msra.mxu0 %v6891_v3  ;;  %v45_v16 = vld [vmem:[%s10424_s1] sm:$0xff]  ;;  %v46_v18 = vld [vmem:[%s10424_s1 + $0x8] sm:$0xff] }
   0x6   :  { %6896 = vmatprep.subr.bf16.mxu0 %v6895_v6  ;;  %v284_v17 = vld [vmem:[%s10428_s5] sm:$0xf] }
   0x9   :  { %6898 = vmatpush3.bf16.msra.mxu0 %v6895_v6 }
   0xa   :  { %6900 = vmatprep.subr.bf16.mxu0 %v6899_v9 }
   0xc   :  { %6654 = vmatmul.mubr.msk.f32.vlgmr.msra.gmra.mrb[0].mxu0 %vm85_vm0, %v42_v12 }
   0xd   :  { %6902 = vmatpush3.bf16.msra.mxu0 %v6899_v9  ;;  %6656 = vmatprep.mubr.msk.f32.mxu0 %vm85_vm0, %v43_v13 }
   0xe   :  { %6904 = vmatprep.subr.bf16.mxu0 %v6903_v14 }
  0x10   :  { %6657 = vmatmul.mubr.msk.f32.gmra.mrb[2].mxu0 %vm85_vm0, %v44_v15 }
  0x11   :  { %6906 = vmatpush3.bf16.msra.mxu0 %v6903_v14  ;;  %6667 = vmatprep.mubr.msk.f32.mxu0 %vm85_vm0, %v45_v16 }
  0x12   :  { %18 = vsyncpa [#allocation5], 0  ;;  %6673 = vmatprep.subr.msk.mxu0 %vm382_vm1, %v284_v17  ;;  %v47_v19 = vld [vmem:[%s10424_s1 + $0x10] sm:$0xff]  ;;  %v48_v20 = vld [vmem:[%s10424_s1 + $0x18] sm:$0xff]  ;;  %vm285_vm2 = vcmask 31744   ;;  %vm1138_vm3 = vcmask 130048   ;;  %v619_v2 = vlaneseq }
  0x13   :  { %v49_v21 = vld [vmem:[%s10425_s2] sm:$0xff]  ;;  %v50_v22 = vld [vmem:[%s10425_s2 + $0x8] sm:$0xff]  ;;  %v51_v23 = vld [vmem:[%s10425_s2 + $0x10] sm:$0xff]  ;;  %vm1140_vm4 = vcmask 123904   ;;  %v7185_v53 = vmov 0.0   ;;  %s7187_s3 = smov 32  }
  0x14   :  { %6668 = vmatmul.mubr.msk.f32.vlgmr.msra.gmra.mrb[4].mxu0 %vm85_vm0, %v46_v18  ;;  %v52_v24 = vld [vmem:[%s10425_s2 + $0x18] sm:$0xff]  ;;  %v53_v25 = vld [vmem:[%s10425_s2 + $0x20] sm:$0xff]  ;;  %v54_v26 = vld [vmem:[%s10425_s2 + $0x28] sm:$0xff]  ;;  %1139 = vst.msk [vmem:[#allocation2] sm:$0xff] %vm1138_vm3, %v7185_v53  ;;  %s7188_s17 = smov 96   ;;  %s7189_s18 = smov 112  }
  0x15   :  { %6674 = vmatpush3.msk.msra.mxu0 %vm382_vm1, %v284_v17  ;;  %6670 = vmatprep.mubr.msk.f32.mxu0 %vm85_vm0, %v47_v19  ;;  %v55_v27 = vld [vmem:[%s10425_s2 + $0x30] sm:$0xff]  ;;  %v56_v28 = vld [vmem:[%s10425_s2 + $0x38] sm:$0xff]  ;;  %v57_v29 = vld [vmem:[%s10425_s2 + $0x40] sm:$0xff]  ;;  %1141 = vst.msk [vmem:[#allocation2 + $0x8] sm:$0x3] %vm1140_vm4, %v7185_v53  ;;  %vm1158_vm5 = vcmask 122880  }
  0x16   :  { %v58_v30 = vld [vmem:[%s10425_s2 + $0x48] sm:$0xff]  ;;  %v59_v31 = vld [vmem:[%s10425_s2 + $0x50] sm:$0xff]  ;;  %v60_v32 = vld [vmem:[%s10425_s2 + $0x58] sm:$0xff]  ;;  %1142 = vst.msk [vmem:[#allocation2 + $0xa0] sm:$0xff] %vm1138_vm3, %v7185_v53  ;;  %v7190_v0 = vmov 1966171168  }
  0x17   :  { %v61_v33 = vld [vmem:[%s10425_s2 + $0x60] sm:$0xff]  ;;  %v62_v34 = vld [vmem:[%s10425_s2 + $0x68] sm:$0xff]  ;;  %v63_v35 = vld [vmem:[%s10425_s2 + $0x70] sm:$0xff]  ;;  %1143 = vst.msk [vmem:[#allocation2 + $0xa8] sm:$0x3] %vm1140_vm4, %v7185_v53  ;;  %v617_v1 = vunpack.c.l.s4 %v7190_v0  ;;  %v620_v4 = vshrl.u32 %v619_v2, 7 }
  0x18   :  { %6671 = vmatmul.mubr.msk.f32.gmra.mrb[6].mxu0 %vm85_vm0, %v48_v20  ;;  %v64_v36 = vld [vmem:[%s10425_s2 + $0x78] sm:$0xff]  ;;  %v65_v37 = vld [vmem:[%s10425_s2 + $0x80] sm:$0xff]  ;;  %v66_v38 = vld [vmem:[%s10425_s2 + $0x88] sm:$0xff]  ;;  %1144 = vst.msk [vmem:[#allocation2 + $0x140] sm:$0xff] %vm1138_vm3, %v7185_v53  ;;  %vm1479_vm6 = vcmask 261248   ;;  %vm1672_vm7 = vcmask 392448  }
  0x19   :  { %6675 = vmatprep.mubr.msk.f32.mxu0 %vm285_vm2, %v49_v21  ;;  %v67_v39 = vld [vmem:[%s10425_s2 + $0x90] sm:$0xff]  ;;  %v68_v40 = vld [vmem:[%s10425_s2 + $0x98] sm:$0xff]  ;;  %v69_v41 = vld [vmem:[%s10425_s2 + $0xa0] sm:$0xff]  ;;  %1145 = vst.msk [vmem:[#allocation2 + $0x148] sm:$0x3] %vm1140_vm4, %v7185_v53  ;;  %v618_v3 = vunpack.c.0.s8 %v617_v1  ;;  %s7192_s25 = smov 64  }
  0x1a   :  { %v70_v42 = vld [vmem:[%s10425_s2 + $0xa8] sm:$0xff]  ;;  %v71_v43 = vld [vmem:[%s10425_s2 + $0xb0] sm:$0xff]  ;;  %v72_v44 = vld [vmem:[%s10425_s2 + $0xb8] sm:$0xff]  ;;  %1146 = vst.msk [vmem:[#allocation2 + $0x1e0] sm:$0xff] %vm1138_vm3, %v7185_v53  ;;  %s7194_s29 = smov 80   ;;  %vm1865_vm8 = vcmask 523648  }
  0x1b   :  { %v73_v45 = vld [vmem:[%s10425_s2 + $0xc0] sm:$0xff]  ;;  %v74_v46 = vld [vmem:[%s10425_s2 + $0xc8] sm:$0xff]  ;;  %v75_v47 = vld [vmem:[%s10425_s2 + $0xd0] sm:$0xff]  ;;  %1147 = vst.msk [vmem:[#allocation2 + $0x1e8] sm:$0x3] %vm1140_vm4, %v7185_v53  ;;  %v7624_v7 = vsub.s32 %v618_v3, %v620_v4  ;;  %vm2058_vm9 = vcmask 654848  }
  0x1c   :  { %6676 = vmatmul.mubr.msk.f32.vlgmr.msra.gmra.mrb[8].mxu0 %vm285_vm2, %v50_v22  ;;  %v76_v48 = vld [vmem:[%s10425_s2 + $0xd8] sm:$0xff]  ;;  %v77_v49 = vld [vmem:[%s10425_s2 + $0xe0] sm:$0xff]  ;;  %v78_v50 = vld [vmem:[%s10425_s2 + $0xe8] sm:$0xff]  ;;  %1149 = vst.msk [vmem:[#allocation2 + $0x90] sm:$0xff] %vm1138_vm3, %v7185_v53  ;;  %vm2251_vm10 = vcmask 786048   ;;  %vm2445_vm11 = vcmask 917248  }
  0x1d   :  { %6678 = vmatprep.mubr.msk.f32.mxu0 %vm285_vm2, %v51_v23  ;;  %v79_v51 = vld [vmem:[%s10425_s2 + $0xf0] sm:$0xff]  ;;  %v80_v52 = vld [vmem:[%s10425_s2 + $0xf8] sm:$0xff]  ;;  %1150 = vst.msk [vmem:[#allocation2 + $0x98] sm:$0x3] %vm1140_vm4, %v7185_v53  ;;  %1152 = vst.msk [vmem:[#allocation2 + $0x138] sm:$0x3] %vm1140_vm4, %v7185_v53 }
  0x1e   :  { %1151 = vst.msk [vmem:[#allocation2 + $0x130] sm:$0xff] %vm1138_vm3, %v7185_v53  ;;  %1153 = vst.msk [vmem:[#allocation2 + $0x1d0] sm:$0xff] %vm1138_vm3, %v7185_v53  ;;  %v1319_v54 = vld [vmem:[#allocation2 + $0x1] sm:$0xff]  ;;  %s7186_s2 = smov 16   ;;  %vm2638_vm12 = vcmask 1048448   ;;  %vm5526_vm13 = vcmask 1041409  }
  0x1f   :  { %1154 = vst.msk [vmem:[#allocation2 + $0x1d8] sm:$0x3] %vm1140_vm4, %v7185_v53  ;;  %1156 = vst.msk [vmem:[#allocation2 + $0x278] sm:$0x3] %vm1140_vm4, %v7185_v53  ;;  %1383 = vrot.lane.b32.xlu0 %v1319_v54, %s7186_s2  ;;  %v1512_v55 = vld [vmem:[#allocation2 + $0x2] sm:$0xff]  ;;  %vm5528_vm14 = vcmask 1042434  }
  0x20   :  { %6679 = vmatmul.mubr.msk.f32.gmra.mrb[10].mxu0 %vm285_vm2, %v52_v24  ;;  %1155 = vst.msk [vmem:[#allocation2 + $0x270] sm:$0xff] %vm1138_vm3, %v7185_v53  ;;  %v1327_v56 = vld [vmem:[#allocation2 + $0xa1] sm:$0xff]  ;;  %v7649_v24 = vsub.s32 0, %v620_v4  ;;  %vm5530_vm15 = vcmask 1043459   ;;  %vm5534_vm4 = vcmask 1045509   ;;  %s7195_s13 = smov [#allocation4]  }
  0x21   :  { %6681 = vmatprep.mubr.msk.f32.mxu0 %vm285_vm2, %v53_v25  ;;  %1399 = vrot.lane.b32.xlu1 %v1327_v56, %s7186_s2  ;;  %v1520_v58 = vld [vmem:[#allocation2 + $0xa2] sm:$0xff]  ;;  %1160 = vst.msk [vmem:[#allocation2 + $0x20] sm:$0x1] %vm1158_vm5, %v7185_v53  ;;  %1159 = vst.msk [vmem:[#allocation2 + $0x10] sm:$0x1] %vm1158_vm5, %v7185_v53  ;;  %s6288_s14 = sshll.u32 %s7195_s13, 4  ;;  %s6289_s14 = int_to_ptr.vmem [resolvable:$true] %s6288_s14 }
  0x22   :  { %v1335_v60 = vld [vmem:[#allocation2 + $0x141] sm:$0xff]  ;;  %1161 = vst.msk [vmem:[#allocation2 + $0x30] sm:$0x1] %vm1158_vm5, %v7185_v53  ;;  %1162 = vst.msk [vmem:[#allocation2 + $0x40] sm:$0x1] %vm1158_vm5, %v7185_v53  ;;  %p7166_p1 = scmp.lt.s32.totalorder %s6289_s14, %s6289_s14 }
  0x23   :  { %1576 = vrot.lane.b32.xlu0 %v1512_v55, %s7187_s3  ;;  %v2292_v57 = vld [vmem:[#allocation2 + $0x90] sm:$0xff]  ;;  %1163 = vst.msk [vmem:[#allocation2 + $0x50] sm:$0x1] %vm1158_vm5, %v7185_v53  ;;  %1164 = vst.msk [vmem:[#allocation2 + $0x60] sm:$0x1] %vm1158_vm5, %v7185_v53  ;;  %v1528_v62 = vld [vmem:[#allocation2 + $0x142] sm:$0xff] }
  0x24   :  { %6682 = vmatmul.mubr.msk.f32.gmra.mrb[12].mxu0 %vm285_vm2, %v54_v26  ;;  %v2485_v59 = vld [vmem:[#allocation2 + $0x91] sm:$0xff]  ;;  %1165 = vst.msk [vmem:[#allocation2 + $0x70] sm:$0x1] %vm1158_vm5, %v7185_v53  ;;  %1166 = vst.msk [vmem:[#allocation2 + $0x80] sm:$0x1] %vm1158_vm5, %v7185_v53  ;;  %v1255_v5 = vld [vmem:[#allocation2] sm:$0xff] }
  0x25   :  { %6684 = vmatprep.mubr.msk.f32.mxu0 %vm285_vm2, %v55_v27  ;;  %1592 = vrot.lane.b32.xlu1 %v1520_v58, %s7187_s3  ;;  %v2300_v61 = vld [vmem:[#allocation2 + $0x130] sm:$0xff]  ;;  %1167 = vst.msk [vmem:[#allocation2 + $0xb0] sm:$0x1] %vm1158_vm5, %v7185_v53  ;;  %1168 = vst.msk [vmem:[#allocation2 + $0xc0] sm:$0x1] %vm1158_vm5, %v7185_v53  ;;  %v1263_v12 = vld [vmem:[#allocation2 + $0xa0] sm:$0xff] }
  0x26   :  { %1169 = vst.msk [vmem:[#allocation2 + $0xd0] sm:$0x1] %vm1158_vm5, %v7185_v53  ;;  %1170 = vst.msk [vmem:[#allocation2 + $0xe0] sm:$0x1] %vm1158_vm5, %v7185_v53  ;;  %v2493_v63 = vld [vmem:[#allocation2 + $0x131] sm:$0xff]  ;;  %v1271_v25 = vld [vmem:[#allocation2 + $0x140] sm:$0xff] }
  0x27   :  { %2363 = vrot.lane.b32.xlu0 %v2292_v57, %s7188_s17  ;;  %1171 = vst.msk [vmem:[#allocation2 + $0xf0] sm:$0x1] %vm1158_vm5, %v7185_v53  ;;  %1172 = vst.msk [vmem:[#allocation2 + $0x100] sm:$0x1] %vm1158_vm5, %v7185_v53 }
  0x28   :  { %6685 = vmatmul.mubr.msk.f32.gmra.mrb[14].mxu0 %vm285_vm2, %v56_v28  ;;  %1173 = vst.msk [vmem:[#allocation2 + $0x110] sm:$0x1] %vm1158_vm5, %v7185_v53  ;;  %1174 = vst.msk [vmem:[#allocation2 + $0x120] sm:$0x1] %vm1158_vm5, %v7185_v53 }
  0x29   :  { %6687 = vmatprep.mubr.msk.f32.mxu0 %vm285_vm2, %v57_v29  ;;  %1415 = vrot.lane.b32.xlu1 %v1335_v60, %s7186_s2  ;;  %1175 = vst.msk [vmem:[#allocation2 + $0x150] sm:$0x1] %vm1158_vm5, %v7185_v53  ;;  %1176 = vst.msk [vmem:[#allocation2 + $0x160] sm:$0x1] %vm1158_vm5, %v7185_v53 }
  0x2a   :  { %1177 = vst.msk [vmem:[#allocation2 + $0x170] sm:$0x1] %vm1158_vm5, %v7185_v53  ;;  %1178 = vst.msk [vmem:[#allocation2 + $0x180] sm:$0x1] %vm1158_vm5, %v7185_v53 }
  0x2b   :  { %2556 = vrot.lane.b32.xlu0 %v2485_v59, %s7189_s18  ;;  %1179 = vst.msk [vmem:[#allocation2 + $0x190] sm:$0x1] %vm1158_vm5, %v7185_v53  ;;  %1180 = vst.msk [vmem:[#allocation2 + $0x1a0] sm:$0x1] %vm1158_vm5, %v7185_v53 }
  0x2c   :  { %6688 = vmatmul.mubr.msk.f32.gmra.mrb[16].mxu0 %vm285_vm2, %v58_v30  ;;  %1181 = vst.msk [vmem:[#allocation2 + $0x1b0] sm:$0x1] %vm1158_vm5, %v7185_v53  ;;  %1182 = vst.msk [vmem:[#allocation2 + $0x1c0] sm:$0x1] %vm1158_vm5, %v7185_v53 }
  0x2d   :  { %6690 = vmatprep.mubr.msk.f32.mxu0 %vm285_vm2, %v59_v31  ;;  %1183 = vst.msk [vmem:[#allocation2 + $0x1f0] sm:$0x1] %vm1158_vm5, %v7185_v53  ;;  %1184 = vst.msk [vmem:[#allocation2 + $0x200] sm:$0x1] %vm1158_vm5, %v7185_v53  ;;  %1608 = vrot.lane.b32.xlu1 %v1528_v62, %s7187_s3 }
  0x2e   :  { %1185 = vst.msk [vmem:[#allocation2 + $0x210] sm:$0x1] %vm1158_vm5, %v7185_v53  ;;  %1186 = vst.msk [vmem:[#allocation2 + $0x220] sm:$0x1] %vm1158_vm5, %v7185_v53 }
  0x2f   :  { %2379 = vrot.lane.b32.xlu0 %v2300_v61, %s7188_s17  ;;  %1187 = vst.msk [vmem:[#allocation2 + $0x230] sm:$0x1] %vm1158_vm5, %v7185_v53  ;;  %1188 = vst.msk [vmem:[#allocation2 + $0x240] sm:$0x1] %vm1158_vm5, %v7185_v53 }
  0x30   :  { %6691 = vmatmul.mubr.msk.f32.gmra.mrb[18].mxu0 %vm285_vm2, %v60_v32  ;;  %1189 = vst.msk [vmem:[#allocation2 + $0x250] sm:$0x1] %vm1158_vm5, %v7185_v53  ;;  %1190 = vst.msk [vmem:[#allocation2 + $0x260] sm:$0x1] %vm1158_vm5, %v7185_v53 }
  0x31   :  { %6693 = vmatprep.mubr.msk.f32.mxu0 %vm285_vm2, %v61_v33  ;;  %1191 = vst.msk [vmem:[#allocation2 + $0x19] sm:$0x1] %vm1158_vm5, %v7185_v53  ;;  %1192 = vst.msk [vmem:[#allocation2 + $0x29] sm:$0x1] %vm1158_vm5, %v7185_v53 }
  0x32   :  { %1193 = vst.msk [vmem:[#allocation2 + $0x39] sm:$0x1] %vm1158_vm5, %v7185_v53  ;;  %1194 = vst.msk [vmem:[#allocation2 + $0x49] sm:$0x1] %vm1158_vm5, %v7185_v53 }
  0x33   :  { %1195 = vst.msk [vmem:[#allocation2 + $0x59] sm:$0x1] %vm1158_vm5, %v7185_v53  ;;  %1196 = vst.msk [vmem:[#allocation2 + $0x69] sm:$0x1] %vm1158_vm5, %v7185_v53  ;;  %2572 = vrot.lane.b32.xlu0 %v2493_v63, %s7189_s18 }
  0x34   :  { %6694 = vmatmul.mubr.msk.f32.gmra.mrb[20].mxu0 %vm285_vm2, %v62_v34  ;;  %1197 = vst.msk [vmem:[#allocation2 + $0x79] sm:$0x1] %vm1158_vm5, %v7185_v53  ;;  %1198 = vst.msk [vmem:[#allocation2 + $0x89] sm:$0x1] %vm1158_vm5, %v7185_v53 }
  0x35   :  { %6696 = vmatprep.mubr.msk.f32.mxu0 %vm285_vm2, %v63_v35  ;;  %1199 = vst.msk [vmem:[#allocation2 + $0xb9] sm:$0x1] %vm1158_vm5, %v7185_v53  ;;  %1200 = vst.msk [vmem:[#allocation2 + $0xc9] sm:$0x1] %vm1158_vm5, %v7185_v53 }
  0x36   :  { %1201 = vst.msk [vmem:[#allocation2 + $0xd9] sm:$0x1] %vm1158_vm5, %v7185_v53  ;;  %1202 = vst.msk [vmem:[#allocation2 + $0xe9] sm:$0x1] %vm1158_vm5, %v7185_v53 }
  0x37   :  { %1203 = vst.msk [vmem:[#allocation2 + $0xf9] sm:$0x1] %vm1158_vm5, %v7185_v53  ;;  %1204 = vst.msk [vmem:[#allocation2 + $0x109] sm:$0x1] %vm1158_vm5, %v7185_v53 }
  0x38   :  { %6697 = vmatmul.mubr.msk.f32.gmra.mrb[22].mxu0 %vm285_vm2, %v64_v36  ;;  %1205 = vst.msk [vmem:[#allocation2 + $0x119] sm:$0x1] %vm1158_vm5, %v7185_v53  ;;  %1206 = vst.msk [vmem:[#allocation2 + $0x129] sm:$0x1] %vm1158_vm5, %v7185_v53 }
  0x39   :  { %6699 = vmatprep.mubr.msk.f32.mxu0 %vm285_vm2, %v65_v37  ;;  %1207 = vst.msk [vmem:[#allocation2 + $0x159] sm:$0x1] %vm1158_vm5, %v7185_v53  ;;  %1208 = vst.msk [vmem:[#allocation2 + $0x169] sm:$0x1] %vm1158_vm5, %v7185_v53 }
  0x3a   :  { %1209 = vst.msk [vmem:[#allocation2 + $0x179] sm:$0x1] %vm1158_vm5, %v7185_v53  ;;  %1210 = vst.msk [vmem:[#allocation2 + $0x189] sm:$0x1] %vm1158_vm5, %v7185_v53 }
  0x3b   :  { %1211 = vst.msk [vmem:[#allocation2 + $0x199] sm:$0x1] %vm1158_vm5, %v7185_v53  ;;  %1212 = vst.msk [vmem:[#allocation2 + $0x1a9] sm:$0x1] %vm1158_vm5, %v7185_v53 }
  0x3c   :  { %6700 = vmatmul.mubr.msk.f32.gmra.mrb[24].mxu0 %vm285_vm2, %v66_v38  ;;  %1213 = vst.msk [vmem:[#allocation2 + $0x1b9] sm:$0x1] %vm1158_vm5, %v7185_v53  ;;  %1214 = vst.msk [vmem:[#allocation2 + $0x1c9] sm:$0x1] %vm1158_vm5, %v7185_v53 }
  0x3d   :  { %6702 = vmatprep.mubr.msk.f32.mxu0 %vm285_vm2, %v67_v39  ;;  %1215 = vst.msk [vmem:[#allocation2 + $0x1f9] sm:$0x1] %vm1158_vm5, %v7185_v53  ;;  %1216 = vst.msk [vmem:[#allocation2 + $0x209] sm:$0x1] %vm1158_vm5, %v7185_v53 }
  0x3e   :  { %1217 = vst.msk [vmem:[#allocation2 + $0x219] sm:$0x1] %vm1158_vm5, %v7185_v53  ;;  %1218 = vst.msk [vmem:[#allocation2 + $0x229] sm:$0x1] %vm1158_vm5, %v7185_v53 }
  0x3f   :  { %1219 = vst.msk [vmem:[#allocation2 + $0x239] sm:$0x1] %vm1158_vm5, %v7185_v53  ;;  %1220 = vst.msk [vmem:[#allocation2 + $0x249] sm:$0x1] %vm1158_vm5, %v7185_v53 }
  0x40   :  { %6703 = vmatmul.mubr.msk.f32.gmra.mrb[26].mxu0 %vm285_vm2, %v68_v40  ;;  %1221 = vst.msk [vmem:[#allocation2 + $0x259] sm:$0x1] %vm1158_vm5, %v7185_v53  ;;  %1222 = vst.msk [vmem:[#allocation2 + $0x269] sm:$0x1] %vm1158_vm5, %v7185_v53  ;;  %v7676_v40 = vld [vmem:[%s10429_s6] ss:$0 sm:$0xff] }
  0x41   :  { %6705 = vmatprep.mubr.msk.f32.mxu0 %vm285_vm2, %v69_v41  ;;  %1287 = vst.msk [vmem:[#allocation3] sm:$0xff] %vm1138_vm3, %v1255_v5  ;;  %1295 = vst.msk [vmem:[#allocation3 + $0x80] sm:$0xff] %vm1138_vm3, %v1263_v12  ;;  %s7191_s6 = smov 48   ;;  %vm5536_vm5 = vcmask 1046534  }
  0x42   :  { %1303 = vst.msk [vmem:[#allocation3 + $0x100] sm:$0xff] %vm1138_vm3, %v1271_v25 }
  0x44   :  { %6706 = vmatmul.mubr.msk.f32.gmra.mrb[28].mxu0 %vm285_vm2, %v70_v42 }
  0x45   :  { %6708 = vmatprep.mubr.msk.f32.mxu0 %vm285_vm2, %v71_v43 }
  0x48   :  { %6709 = vmatmul.mubr.msk.f32.gmra.mrb[30].mxu0 %vm285_vm2, %v72_v44 }
  0x49   :  { %6711 = vmatprep.mubr.msk.f32.mxu0 %vm285_vm2, %v73_v45 }
  0x4c   :  { %6712 = vmatmul.mubr.msk.f32.gmra.mrb[32].mxu0 %vm285_vm2, %v74_v46 }
  0x4d   :  { %6714 = vmatprep.mubr.msk.f32.mxu0 %vm285_vm2, %v75_v47 }
  0x50   :  { %6715 = vmatmul.mubr.msk.f32.gmra.mrb[34].mxu0 %vm285_vm2, %v76_v48 }
  0x51   :  { %6717 = vmatprep.mubr.msk.f32.mxu0 %vm285_vm2, %v77_v49 }
  0x54   :  { %6718 = vmatmul.mubr.msk.f32.gmra.mrb[36].mxu0 %vm285_vm2, %v78_v50 }
  0x55   :  { %6720 = vmatprep.mubr.msk.f32.mxu0 %vm285_vm2, %v79_v51 }
  0x58   :  { %6721 = vmatmul.mubr.msk.f32.gmra.mrb[38].mxu0 %vm285_vm2, %v80_v52 }
  0x91   :  { %v1384_v6 = vpop.permute.xlu0 %1383 }
  0x92   :  { %1480 = vst.msk [vmem:[#allocation3] sm:$0xff] %vm1479_vm6, %v1384_v6 }
  0x93   :  { %v1400_v14 = vpop.permute.xlu1 %1399 }
  0x94   :  { %1488 = vst.msk [vmem:[#allocation3 + $0x80] sm:$0xff] %vm1479_vm6, %v1400_v14 }
  0x95   :  { %v1577_v8 = vpop.permute.xlu0 %1576 }
  0x96   :  { %1673 = vst.msk [vmem:[#allocation3] sm:$0xff] %vm1672_vm7, %v1577_v8 }
  0x97   :  { %v1593_v20 = vpop.permute.xlu1 %1592 }
  0x98   :  { %1681 = vst.msk [vmem:[#allocation3 + $0x80] sm:$0xff] %vm1672_vm7, %v1593_v20 }
  0x9b   :  { %v1416_v31 = vpop.permute.xlu1 %1415 }
  0x9c   :  { %1496 = vst.msk [vmem:[#allocation3 + $0x100] sm:$0xff] %vm1479_vm6, %v1416_v31 }
  0x9f   :  { %v1609_v44 = vpop.permute.xlu1 %1608 }
  0xa0   :  { %1689 = vst.msk [vmem:[#allocation3 + $0x100] sm:$0xff] %vm1672_vm7, %v1609_v44 }
  0xdf   :  { %v7626_v9 = vpop.f32.mrb[0].mxu0 }
  0xe0   :  { %10479 = vst [vmem:[#allocation7_spill] sm:$0xff] %v7626_v9  ;;  %v7629_v10 = vpop.f32.mrb[1].mxu0  ;;  %v671_v33 = vrot.slane %v7626_v9, %v7624_v7  ;;  %v664_v35 = vcombine.high %v7626_v9, %v7626_v9 }
  0xe1   :  { %10480 = vst [vmem:[#allocation8_spill] sm:$0xff] %v7629_v10  ;;  %v622_v11 = vrot.slane %v7629_v10, %v7624_v7  ;;  %v615_v13 = vcombine.high %v7629_v10, %v7629_v10 }
  0xe2   :  { %v679_v47 = vcombine.high %v671_v33, %v671_v33  ;;  %v687_v49 = vrot.slane %v671_v33, %v7624_v7  ;;  %v678_v50 = vrot.slane %v664_v35, %v7624_v7 }
  0xe3   :  { %v7636_v15 = vpop.f32.mrb[2].mxu0  ;;  %v630_v16 = vcombine.high %v622_v11, %v622_v11  ;;  %v629_v19 = vrot.slane %v615_v13, %v7624_v7  ;;  %v638_v22 = vrot.slane %v622_v11, %v7624_v7 }
  0xe4   :  { %10481 = vst [vmem:[#allocation9_spill] sm:$0xff] %v7636_v15  ;;  %v7639_v17 = vpop.f32.mrb[3].mxu0  ;;  %v701_v63 = vrot.slane %v679_v47, %v7624_v7  ;;  %v709_v2 = vcombine.high %v687_v49, %v687_v49  ;;  %v680_v3 = vcombine.high %v678_v50, %v678_v50 }
  0xe5   :  { %10482 = vst [vmem:[#allocation10_spill] sm:$0xff] %v7639_v17  ;;  %v652_v18 = vrot.slane %v630_v16, %v7624_v7  ;;  %v631_v28 = vcombine.high %v629_v19, %v629_v19  ;;  %v660_v30 = vcombine.high %v638_v22, %v638_v22  ;;  %v7663_v34 = vrot.slane %v638_v22, %v7649_v24 }
  0xe6   :  { %v645_v43 = vrot.slane %v629_v19, %v7624_v7  ;;  %v7714_v22 = vrot.slane %v701_v63, %v7649_v24  ;;  %v7721_v35 = vrot.slane %v709_v2, %v7649_v24 }
  0xe7   :  { %v7643_v21 = vpop.f32.mrb[4].mxu0  ;;  %v7652_v26 = vrot.slane %v652_v18, %v7649_v24  ;;  %v662_v27 = vcombine.high %v652_v18, %v652_v18  ;;  %v659_v38 = vrot.slane %v631_v28, %v7624_v7  ;;  %v7681_v42 = vrot.slane %v660_v30, %v7649_v24 }
  0xe8   :  { %v7647_v23 = vpop.f32.mrb[5].mxu0  ;;  %v7697_v58 = vrot.slane %v645_v43, %v7649_v24  ;;  %v661_v59 = vcombine.high %v645_v43, %v645_v43  ;;  %10487 = vst [vmem:[#allocation15_spill] sm:$0xff] %v7714_v22  ;;  %v711_v28 = vcombine.high %v701_v63, %v701_v63  ;;  %10488 = vst [vmem:[#allocation16_spill] sm:$0xff] %v7721_v35 }
  0xe9   :  { %v972_v36 = vadd.f32 %v7652_v26, %v7647_v23  ;;  %v7670_v37 = vrot.slane %v662_v27, %v7649_v24  ;;  %v971_v41 = vadd.f32 %v7663_v34, %v7647_v23  ;;  %v7691_v53 = vrot.slane %v659_v38, %v7649_v24 }
  0xea   :  { %v663_v54 = vcombine.high %v659_v38, %v659_v38  ;;  %v973_v57 = vadd.f32 %v7681_v42, %v7647_v23  ;;  %v975_v14 = vadd.f32 %v7697_v58, %v7647_v23  ;;  %v7710_v16 = vrot.slane %v661_v59, %v7649_v24 }
  0xeb   :  { %v7655_v29 = vpop.f32.mrb[6].mxu0  ;;  %10483 = vst [vmem:[#allocation11_spill] sm:$0xff] %v7670_v37  ;;  %v974_v52 = vadd.f32 %v7670_v37, %v7647_v23  ;;  %10484 = vst [vmem:[#allocation12_spill] sm:$0xff] %v7691_v53  ;;  %v976_v6 = vadd.f32 %v7691_v53, %v7647_v23  ;;  %v7727_v43 = vrot.slane %v680_v3, %v7624_v7 }
  0xec   :  { %v7657_v32 = vpop.f32.mrb[7].mxu0  ;;  %v7704_v8 = vrot.slane %v663_v54, %v7649_v24  ;;  %10486 = vst [vmem:[#allocation14_spill] sm:$0xff] %v7710_v16  ;;  %v980_v47 = vadd.f32 %v7643_v21, %v7714_v22  ;;  %v7737_v54 = vrot.slane %v711_v28, %v7649_v24  ;;  %v2799_v28 = vld [vmem:[%s10430_s7] sm:$0xff] }
  0xee   :  { %10485 = vst [vmem:[#allocation13_spill] sm:$0xff] %v7704_v8  ;;  %v978_v33 = vadd.f32 %v7704_v8, %v7647_v23  ;;  %10490 = vst [vmem:[#allocation18_spill] sm:$0xff] %v7737_v54 }
  0xef   :  { %v6677_v39 = vpop.f32.mrb[8].mxu0 }
  0xf0   :  { %v1004_v45 = vadd.f32 %v6677_v39, %v972_v36  ;;  %v452_v46 = vpop.f32.mrb[9].mxu0 }
  0xf1   :  { %v1003_v48 = vadd.f32 %v971_v41, %v452_v46  ;;  %v977_v41 = vadd.f32 %v7710_v16, %v7647_v23 }
  0xf2   :  { %v1043_v51 = vadd.f32 %v7676_v40, %v1004_v45 }
  0xf3   :  { %v1042_v55 = vadd.f32 %v7676_v40, %v1003_v48  ;;  %v6680_v56 = vpop.f32.mrb[10].mxu0  ;;  %v7733_v48 = vrot.slane %v687_v49, %v7649_v24  ;;  %v7747_v49 = vrot.slane %v7639_v17, %v7624_v7 }
  0xf4   :  { %v1075_v60 = vmul.f32 0.1, %v1043_v51  ;;  %v1006_v61 = vadd.f32 %v6680_v56, %v974_v52  ;;  %v462_v62 = vpop.f32.mrb[11].mxu0 }
  0xf5   :  { %v1074_v0 = vmul.f32 0.1, %v1042_v55  ;;  %v1005_v1 = vadd.f32 %v973_v57, %v462_v62  ;;  %10489 = vst [vmem:[#allocation17_spill] sm:$0xff] %v7733_v48  ;;  %v979_v59 = vadd.f32 %v7643_v21, %v7733_v48 }
  0xf6   :  { %v1107_v4 = vmax.f32 %v1043_v51, %v1075_v60  ;;  %v1045_v5 = vadd.f32 %v7676_v40, %v1006_v61 }
  0xf7   :  { %v1106_v11 = vmax.f32 %v1042_v55, %v1074_v0  ;;  %v1044_v12 = vadd.f32 %v7676_v40, %v1005_v1  ;;  %v6683_v13 = vpop.f32.mrb[12].mxu0  ;;  %v7740_v55 = vrot.slane %v678_v50, %v7624_v7  ;;  %v981_v0 = vadd.f32 %v7643_v21, %v7721_v35 }
  0xf8   :  { %1224 = vst.msk [vmem:[#allocation2 + $0x21] sm:$0xff] %vm1138_vm3, %v1107_v4  ;;  %v1077_v18 = vmul.f32 0.1, %v1045_v5  ;;  %v1008_v19 = vadd.f32 %v6683_v13, %v976_v6  ;;  %v472_v20 = vpop.f32.mrb[13].mxu0  ;;  %v7754_v50 = vrot.slane %v7727_v43, %v7649_v24 }
  0xf9   :  { %1223 = vst.msk [vmem:[#allocation2 + $0x11] sm:$0xff] %vm1138_vm3, %v1106_v11  ;;  %v1076_v25 = vmul.f32 0.1, %v1044_v12  ;;  %v1007_v27 = vadd.f32 %v975_v14, %v472_v20  ;;  %v713_v11 = vcombine.high %v7639_v17, %v7639_v17  ;;  %v982_v14 = vadd.f32 %v7643_v21, %v7737_v54 }
  0xfa   :  { %v1109_v30 = vmax.f32 %v1045_v5, %v1077_v18  ;;  %v1047_v31 = vadd.f32 %v7676_v40, %v1008_v19  ;;  %10491 = vst [vmem:[#allocation19_spill] sm:$0xff] %v7754_v50  ;;  %v712_v5 = vcombine.high %v7727_v43, %v7727_v43  ;;  %v7775_v18 = vrot.slane %v7740_v55, %v7649_v24 }
  0xfb   :  { %v1108_v36 = vmax.f32 %v1044_v12, %v1076_v25  ;;  %v1046_v38 = vadd.f32 %v7676_v40, %v1007_v27  ;;  %v6686_v39 = vpop.f32.mrb[14].mxu0  ;;  %v710_v25 = vcombine.high %v7740_v55, %v7740_v55  ;;  %v728_v27 = vcombine.high %v7747_v49, %v7747_v49 }
  0xfc   :  { %1226 = vst.msk [vmem:[#allocation2 + $0x41] sm:$0xff] %vm1138_vm3, %v1109_v30  ;;  %v1079_v44 = vmul.f32 0.1, %v1047_v31  ;;  %v1010_v45 = vadd.f32 %v6686_v39, %v978_v33  ;;  %v482_v46 = vpop.f32.mrb[15].mxu0  ;;  %10492 = vst [vmem:[#allocation20_spill] sm:$0xff] %v7775_v18  ;;  %v2800_v30 = vld [vmem:[%s10430_s7 + $0x8] sm:$0xff]  ;;  %v984_v39 = vadd.f32 %v7643_v21, %v7754_v50 }
  0xfd   :  { %1225 = vst.msk [vmem:[#allocation2 + $0x31] sm:$0xff] %vm1138_vm3, %v1108_v36  ;;  %v1078_v51 = vmul.f32 0.1, %v1046_v38  ;;  %v1009_v52 = vadd.f32 %v977_v41, %v482_v46  ;;  %v7795_v41 = vrot.slane %v7747_v49, %v7624_v7  ;;  %v983_v49 = vadd.f32 %v7643_v21, %v7775_v18 }
  0xfe   :  { %v1111_v56 = vmax.f32 %v1047_v31, %v1079_v44  ;;  %v1049_v57 = vadd.f32 %v7676_v40, %v1010_v45 }
  0xff   :  { %v1110_v60 = vmax.f32 %v1046_v38, %v1078_v51  ;;  %v1048_v61 = vadd.f32 %v7676_v40, %v1009_v52  ;;  %v6689_v62 = vpop.f32.mrb[16].mxu0  ;;  %v2285_v63 = vld [vmem:[#allocation2 + $0x20] sm:$0xff]  ;;  %v7805_v51 = vrot.slane %v712_v5, %v7649_v24  ;;  %v7808_v52 = vrot.slane %v713_v11, %v7624_v7 }
 0x100   :  { %v7756_v1 = vld [vmem:[#allocation2 + $0x22] sm:$0xff]  ;;  %1228 = vst.msk [vmem:[#allocation2 + $0x61] sm:$0xff] %vm1138_vm3, %v1111_v56  ;;  %v1081_v2 = vmul.f32 0.1, %v1049_v57  ;;  %v1012_v3 = vadd.f32 %v6689_v62, %v980_v47  ;;  %2349 = vrot.lane.b32.xlu1 %v2285_v63, %s7188_s17  ;;  %1771 = vrot.lane.b32.xlu0 %v2285_v63, %s7191_s6  ;;  %v492_v4 = vpop.f32.mrb[17].mxu0  ;;  %v7765_v6 = vld [vmem:[#allocation2 + $0x10] sm:$0xff] }
 0x101   :  { %2703 = vst.msk [vmem:[#allocation3 + $0x8] sm:$0xff] %vm1138_vm3, %v7756_v1  ;;  %1289 = vst.msk [vmem:[#allocation3 + $0x20] sm:$0xff] %vm1138_vm3, %v2285_v63  ;;  %v1080_v12 = vmul.f32 0.1, %v1048_v61  ;;  %v1011_v13 = vadd.f32 %v979_v59, %v492_v4  ;;  %v2478_v38 = vld [vmem:[#allocation2 + $0x21] sm:$0xff]  ;;  %v7827_v63 = vrot.slane %v728_v27, %v7624_v7 }
 0x102   :  { %1227 = vst.msk [vmem:[#allocation2 + $0x51] sm:$0xff] %vm1138_vm3, %v1110_v60  ;;  %1288 = vst.msk [vmem:[#allocation3 + $0x10] sm:$0xff] %vm1138_vm3, %v7765_v6  ;;  %v1113_v19 = vmax.f32 %v1049_v57, %v1081_v2  ;;  %v1051_v20 = vadd.f32 %v7676_v40, %v1012_v3  ;;  %v6908_v60 = vpack.c.bf16 %v2800_v30, %v2799_v28  ;;  %v2802_v2 = vld [vmem:[%s10430_s7 + $0x18] sm:$0xff] }
 0x103   :  { %v1112_v31 = vmax.f32 %v1048_v61, %v1080_v12  ;;  %v1050_v33 = vadd.f32 %v7676_v40, %v1011_v13  ;;  %v6692_v36 = vpop.f32.mrb[18].mxu0  ;;  %v7797_v43 = vld [vmem:[#allocation2 + $0x40] sm:$0xff]  ;;  %10493 = vst [vmem:[#allocation21_spill] sm:$0xff] %v7805_v51  ;;  %v7839_v12 = vrot.slane %v710_v25, %v7649_v24  ;;  %v758_v13 = vcombine.high %v7795_v41, %v7795_v41 }
 0x104   :  { %v7799_v44 = vld [vmem:[#allocation2 + $0x42] sm:$0xff]  ;;  %1230 = vst.msk [vmem:[#allocation2 + $0x81] sm:$0xff] %vm1138_vm3, %v1113_v19  ;;  %v1083_v45 = vmul.f32 0.1, %v1051_v20  ;;  %v1014_v46 = vadd.f32 %v6692_v36, %v982_v14  ;;  %2542 = vrot.lane.b32.xlu1 %v2478_v38, %s7189_s18  ;;  %1964 = vrot.lane.b32.xlu0 %v2478_v38, %s7192_s25  ;;  %v502_v47 = vpop.f32.mrb[19].mxu0  ;;  %v7810_v55 = vld [vmem:[#allocation2 + $0x30] sm:$0xff]  ;;  %v986_v28 = vadd.f32 %v7643_v21, %v7805_v51 }
 0x105   :  { %v7812_v56 = vld [vmem:[#allocation2 + $0x32] sm:$0xff]  ;;  %1291 = vst.msk [vmem:[#allocation3 + $0x40] sm:$0xff] %vm1138_vm3, %v7797_v43  ;;  %2705 = vst.msk [vmem:[#allocation3 + $0x28] sm:$0xff] %vm1138_vm3, %v7799_v44  ;;  %v1082_v57 = vmul.f32 0.1, %v1050_v33  ;;  %v1013_v59 = vadd.f32 %v981_v0, %v502_v47  ;;  %v10436_v19 = vmov 0.0|0.0   ;;  %v729_v30 = vcombine.high %v7808_v52, %v7808_v52 }
 0x106   :  { %1229 = vst.msk [vmem:[#allocation2 + $0x71] sm:$0xff] %vm1138_vm3, %v1112_v31  ;;  %2704 = vst.msk [vmem:[#allocation3 + $0x18] sm:$0xff] %vm1138_vm3, %v7812_v56  ;;  %v1115_v61 = vmax.f32 %v1051_v20, %v1083_v45  ;;  %v1053_v62 = vadd.f32 %v7676_v40, %v1014_v46  ;;  %v7832_v0 = vld [vmem:[%s10430_s7 + $0x10] sm:$0xff]  ;;  %6907 = vmatprep.subr.bf16.mxu1 %v10436_v19  ;;  %v7864_v45 = vrot.slane %v7795_v41, %v7649_v24 }
 0x107   :  { %1290 = vst.msk [vmem:[#allocation3 + $0x30] sm:$0xff] %vm1138_vm3, %v7810_v55  ;;  %v1114_v3 = vmax.f32 %v1050_v33, %v1082_v57  ;;  %v1052_v4 = vadd.f32 %v7676_v40, %v1013_v59  ;;  %v6695_v5 = vpop.f32.mrb[20].mxu0  ;;  %10494 = vst [vmem:[#allocation22_spill] sm:$0xff] %v7839_v12  ;;  %v7843_v14 = vld [vmem:[#allocation2 + $0x60] sm:$0xff]  ;;  %6909 = vmatpush1.bf16.msra.mxu1 %v6908_v60  ;;  %v6911_v47 = vpack.c.bf16 %v2802_v2, %v7832_v0  ;;  %v2804_v60 = vld [vmem:[%s10430_s7 + $0x28] sm:$0xff] }
 0x108   :  { %v2736_v11 = vld [vmem:[#allocation3 + $0x8] sm:$0xff]  ;;  %1232 = vst.msk [vmem:[#allocation2 + $0xc1] sm:$0xff] %vm1138_vm3, %v1115_v61  ;;  %v1085_v20 = vmul.f32 0.1, %v1053_v62  ;;  %v1016_v27 = vadd.f32 %v6695_v5, %v984_v39  ;;  %2157 = vrot.lane.b32.xlu0 %v7756_v1, %s7194_s29  ;;  %v512_v25 = vpop.f32.mrb[21].mxu0  ;;  %1293 = vst.msk [vmem:[#allocation3 + $0x60] sm:$0xff] %vm1138_vm3, %v7843_v14  ;;  %1387 = vrot.lane.b32.xlu1 %v2478_v38, %s7186_s2  ;;  %v7876_v38 = vrot.slane %v7827_v63, %v7649_v24 }
 0x109   :  { %6346 = vmatprep.mubr.msk.f32.mxu1 %vm1138_vm3, %v2736_v11  ;;  %v7854_v31 = vld [vmem:[#allocation2 + $0x62] sm:$0xff]  ;;  %v7856_v33 = vld [vmem:[#allocation2 + $0x50] sm:$0xff]  ;;  %1231 = vst.msk [vmem:[#allocation2 + $0xb1] sm:$0xff] %vm1138_vm3, %v1114_v3  ;;  %v1084_v36 = vmul.f32 0.1, %v1052_v4  ;;  %v1015_v39 = vadd.f32 %v983_v49, %v512_v25  ;;  %10495 = vst [vmem:[#allocation23_spill] sm:$0xff] %v7864_v45  ;;  %v760_v41 = vcombine.high %v7827_v63, %v7827_v63  ;;  %6910 = vmatprep.subr.bf16.mxu1 %v10436_v19 }
 0x10a   :  { %v7866_v46 = vld [vmem:[#allocation2 + $0x52] sm:$0xff]  ;;  %1292 = vst.msk [vmem:[#allocation3 + $0x50] sm:$0xff] %vm1138_vm3, %v7856_v33  ;;  %2707 = vst.msk [vmem:[#allocation3 + $0x48] sm:$0xff] %vm1138_vm3, %v7854_v31  ;;  %v1117_v57 = vmax.f32 %v1053_v62, %v1085_v20  ;;  %v1055_v59 = vadd.f32 %v7676_v40, %v1016_v27  ;;  %v2803_v49 = vld [vmem:[%s10430_s7 + $0x20] sm:$0xff]  ;;  %v985_v63 = vadd.f32 %v7643_v21, %v7839_v12 }
 0x10b   :  { %10496 = vst [vmem:[#allocation24_spill] sm:$0xff] %v7876_v38  ;;  %2706 = vst.msk [vmem:[#allocation3 + $0x38] sm:$0xff] %vm1138_vm3, %v7866_v46  ;;  %v1116_v61 = vmax.f32 %v1052_v4, %v1084_v36  ;;  %v1054_v62 = vadd.f32 %v7676_v40, %v1015_v39  ;;  %v6698_v0 = vpop.f32.mrb[22].mxu0  ;;  %v7890_v2 = vld [vmem:[#allocation2 + $0x11] sm:$0xff]  ;;  %v7895_v3 = vrot.slane %v758_v13, %v7649_v24  ;;  %v7897_v5 = vld [vmem:[#allocation2 + $0x82] sm:$0xff]  ;;  %6912 = vmatpush1.bf16.msra.mxu1 %v6911_v47 }
 0x10c   :  { %1234 = vst.msk [vmem:[#allocation2 + $0xe1] sm:$0xff] %vm1138_vm3, %v1117_v57  ;;  %v1087_v11 = vmul.f32 0.1, %v1055_v59  ;;  %v1018_v20 = vadd.f32 %v6698_v0, %v986_v28  ;;  %1385 = vrot.lane.b32.xlu0 %v7890_v2, %s7186_s2  ;;  %v522_v4 = vpop.f32.mrb[23].mxu0  ;;  %v987_v27 = vadd.f32 %v7864_v45, %v7657_v32  ;;  %v7905_v25 = vrot.slane %v729_v30, %v7624_v7  ;;  %v2805_v47 = vld [vmem:[%s10430_s7 + $0x30] sm:$0xff] }
 0x10d   :  { %10497 = vst [vmem:[#allocation25_spill] sm:$0xff] %v7895_v3  ;;  %v7907_v36 = vld [vmem:[#allocation2 + $0x70] sm:$0xff]  ;;  %2709 = vst.msk [vmem:[#allocation3 + $0x68] sm:$0xff] %vm1138_vm3, %v7897_v5  ;;  %v1086_v28 = vmul.f32 0.1, %v1054_v62  ;;  %1580 = vrot.lane.b32.xlu1 %v7756_v1, %s7187_s3  ;;  %v1017_v39 = vadd.f32 %v985_v63, %v522_v4  ;;  %v7918_v57 = vrot.slane %v7636_v15, %v7624_v7  ;;  %v10499_v63 = vmov 0.0|0.0  }
 0x10e   :  { %v7909_v13 = vld [vmem:[#allocation2 + $0x72] sm:$0xff]  ;;  %1233 = vst.msk [vmem:[#allocation2 + $0xd1] sm:$0xff] %vm1138_vm3, %v1116_v61  ;;  %v6914_v30 = vpack.c.bf16 %v2804_v60, %v2803_v49  ;;  %1294 = vst.msk [vmem:[#allocation3 + $0x70] sm:$0xff] %vm1138_vm3, %v7907_v36  ;;  %v1119_v0 = vmax.f32 %v1055_v59, %v1087_v11  ;;  %v1057_v61 = vadd.f32 %v7676_v40, %v1018_v20  ;;  %6913 = vmatprep.subr.bf16.mxu1 %v10499_v63 }
 0x10f   :  { %2708 = vst.msk [vmem:[#allocation3 + $0x58] sm:$0xff] %vm1138_vm3, %v7909_v13  ;;  %v988_v19 = vadd.f32 %v7876_v38, %v7657_v32  ;;  %v7928_v1 = vrot.slane %v760_v41, %v7649_v24  ;;  %v2806_v49 = vld [vmem:[%s10430_s7 + $0x38] sm:$0xff]  ;;  %v1118_v60 = vmax.f32 %v1054_v62, %v1086_v28  ;;  %v1056_v59 = vadd.f32 %v7676_v40, %v1017_v39  ;;  %v6701_v11 = vpop.f32.mrb[24].mxu0  ;;  %v7946_v9 = vld [vmem:[#allocation2 + $0xc0] sm:$0xff] }
 0x110   :  { %v7938_v20 = vld [vmem:[#allocation2 + $0x12] sm:$0xff]  ;;  %v989_v41 = vadd.f32 %v7895_v3, %v7657_v32  ;;  %v7944_v4 = vrot.slane %v7808_v52, %v7624_v7  ;;  %v7948_v17 = vld [vmem:[#allocation2 + $0xc2] sm:$0xff]  ;;  %1236 = vst.msk [vmem:[#allocation2 + $0x101] sm:$0xff] %vm1138_vm3, %v1119_v0  ;;  %v1089_v10 = vmul.f32 0.1, %v1057_v61  ;;  %v532_v28 = vpop.f32.mrb[25].mxu0  ;;  %v7955_v39 = vrot.slane %v7905_v25, %v7649_v24  ;;  %6915 = vmatpush1.bf16.msra.mxu1 %v6914_v30 }
 0x111   :  { %10498 = vst [vmem:[#allocation26_spill] sm:$0xff] %v7928_v1  ;;  %v1020_v62 = vadd.f32 %v6701_v11, %v988_v19  ;;  %1578 = vrot.lane.b32.xlu0 %v7938_v20, %s7187_s3  ;;  %v761_v52 = vcombine.high %v7905_v25, %v7905_v25  ;;  %v7959_v38 = vld [vmem:[#allocation2 + $0xb0] sm:$0xff]  ;;  %1297 = vst.msk [vmem:[#allocation3 + $0xa0] sm:$0xff] %vm1138_vm3, %v7946_v9  ;;  %v1088_v19 = vmul.f32 0.1, %v1056_v59  ;;  %1769 = vrot.lane.b32.xlu1 %v7765_v6, %s7191_s6  ;;  %v2807_v6 = vld [vmem:[%s10430_s7 + $0x40] sm:$0xff] }
 0x112   :  { %10500 = vst [vmem:[#allocation27_spill] sm:$0xff] %v7955_v39  ;;  %2711 = vst.msk [vmem:[#allocation3 + $0x88] sm:$0xff] %vm1138_vm3, %v7948_v17  ;;  %v1019_v0 = vadd.f32 %v987_v27, %v532_v28  ;;  %v777_v11 = vcombine.high %v7918_v57, %v7918_v57  ;;  %v6917_v25 = vpack.c.bf16 %v2806_v49, %v2805_v47  ;;  %6916 = vmatprep.subr.bf16.mxu1 %v10499_v63  ;;  %v2808_v27 = vld [vmem:[%s10430_s7 + $0x48] sm:$0xff] }
 0x113   :  { %1235 = vst.msk [vmem:[#allocation2 + $0xf1] sm:$0xff] %vm1138_vm3, %v1118_v60  ;;  %1296 = vst.msk [vmem:[#allocation3 + $0x90] sm:$0xff] %vm1138_vm3, %v7959_v38  ;;  %v1121_v3 = vmax.f32 %v1057_v61, %v1089_v10  ;;  %v1059_v51 = vadd.f32 %v7676_v40, %v1020_v62  ;;  %v990_v45 = vadd.f32 %v7928_v1, %v7657_v32  ;;  %v6704_v61 = vpop.f32.mrb[26].mxu0  ;;  %v7991_v62 = vld [vmem:[#allocation2 + $0xe0] sm:$0xff] }
 0x114   :  { %v762_v60 = vcombine.high %v7636_v15, %v7636_v15  ;;  %v1120_v30 = vmax.f32 %v1056_v59, %v1088_v19  ;;  %v1058_v10 = vadd.f32 %v7676_v40, %v1019_v0  ;;  %v7987_v47 = vrot.slane %v7944_v4, %v7649_v24  ;;  %v7993_v28 = vld [vmem:[#allocation2 + $0xe2] sm:$0xff]  ;;  %v542_v59 = vpop.f32.mrb[27].mxu0  ;;  %1299 = vst.msk [vmem:[#allocation3 + $0xc0] sm:$0xff] %vm1138_vm3, %v7991_v62 }
 0x115   :  { %v759_v49 = vcombine.high %v7944_v4, %v7944_v4  ;;  %1238 = vst.msk [vmem:[#allocation2 + $0x121] sm:$0xff] %vm1138_vm3, %v1121_v3  ;;  %v1091_v15 = vmul.f32 0.1, %v1059_v51  ;;  %v1022_v1 = vadd.f32 %v6704_v61, %v990_v45  ;;  %1775 = vrot.lane.b32.xlu0 %v7797_v43, %s7191_s6  ;;  %v7999_v19 = vrot.slane %v761_v52, %v7649_v24  ;;  %v8005_v4 = vld [vmem:[#allocation2 + $0xd0] sm:$0xff] }
 0x116   :  { %10501 = vst [vmem:[#allocation28_spill] sm:$0xff] %v7987_v47  ;;  %v8003_v0 = vrot.slane %v7918_v57, %v7624_v7  ;;  %v8007_v50 = vld [vmem:[#allocation2 + $0xd2] sm:$0xff]  ;;  %2713 = vst.msk [vmem:[#allocation3 + $0xa8] sm:$0xff] %vm1138_vm3, %v7993_v28  ;;  %v1090_v45 = vmul.f32 0.1, %v1058_v10  ;;  %1962 = vrot.lane.b32.xlu1 %v7890_v2, %s7192_s25  ;;  %v1021_v3 = vadd.f32 %v989_v41, %v542_v59  ;;  %6918 = vmatpush1.bf16.msra.mxu1 %v6917_v25 }
 0x117   :  { %10502 = vst [vmem:[#allocation29_spill] sm:$0xff] %v7999_v19  ;;  %1237 = vst.msk [vmem:[#allocation2 + $0x111] sm:$0xff] %vm1138_vm3, %v1120_v30  ;;  %v8017_v57 = vrot.slane %v777_v11, %v7624_v7  ;;  %v6920_v52 = vpack.c.bf16 %v2808_v27, %v2807_v6  ;;  %v1123_v61 = vmax.f32 %v1059_v51, %v1091_v15  ;;  %6919 = vmatprep.subr.bf16.mxu1 %v10499_v63  ;;  %v2809_v41 = vld [vmem:[%s10430_s7 + $0x50] sm:$0xff]  ;;  %v2810_v11 = vld [vmem:[%s10430_s7 + $0x58] sm:$0xff]  ;;  %v6707_v51 = vpop.f32.mrb[28].mxu0 }
 0x118   :  { %2712 = vst.msk [vmem:[#allocation3 + $0x98] sm:$0xff] %vm1138_vm3, %v8007_v50  ;;  %1298 = vst.msk [vmem:[#allocation3 + $0xb0] sm:$0xff] %vm1138_vm3, %v8005_v4  ;;  %v1061_v12 = vadd.f32 %v7676_v40, %v1022_v1  ;;  %v992_v30 = vadd.f32 %v7955_v39, %v7657_v32  ;;  %v8027_v2 = vrot.slane %v762_v60, %v7624_v7  ;;  %v8037_v1 = vld [vmem:[#allocation2 + $0x41] sm:$0xff] }
 0x119   :  { %v1122_v25 = vmax.f32 %v1058_v10, %v1090_v45  ;;  %v1060_v15 = vadd.f32 %v7676_v40, %v1021_v3  ;;  %v991_v60 = vadd.f32 %v7987_v47, %v7657_v32  ;;  %v8042_v6 = vrot.slane %v759_v49, %v7649_v24  ;;  %v8044_v27 = vld [vmem:[#allocation2 + $0x100] sm:$0xff]  ;;  %1240 = vst.msk [vmem:[#allocation2 + $0x161] sm:$0xff] %vm1138_vm3, %v1123_v61  ;;  %v552_v10 = vpop.f32.mrb[29].mxu0 }
 0x11a   :  { %v8046_v59 = vld [vmem:[#allocation2 + $0x102] sm:$0xff]  ;;  %v1093_v39 = vmul.f32 0.1, %v1061_v12  ;;  %v1024_v54 = vadd.f32 %v6707_v51, %v992_v30  ;;  %1968 = vrot.lane.b32.xlu0 %v8037_v1, %s7192_s25  ;;  %v994_v45 = vadd.f32 %v7999_v19, %v7657_v32  ;;  %v807_v3 = vcombine.high %v8003_v0, %v8003_v0  ;;  %v8055_v49 = vld [vmem:[#allocation2 + $0xf0] sm:$0xff]  ;;  %1301 = vst.msk [vmem:[#allocation3 + $0xe0] sm:$0xff] %vm1138_vm3, %v8044_v27 }
 0x11b   :  { %10503 = vst [vmem:[#allocation30_spill] sm:$0xff] %v8042_v6  ;;  %v8057_v47 = vld [vmem:[#allocation2 + $0xf2] sm:$0xff]  ;;  %2715 = vst.msk [vmem:[#allocation3 + $0xc8] sm:$0xff] %vm1138_vm3, %v8046_v59  ;;  %v1092_v61 = vmul.f32 0.1, %v1060_v15  ;;  %2155 = vrot.lane.b32.xlu1 %v7938_v20, %s7194_s29  ;;  %v1023_v30 = vadd.f32 %v991_v60, %v552_v10  ;;  %v809_v51 = vcombine.high %v8017_v57, %v8017_v57  ;;  %6921 = vmatpush1.bf16.msra.mxu1 %v6920_v52  ;;  %v2811_v52 = vld [vmem:[%s10430_s7 + $0x60] sm:$0xff] }
 0x11c   :  { %1239 = vst.msk [vmem:[#allocation2 + $0x151] sm:$0xff] %vm1138_vm3, %v1122_v25  ;;  %v6923_v19 = vpack.c.bf16 %v2810_v11, %v2809_v41  ;;  %2714 = vst.msk [vmem:[#allocation3 + $0xb8] sm:$0xff] %vm1138_vm3, %v8057_v47  ;;  %v1125_v18 = vmax.f32 %v1061_v12, %v1093_v39  ;;  %v1063_v22 = vadd.f32 %v7676_v40, %v1024_v54  ;;  %6922 = vmatprep.subr.bf16.mxu1 %v10499_v63  ;;  %v2812_v41 = vld [vmem:[%s10430_s7 + $0x68] sm:$0xff]  ;;  %v6710_v39 = vpop.f32.mrb[30].mxu0 }
 0x11d   :  { %1300 = vst.msk [vmem:[#allocation3 + $0xd0] sm:$0xff] %vm1138_vm3, %v8055_v49  ;;  %v8075_v25 = vrot.slane %v8017_v57, %v7649_v24  ;;  %v778_v20 = vcombine.high %v8027_v2, %v8027_v2  ;;  %v1124_v12 = vmax.f32 %v1060_v15, %v1092_v61  ;;  %v1062_v54 = vadd.f32 %v7676_v40, %v1023_v30  ;;  %v8089_v11 = vld [vmem:[#allocation2 + $0x122] sm:$0xff]  ;;  %v562_v35 = vpop.f32.mrb[31].mxu0 }
 0x11e   :  { %v993_v57 = vadd.f32 %v8042_v6, %v7657_v32  ;;  %1242 = vst.msk [vmem:[#allocation2 + $0x181] sm:$0xff] %vm1138_vm3, %v1125_v18  ;;  %v1095_v60 = vmul.f32 0.1, %v1063_v22  ;;  %v1026_v10 = vadd.f32 %v6710_v39, %v994_v45  ;;  %2161 = vrot.lane.b32.xlu0 %v7799_v44, %s7194_s29  ;;  %v8096_v8 = vrot.slane %v8003_v0, %v7649_v24  ;;  %v8101_v61 = vld [vmem:[#allocation2 + $0x110] sm:$0xff] }
 0x11f   :  { %10504 = vst [vmem:[#allocation31_spill] sm:$0xff] %v8075_v25  ;;  %v8099_v15 = vrot.slane %v807_v3, %v7649_v24  ;;  %v8103_v30 = vld [vmem:[#allocation2 + $0x112] sm:$0xff]  ;;  %2717 = vst.msk [vmem:[#allocation3 + $0xe8] sm:$0xff] %vm1138_vm3, %v8089_v11  ;;  %v1094_v18 = vmul.f32 0.1, %v1062_v54  ;;  %2353 = vrot.lane.b32.xlu1 %v7797_v43, %s7188_s17  ;;  %v8111_v0 = vrot.slane %v809_v51, %v7649_v24  ;;  %6924 = vmatpush1.bf16.msra.mxu1 %v6923_v19 }
 0x120   :  { %10505 = vst [vmem:[#allocation32_spill] sm:$0xff] %v8096_v8  ;;  %1241 = vst.msk [vmem:[#allocation2 + $0x171] sm:$0xff] %vm1138_vm3, %v1124_v12  ;;  %v1025_v45 = vadd.f32 %v993_v57, %v562_v35  ;;  %v6926_v3 = vpack.c.bf16 %v2812_v41, %v2811_v52  ;;  %v1127_v39 = vmax.f32 %v1063_v22, %v1095_v60  ;;  %6925 = vmatprep.subr.bf16.mxu1 %v10499_v63  ;;  %v2813_v35 = vld [vmem:[%s10430_s7 + $0x70] sm:$0xff]  ;;  %v2814_v19 = vld [vmem:[%s10430_s7 + $0x78] sm:$0xff]  ;;  %v6713_v52 = vpop.f32.mrb[32].mxu0 }
 0x121   :  { %10506 = vst [vmem:[#allocation33_spill] sm:$0xff] %v8099_v15  ;;  %10507 = vst [vmem:[#allocation34_spill] sm:$0xff] %v8111_v0  ;;  %v1065_v6 = vadd.f32 %v7676_v40, %v1026_v10  ;;  %v996_v12 = vadd.f32 %v7655_v29, %v8075_v25  ;;  %v8121_v43 = vrot.slane %v778_v20, %v7624_v7  ;;  %v8135_v57 = vld [vmem:[#allocation2 + $0x160] sm:$0xff] }
 0x122   :  { %2716 = vst.msk [vmem:[#allocation3 + $0xd8] sm:$0xff] %vm1138_vm3, %v8103_v30  ;;  %1302 = vst.msk [vmem:[#allocation3 + $0xf0] sm:$0xff] %vm1138_vm3, %v8101_v61  ;;  %v1126_v51 = vmax.f32 %v1062_v54, %v1094_v18  ;;  %v1064_v22 = vadd.f32 %v7676_v40, %v1025_v45  ;;  %v995_v41 = vadd.f32 %v7655_v29, %v8096_v8  ;;  %v8137_v60 = vld [vmem:[#allocation2 + $0x162] sm:$0xff]  ;;  %2351 = vrot.lane.b32.xlu0 %v7810_v55, %s7188_s17  ;;  %v572_v54 = vpop.f32.mrb[33].mxu0 }
 0x123   :  { %v792_v20 = vrot.slane %v8027_v2, %v7624_v7  ;;  %1244 = vst.msk [vmem:[#allocation2 + $0x1a1] sm:$0xff] %vm1138_vm3, %v1127_v39  ;;  %v1097_v10 = vmul.f32 0.1, %v1065_v6  ;;  %v1028_v25 = vadd.f32 %v6713_v52, %v996_v12  ;;  %v997_v18 = vadd.f32 %v7655_v29, %v8099_v15  ;;  %v8144_v45 = vld [vmem:[#allocation2 + $0x150] sm:$0xff]  ;;  %1305 = vst.msk [vmem:[#allocation3 + $0x120] sm:$0xff] %vm1138_vm3, %v8135_v57 }
 0x124   :  { %2719 = vst.msk [vmem:[#allocation3 + $0x108] sm:$0xff] %vm1138_vm3, %v8137_v60  ;;  %1243 = vst.msk [vmem:[#allocation2 + $0x191] sm:$0xff] %vm1138_vm3, %v1126_v51  ;;  %v1096_v7 = vmul.f32 0.1, %v1064_v22  ;;  %2546 = vrot.lane.b32.xlu1 %v8037_v1, %s7189_s18  ;;  %v1027_v2 = vadd.f32 %v995_v41, %v572_v54  ;;  %v998_v39 = vadd.f32 %v7655_v29, %v8111_v0  ;;  %6927 = vmatpush1.bf16.msra.mxu1 %v6926_v3  ;;  %v2815_v3 = vld [vmem:[%s10430_s7 + $0x80] sm:$0xff]  ;;  %v8172_v41 = vld [vmem:[#allocation2 + $0x31] sm:$0xff] }
 0x125   :  { %v6929_v12 = vpack.c.bf16 %v2814_v19, %v2813_v35  ;;  %1304 = vst.msk [vmem:[#allocation3 + $0x110] sm:$0xff] %vm1138_vm3, %v8144_v45  ;;  %v1129_v52 = vmax.f32 %v1065_v6, %v1097_v10  ;;  %v1067_v15 = vadd.f32 %v7676_v40, %v1028_v25  ;;  %v8160_v8 = vrot.slane %v8121_v43, %v7649_v24  ;;  %v2816_v35 = vld [vmem:[%s10430_s7 + $0x88] sm:$0xff]  ;;  %v6716_v19 = vpop.f32.mrb[34].mxu0  ;;  %v8177_v54 = vld [vmem:[#allocation2 + $0x180] sm:$0xff] }
 0x126   :  { %v810_v51 = vcombine.high %v8121_v43, %v8121_v43  ;;  %6928 = vmatprep.subr.bf16.mxu1 %v10499_v63  ;;  %v1128_v6 = vmax.f32 %v1064_v22, %v1096_v7  ;;  %v1066_v25 = vadd.f32 %v7676_v40, %v1027_v2  ;;  %v8175_v10 = vrot.slane %v792_v20, %v7649_v24  ;;  %v8179_v0 = vld [vmem:[#allocation2 + $0x182] sm:$0xff]  ;;  %v582_v22 = vpop.f32.mrb[35].mxu0 }
 0x127   :  { %10508 = vst [vmem:[#allocation35_spill] sm:$0xff] %v8160_v8  ;;  %v808_v43 = vcombine.high %v792_v20, %v792_v20  ;;  %1246 = vst.msk [vmem:[#allocation2 + $0x1c1] sm:$0xff] %vm1138_vm3, %v1129_v52  ;;  %v1099_v48 = vmul.f32 0.1, %v1067_v15  ;;  %v1030_v53 = vadd.f32 %v6716_v19, %v998_v39  ;;  %2544 = vrot.lane.b32.xlu0 %v8172_v41, %s7189_s18  ;;  %v8184_v7 = vld [vmem:[#allocation2 + $0x170] sm:$0xff] }
 0x128   :  { %v8186_v2 = vld [vmem:[#allocation2 + $0x172] sm:$0xff]  ;;  %1307 = vst.msk [vmem:[#allocation3 + $0x140] sm:$0xff] %vm1138_vm3, %v8177_v54  ;;  %2721 = vst.msk [vmem:[#allocation3 + $0x128] sm:$0xff] %vm1138_vm3, %v8179_v0  ;;  %v1098_v20 = vmul.f32 0.1, %v1066_v25  ;;  %1391 = vrot.lane.b32.xlu1 %v8037_v1, %s7186_s2  ;;  %v1029_v39 = vadd.f32 %v997_v18, %v582_v22  ;;  %6930 = vmatpush1.bf16.msra.mxu1 %v6929_v12  ;;  %v6932_v52 = vpack.c.bf16 %v2816_v35, %v2815_v3  ;;  %v6719_v12 = vpop.f32.mrb[36].mxu0 }
 0x129   :  { %1245 = vst.msk [vmem:[#allocation2 + $0x1b1] sm:$0xff] %vm1138_vm3, %v1128_v6  ;;  %2720 = vst.msk [vmem:[#allocation3 + $0x118] sm:$0xff] %vm1138_vm3, %v8186_v2  ;;  %v1131_v19 = vmax.f32 %v1067_v15, %v1099_v48  ;;  %v1069_v16 = vadd.f32 %v7676_v40, %v1030_v53  ;;  %v1000_v37 = vadd.f32 %v7655_v29, %v8160_v8  ;;  %6931 = vmatprep.subr.bf16.mxu1 %v10499_v63  ;;  %v592_v63 = vpop.f32.mrb[37].mxu0 }
 0x12a   :  { %1306 = vst.msk [vmem:[#allocation3 + $0x130] sm:$0xff] %vm1138_vm3, %v8184_v7  ;;  %v8203_v6 = vrot.slane %v810_v51, %v7649_v24  ;;  %v1130_v1 = vmax.f32 %v1066_v25, %v1098_v20  ;;  %v1068_v18 = vadd.f32 %v7676_v40, %v1029_v39  ;;  %v999_v3 = vadd.f32 %v7655_v29, %v8175_v10  ;;  %v8212_v48 = vld [vmem:[#allocation2 + $0x1a0] sm:$0xff] }
 0x12b   :  { %v8210_v35 = vrot.slane %v808_v43, %v7649_v24  ;;  %v8214_v53 = vld [vmem:[#allocation2 + $0x1a2] sm:$0xff]  ;;  %1248 = vst.msk [vmem:[#allocation2 + $0x201] sm:$0xff] %vm1138_vm3, %v1131_v19  ;;  %v1101_v15 = vmul.f32 0.1, %v1069_v16  ;;  %v1032_v51 = vadd.f32 %v6719_v12, %v1000_v37  ;;  %1389 = vrot.lane.b32.xlu0 %v8172_v41, %s7186_s2  ;;  %v8219_v25 = vld [vmem:[#allocation2 + $0x190] sm:$0xff]  ;;  %1309 = vst.msk [vmem:[#allocation3 + $0x160] sm:$0xff] %vm1138_vm3, %v8212_v48 }
 0x12c   :  { %10509 = vst [vmem:[#allocation36_spill] sm:$0xff] %v8203_v6  ;;  %v8221_v22 = vld [vmem:[#allocation2 + $0x192] sm:$0xff]  ;;  %2723 = vst.msk [vmem:[#allocation3 + $0x148] sm:$0xff] %vm1138_vm3, %v8214_v53  ;;  %v1100_v24 = vmul.f32 0.1, %v1068_v18  ;;  %1584 = vrot.lane.b32.xlu1 %v7799_v44, %s7187_s3  ;;  %v1031_v37 = vadd.f32 %v999_v3, %v592_v63  ;;  %6933 = vmatpush1.bf16.msra.mxu1 %v6932_v52  ;;  %v1002_v39 = vadd.f32 %v7655_v29, %v8203_v6  ;;  %v6722_v12 = vpop.f32.mrb[38].mxu0 }
 0x12d   :  { %10510 = vst [vmem:[#allocation37_spill] sm:$0xff] %v8210_v35  ;;  %1247 = vst.msk [vmem:[#allocation2 + $0x1f1] sm:$0xff] %vm1138_vm3, %v1130_v1  ;;  %v1133_v43 = vmax.f32 %v1069_v16, %v1101_v15  ;;  %v1071_v20 = vadd.f32 %v7676_v40, %v1032_v51  ;;  %v1001_v44 = vadd.f32 %v7655_v29, %v8210_v35  ;;  %v602_v16 = vpop.f32.mrb[39].mxu0 }
 0x12e   :  { %1308 = vst.msk [vmem:[#allocation3 + $0x150] sm:$0xff] %vm1138_vm3, %v8219_v25  ;;  %2722 = vst.msk [vmem:[#allocation3 + $0x138] sm:$0xff] %vm1138_vm3, %v8221_v22  ;;  %v1132_v19 = vmax.f32 %v1068_v18, %v1100_v24  ;;  %v1070_v1 = vadd.f32 %v7676_v40, %v1031_v37  ;;  %v8240_v52 = vld [vmem:[#allocation2 + $0x1c2] sm:$0xff]  ;;  %v1034_v63 = vadd.f32 %v6722_v12, %v1002_v39 }
 0x12f   :  { %1250 = vst.msk [vmem:[#allocation2 + $0x221] sm:$0xff] %vm1138_vm3, %v1133_v43  ;;  %v1103_v3 = vmul.f32 0.1, %v1071_v20  ;;  %1582 = vrot.lane.b32.xlu0 %v7812_v56, %s7187_s3  ;;  %2725 = vst.msk [vmem:[#allocation3 + $0x168] sm:$0xff] %vm1138_vm3, %v8240_v52  ;;  %v1033_v24 = vadd.f32 %v1001_v44, %v602_v16 }
 0x130   :  { %v8245_v15 = vld [vmem:[#allocation2 + $0x1b0] sm:$0xff]  ;;  %1249 = vst.msk [vmem:[#allocation2 + $0x211] sm:$0xff] %vm1138_vm3, %v1132_v19  ;;  %v1102_v18 = vmul.f32 0.1, %v1070_v1  ;;  %1773 = vrot.lane.b32.xlu1 %v7810_v55, %s7191_s6  ;;  %v1073_v43 = vadd.f32 %v7676_v40, %v1034_v63 }
 0x131   :  { %v8247_v51 = vld [vmem:[#allocation2 + $0x1b2] sm:$0xff]  ;;  %1310 = vst.msk [vmem:[#allocation3 + $0x170] sm:$0xff] %vm1138_vm3, %v8245_v15  ;;  %v1135_v37 = vmax.f32 %v1071_v20, %v1103_v3  ;;  %v1072_v12 = vadd.f32 %v7676_v40, %v1033_v24  ;;  %v1903_v3 = vld [vmem:[#allocation2 + $0x61] sm:$0xff] }
 0x132   :  { %2724 = vst.msk [vmem:[#allocation3 + $0x158] sm:$0xff] %vm1138_vm3, %v8247_v51  ;;  %v1134_v39 = vmax.f32 %v1070_v1, %v1102_v18  ;;  %v8260_v6 = vld [vmem:[#allocation2 + $0x200] sm:$0xff]  ;;  %v1105_v55 = vmul.f32 0.1, %v1073_v43 }
 0x133   :  { %v8262_v19 = vld [vmem:[#allocation2 + $0x202] sm:$0xff]  ;;  %1252 = vst.msk [vmem:[#allocation2 + $0x241] sm:$0xff] %vm1138_vm3, %v1135_v37  ;;  %1779 = vrot.lane.b32.xlu0 %v7843_v14, %s7191_s6  ;;  %1313 = vst.msk [vmem:[#allocation3 + $0x1a0] sm:$0xff] %vm1138_vm3, %v8260_v6  ;;  %v1104_v40 = vmul.f32 0.1, %v1072_v12 }
 0x134   :  { %v8267_v44 = vld [vmem:[#allocation2 + $0x1f0] sm:$0xff]  ;;  %2727 = vst.msk [vmem:[#allocation3 + $0x188] sm:$0xff] %vm1138_vm3, %v8262_v19  ;;  %1251 = vst.msk [vmem:[#allocation2 + $0x231] sm:$0xff] %vm1138_vm3, %v1134_v39  ;;  %1966 = vrot.lane.b32.xlu1 %v8172_v41, %s7192_s25  ;;  %v1137_v20 = vmax.f32 %v1073_v43, %v1105_v55 }
 0x135   :  { %1312 = vst.msk [vmem:[#allocation3 + $0x190] sm:$0xff] %vm1138_vm3, %v8267_v44  ;;  %v1136_v1 = vmax.f32 %v1072_v12, %v1104_v40  ;;  %v1712_v40 = vld [vmem:[#allocation2 + $0x80] sm:$0xff] }
 0x136   :  { %v8278_v63 = vld [vmem:[#allocation2 + $0x220] sm:$0xff]  ;;  %1254 = vst.msk [vmem:[#allocation2 + $0x261] sm:$0xff] %vm1138_vm3, %v1137_v20 }
 0x137   :  { %v8280_v16 = vld [vmem:[#allocation2 + $0x222] sm:$0xff]  ;;  %1972 = vrot.lane.b32.xlu0 %v1903_v3, %s7192_s25  ;;  %v8284_v18 = vld [vmem:[#allocation2 + $0x210] sm:$0xff]  ;;  %1315 = vst.msk [vmem:[#allocation3 + $0x1c0] sm:$0xff] %vm1138_vm3, %v8278_v63  ;;  %1253 = vst.msk [vmem:[#allocation2 + $0x251] sm:$0xff] %vm1138_vm3, %v1136_v1 }
 0x138   :  { %v8286_v24 = vld [vmem:[#allocation2 + $0x212] sm:$0xff]  ;;  %2729 = vst.msk [vmem:[#allocation3 + $0x1a8] sm:$0xff] %vm1138_vm3, %v8280_v16  ;;  %2159 = vrot.lane.b32.xlu1 %v7812_v56, %s7194_s29  ;;  %1314 = vst.msk [vmem:[#allocation3 + $0x1b0] sm:$0xff] %vm1138_vm3, %v8284_v18  ;;  %v1905_v20 = vld [vmem:[#allocation2 + $0x81] sm:$0xff] }
 0x139   :  { %2728 = vst.msk [vmem:[#allocation3 + $0x198] sm:$0xff] %vm1138_vm3, %v8286_v24 }
 0x13a   :  { %v8299_v41 = vld [vmem:[#allocation2 + $0x240] sm:$0xff] }
 0x13b   :  { %v8301_v37 = vld [vmem:[#allocation2 + $0x242] sm:$0xff]  ;;  %2165 = vrot.lane.b32.xlu0 %v7854_v31, %s7194_s29  ;;  %v8305_v43 = vld [vmem:[#allocation2 + $0x230] sm:$0xff]  ;;  %1317 = vst.msk [vmem:[#allocation3 + $0x1e0] sm:$0xff] %vm1138_vm3, %v8299_v41 }
 0x13c   :  { %v8307_v39 = vld [vmem:[#allocation2 + $0x232] sm:$0xff]  ;;  %2731 = vst.msk [vmem:[#allocation3 + $0x1c8] sm:$0xff] %vm1138_vm3, %v8301_v37  ;;  %2357 = vrot.lane.b32.xlu1 %v7843_v14, %s7188_s17  ;;  %1316 = vst.msk [vmem:[#allocation3 + $0x1d0] sm:$0xff] %vm1138_vm3, %v8305_v43 }
 0x13d   :  { %2730 = vst.msk [vmem:[#allocation3 + $0x1b8] sm:$0xff] %vm1138_vm3, %v8307_v39  ;;  %v8319_v56 = vld [vmem:[#allocation2 + $0x262] sm:$0xff]  ;;  %v2481_v14 = vld [vmem:[#allocation2 + $0x51] sm:$0xff] }
 0x13e   :  { %v8323_v12 = vld [vmem:[#allocation2 + $0x250] sm:$0xff]  ;;  %2733 = vst.msk [vmem:[#allocation3 + $0x1e8] sm:$0xff] %vm1138_vm3, %v8319_v56 }
 0x13f   :  { %2355 = vrot.lane.b32.xlu0 %v7856_v33, %s7188_s17  ;;  %v8325_v55 = vld [vmem:[#allocation2 + $0x252] sm:$0xff]  ;;  %1318 = vst.msk [vmem:[#allocation3 + $0x1f0] sm:$0xff] %vm1138_vm3, %v8323_v12 }
 0x140   :  { %2550 = vrot.lane.b32.xlu1 %v1903_v3, %s7189_s18  ;;  %2732 = vst.msk [vmem:[#allocation3 + $0x1d8] sm:$0xff] %vm1138_vm3, %v8325_v55 }
 0x143   :  { %2548 = vrot.lane.b32.xlu0 %v2481_v14, %s7189_s18 }
 0x144   :  { %1395 = vrot.lane.b32.xlu1 %v1903_v3, %s7186_s2 }
 0x147   :  { %1393 = vrot.lane.b32.xlu0 %v2481_v14, %s7186_s2 }
 0x148   :  { %1588 = vrot.lane.b32.xlu1 %v7854_v31, %s7187_s3  ;;  %v8354_v31 = vpop.permute.xlu0 %2363 }
 0x14b   :  { %1586 = vrot.lane.b32.xlu0 %v7866_v46, %s7187_s3 }
 0x14c   :  { %1777 = vrot.lane.b32.xlu1 %v7856_v33, %s7191_s6  ;;  %v2483_v33 = vld [vmem:[#allocation2 + $0x71] sm:$0xff] }
 0x14f   :  { %1783 = vrot.lane.b32.xlu0 %v1712_v40, %s7191_s6 }
 0x150   :  { %1970 = vrot.lane.b32.xlu1 %v2481_v14, %s7192_s25 }
 0x153   :  { %1976 = vrot.lane.b32.xlu0 %v1905_v20, %s7192_s25 }
 0x154   :  { %2163 = vrot.lane.b32.xlu1 %v7866_v46, %s7194_s29  ;;  %v8360_v46 = vpop.permute.xlu0 %2556 }
 0x157   :  { %2169 = vrot.lane.b32.xlu0 %v7897_v5, %s7194_s29  ;;  %v2678_v5 = vld [vmem:[#allocation2 + $0x92] sm:$0xff] }
 0x158   :  { %2361 = vrot.lane.b32.xlu1 %v1712_v40, %s7188_s17  ;;  %2710 = vst.msk [vmem:[#allocation3 + $0x78] sm:$0xff] %vm1138_vm3, %v2678_v5  ;;  %v8368_v1 = vpop.permute.xlu0 %2379  ;;  %v1328_v40 = vld [vmem:[#allocation2 + $0xb1] sm:$0xff] }
 0x15b   :  { %2359 = vrot.lane.b32.xlu0 %v7907_v36, %s7188_s17 }
 0x15c   :  { %2554 = vrot.lane.b32.xlu1 %v1905_v20, %s7189_s18  ;;  %v8375_v3 = vpop.permute.xlu0 %2572 }
 0x15f   :  { %2552 = vrot.lane.b32.xlu0 %v2483_v33, %s7189_s18 }
 0x160   :  { %1781 = vrot.lane.b32.xlu1 %v7907_v36, %s7191_s6  ;;  %v2486_v36 = vld [vmem:[#allocation2 + $0xc1] sm:$0xff] }
 0x163   :  { %1397 = vrot.lane.b32.xlu0 %v2483_v33, %s7186_s2 }
 0x164   :  { %1974 = vrot.lane.b32.xlu1 %v2483_v33, %s7192_s25  ;;  %v1521_v33 = vld [vmem:[#allocation2 + $0xb2] sm:$0xff] }
 0x167   :  { %1590 = vrot.lane.b32.xlu0 %v7909_v13, %s7187_s3 }
 0x168   :  { %2167 = vrot.lane.b32.xlu1 %v7909_v13, %s7194_s29 }
 0x16b   :  { %1787 = vrot.lane.b32.xlu0 %v7946_v9, %s7191_s6 }
 0x16c   :  { %2365 = vrot.lane.b32.xlu1 %v7946_v9, %s7188_s17 }
 0x16f   :  { %1980 = vrot.lane.b32.xlu0 %v2486_v36, %s7192_s25 }
 0x170   :  { %2558 = vrot.lane.b32.xlu1 %v2486_v36, %s7189_s18 }
 0x172   :  { %v2350_v13 = vpop.permute.xlu1 %2349  ;;  %v1772_v14 = vpop.permute.xlu0 %1771 }
 0x173   :  { %2173 = vrot.lane.b32.xlu0 %v7948_v17, %s7194_s29 }
 0x174   :  { %1403 = vrot.lane.b32.xlu1 %v2486_v36, %s7186_s2 }
 0x176   :  { %v2543_v9 = vpop.permute.xlu1 %2542  ;;  %v1965_v20 = vpop.permute.xlu0 %1964 }
 0x177   :  { %1401 = vrot.lane.b32.xlu0 %v1328_v40, %s7186_s2 }
 0x178   :  { %1596 = vrot.lane.b32.xlu1 %v7948_v17, %s7187_s3  ;;  %v1909_v17 = vld [vmem:[#allocation2 + $0xe1] sm:$0xff] }
 0x17a   :  { %v2158_v5 = vpop.permute.xlu0 %2157  ;;  %v1388_v35 = vpop.permute.xlu1 %1387 }
 0x17b   :  { %1594 = vrot.lane.b32.xlu0 %v1521_v33, %s7187_s3  ;;  %1482 = vst.msk [vmem:[#allocation3 + $0x20] sm:$0xff] %vm1479_vm6, %v1388_v35 }
 0x17c   :  { %1785 = vrot.lane.b32.xlu1 %v7959_v38, %s7191_s6 }
 0x17e   :  { %v1386_v36 = vpop.permute.xlu0 %1385 }
 0x17f   :  { %1791 = vrot.lane.b32.xlu0 %v7991_v62, %s7191_s6  ;;  %v1581_v8 = vpop.permute.xlu1 %1580  ;;  %1481 = vst.msk [vmem:[#allocation3 + $0x10] sm:$0xff] %vm1479_vm6, %v1386_v36  ;;  %v2487_v36 = vld [vmem:[#allocation2 + $0xd1] sm:$0xff] }
 0x180   :  { %1978 = vrot.lane.b32.xlu1 %v1328_v40, %s7192_s25  ;;  %1675 = vst.msk [vmem:[#allocation3 + $0x20] sm:$0xff] %vm1672_vm7, %v1581_v8 }
 0x183   :  { %1984 = vrot.lane.b32.xlu0 %v1909_v17, %s7192_s25  ;;  %v1579_v38 = vpop.permute.xlu0 %1578  ;;  %v1770_v35 = vpop.permute.xlu1 %1769 }
 0x184   :  { %2171 = vrot.lane.b32.xlu1 %v1521_v33, %s7194_s29  ;;  %1674 = vst.msk [vmem:[#allocation3 + $0x10] sm:$0xff] %vm1672_vm7, %v1579_v38 }
 0x185   :  { %1866 = vst.msk [vmem:[#allocation3] sm:$0xff] %vm1865_vm8, %v1770_v35  ;;  %1867 = vst.msk [vmem:[#allocation3 + $0x10] sm:$0xff] %vm1865_vm8, %v1772_v14 }
 0x186   :  { %2060 = vst.msk [vmem:[#allocation3 + $0x10] sm:$0xff] %vm2058_vm9, %v1965_v20 }
 0x187   :  { %2177 = vrot.lane.b32.xlu0 %v7993_v28, %s7194_s29  ;;  %v1776_v8 = vpop.permute.xlu0 %1775  ;;  %2253 = vst.msk [vmem:[#allocation3 + $0x10] sm:$0xff] %vm2251_vm10, %v2158_v5 }
 0x188   :  { %2369 = vrot.lane.b32.xlu1 %v7991_v62, %s7188_s17  ;;  %v1963_v40 = vpop.permute.xlu1 %1962 }
 0x189   :  { %2059 = vst.msk [vmem:[#allocation3] sm:$0xff] %vm2058_vm9, %v1963_v40 }
 0x18b   :  { %2367 = vrot.lane.b32.xlu0 %v8005_v4, %s7188_s17 }
 0x18c   :  { %2562 = vrot.lane.b32.xlu1 %v1909_v17, %s7189_s18  ;;  %v1969_v14 = vpop.permute.xlu0 %1968 }
 0x18d   :  { %v2156_v33 = vpop.permute.xlu1 %2155 }
 0x18e   :  { %2252 = vst.msk [vmem:[#allocation3] sm:$0xff] %vm2251_vm10, %v2156_v33 }
 0x18f   :  { %2560 = vrot.lane.b32.xlu0 %v2487_v36, %s7189_s18  ;;  %2446 = vst.msk [vmem:[#allocation3] sm:$0xff] %vm2445_vm11, %v2350_v13 }
 0x190   :  { %1407 = vrot.lane.b32.xlu1 %v1909_v17, %s7186_s2  ;;  %2639 = vst.msk [vmem:[#allocation3] sm:$0xff] %vm2638_vm12, %v2543_v9  ;;  %v2162_v62 = vpop.permute.xlu0 %2161  ;;  %v2738_v9 = vld [vmem:[#allocation3 + $0x18] sm:$0xff] }
 0x191   :  { %v2354_v20 = vpop.permute.xlu1 %2353 }
 0x193   :  { %1405 = vrot.lane.b32.xlu0 %v2487_v36, %s7186_s2 }
 0x194   :  { %1600 = vrot.lane.b32.xlu1 %v7993_v28, %s7187_s3  ;;  %v2352_v5 = vpop.permute.xlu0 %2351 }
 0x195   :  { %2447 = vst.msk [vmem:[#allocation3 + $0x10] sm:$0xff] %vm2445_vm11, %v2352_v5 }
 0x196   :  { %v2547_v38 = vpop.permute.xlu1 %2546 }
 0x197   :  { %1598 = vrot.lane.b32.xlu0 %v8007_v50, %s7187_s3  ;;  %v2735_v13 = vld [vmem:[#allocation3] sm:$0xff] }
 0x198   :  { %1789 = vrot.lane.b32.xlu1 %v8005_v4, %s7191_s6  ;;  %2985 = vmatmul.mubr.f32.vlgmr.msra.gmra.mrb[0].mxu1 %v2735_v13  ;;  %v1911_v4 = vld [vmem:[#allocation2 + $0x101] sm:$0xff] }
 0x199   :  { %v2545_v17 = vpop.permute.xlu0 %2544  ;;  %6347 = vmatprep.mubr.msk.f32.mxu1 %vm1138_vm3, %v2738_v9  ;;  %v2740_v9 = vld [vmem:[#allocation3 + $0x28] sm:$0xff] }
 0x19a   :  { %v1392_v35 = vpop.permute.xlu1 %1391  ;;  %2640 = vst.msk [vmem:[#allocation3 + $0x10] sm:$0xff] %vm2638_vm12, %v2545_v17 }
 0x19b   :  { %1484 = vst.msk [vmem:[#allocation3 + $0x40] sm:$0xff] %vm1479_vm6, %v1392_v35  ;;  %1795 = vrot.lane.b32.xlu0 %v8044_v27, %s7191_s6  ;;  %v2489_v35 = vld [vmem:[#allocation2 + $0xf1] sm:$0xff] }
 0x19c   :  { %1982 = vrot.lane.b32.xlu1 %v2487_v36, %s7192_s25 }
 0x19d   :  { %v1390_v28 = vpop.permute.xlu0 %1389 }
 0x19e   :  { %v1585_v40 = vpop.permute.xlu1 %1584  ;;  %1483 = vst.msk [vmem:[#allocation3 + $0x30] sm:$0xff] %vm1479_vm6, %v1390_v28 }
 0x19f   :  { %1677 = vst.msk [vmem:[#allocation3 + $0x40] sm:$0xff] %vm1672_vm7, %v1585_v40  ;;  %1988 = vrot.lane.b32.xlu0 %v1911_v4, %s7192_s25 }
 0x1a0   :  { %2175 = vrot.lane.b32.xlu1 %v8007_v50, %s7194_s29 }
 0x1a1   :  { %v1583_v33 = vpop.permute.xlu0 %1582  ;;  %v2737_v5 = vld [vmem:[#allocation3 + $0x10] sm:$0xff] }
 0x1a2   :  { %v1774_v13 = vpop.permute.xlu1 %1773  ;;  %1676 = vst.msk [vmem:[#allocation3 + $0x30] sm:$0xff] %vm1672_vm7, %v1583_v33  ;;  %2990 = vmatmul.mubr.f32.gmra.mrb[2].mxu1 %v2737_v5 }
 0x1a3   :  { %1868 = vst.msk [vmem:[#allocation3 + $0x20] sm:$0xff] %vm1865_vm8, %v1774_v13  ;;  %1869 = vst.msk [vmem:[#allocation3 + $0x30] sm:$0xff] %vm1865_vm8, %v1776_v8  ;;  %6348 = vmatprep.mubr.msk.f32.mxu1 %vm1138_vm3, %v2740_v9  ;;  %2181 = vrot.lane.b32.xlu0 %v8046_v59, %s7194_s29 }
 0x1a4   :  { %2062 = vst.msk [vmem:[#allocation3 + $0x30] sm:$0xff] %vm2058_vm9, %v1969_v14  ;;  %2373 = vrot.lane.b32.xlu1 %v8044_v27, %s7188_s17 }
 0x1a5   :  { %2255 = vst.msk [vmem:[#allocation3 + $0x30] sm:$0xff] %vm2251_vm10, %v2162_v62  ;;  %v1780_v50 = vpop.permute.xlu0 %1779 }
 0x1a6   :  { %v1967_v36 = vpop.permute.xlu1 %1966 }
 0x1a7   :  { %2061 = vst.msk [vmem:[#allocation3 + $0x20] sm:$0xff] %vm2058_vm9, %v1967_v36  ;;  %2371 = vrot.lane.b32.xlu0 %v8055_v49, %s7188_s17 }
 0x1a8   :  { %2566 = vrot.lane.b32.xlu1 %v1911_v4, %s7189_s18 }
 0x1a9   :  { %v1973_v8 = vpop.permute.xlu0 %1972 }
 0x1aa   :  { %v2160_v17 = vpop.permute.xlu1 %2159 }
 0x1ab   :  { %2254 = vst.msk [vmem:[#allocation3 + $0x20] sm:$0xff] %vm2251_vm10, %v2160_v17  ;;  %2564 = vrot.lane.b32.xlu0 %v2489_v35, %s7189_s18  ;;  %v2744_v17 = vld [vmem:[#allocation3 + $0x48] sm:$0xff] }
 0x1ac   :  { %2448 = vst.msk [vmem:[#allocation3 + $0x20] sm:$0xff] %vm2445_vm11, %v2354_v20  ;;  %1411 = vrot.lane.b32.xlu1 %v1911_v4, %s7186_s2 }
 0x1ad   :  { %2641 = vst.msk [vmem:[#allocation3 + $0x20] sm:$0xff] %vm2638_vm12, %v2547_v38  ;;  %v2166_v27 = vpop.permute.xlu0 %2165  ;;  %v2742_v38 = vld [vmem:[#allocation3 + $0x38] sm:$0xff] }
 0x1ae   :  { %v2358_v14 = vpop.permute.xlu1 %2357 }
 0x1af   :  { %1409 = vrot.lane.b32.xlu0 %v2489_v35, %s7186_s2 }
 0x1b0   :  { %1604 = vrot.lane.b32.xlu1 %v8046_v59, %s7187_s3  ;;  %v1720_v59 = vld [vmem:[#allocation2 + $0x120] sm:$0xff] }
 0x1b1   :  { %v2356_v62 = vpop.permute.xlu0 %2355 }
 0x1b2   :  { %v2551_v28 = vpop.permute.xlu1 %2550  ;;  %2449 = vst.msk [vmem:[#allocation3 + $0x30] sm:$0xff] %vm2445_vm11, %v2356_v62 }
 0x1b3   :  { %1602 = vrot.lane.b32.xlu0 %v8057_v47, %s7187_s3 }
 0x1b4   :  { %1793 = vrot.lane.b32.xlu1 %v8055_v49, %s7191_s6  ;;  %v2739_v20 = vld [vmem:[#allocation3 + $0x20] sm:$0xff] }
 0x1b5   :  { %2995 = vmatmul.mubr.f32.gmra.mrb[4].mxu1 %v2739_v20  ;;  %v2549_v40 = vpop.permute.xlu0 %2548  ;;  %v1913_v49 = vld [vmem:[#allocation2 + $0x121] sm:$0xff]  ;;  %v2491_v20 = vld [vmem:[#allocation2 + $0x111] sm:$0xff] }
 0x1b6   :  { %v1396_v4 = vpop.permute.xlu1 %1395  ;;  %6349 = vmatprep.mubr.msk.f32.mxu1 %vm1138_vm3, %v2742_v38  ;;  %2642 = vst.msk [vmem:[#allocation3 + $0x30] sm:$0xff] %vm2638_vm12, %v2549_v40  ;;  %v2686_v40 = vld [vmem:[#allocation2 + $0x132] sm:$0xff] }
 0x1b7   :  { %1486 = vst.msk [vmem:[#allocation3 + $0x60] sm:$0xff] %vm1479_vm6, %v1396_v4  ;;  %1799 = vrot.lane.b32.xlu0 %v1720_v59, %s7191_s6 }
 0x1b8   :  { %1986 = vrot.lane.b32.xlu1 %v2489_v35, %s7192_s25  ;;  %2718 = vst.msk [vmem:[#allocation3 + $0xf8] sm:$0xff] %vm1138_vm3, %v2686_v40 }
 0x1b9   :  { %v1394_v33 = vpop.permute.xlu0 %1393 }
 0x1ba   :  { %v1589_v5 = vpop.permute.xlu1 %1588  ;;  %1485 = vst.msk [vmem:[#allocation3 + $0x50] sm:$0xff] %vm1479_vm6, %v1394_v33  ;;  %v2494_v33 = vld [vmem:[#allocation2 + $0x161] sm:$0xff] }
 0x1bb   :  { %1679 = vst.msk [vmem:[#allocation3 + $0x60] sm:$0xff] %vm1672_vm7, %v1589_v5  ;;  %1992 = vrot.lane.b32.xlu0 %v1913_v49, %s7192_s25 }
 0x1bc   :  { %2179 = vrot.lane.b32.xlu1 %v8057_v47, %s7194_s29 }
 0x1bd   :  { %v1587_v13 = vpop.permute.xlu0 %1586  ;;  %v2741_v9 = vld [vmem:[#allocation3 + $0x30] sm:$0xff] }
 0x1be   :  { %v1778_v36 = vpop.permute.xlu1 %1777  ;;  %1678 = vst.msk [vmem:[#allocation3 + $0x50] sm:$0xff] %vm1672_vm7, %v1587_v13  ;;  %3000 = vmatmul.mubr.f32.gmra.mrb[6].mxu1 %v2741_v9  ;;  %v2748_v9 = vld [vmem:[#allocation3 + $0x68] sm:$0xff] }
 0x1bf   :  { %1870 = vst.msk [vmem:[#allocation3 + $0x40] sm:$0xff] %vm1865_vm8, %v1778_v36  ;;  %1871 = vst.msk [vmem:[#allocation3 + $0x50] sm:$0xff] %vm1865_vm8, %v1780_v50  ;;  %6350 = vmatprep.mubr.msk.f32.mxu1 %vm1138_vm3, %v2744_v17  ;;  %2185 = vrot.lane.b32.xlu0 %v8089_v11, %s7194_s29  ;;  %v1336_v17 = vld [vmem:[#allocation2 + $0x151] sm:$0xff] }
 0x1c0   :  { %2064 = vst.msk [vmem:[#allocation3 + $0x50] sm:$0xff] %vm2058_vm9, %v1973_v8  ;;  %2377 = vrot.lane.b32.xlu1 %v1720_v59, %s7188_s17 }
 0x1c1   :  { %2257 = vst.msk [vmem:[#allocation3 + $0x50] sm:$0xff] %vm2251_vm10, %v2166_v27  ;;  %v1784_v47 = vpop.permute.xlu0 %1783 }
 0x1c2   :  { %v1971_v35 = vpop.permute.xlu1 %1970 }
 0x1c3   :  { %2063 = vst.msk [vmem:[#allocation3 + $0x40] sm:$0xff] %vm2058_vm9, %v1971_v35  ;;  %2375 = vrot.lane.b32.xlu0 %v8101_v61, %s7188_s17 }
 0x1c4   :  { %2570 = vrot.lane.b32.xlu1 %v1913_v49, %s7189_s18 }
 0x1c5   :  { %v1977_v50 = vpop.permute.xlu0 %1976 }
 0x1c6   :  { %v2164_v62 = vpop.permute.xlu1 %2163 }
 0x1c7   :  { %2256 = vst.msk [vmem:[#allocation3 + $0x40] sm:$0xff] %vm2251_vm10, %v2164_v62  ;;  %2568 = vrot.lane.b32.xlu0 %v2491_v20, %s7189_s18  ;;  %v2750_v62 = vld [vmem:[#allocation3 + $0x78] sm:$0xff] }
 0x1c8   :  { %2450 = vst.msk [vmem:[#allocation3 + $0x40] sm:$0xff] %vm2445_vm11, %v2358_v14  ;;  %1797 = vrot.lane.b32.xlu1 %v8101_v61, %s7191_s6  ;;  %v2746_v14 = vld [vmem:[#allocation3 + $0x58] sm:$0xff] }
 0x1c9   :  { %2643 = vst.msk [vmem:[#allocation3 + $0x40] sm:$0xff] %vm2638_vm12, %v2551_v28  ;;  %v2170_v11 = vpop.permute.xlu0 %2169 }
 0x1ca   :  { %v2362_v8 = vpop.permute.xlu1 %2361 }
 0x1cb   :  { %1413 = vrot.lane.b32.xlu0 %v2491_v20, %s7186_s2 }
 0x1cc   :  { %1990 = vrot.lane.b32.xlu1 %v2491_v20, %s7192_s25 }
 0x1cd   :  { %v2360_v27 = vpop.permute.xlu0 %2359 }
 0x1ce   :  { %v2555_v38 = vpop.permute.xlu1 %2554  ;;  %2451 = vst.msk [vmem:[#allocation3 + $0x50] sm:$0xff] %vm2445_vm11, %v2360_v27  ;;  %v1917_v27 = vld [vmem:[#allocation2 + $0x181] sm:$0xff] }
 0x1cf   :  { %1606 = vrot.lane.b32.xlu0 %v8103_v30, %s7187_s3 }
 0x1d0   :  { %2183 = vrot.lane.b32.xlu1 %v8103_v30, %s7194_s29  ;;  %v2743_v61 = vld [vmem:[#allocation3 + $0x40] sm:$0xff] }
 0x1d1   :  { %3005 = vmatmul.mubr.f32.gmra.mrb[8].mxu1 %v2743_v61  ;;  %v2553_v28 = vpop.permute.xlu0 %2552 }
 0x1d2   :  { %6351 = vmatprep.mubr.msk.f32.mxu1 %vm1138_vm3, %v2746_v14  ;;  %2644 = vst.msk [vmem:[#allocation3 + $0x50] sm:$0xff] %vm2638_vm12, %v2553_v28  ;;  %v1782_v4 = vpop.permute.xlu1 %1781 }
 0x1d3   :  { %1872 = vst.msk [vmem:[#allocation3 + $0x60] sm:$0xff] %vm1865_vm8, %v1782_v4  ;;  %1803 = vrot.lane.b32.xlu0 %v8135_v57, %s7191_s6 }
 0x1d4   :  { %2381 = vrot.lane.b32.xlu1 %v8135_v57, %s7188_s17 }
 0x1d5   :  { %v1398_v30 = vpop.permute.xlu0 %1397 }
 0x1d6   :  { %v1975_v59 = vpop.permute.xlu1 %1974  ;;  %1487 = vst.msk [vmem:[#allocation3 + $0x70] sm:$0xff] %vm1479_vm6, %v1398_v30  ;;  %v2495_v30 = vld [vmem:[#allocation2 + $0x171] sm:$0xff] }
 0x1d7   :  { %2065 = vst.msk [vmem:[#allocation3 + $0x60] sm:$0xff] %vm2058_vm9, %v1975_v59  ;;  %1996 = vrot.lane.b32.xlu0 %v2494_v33, %s7192_s25 }
 0x1d8   :  { %2574 = vrot.lane.b32.xlu1 %v2494_v33, %s7189_s18 }
 0x1d9   :  { %v1591_v5 = vpop.permute.xlu0 %1590  ;;  %v2745_v49 = vld [vmem:[#allocation3 + $0x50] sm:$0xff] }
 0x1da   :  { %v2168_v13 = vpop.permute.xlu1 %2167  ;;  %1680 = vst.msk [vmem:[#allocation3 + $0x70] sm:$0xff] %vm1672_vm7, %v1591_v5  ;;  %3010 = vmatmul.mubr.f32.gmra.mrb[10].mxu1 %v2745_v49  ;;  %v3242_v5 = vld [vmem:[%s10432_s9 + $0x8] sm:$0xff] }
 0x1db   :  { %2258 = vst.msk [vmem:[#allocation3 + $0x60] sm:$0xff] %vm2251_vm10, %v2168_v13  ;;  %6352 = vmatprep.mubr.msk.f32.mxu1 %vm1138_vm3, %v2748_v9  ;;  %2189 = vrot.lane.b32.xlu0 %v8137_v60, %s7194_s29 }
 0x1dc   :  { %1873 = vst.msk [vmem:[#allocation3 + $0x70] sm:$0xff] %vm1865_vm8, %v1784_v47  ;;  %1419 = vrot.lane.b32.xlu1 %v2494_v33, %s7186_s2  ;;  %v3241_v33 = vld [vmem:[%s10432_s9] sm:$0xff] }
 0x1dd   :  { %2452 = vst.msk [vmem:[#allocation3 + $0x60] sm:$0xff] %vm2445_vm11, %v2362_v8  ;;  %v1788_v57 = vpop.permute.xlu0 %1787  ;;  %v6934_v13 = vpack.c.bf16 %v3242_v5, %v3241_v33  ;;  %v2760_v33 = vld [vmem:[#allocation3 + $0xc8] sm:$0xff] }
 0x1de   :  { %2066 = vst.msk [vmem:[#allocation3 + $0x70] sm:$0xff] %vm2058_vm9, %v1977_v50  ;;  %v2366_v36 = vpop.permute.xlu1 %2365  ;;  %v1529_v50 = vld [vmem:[#allocation2 + $0x152] sm:$0xff] }
 0x1df   :  { %2645 = vst.msk [vmem:[#allocation3 + $0x60] sm:$0xff] %vm2638_vm12, %v2555_v38  ;;  %1417 = vrot.lane.b32.xlu0 %v1336_v17, %s7186_s2  ;;  %6935 = vmatprep.subr.bf16.mxu0 %v6934_v13 }
 0x1e0   :  { %2259 = vst.msk [vmem:[#allocation3 + $0x70] sm:$0xff] %vm2251_vm10, %v2170_v11  ;;  %1612 = vrot.lane.b32.xlu1 %v8137_v60, %s7187_s3  ;;  %v2752_v60 = vld [vmem:[#allocation3 + $0x88] sm:$0xff]  ;;  %6937 = vmatpush3.bf16.msra.mxu0 %v6934_v13 }
 0x1e1   :  { %2453 = vst.msk [vmem:[#allocation3 + $0x70] sm:$0xff] %vm2445_vm11, %v8354_v31  ;;  %v1981_v47 = vpop.permute.xlu0 %1980 }
 0x1e2   :  { %2646 = vst.msk [vmem:[#allocation3 + $0x70] sm:$0xff] %vm2638_vm12, %v8360_v46  ;;  %v2559_v35 = vpop.permute.xlu1 %2558 }
 0x1e3   :  { %1610 = vrot.lane.b32.xlu0 %v1529_v50, %s7187_s3 }
 0x1e4   :  { %1801 = vrot.lane.b32.xlu1 %v8144_v45, %s7191_s6 }
 0x1e5   :  { %v2174_v20 = vpop.permute.xlu0 %2173 }
 0x1e6   :  { %v2747_v31 = vld [vmem:[#allocation3 + $0x60] sm:$0xff]  ;;  %v1404_v11 = vpop.permute.xlu1 %1403 }
 0x1e7   :  { %3015 = vmatmul.mubr.f32.gmra.mrb[12].mxu1 %v2747_v31  ;;  %1490 = vst.msk [vmem:[#allocation3 + $0xa0] sm:$0xff] %vm1479_vm6, %v1404_v11  ;;  %1807 = vrot.lane.b32.xlu0 %v8177_v54, %s7191_s6  ;;  %v2756_v31 = vld [vmem:[#allocation3 + $0xa8] sm:$0xff] }
 0x1e8   :  { %6353 = vmatprep.mubr.msk.f32.mxu1 %vm1138_vm3, %v2750_v62  ;;  %1994 = vrot.lane.b32.xlu1 %v1336_v17, %s7192_s25 }
 0x1e9   :  { %v2749_v46 = vld [vmem:[#allocation3 + $0x70] sm:$0xff]  ;;  %v1402_v8 = vpop.permute.xlu0 %1401 }
 0x1ea   :  { %v1597_v45 = vpop.permute.xlu1 %1596  ;;  %1489 = vst.msk [vmem:[#allocation3 + $0x90] sm:$0xff] %vm1479_vm6, %v1402_v8 }
 0x1eb   :  { %3020 = vmatmul.mubr.f32.gmra.mrb[14].mxu1 %v2749_v46  ;;  %1683 = vst.msk [vmem:[#allocation3 + $0xa0] sm:$0xff] %vm1672_vm7, %v1597_v45  ;;  %2000 = vrot.lane.b32.xlu0 %v1917_v27, %s7192_s25  ;;  %v2498_v46 = vld [vmem:[#allocation2 + $0x1a1] sm:$0xff] }
 0x1ec   :  { %6354 = vmatprep.mubr.msk.f32.mxu1 %vm1138_vm3, %v2752_v60  ;;  %2187 = vrot.lane.b32.xlu1 %v1529_v50, %s7194_s29 }
 0x1ed   :  { %v1595_v38 = vpop.permute.xlu0 %1594 }
 0x1ee   :  { %v1786_v40 = vpop.permute.xlu1 %1785  ;;  %1682 = vst.msk [vmem:[#allocation3 + $0x90] sm:$0xff] %vm1672_vm7, %v1595_v38 }
 0x1ef   :  { %1874 = vst.msk [vmem:[#allocation3 + $0x80] sm:$0xff] %vm1865_vm8, %v1786_v40  ;;  %1875 = vst.msk [vmem:[#allocation3 + $0x90] sm:$0xff] %vm1865_vm8, %v1788_v57  ;;  %2193 = vrot.lane.b32.xlu0 %v8179_v0, %s7194_s29  ;;  %v2754_v57 = vld [vmem:[#allocation3 + $0x98] sm:$0xff] }
 0x1f0   :  { %2068 = vst.msk [vmem:[#allocation3 + $0x90] sm:$0xff] %vm2058_vm9, %v1981_v47  ;;  %2385 = vrot.lane.b32.xlu1 %v8177_v54, %s7188_s17 }
 0x1f1   :  { %2261 = vst.msk [vmem:[#allocation3 + $0x90] sm:$0xff] %vm2251_vm10, %v2174_v20  ;;  %v1792_v61 = vpop.permute.xlu0 %1791  ;;  %v2497_v20 = vld [vmem:[#allocation2 + $0x191] sm:$0xff] }
 0x1f2   :  { %v1979_v14 = vpop.permute.xlu1 %1978 }
 0x1f3   :  { %2067 = vst.msk [vmem:[#allocation3 + $0x80] sm:$0xff] %vm2058_vm9, %v1979_v14  ;;  %2383 = vrot.lane.b32.xlu0 %v8184_v7, %s7188_s17 }
 0x1f4   :  { %2578 = vrot.lane.b32.xlu1 %v1917_v27, %s7189_s18 }
 0x1f5   :  { %v1985_v28 = vpop.permute.xlu0 %1984 }
 0x1f6   :  { %v2172_v4 = vpop.permute.xlu1 %2171 }
 0x1f7   :  { %2260 = vst.msk [vmem:[#allocation3 + $0x80] sm:$0xff] %vm2251_vm10, %v2172_v4  ;;  %2576 = vrot.lane.b32.xlu0 %v2495_v30, %s7189_s18 }
 0x1f8   :  { %2454 = vst.msk [vmem:[#allocation3 + $0x80] sm:$0xff] %vm2445_vm11, %v2366_v36  ;;  %1423 = vrot.lane.b32.xlu1 %v1917_v27, %s7186_s2 }
 0x1f9   :  { %2647 = vst.msk [vmem:[#allocation3 + $0x80] sm:$0xff] %vm2638_vm12, %v2559_v35  ;;  %v2178_v54 = vpop.permute.xlu0 %2177 }
 0x1fa   :  { %v2370_v59 = vpop.permute.xlu1 %2369 }
 0x1fb   :  { %1421 = vrot.lane.b32.xlu0 %v2495_v30, %s7186_s2 }
 0x1fc   :  { %1616 = vrot.lane.b32.xlu1 %v8179_v0, %s7187_s3 }
 0x1fd   :  { %v2368_v49 = vpop.permute.xlu0 %2367 }
 0x1fe   :  { %v2563_v9 = vpop.permute.xlu1 %2562  ;;  %2455 = vst.msk [vmem:[#allocation3 + $0x90] sm:$0xff] %vm2445_vm11, %v2368_v49 }
 0x1ff   :  { %1614 = vrot.lane.b32.xlu0 %v8186_v2, %s7187_s3 }
 0x200   :  { %1805 = vrot.lane.b32.xlu1 %v8184_v7, %s7191_s6  ;;  %v2751_v0 = vld [vmem:[#allocation3 + $0x80] sm:$0xff] }
 0x201   :  { %3025 = vmatmul.mubr.f32.gmra.mrb[16].mxu1 %v2751_v0  ;;  %v2561_v36 = vpop.permute.xlu0 %2560 }
 0x202   :  { %v1408_v17 = vpop.permute.xlu1 %1407  ;;  %6355 = vmatprep.mubr.msk.f32.mxu1 %vm1138_vm3, %v2754_v57  ;;  %2648 = vst.msk [vmem:[#allocation3 + $0x90] sm:$0xff] %vm2638_vm12, %v2561_v36  ;;  %v1921_v57 = vld [vmem:[#allocation2 + $0x1c1] sm:$0xff] }
 0x203   :  { %1492 = vst.msk [vmem:[#allocation3 + $0xc0] sm:$0xff] %vm1479_vm6, %v1408_v17  ;;  %1811 = vrot.lane.b32.xlu0 %v8212_v48, %s7191_s6  ;;  %v1279_v36 = vld [vmem:[#allocation2 + $0x1e0] sm:$0xff] }
 0x204   :  { %1998 = vrot.lane.b32.xlu1 %v2495_v30, %s7192_s25  ;;  %1311 = vst.msk [vmem:[#allocation3 + $0x180] sm:$0xff] %vm1138_vm3, %v1279_v36  ;;  %v2770_v36 = vld [vmem:[#allocation3 + $0x118] sm:$0xff] }
 0x205   :  { %v1406_v47 = vpop.permute.xlu0 %1405 }
 0x206   :  { %v1601_v35 = vpop.permute.xlu1 %1600  ;;  %1491 = vst.msk [vmem:[#allocation3 + $0xb0] sm:$0xff] %vm1479_vm6, %v1406_v47 }
 0x207   :  { %1685 = vst.msk [vmem:[#allocation3 + $0xc0] sm:$0xff] %vm1672_vm7, %v1601_v35  ;;  %2387 = vrot.lane.b32.xlu0 %v8219_v25, %s7188_s17  ;;  %v2308_v35 = vld [vmem:[#allocation2 + $0x1d0] sm:$0xff] }
 0x208   :  { %2191 = vrot.lane.b32.xlu1 %v8186_v2, %s7194_s29 }
 0x209   :  { %v1599_v7 = vpop.permute.xlu0 %1598  ;;  %v2753_v50 = vld [vmem:[#allocation3 + $0x90] sm:$0xff] }
 0x20a   :  { %v1790_v62 = vpop.permute.xlu1 %1789  ;;  %1684 = vst.msk [vmem:[#allocation3 + $0xb0] sm:$0xff] %vm1672_vm7, %v1599_v7  ;;  %3030 = vmatmul.mubr.f32.gmra.mrb[18].mxu1 %v2753_v50  ;;  %v2762_v7 = vld [vmem:[#allocation3 + $0xd8] sm:$0xff] }
 0x20b   :  { %1876 = vst.msk [vmem:[#allocation3 + $0xa0] sm:$0xff] %vm1865_vm8, %v1790_v62  ;;  %1877 = vst.msk [vmem:[#allocation3 + $0xb0] sm:$0xff] %vm1865_vm8, %v1792_v61  ;;  %6356 = vmatprep.mubr.msk.f32.mxu1 %vm1138_vm3, %v2756_v31  ;;  %2580 = vrot.lane.b32.xlu0 %v2497_v20, %s7189_s18  ;;  %v1343_v62 = vld [vmem:[#allocation2 + $0x1e1] sm:$0xff] }
 0x20c   :  { %2070 = vst.msk [vmem:[#allocation3 + $0xb0] sm:$0xff] %vm2058_vm9, %v1985_v28  ;;  %2389 = vrot.lane.b32.xlu1 %v8212_v48, %s7188_s17 }
 0x20d   :  { %2263 = vst.msk [vmem:[#allocation3 + $0xb0] sm:$0xff] %vm2251_vm10, %v2178_v54  ;;  %v1796_v2 = vpop.permute.xlu0 %1795 }
 0x20e   :  { %v1983_v11 = vpop.permute.xlu1 %1982 }
 0x20f   :  { %2069 = vst.msk [vmem:[#allocation3 + $0xa0] sm:$0xff] %vm2058_vm9, %v1983_v11  ;;  %1425 = vrot.lane.b32.xlu0 %v2497_v20, %s7186_s2 }
 0x210   :  { %2582 = vrot.lane.b32.xlu1 %v2498_v46, %s7189_s18 }
 0x211   :  { %v1989_v60 = vpop.permute.xlu0 %1988 }
 0x212   :  { %v2176_v8 = vpop.permute.xlu1 %2175 }
 0x213   :  { %2262 = vst.msk [vmem:[#allocation3 + $0xa0] sm:$0xff] %vm2251_vm10, %v2176_v8  ;;  %1618 = vrot.lane.b32.xlu0 %v8221_v22, %s7187_s3 }
 0x214   :  { %2456 = vst.msk [vmem:[#allocation3 + $0xa0] sm:$0xff] %vm2445_vm11, %v2370_v59  ;;  %1809 = vrot.lane.b32.xlu1 %v8219_v25, %s7191_s6  ;;  %v2758_v25 = vld [vmem:[#allocation3 + $0xb8] sm:$0xff] }
 0x215   :  { %2649 = vst.msk [vmem:[#allocation3 + $0xa0] sm:$0xff] %vm2638_vm12, %v2563_v9  ;;  %v2182_v48 = vpop.permute.xlu0 %2181  ;;  %v1728_v9 = vld [vmem:[#allocation2 + $0x1c0] sm:$0xff] }
 0x216   :  { %v2374_v45 = vpop.permute.xlu1 %2373 }
 0x217   :  { %2004 = vrot.lane.b32.xlu0 %v2498_v46, %s7192_s25 }
 0x218   :  { %2002 = vrot.lane.b32.xlu1 %v2497_v20, %s7192_s25 }
 0x219   :  { %v2372_v27 = vpop.permute.xlu0 %2371 }
 0x21a   :  { %v2567_v38 = vpop.permute.xlu1 %2566  ;;  %2457 = vst.msk [vmem:[#allocation3 + $0xb0] sm:$0xff] %vm2445_vm11, %v2372_v27  ;;  %v1344_v27 = vld [vmem:[#allocation2 + $0x1f1] sm:$0xff] }
 0x21b   :  { %2197 = vrot.lane.b32.xlu0 %v8214_v53, %s7194_s29 }
 0x21c   :  { %2195 = vrot.lane.b32.xlu1 %v8221_v22, %s7194_s29  ;;  %v2755_v40 = vld [vmem:[#allocation3 + $0xa0] sm:$0xff]  ;;  %v2499_v22 = vld [vmem:[#allocation2 + $0x1b1] sm:$0xff] }
 0x21d   :  { %3035 = vmatmul.mubr.f32.gmra.mrb[20].mxu1 %v2755_v40  ;;  %v2565_v61 = vpop.permute.xlu0 %2564 }
 0x21e   :  { %v1412_v14 = vpop.permute.xlu1 %1411  ;;  %6357 = vmatprep.mubr.msk.f32.mxu1 %vm1138_vm3, %v2758_v25  ;;  %2650 = vst.msk [vmem:[#allocation3 + $0xb0] sm:$0xff] %vm2638_vm12, %v2565_v61  ;;  %v1537_v25 = vld [vmem:[#allocation2 + $0x1f2] sm:$0xff] }
 0x21f   :  { %1494 = vst.msk [vmem:[#allocation3 + $0xe0] sm:$0xff] %vm1479_vm6, %v1412_v14  ;;  %2391 = vrot.lane.b32.xlu0 %v8245_v15, %s7188_s17 }
 0x220   :  { %1427 = vrot.lane.b32.xlu1 %v2498_v46, %s7186_s2  ;;  %v2694_v46 = vld [vmem:[#allocation2 + $0x1d2] sm:$0xff] }
 0x221   :  { %v1410_v28 = vpop.permute.xlu0 %1409  ;;  %2726 = vst.msk [vmem:[#allocation3 + $0x178] sm:$0xff] %vm1138_vm3, %v2694_v46 }
 0x222   :  { %v1605_v4 = vpop.permute.xlu1 %1604  ;;  %1493 = vst.msk [vmem:[#allocation3 + $0xd0] sm:$0xff] %vm1479_vm6, %v1410_v28 }
 0x223   :  { %1687 = vst.msk [vmem:[#allocation3 + $0xe0] sm:$0xff] %vm1672_vm7, %v1605_v4  ;;  %2584 = vrot.lane.b32.xlu0 %v2499_v22, %s7189_s18 }
 0x224   :  { %1620 = vrot.lane.b32.xlu1 %v8214_v53, %s7187_s3 }
 0x225   :  { %v1603_v30 = vpop.permute.xlu0 %1602  ;;  %v2757_v54 = vld [vmem:[#allocation3 + $0xb0] sm:$0xff] }
 0x226   :  { %v1794_v59 = vpop.permute.xlu1 %1793  ;;  %1686 = vst.msk [vmem:[#allocation3 + $0xd0] sm:$0xff] %vm1672_vm7, %v1603_v30  ;;  %3040 = vmatmul.mubr.f32.gmra.mrb[22].mxu1 %v2757_v54  ;;  %v2768_v30 = vld [vmem:[#allocation3 + $0x108] sm:$0xff] }
 0x227   :  { %1878 = vst.msk [vmem:[#allocation3 + $0xc0] sm:$0xff] %vm1865_vm8, %v1794_v59  ;;  %1879 = vst.msk [vmem:[#allocation3 + $0xd0] sm:$0xff] %vm1865_vm8, %v1796_v2  ;;  %6358 = vmatprep.mubr.msk.f32.mxu1 %vm1138_vm3, %v2760_v33  ;;  %1429 = vrot.lane.b32.xlu0 %v2499_v22, %s7186_s2  ;;  %v1536_v2 = vld [vmem:[#allocation2 + $0x1e2] sm:$0xff] }
 0x228   :  { %2072 = vst.msk [vmem:[#allocation3 + $0xd0] sm:$0xff] %vm2058_vm9, %v1989_v60  ;;  %1813 = vrot.lane.b32.xlu1 %v8245_v15, %s7191_s6 }
 0x229   :  { %2265 = vst.msk [vmem:[#allocation3 + $0xd0] sm:$0xff] %vm2251_vm10, %v2182_v48  ;;  %v1800_v53 = vpop.permute.xlu0 %1799 }
 0x22a   :  { %v1987_v5 = vpop.permute.xlu1 %1986 }
 0x22b   :  { %2071 = vst.msk [vmem:[#allocation3 + $0xc0] sm:$0xff] %vm2058_vm9, %v1987_v5  ;;  %1622 = vrot.lane.b32.xlu0 %v8247_v51, %s7187_s3 }
 0x22c   :  { %2006 = vrot.lane.b32.xlu1 %v2499_v22, %s7192_s25  ;;  %v1923_v22 = vld [vmem:[#allocation2 + $0x201] sm:$0xff] }
 0x22d   :  { %v1993_v49 = vpop.permute.xlu0 %1992 }
 0x22e   :  { %v2180_v13 = vpop.permute.xlu1 %2179 }
 0x22f   :  { %2264 = vst.msk [vmem:[#allocation3 + $0xc0] sm:$0xff] %vm2251_vm10, %v2180_v13  ;;  %1815 = vrot.lane.b32.xlu0 %v1728_v9, %s7191_s6 }
 0x230   :  { %2458 = vst.msk [vmem:[#allocation3 + $0xc0] sm:$0xff] %vm2445_vm11, %v2374_v45  ;;  %2199 = vrot.lane.b32.xlu1 %v8247_v51, %s7194_s29  ;;  %v2764_v45 = vld [vmem:[#allocation3 + $0xe8] sm:$0xff] }
 0x231   :  { %2651 = vst.msk [vmem:[#allocation3 + $0xc0] sm:$0xff] %vm2638_vm12, %v2567_v38  ;;  %v2186_v15 = vpop.permute.xlu0 %2185 }
 0x232   :  { %v2378_v0 = vpop.permute.xlu1 %2377 }
 0x233   :  { %2008 = vrot.lane.b32.xlu0 %v1921_v57, %s7192_s25 }
 0x234   :  { %2393 = vrot.lane.b32.xlu1 %v1728_v9, %s7188_s17 }
 0x235   :  { %v2376_v17 = vpop.permute.xlu0 %2375 }
 0x236   :  { %v2571_v47 = vpop.permute.xlu1 %2570  ;;  %2459 = vst.msk [vmem:[#allocation3 + $0xd0] sm:$0xff] %vm2445_vm11, %v2376_v17 }
 0x237   :  { %2201 = vrot.lane.b32.xlu0 %v8240_v52, %s7194_s29  ;;  %v2501_v52 = vld [vmem:[#allocation2 + $0x1d1] sm:$0xff] }
 0x238   :  { %2586 = vrot.lane.b32.xlu1 %v1921_v57, %s7189_s18  ;;  %v2759_v51 = vld [vmem:[#allocation3 + $0xc0] sm:$0xff] }
 0x239   :  { %3045 = vmatmul.mubr.f32.gmra.mrb[24].mxu1 %v2759_v51  ;;  %v2569_v50 = vpop.permute.xlu0 %2568  ;;  %v8717_v51 = vld [vmem:[%s10431_s8] ss:$0 sm:$0xff] }
 0x23a   :  { %6359 = vmatprep.mubr.msk.f32.mxu1 %vm1138_vm3, %v2762_v7  ;;  %2652 = vst.msk [vmem:[#allocation3 + $0xd0] sm:$0xff] %vm2638_vm12, %v2569_v50  ;;  %v1798_v31 = vpop.permute.xlu1 %1797 }
 0x23b   :  { %1880 = vst.msk [vmem:[#allocation3 + $0xe0] sm:$0xff] %vm1865_vm8, %v1798_v31  ;;  %2395 = vrot.lane.b32.xlu0 %v2308_v35, %s7188_s17  ;;  %v1925_v35 = vld [vmem:[#allocation2 + $0x221] sm:$0xff] }
 0x23c   :  { %1431 = vrot.lane.b32.xlu1 %v1343_v62, %s7186_s2 }
 0x23d   :  { %v1414_v20 = vpop.permute.xlu0 %1413 }
 0x23e   :  { %v1991_v11 = vpop.permute.xlu1 %1990  ;;  %1495 = vst.msk [vmem:[#allocation3 + $0xf0] sm:$0xff] %vm1479_vm6, %v1414_v20 }
 0x23f   :  { %2073 = vst.msk [vmem:[#allocation3 + $0xe0] sm:$0xff] %vm2058_vm9, %v1991_v11  ;;  %2588 = vrot.lane.b32.xlu0 %v2501_v52, %s7189_s18 }
 0x240   :  { %1624 = vrot.lane.b32.xlu1 %v1536_v2, %s7187_s3 }
 0x241   :  { %v1607_v60 = vpop.permute.xlu0 %1606  ;;  %v2761_v8 = vld [vmem:[#allocation3 + $0xd0] sm:$0xff] }
 0x242   :  { %v2184_v48 = vpop.permute.xlu1 %2183  ;;  %1688 = vst.msk [vmem:[#allocation3 + $0xf0] sm:$0xff] %vm1672_vm7, %v1607_v60  ;;  %3050 = vmatmul.mubr.f32.gmra.mrb[26].mxu1 %v2761_v8 }
 0x243   :  { %2266 = vst.msk [vmem:[#allocation3 + $0xe0] sm:$0xff] %vm2251_vm10, %v2184_v48  ;;  %6360 = vmatprep.mubr.msk.f32.mxu1 %vm1138_vm3, %v2764_v45  ;;  %1433 = vrot.lane.b32.xlu0 %v1344_v27, %s7186_s2 }
 0x244   :  { %1881 = vst.msk [vmem:[#allocation3 + $0xf0] sm:$0xff] %vm1865_vm8, %v1800_v53  ;;  %1817 = vrot.lane.b32.xlu1 %v8267_v44, %s7191_s6  ;;  %v2766_v44 = vld [vmem:[#allocation3 + $0xf8] sm:$0xff] }
 0x245   :  { %2460 = vst.msk [vmem:[#allocation3 + $0xe0] sm:$0xff] %vm2445_vm11, %v2378_v0  ;;  %v1804_v38 = vpop.permute.xlu0 %1803 }
 0x246   :  { %2074 = vst.msk [vmem:[#allocation3 + $0xf0] sm:$0xff] %vm2058_vm9, %v1993_v49  ;;  %v2382_v40 = vpop.permute.xlu1 %2381  ;;  %v2503_v49 = vld [vmem:[#allocation2 + $0x211] sm:$0xff] }
 0x247   :  { %2653 = vst.msk [vmem:[#allocation3 + $0xe0] sm:$0xff] %vm2638_vm12, %v2571_v47  ;;  %1626 = vrot.lane.b32.xlu0 %v1537_v25, %s7187_s3 }
 0x248   :  { %2267 = vst.msk [vmem:[#allocation3 + $0xf0] sm:$0xff] %vm2251_vm10, %v2186_v15  ;;  %2010 = vrot.lane.b32.xlu1 %v1344_v27, %s7192_s25 }
 0x249   :  { %2461 = vst.msk [vmem:[#allocation3 + $0xf0] sm:$0xff] %vm2445_vm11, %v8368_v1  ;;  %v1997_v61 = vpop.permute.xlu0 %1996 }
 0x24a   :  { %2654 = vst.msk [vmem:[#allocation3 + $0xf0] sm:$0xff] %vm2638_vm12, %v8375_v3  ;;  %v2575_v14 = vpop.permute.xlu1 %2574 }
 0x24b   :  { %1819 = vrot.lane.b32.xlu0 %v8260_v6, %s7191_s6 }
 0x24c   :  { %2203 = vrot.lane.b32.xlu1 %v1537_v25, %s7194_s29 }
 0x24d   :  { %v2190_v1 = vpop.permute.xlu0 %2189 }
 0x24e   :  { %v2763_v28 = vld [vmem:[#allocation3 + $0xe0] sm:$0xff]  ;;  %v1420_v4 = vpop.permute.xlu1 %1419 }
 0x24f   :  { %3055 = vmatmul.mubr.f32.gmra.mrb[28].mxu1 %v2763_v28  ;;  %1498 = vst.msk [vmem:[#allocation3 + $0x120] sm:$0xff] %vm1479_vm6, %v1420_v4  ;;  %2012 = vrot.lane.b32.xlu0 %v1923_v22, %s7192_s25  ;;  %v2774_v4 = vld [vmem:[#allocation3 + $0x138] sm:$0xff] }
 0x250   :  { %6361 = vmatprep.mubr.msk.f32.mxu1 %vm1138_vm3, %v2766_v44  ;;  %2397 = vrot.lane.b32.xlu1 %v8260_v6, %s7188_s17 }
 0x251   :  { %v2765_v3 = vld [vmem:[#allocation3 + $0xf0] sm:$0xff]  ;;  %v1418_v54 = vpop.permute.xlu0 %1417 }
 0x252   :  { %v1613_v59 = vpop.permute.xlu1 %1612  ;;  %1497 = vst.msk [vmem:[#allocation3 + $0x110] sm:$0xff] %vm1479_vm6, %v1418_v54 }
 0x253   :  { %3060 = vmatmul.mubr.f32.gmra.mrb[30].mxu1 %v2765_v3  ;;  %1691 = vst.msk [vmem:[#allocation3 + $0x120] sm:$0xff] %vm1672_vm7, %v1613_v59  ;;  %2205 = vrot.lane.b32.xlu0 %v8262_v19, %s7194_s29 }
 0x254   :  { %6362 = vmatprep.mubr.msk.f32.mxu1 %vm1138_vm3, %v2768_v30  ;;  %2590 = vrot.lane.b32.xlu1 %v1923_v22, %s7189_s18  ;;  %v1927_v30 = vld [vmem:[#allocation2 + $0x241] sm:$0xff] }
 0x255   :  { %v1611_v33 = vpop.permute.xlu0 %1610 }
 0x256   :  { %v1802_v53 = vpop.permute.xlu1 %1801  ;;  %1690 = vst.msk [vmem:[#allocation3 + $0x110] sm:$0xff] %vm1672_vm7, %v1611_v33 }
 0x257   :  { %1882 = vst.msk [vmem:[#allocation3 + $0x100] sm:$0xff] %vm1865_vm8, %v1802_v53  ;;  %1883 = vst.msk [vmem:[#allocation3 + $0x110] sm:$0xff] %vm1865_vm8, %v1804_v38  ;;  %2399 = vrot.lane.b32.xlu0 %v8284_v18, %s7188_s17  ;;  %v2505_v38 = vld [vmem:[#allocation2 + $0x231] sm:$0xff]  ;;  %v2776_v53 = vld [vmem:[#allocation3 + $0x148] sm:$0xff] }
 0x258   :  { %2076 = vst.msk [vmem:[#allocation3 + $0x110] sm:$0xff] %vm2058_vm9, %v1997_v61  ;;  %1435 = vrot.lane.b32.xlu1 %v1923_v22, %s7186_s2 }
 0x259   :  { %2269 = vst.msk [vmem:[#allocation3 + $0x110] sm:$0xff] %vm2251_vm10, %v2190_v1  ;;  %v1808_v6 = vpop.permute.xlu0 %1807 }
 0x25a   :  { %v1995_v5 = vpop.permute.xlu1 %1994 }
 0x25b   :  { %2075 = vst.msk [vmem:[#allocation3 + $0x100] sm:$0xff] %vm2058_vm9, %v1995_v5  ;;  %2592 = vrot.lane.b32.xlu0 %v2503_v49, %s7189_s18 }
 0x25c   :  { %1628 = vrot.lane.b32.xlu1 %v8262_v19, %s7187_s3 }
 0x25d   :  { %v2001_v13 = vpop.permute.xlu0 %2000 }
 0x25e   :  { %v2188_v9 = vpop.permute.xlu1 %2187 }
 0x25f   :  { %2268 = vst.msk [vmem:[#allocation3 + $0x100] sm:$0xff] %vm2251_vm10, %v2188_v9  ;;  %1437 = vrot.lane.b32.xlu0 %v2503_v49, %s7186_s2 }
 0x260   :  { %2462 = vst.msk [vmem:[#allocation3 + $0x100] sm:$0xff] %vm2445_vm11, %v2382_v40  ;;  %1821 = vrot.lane.b32.xlu1 %v8284_v18, %s7191_s6 }
 0x261   :  { %2655 = vst.msk [vmem:[#allocation3 + $0x100] sm:$0xff] %vm2638_vm12, %v2575_v14  ;;  %v2194_v15 = vpop.permute.xlu0 %2193 }
 0x262   :  { %v2386_v0 = vpop.permute.xlu1 %2385 }
 0x263   :  { %1630 = vrot.lane.b32.xlu0 %v8286_v24, %s7187_s3 }
 0x264   :  { %2014 = vrot.lane.b32.xlu1 %v2503_v49, %s7192_s25 }
 0x265   :  { %v2384_v19 = vpop.permute.xlu0 %2383 }
 0x266   :  { %v2579_v57 = vpop.permute.xlu1 %2578  ;;  %2463 = vst.msk [vmem:[#allocation3 + $0x110] sm:$0xff] %vm2445_vm11, %v2384_v19 }
 0x267   :  { %1823 = vrot.lane.b32.xlu0 %v8278_v63, %s7191_s6 }
 0x268   :  { %2207 = vrot.lane.b32.xlu1 %v8286_v24, %s7194_s29  ;;  %v2767_v18 = vld [vmem:[#allocation3 + $0x100] sm:$0xff] }
 0x269   :  { %3065 = vmatmul.mubr.f32.gmra.mrb[32].mxu1 %v2767_v18  ;;  %v2577_v17 = vpop.permute.xlu0 %2576 }
 0x26a   :  { %v1424_v47 = vpop.permute.xlu1 %1423  ;;  %6363 = vmatprep.mubr.msk.f32.mxu1 %vm1138_vm3, %v2770_v36  ;;  %2656 = vst.msk [vmem:[#allocation3 + $0x110] sm:$0xff] %vm2638_vm12, %v2577_v17  ;;  %v2507_v36 = vld [vmem:[#allocation2 + $0x251] sm:$0xff] }
 0x26b   :  { %1500 = vst.msk [vmem:[#allocation3 + $0x140] sm:$0xff] %vm1479_vm6, %v1424_v47  ;;  %2016 = vrot.lane.b32.xlu0 %v1925_v35, %s7192_s25  ;;  %v2986_v24 = vpop.f32.mrb[0].mxu1 }
 0x26c   :  { %2401 = vrot.lane.b32.xlu1 %v8278_v63, %s7188_s17  ;;  %v2987_v7 = vadd.f32 %v8717_v51, %v2986_v24  ;;  %v2988_v50 = vpop.f32.mrb[1].mxu1  ;;  %v2772_v63 = vld [vmem:[#allocation3 + $0x128] sm:$0xff] }
 0x26d   :  { %v1422_v62 = vpop.permute.xlu0 %1421 }
 0x26e   :  { %v1617_v31 = vpop.permute.xlu1 %1616  ;;  %1499 = vst.msk [vmem:[#allocation3 + $0x130] sm:$0xff] %vm1479_vm6, %v1422_v62  ;;  %v3145_v52 = vmul.f32 0.1, %v2987_v7 }
 0x26f   :  { %1693 = vst.msk [vmem:[#allocation3 + $0x140] sm:$0xff] %vm1672_vm7, %v1617_v31  ;;  %2209 = vrot.lane.b32.xlu0 %v8280_v16, %s7194_s29 }
 0x270   :  { %2594 = vrot.lane.b32.xlu1 %v1925_v35, %s7189_s18  ;;  %v3177_v20 = vmax.f32 %v2987_v7, %v3145_v52  ;;  %v2778_v7 = vld [vmem:[#allocation3 + $0x158] sm:$0xff] }
 0x271   :  { %v1615_v2 = vpop.permute.xlu0 %1614  ;;  %v2769_v11 = vld [vmem:[#allocation3 + $0x110] sm:$0xff] }
 0x272   :  { %v1806_v46 = vpop.permute.xlu1 %1805  ;;  %1692 = vst.msk [vmem:[#allocation3 + $0x130] sm:$0xff] %vm1672_vm7, %v1615_v2  ;;  %3070 = vmatmul.mubr.f32.gmra.mrb[34].mxu1 %v2769_v11  ;;  %6727 = vmatprep.mubr.msk.f32.mxu0 %vm1138_vm3, %v3177_v20  ;;  %v1736_v2 = vld [vmem:[#allocation2 + $0x260] sm:$0xff] }
 0x273   :  { %3209 = vst.msk [vmem:[%s10435_s12] sm:$0xff] %vm1138_vm3, %v3177_v20  ;;  %6364 = vmatprep.mubr.msk.f32.mxu1 %vm1138_vm3, %v2772_v63  ;;  %2403 = vrot.lane.b32.xlu0 %v8305_v43, %s7188_s17  ;;  %v2780_v20 = vld [vmem:[#allocation3 + $0x168] sm:$0xff] }
 0x274   :  { %1884 = vst.msk [vmem:[#allocation3 + $0x120] sm:$0xff] %vm1865_vm8, %v1806_v46  ;;  %1885 = vst.msk [vmem:[#allocation3 + $0x130] sm:$0xff] %vm1865_vm8, %v1808_v6  ;;  %1439 = vrot.lane.b32.xlu1 %v1925_v35, %s7186_s2  ;;  %v1929_v63 = vld [vmem:[#allocation2 + $0x261] sm:$0xff] }
 0x275   :  { %2078 = vst.msk [vmem:[#allocation3 + $0x130] sm:$0xff] %vm2058_vm9, %v2001_v13  ;;  %v2991_v60 = vpop.f32.mrb[2].mxu1  ;;  %v1812_v8 = vpop.permute.xlu0 %1811 }
 0x276   :  { %2271 = vst.msk [vmem:[#allocation3 + $0x130] sm:$0xff] %vm2251_vm10, %v2194_v15  ;;  %v2992_v48 = vadd.f32 %v8717_v51, %v2991_v60  ;;  %v1999_v45 = vpop.permute.xlu1 %1998  ;;  %v2993_v27 = vpop.f32.mrb[3].mxu1 }
 0x277   :  { %2077 = vst.msk [vmem:[#allocation3 + $0x120] sm:$0xff] %vm2058_vm9, %v1999_v45  ;;  %2596 = vrot.lane.b32.xlu0 %v2505_v38, %s7189_s18  ;;  %v2316_v27 = vld [vmem:[#allocation2 + $0x270] sm:$0xff] }
 0x278   :  { %v3146_v40 = vmul.f32 0.1, %v2992_v48  ;;  %1632 = vrot.lane.b32.xlu1 %v8280_v16, %s7187_s3 }
 0x279   :  { %v2388_v25 = vpop.permute.xlu0 %2387 }
 0x27a   :  { %v3178_v61 = vmax.f32 %v2992_v48, %v3146_v40  ;;  %v2192_v14 = vpop.permute.xlu1 %2191  ;;  %2465 = vst.msk [vmem:[#allocation3 + $0x130] sm:$0xff] %vm2445_vm11, %v2388_v25 }
 0x27b   :  { %2270 = vst.msk [vmem:[#allocation3 + $0x120] sm:$0xff] %vm2251_vm10, %v2192_v14  ;;  %1441 = vrot.lane.b32.xlu0 %v2505_v38, %s7186_s2  ;;  %v2702_v14 = vld [vmem:[#allocation2 + $0x272] sm:$0xff] }
 0x27c   :  { %3210 = vst.msk [vmem:[%s10435_s12 + $0x8] sm:$0xff] %vm1138_vm3, %v3178_v61  ;;  %1825 = vrot.lane.b32.xlu1 %v8305_v43, %s7191_s6  ;;  %6728 = vmatmul.mubr.msk.f32.vlgmr.msra.gmra.mrb[40].mxu0 %vm1138_vm3, %v3178_v61  ;;  %2734 = vst.msk [vmem:[#allocation3 + $0x1f8] sm:$0xff] %vm1138_vm3, %v2702_v14 }
 0x27d   :  { %2464 = vst.msk [vmem:[#allocation3 + $0x120] sm:$0xff] %vm2445_vm11, %v2386_v0  ;;  %v2581_v16 = vpop.permute.xlu0 %2580 }
 0x27e   :  { %2657 = vst.msk [vmem:[#allocation3 + $0x120] sm:$0xff] %vm2638_vm12, %v2579_v57  ;;  %v2390_v44 = vpop.permute.xlu1 %2389  ;;  %2658 = vst.msk [vmem:[#allocation3 + $0x130] sm:$0xff] %vm2638_vm12, %v2581_v16 }
 0x27f   :  { %1634 = vrot.lane.b32.xlu0 %v8307_v39, %s7187_s3 }
 0x280   :  { %2018 = vrot.lane.b32.xlu1 %v2505_v38, %s7192_s25 }
 0x281   :  { %v1426_v28 = vpop.permute.xlu0 %1425 }
 0x282   :  { %v2583_v1 = vpop.permute.xlu1 %2582  ;;  %1501 = vst.msk [vmem:[#allocation3 + $0x150] sm:$0xff] %vm1479_vm6, %v1426_v28  ;;  %v2509_v28 = vld [vmem:[#allocation2 + $0x271] sm:$0xff] }
 0x283   :  { %1827 = vrot.lane.b32.xlu0 %v8299_v41, %s7191_s6 }
 0x284   :  { %2211 = vrot.lane.b32.xlu1 %v8307_v39, %s7194_s29 }
 0x285   :  { %v2771_v43 = vld [vmem:[#allocation3 + $0x120] sm:$0xff]  ;;  %v1619_v22 = vpop.permute.xlu0 %1618  ;;  %v2773_v39 = vld [vmem:[#allocation3 + $0x130] sm:$0xff] }
 0x286   :  { %3075 = vmatmul.mubr.f32.gmra.mrb[36].mxu1 %v2771_v43  ;;  %v1810_v3 = vpop.permute.xlu1 %1809  ;;  %1694 = vst.msk [vmem:[#allocation3 + $0x150] sm:$0xff] %vm1672_vm7, %v1619_v22 }
 0x287   :  { %6365 = vmatprep.mubr.msk.f32.mxu1 %vm1138_vm3, %v2774_v4  ;;  %1886 = vst.msk [vmem:[#allocation3 + $0x140] sm:$0xff] %vm1865_vm8, %v1810_v3  ;;  %1887 = vst.msk [vmem:[#allocation3 + $0x150] sm:$0xff] %vm1865_vm8, %v1812_v8  ;;  %2020 = vrot.lane.b32.xlu0 %v1927_v30, %s7192_s25 }
 0x288   :  { %v2996_v54 = vpop.f32.mrb[4].mxu1  ;;  %2405 = vrot.lane.b32.xlu1 %v8299_v41, %s7188_s17 }
 0x289   :  { %v2997_v59 = vadd.f32 %v8717_v51, %v2996_v54  ;;  %v2998_v33 = vpop.f32.mrb[5].mxu1  ;;  %v2005_v6 = vpop.permute.xlu0 %2004  ;;  %v2782_v54 = vld [vmem:[#allocation3 + $0x178] sm:$0xff] }
 0x28a   :  { %3080 = vmatmul.mubr.f32.gmra.mrb[38].mxu1 %v2773_v39  ;;  %v2003_v5 = vpop.permute.xlu1 %2002  ;;  %2080 = vst.msk [vmem:[#allocation3 + $0x150] sm:$0xff] %vm2058_vm9, %v2005_v6 }
 0x28b   :  { %6366 = vmatprep.mubr.msk.f32.mxu1 %vm1138_vm3, %v2776_v53  ;;  %v3147_v49 = vmul.f32 0.1, %v2997_v59  ;;  %2079 = vst.msk [vmem:[#allocation3 + $0x140] sm:$0xff] %vm2058_vm9, %v2003_v5  ;;  %2213 = vrot.lane.b32.xlu0 %v8301_v37, %s7194_s29  ;;  %v2784_v5 = vld [vmem:[#allocation3 + $0x188] sm:$0xff] }
 0x28c   :  { %2598 = vrot.lane.b32.xlu1 %v1927_v30, %s7189_s18 }
 0x28d   :  { %v3179_v41 = vmax.f32 %v2997_v59, %v3147_v49  ;;  %v2198_v13 = vpop.permute.xlu0 %2197 }
 0x28e   :  { %v2196_v9 = vpop.permute.xlu1 %2195  ;;  %2273 = vst.msk [vmem:[#allocation3 + $0x150] sm:$0xff] %vm2251_vm10, %v2198_v13 }
 0x28f   :  { %3211 = vst.msk [vmem:[%s10435_s12 + $0x10] sm:$0xff] %vm1138_vm3, %v3179_v41  ;;  %6730 = vmatprep.mubr.msk.f32.mxu0 %vm1138_vm3, %v3179_v41  ;;  %2407 = vrot.lane.b32.xlu0 %v8323_v12, %s7188_s17 }
 0x290   :  { %2272 = vst.msk [vmem:[#allocation3 + $0x140] sm:$0xff] %vm2251_vm10, %v2196_v9  ;;  %1443 = vrot.lane.b32.xlu1 %v1927_v30, %s7186_s2 }
 0x291   :  { %2466 = vst.msk [vmem:[#allocation3 + $0x140] sm:$0xff] %vm2445_vm11, %v2390_v44  ;;  %v3001_v15 = vpop.f32.mrb[6].mxu1  ;;  %v2392_v0 = vpop.permute.xlu0 %2391 }
 0x292   :  { %2659 = vst.msk [vmem:[#allocation3 + $0x140] sm:$0xff] %vm2638_vm12, %v2583_v1  ;;  %v3002_v19 = vadd.f32 %v8717_v51, %v3001_v15  ;;  %v1428_v57 = vpop.permute.xlu1 %1427  ;;  %v3003_v18 = vpop.f32.mrb[7].mxu1 }
 0x293   :  { %2467 = vst.msk [vmem:[#allocation3 + $0x150] sm:$0xff] %vm2445_vm11, %v2392_v0  ;;  %2600 = vrot.lane.b32.xlu0 %v2507_v36, %s7189_s18 }
 0x294   :  { %1502 = vst.msk [vmem:[#allocation3 + $0x160] sm:$0xff] %vm1479_vm6, %v1428_v57  ;;  %v3148_v17 = vmul.f32 0.1, %v3002_v19  ;;  %1636 = vrot.lane.b32.xlu1 %v8301_v37, %s7187_s3 }
 0x295   :  { %v2585_v47 = vpop.permute.xlu0 %2584 }
 0x296   :  { %v3180_v35 = vmax.f32 %v3002_v19, %v3148_v17  ;;  %v1621_v24 = vpop.permute.xlu1 %1620  ;;  %2660 = vst.msk [vmem:[#allocation3 + $0x150] sm:$0xff] %vm2638_vm12, %v2585_v47  ;;  %v10514_v17 = vld [vmem:[#allocation17_spill] sm:$0xff] }
 0x297   :  { %1695 = vst.msk [vmem:[#allocation3 + $0x160] sm:$0xff] %vm1672_vm7, %v1621_v24  ;;  %1445 = vrot.lane.b32.xlu0 %v2507_v36, %s7186_s2  ;;  %v10515_v24 = vld [vmem:[#allocation13_spill] sm:$0xff] }
 0x298   :  { %3212 = vst.msk [vmem:[%s10435_s12 + $0x18] sm:$0xff] %vm1138_vm3, %v3180_v35  ;;  %1829 = vrot.lane.b32.xlu1 %v8323_v12, %s7191_s6  ;;  %6731 = vmatmul.mubr.msk.f32.gmra.mrb[42].mxu0 %vm1138_vm3, %v3180_v35 }
 0x299   :  { %v2775_v37 = vld [vmem:[#allocation3 + $0x140] sm:$0xff]  ;;  %v1430_v50 = vpop.permute.xlu0 %1429 }
 0x29a   :  { %3085 = vmatmul.mubr.f32.gmra.mrb[40].mxu1 %v2775_v37  ;;  %v1814_v62 = vpop.permute.xlu1 %1813  ;;  %1503 = vst.msk [vmem:[#allocation3 + $0x170] sm:$0xff] %vm1479_vm6, %v1430_v50  ;;  %v10516_v37 = vld [vmem:[#allocation16_spill] sm:$0xff] }
 0x29b   :  { %6367 = vmatprep.mubr.msk.f32.mxu1 %vm1138_vm3, %v2778_v7  ;;  %1888 = vst.msk [vmem:[#allocation3 + $0x160] sm:$0xff] %vm1865_vm8, %v1814_v62  ;;  %1638 = vrot.lane.b32.xlu0 %v8325_v55, %s7187_s3  ;;  %v10517_v62 = vld [vmem:[#allocation15_spill] sm:$0xff]  ;;  %s7161_s3 = scalar_lea.vmem %s6289_s14, 1024 }
 0x29c   :  { %2022 = vrot.lane.b32.xlu1 %v2507_v36, %s7192_s25  ;;  %v10513_v36 = vld [vmem:[#allocation12_spill] sm:$0xff]  ;;  %p7162_p0 = scmp.ne.s32.totalorder %s6289_s14, %s7161_s3  ;;  %p7167_p2 = scmp.lt.s32.totalorder %s7161_s3, %s7161_s3 }
 0x29d   :  { %v1623_v12 = vpop.permute.xlu0 %1622  ;;  %v2777_v31 = vld [vmem:[#allocation3 + $0x150] sm:$0xff] }
 0x29e   :  { %v2007_v52 = vpop.permute.xlu1 %2006  ;;  %1696 = vst.msk [vmem:[#allocation3 + $0x170] sm:$0xff] %vm1672_vm7, %v1623_v12  ;;  %3090 = vmatmul.mubr.f32.gmra.mrb[42].mxu1 %v2777_v31  ;;  %v10518_v12 = vld [vmem:[#allocation20_spill] sm:$0xff]  ;;  %p7168_p3 = por %p7167_p2, %p7166_p1 }
 0x29f   :  { %2081 = vst.msk [vmem:[#allocation3 + $0x160] sm:$0xff] %vm2058_vm9, %v2007_v52  ;;  %6368 = vmatprep.mubr.msk.f32.mxu1 %vm1138_vm3, %v2780_v20  ;;  %1831 = vrot.lane.b32.xlu0 %v1736_v2, %s7191_s6 }
 0x2a0   :  { %2215 = vrot.lane.b32.xlu1 %v8325_v55, %s7194_s29  ;;  %p7169_p4 = pnand %p7168_p3, %p7162_p0 }
 0x2a1   :  { %v1816_v11 = vpop.permute.xlu0 %1815 }
 0x2a2   :  { %v2200_v46 = vpop.permute.xlu1 %2199  ;;  %1889 = vst.msk [vmem:[#allocation3 + $0x170] sm:$0xff] %vm1865_vm8, %v1816_v11  ;;  %v10519_v11 = vld [vmem:[#allocation18_spill] sm:$0xff] }
 0x2a3   :  { %2274 = vst.msk [vmem:[#allocation3 + $0x160] sm:$0xff] %vm2251_vm10, %v2200_v46  ;;  %2024 = vrot.lane.b32.xlu0 %v1929_v63, %s7192_s25  ;;  %v10520_v46 = vld [vmem:[#allocation22_spill] sm:$0xff] }
 0x2a4   :  { %v3006_v60 = vpop.f32.mrb[8].mxu1  ;;  %2409 = vrot.lane.b32.xlu1 %v1736_v2, %s7188_s17  ;;  %v2786_v2 = vld [vmem:[#allocation3 + $0x198] sm:$0xff] }
 0x2a5   :  { %v3007_v8 = vadd.f32 %v8717_v51, %v3006_v60  ;;  %v3008_v48 = vpop.f32.mrb[9].mxu1  ;;  %v2009_v45 = vpop.permute.xlu0 %2008 }
 0x2a6   :  { %v2394_v55 = vpop.permute.xlu1 %2393  ;;  %2082 = vst.msk [vmem:[#allocation3 + $0x170] sm:$0xff] %vm2058_vm9, %v2009_v45  ;;  %v10521_v48 = vld [vmem:[#allocation19_spill] sm:$0xff] }
 0x2a7   :  { %v3149_v38 = vmul.f32 0.1, %v3007_v8  ;;  %2468 = vst.msk [vmem:[#allocation3 + $0x160] sm:$0xff] %vm2445_vm11, %v2394_v55  ;;  %2411 = vrot.lane.b32.xlu0 %v2316_v27, %s7188_s17  ;;  %v10522_v27 = vld [vmem:[#allocation23_spill] sm:$0xff] }
 0x2a8   :  { %2602 = vrot.lane.b32.xlu1 %v1929_v63, %s7189_s18 }
 0x2a9   :  { %v3181_v40 = vmax.f32 %v3007_v8, %v3149_v38  ;;  %v2202_v25 = vpop.permute.xlu0 %2201 }
 0x2aa   :  { %v2587_v61 = vpop.permute.xlu1 %2586  ;;  %2275 = vst.msk [vmem:[#allocation3 + $0x170] sm:$0xff] %vm2251_vm10, %v2202_v25 }
 0x2ab   :  { %3213 = vst.msk [vmem:[%s10435_s12 + $0x20] sm:$0xff] %vm1138_vm3, %v3181_v40  ;;  %6733 = vmatprep.mubr.msk.f32.mxu0 %vm1138_vm3, %v3181_v40  ;;  %4685 = vrot.lane.b32.xlu0 %v7647_v23, %s7189_s18 }
 0x2ac   :  { %2661 = vst.msk [vmem:[#allocation3 + $0x160] sm:$0xff] %vm2638_vm12, %v2587_v61  ;;  %2217 = vrot.lane.b32.xlu1 %v8319_v56, %s7194_s29  ;;  %v2788_v61 = vld [vmem:[#allocation3 + $0x1a8] sm:$0xff] }
 0x2ad   :  { %v3011_v16 = vpop.f32.mrb[10].mxu1  ;;  %v2396_v44 = vpop.permute.xlu0 %2395 }
 0x2ae   :  { %v3012_v1 = vadd.f32 %v8717_v51, %v3011_v16  ;;  %v1432_v43 = vpop.permute.xlu1 %1431  ;;  %2469 = vst.msk [vmem:[#allocation3 + $0x170] sm:$0xff] %vm2445_vm11, %v2396_v44  ;;  %v3013_v4 = vpop.f32.mrb[11].mxu1  ;;  %v10523_v16 = vld [vmem:[#allocation21_spill] sm:$0xff] }
 0x2af   :  { %1504 = vst.msk [vmem:[#allocation3 + $0x180] sm:$0xff] %vm1479_vm6, %v1432_v43  ;;  %4689 = vrot.lane.b32.xlu0 %v7657_v32, %s7189_s18  ;;  %v10525_v4 = vld [vmem:[#allocation24_spill] sm:$0xff] }
 0x2b0   :  { %v3150_v22 = vmul.f32 0.1, %v3012_v1  ;;  %2604 = vrot.lane.b32.xlu1 %v2509_v28, %s7189_s18  ;;  %v10524_v28 = vld [vmem:[#allocation25_spill] sm:$0xff] }
 0x2b1   :  { %v2589_v23 = vpop.permute.xlu0 %2588 }
 0x2b2   :  { %v3182_v56 = vmax.f32 %v3012_v1, %v3150_v22  ;;  %v1625_v3 = vpop.permute.xlu1 %1624  ;;  %2662 = vst.msk [vmem:[#allocation3 + $0x170] sm:$0xff] %vm2638_vm12, %v2589_v23  ;;  %v10526_v22 = vld [vmem:[#allocation28_spill] sm:$0xff] }
 0x2b3   :  { %v2779_v30 = vld [vmem:[#allocation3 + $0x160] sm:$0xff]  ;;  %1697 = vst.msk [vmem:[#allocation3 + $0x180] sm:$0xff] %vm1672_vm7, %v1625_v3  ;;  %5050 = vrot.lane.b32.xlu0 %v7663_v34, %s7189_s18 }
 0x2b4   :  { %3095 = vmatmul.mubr.f32.gmra.mrb[44].mxu1 %v2779_v30  ;;  %3214 = vst.msk [vmem:[%s10435_s12 + $0x28] sm:$0xff] %vm1138_vm3, %v3182_v56  ;;  %4687 = vrot.lane.b32.xlu1 %v7643_v21, %s7189_s18 }
 0x2b5   :  { %6734 = vmatmul.mubr.msk.f32.gmra.mrb[44].mxu0 %vm1138_vm3, %v3182_v56  ;;  %v1434_v32 = vpop.permute.xlu0 %1433  ;;  %6369 = vmatprep.mubr.msk.f32.mxu1 %vm1138_vm3, %v2782_v54 }
 0x2b6   :  { %v1818_v39 = vpop.permute.xlu1 %1817  ;;  %1505 = vst.msk [vmem:[#allocation3 + $0x190] sm:$0xff] %vm1479_vm6, %v1434_v32 }
 0x2b7   :  { %1890 = vst.msk [vmem:[#allocation3 + $0x180] sm:$0xff] %vm1865_vm8, %v1818_v39  ;;  %5054 = vrot.lane.b32.xlu0 %v7681_v42, %s7189_s18  ;;  %v10527_v39 = vld [vmem:[#allocation26_spill] sm:$0xff] }
 0x2b8   :  { %4691 = vrot.lane.b32.xlu1 %v7655_v29, %s7189_s18 }
 0x2b9   :  { %v1627_v33 = vpop.permute.xlu0 %1626  ;;  %v2781_v53 = vld [vmem:[#allocation3 + $0x170] sm:$0xff] }
 0x2ba   :  { %v3016_v59 = vpop.f32.mrb[12].mxu1  ;;  %v2011_v6 = vpop.permute.xlu1 %2010  ;;  %1698 = vst.msk [vmem:[#allocation3 + $0x190] sm:$0xff] %vm1672_vm7, %v1627_v33  ;;  %3100 = vmatmul.mubr.f32.gmra.mrb[46].mxu1 %v2781_v53  ;;  %v10529_v53 = vld [vmem:[#allocation32_spill] sm:$0xff] }
 0x2bb   :  { %v3017_v21 = vadd.f32 %v8717_v51, %v3016_v59  ;;  %v3018_v34 = vpop.f32.mrb[13].mxu1  ;;  %2083 = vst.msk [vmem:[#allocation3 + $0x180] sm:$0xff] %vm2058_vm9, %v2011_v6  ;;  %6370 = vmatprep.mubr.msk.f32.mxu1 %vm1138_vm3, %v2784_v5  ;;  %5058 = vrot.lane.b32.xlu0 %v7697_v58, %s7189_s18  ;;  %v10512_v58 = vld [vmem:[#allocation14_spill] sm:$0xff]  ;;  %v10528_v59 = vld [vmem:[#allocation31_spill] sm:$0xff] }
 0x2bc   :  { %5052 = vrot.lane.b32.xlu1 %v7652_v26, %s7189_s18  ;;  %v10511_v26 = vld [vmem:[#allocation11_spill] sm:$0xff]  ;;  %v10530_v6 = vld [vmem:[#allocation34_spill] sm:$0xff] }
 0x2bd   :  { %v3151_v49 = vmul.f32 0.1, %v3017_v21  ;;  %v1820_v9 = vpop.permute.xlu0 %1819 }
 0x2be   :  { %v3021_v41 = vpop.f32.mrb[14].mxu1  ;;  %v2204_v15 = vpop.permute.xlu1 %2203  ;;  %1891 = vst.msk [vmem:[#allocation3 + $0x190] sm:$0xff] %vm1865_vm8, %v1820_v9 }
 0x2bf   :  { %v3183_v29 = vmax.f32 %v3017_v21, %v3151_v49  ;;  %v3022_v42 = vadd.f32 %v8717_v51, %v3021_v41  ;;  %v3023_v13 = vpop.f32.mrb[15].mxu1  ;;  %2276 = vst.msk [vmem:[#allocation3 + $0x180] sm:$0xff] %vm2251_vm10, %v2204_v15  ;;  %5062 = vrot.lane.b32.xlu0 %v10512_v58, %s7189_s18  ;;  %v10531_v41 = vld [vmem:[#allocation33_spill] sm:$0xff]  ;;  %v2790_v15 = vld [vmem:[#allocation3 + $0x1b8] sm:$0xff] }
 0x2c0   :  { %5056 = vrot.lane.b32.xlu1 %v10511_v26, %s7189_s18 }
 0x2c1   :  { %3215 = vst.msk [vmem:[%s10435_s12 + $0x30] sm:$0xff] %vm1138_vm3, %v3183_v29  ;;  %v3152_v0 = vmul.f32 0.1, %v3022_v42  ;;  %6736 = vmatprep.mubr.msk.f32.mxu0 %vm1138_vm3, %v3183_v29  ;;  %v2013_v57 = vpop.permute.xlu0 %2012  ;;  %v10532_v29 = vld [vmem:[#allocation27_spill] sm:$0xff] }
 0x2c2   :  { %v2398_v18 = vpop.permute.xlu1 %2397  ;;  %2084 = vst.msk [vmem:[#allocation3 + $0x190] sm:$0xff] %vm2058_vm9, %v2013_v57 }
 0x2c3   :  { %v3184_v19 = vmax.f32 %v3022_v42, %v3152_v0  ;;  %2470 = vst.msk [vmem:[#allocation3 + $0x180] sm:$0xff] %vm2445_vm11, %v2398_v18  ;;  %5066 = vrot.lane.b32.xlu0 %v10514_v17, %s7189_s18  ;;  %v10533_v0 = vld [vmem:[#allocation30_spill] sm:$0xff] }
 0x2c4   :  { %5060 = vrot.lane.b32.xlu1 %v10513_v36, %s7189_s18  ;;  %v10535_v36 = vld [vmem:[#allocation35_spill] sm:$0xff] }
 0x2c5   :  { %3216 = vst.msk [vmem:[%s10435_s12 + $0x38] sm:$0xff] %vm1138_vm3, %v3184_v19  ;;  %6737 = vmatmul.mubr.msk.f32.gmra.mrb[46].mxu0 %vm1138_vm3, %v3184_v19  ;;  %v2206_v47 = vpop.permute.xlu0 %2205  ;;  %v10534_v19 = vld [vmem:[#allocation8_spill] sm:$0xff] }
 0x2c6   :  { %v2591_v35 = vpop.permute.xlu1 %2590  ;;  %2277 = vst.msk [vmem:[#allocation3 + $0x190] sm:$0xff] %vm2251_vm10, %v2206_v47  ;;  %v5855_v57 = vrot.slane %v10534_v19, 1 }
 0x2c7   :  { %2663 = vst.msk [vmem:[#allocation3 + $0x180] sm:$0xff] %vm2638_vm12, %v2591_v35  ;;  %5070 = vrot.lane.b32.xlu0 %v10516_v37, %s7189_s18 }
 0x2c8   :  { %5064 = vrot.lane.b32.xlu1 %v10515_v24, %s7189_s18 }
 0x2c9   :  { %v2400_v7 = vpop.permute.xlu0 %2399 }
 0x2ca   :  { %v1436_v50 = vpop.permute.xlu1 %1435  ;;  %2471 = vst.msk [vmem:[#allocation3 + $0x190] sm:$0xff] %vm2445_vm11, %v2400_v7  ;;  %v2792_v7 = vld [vmem:[#allocation3 + $0x1c8] sm:$0xff] }
 0x2cb   :  { %1506 = vst.msk [vmem:[#allocation3 + $0x1a0] sm:$0xff] %vm1479_vm6, %v1436_v50  ;;  %5074 = vrot.lane.b32.xlu0 %v10518_v12, %s7189_s18  ;;  %v10536_v50 = vld [vmem:[#allocation10_spill] sm:$0xff]  ;;  %v10537_v12 = vld [vmem:[#allocation37_spill] sm:$0xff] }
 0x2cc   :  { %5068 = vrot.lane.b32.xlu1 %v10517_v62, %s7189_s18  ;;  %v5869_v62 = vrot.slane %v10536_v50, 1 }
 0x2cd   :  { %v2593_v31 = vpop.permute.xlu0 %2592 }
 0x2ce   :  { %v1629_v52 = vpop.permute.xlu1 %1628  ;;  %2664 = vst.msk [vmem:[#allocation3 + $0x190] sm:$0xff] %vm2638_vm12, %v2593_v31  ;;  %v2783_v20 = vld [vmem:[#allocation3 + $0x180] sm:$0xff] }
 0x2cf   :  { %1699 = vst.msk [vmem:[#allocation3 + $0x1a0] sm:$0xff] %vm1672_vm7, %v1629_v52  ;;  %3105 = vmatmul.mubr.f32.gmra.mrb[48].mxu1 %v2783_v20  ;;  %5078 = vrot.lane.b32.xlu0 %v10520_v46, %s7189_s18  ;;  %v5856_v46 = vrot.slane %v10534_v19, 2 }
 0x2d0   :  { %6371 = vmatprep.mubr.msk.f32.mxu1 %vm1138_vm3, %v2786_v2  ;;  %5072 = vrot.lane.b32.xlu1 %v10519_v11, %s7189_s18  ;;  %v10538_v2 = vld [vmem:[#allocation7_spill] sm:$0xff] }
 0x2d1   :  { %v1438_v63 = vpop.permute.xlu0 %1437  ;;  %v5862_v11 = vrot.slane %v10538_v2, 1 }
 0x2d2   :  { %v1822_v60 = vpop.permute.xlu1 %1821  ;;  %1507 = vst.msk [vmem:[#allocation3 + $0x1b0] sm:$0xff] %vm1479_vm6, %v1438_v63 }
 0x2d3   :  { %1892 = vst.msk [vmem:[#allocation3 + $0x1a0] sm:$0xff] %vm1865_vm8, %v1822_v60  ;;  %5082 = vrot.lane.b32.xlu0 %v10522_v27, %s7189_s18 }
 0x2d4   :  { %v3026_v8 = vpop.f32.mrb[16].mxu1  ;;  %5076 = vrot.lane.b32.xlu1 %v10521_v48, %s7189_s18 }
 0x2d5   :  { %v3027_v45 = vadd.f32 %v8717_v51, %v3026_v8  ;;  %v3028_v55 = vpop.f32.mrb[17].mxu1  ;;  %v1631_v38 = vpop.permute.xlu0 %1630  ;;  %v2785_v40 = vld [vmem:[#allocation3 + $0x190] sm:$0xff] }
 0x2d6   :  { %v2015_v25 = vpop.permute.xlu1 %2014  ;;  %1700 = vst.msk [vmem:[#allocation3 + $0x1b0] sm:$0xff] %vm1672_vm7, %v1631_v38  ;;  %3110 = vmatmul.mubr.f32.gmra.mrb[50].mxu1 %v2785_v40  ;;  %v5870_v38 = vrot.slane %v10536_v50, 2 }
 0x2d7   :  { %v3153_v14 = vmul.f32 0.1, %v3027_v45  ;;  %2085 = vst.msk [vmem:[#allocation3 + $0x1a0] sm:$0xff] %vm2058_vm9, %v2015_v25  ;;  %6372 = vmatprep.mubr.msk.f32.mxu1 %vm1138_vm3, %v2788_v61  ;;  %5086 = vrot.lane.b32.xlu0 %v10524_v28, %s7189_s18 }
 0x2d8   :  { %5080 = vrot.lane.b32.xlu1 %v10523_v16, %s7189_s18  ;;  %v5863_v16 = vrot.slane %v10538_v2, 2 }
 0x2d9   :  { %v3185_v44 = vmax.f32 %v3027_v45, %v3153_v14  ;;  %v1824_v1 = vpop.permute.xlu0 %1823  ;;  %v10539_v45 = vld [vmem:[#allocation9_spill] sm:$0xff] }
 0x2da   :  { %v2208_v43 = vpop.permute.xlu1 %2207  ;;  %1893 = vst.msk [vmem:[#allocation3 + $0x1b0] sm:$0xff] %vm1865_vm8, %v1824_v1  ;;  %v5876_v27 = vrot.slane %v10539_v45, 1 }
 0x2db   :  { %3217 = vst.msk [vmem:[%s10435_s12 + $0x40] sm:$0xff] %vm1138_vm3, %v3185_v44  ;;  %6739 = vmatprep.mubr.msk.f32.mxu0 %vm1138_vm3, %v3185_v44  ;;  %5090 = vrot.lane.b32.xlu0 %v10526_v22, %s7189_s18  ;;  %v10540_v44 = vld [vmem:[#allocation29_spill] sm:$0xff] }
 0x2dc   :  { %2278 = vst.msk [vmem:[#allocation3 + $0x1a0] sm:$0xff] %vm2251_vm10, %v2208_v43  ;;  %5084 = vrot.lane.b32.xlu1 %v10525_v4, %s7189_s18  ;;  %v5877_v43 = vrot.slane %v10539_v45, 2 }
 0x2dd   :  { %v3031_v23 = vpop.f32.mrb[18].mxu1  ;;  %v2017_v56 = vpop.permute.xlu0 %2016 }
 0x2de   :  { %v3032_v3 = vadd.f32 %v8717_v51, %v3031_v23  ;;  %v2402_v30 = vpop.permute.xlu1 %2401  ;;  %2086 = vst.msk [vmem:[#allocation3 + $0x1b0] sm:$0xff] %vm2058_vm9, %v2017_v56  ;;  %v3033_v54 = vpop.f32.mrb[19].mxu1  ;;  %v2794_v56 = vld [vmem:[#allocation3 + $0x1d8] sm:$0xff] }
 0x2df   :  { %2472 = vst.msk [vmem:[#allocation3 + $0x1a0] sm:$0xff] %vm2445_vm11, %v2402_v30  ;;  %5100 = vrot.lane.b32.xlu0 %v10528_v59, %s7189_s18 }
 0x2e0   :  { %v3154_v32 = vmul.f32 0.1, %v3032_v3  ;;  %5088 = vrot.lane.b32.xlu1 %v10527_v39, %s7189_s18 }
 0x2e1   :  { %v2210_v21 = vpop.permute.xlu0 %2209 }
 0x2e2   :  { %v3186_v34 = vmax.f32 %v3032_v3, %v3154_v32  ;;  %v2595_v33 = vpop.permute.xlu1 %2594  ;;  %2279 = vst.msk [vmem:[#allocation3 + $0x1b0] sm:$0xff] %vm2251_vm10, %v2210_v21  ;;  %v10541_v3 = vld [vmem:[#allocation36_spill] sm:$0xff]  ;;  %v5857_v32 = vrot.slane %v10534_v19, 3 }
 0x2e3   :  { %2665 = vst.msk [vmem:[#allocation3 + $0x1a0] sm:$0xff] %vm2638_vm12, %v2595_v33  ;;  %5104 = vrot.lane.b32.xlu0 %v10530_v6, %s7189_s18  ;;  %v5864_v6 = vrot.slane %v10538_v2, 3 }
 0x2e4   :  { %3218 = vst.msk [vmem:[%s10435_s12 + $0x48] sm:$0xff] %vm1138_vm3, %v3186_v34  ;;  %5098 = vrot.lane.b32.xlu1 %v10529_v53, %s7189_s18  ;;  %6740 = vmatmul.mubr.msk.f32.gmra.mrb[48].mxu0 %vm1138_vm3, %v3186_v34 }
 0x2e5   :  { %v2404_v49 = vpop.permute.xlu0 %2403 }
 0x2e6   :  { %v1440_v5 = vpop.permute.xlu1 %1439  ;;  %2473 = vst.msk [vmem:[#allocation3 + $0x1b0] sm:$0xff] %vm2445_vm11, %v2404_v49  ;;  %v2796_v49 = vld [vmem:[#allocation3 + $0x1e8] sm:$0xff] }
 0x2e7   :  { %1508 = vst.msk [vmem:[#allocation3 + $0x1c0] sm:$0xff] %vm1479_vm6, %v1440_v5  ;;  %5092 = vrot.lane.b32.xlu0 %v10532_v29, %s7189_s18 }
 0x2e8   :  { %5102 = vrot.lane.b32.xlu1 %v10531_v41, %s7189_s18 }
 0x2e9   :  { %v2597_v13 = vpop.permute.xlu0 %2596 }
 0x2ea   :  { %v1633_v42 = vpop.permute.xlu1 %1632  ;;  %v2787_v9 = vld [vmem:[#allocation3 + $0x1a0] sm:$0xff]  ;;  %2666 = vst.msk [vmem:[#allocation3 + $0x1b0] sm:$0xff] %vm2638_vm12, %v2597_v13  ;;  %v5871_v13 = vrot.slane %v10536_v50, 3 }
 0x2eb   :  { %1701 = vst.msk [vmem:[#allocation3 + $0x1c0] sm:$0xff] %vm1672_vm7, %v1633_v42  ;;  %3115 = vmatmul.mubr.f32.gmra.mrb[52].mxu1 %v2787_v9  ;;  %5094 = vrot.lane.b32.xlu0 %v10533_v0, %s7189_s18  ;;  %v5858_v9 = vrot.slane %v10534_v19, 4 }
 0x2ec   :  { %6373 = vmatprep.mubr.msk.f32.mxu1 %vm1138_vm3, %v2790_v15  ;;  %5106 = vrot.lane.b32.xlu1 %v8175_v10, %s7189_s18 }
 0x2ed   :  { %v1442_v58 = vpop.permute.xlu0 %1441 }
 0x2ee   :  { %v1826_v26 = vpop.permute.xlu1 %1825  ;;  %1509 = vst.msk [vmem:[#allocation3 + $0x1d0] sm:$0xff] %vm1479_vm6, %v1442_v58 }
 0x2ef   :  { %1894 = vst.msk [vmem:[#allocation3 + $0x1c0] sm:$0xff] %vm1865_vm8, %v1826_v26  ;;  %5885 = vrot.lane.b32.xlu0 %v5855_v57, %s7189_s18  ;;  %v5878_v57 = vrot.slane %v10539_v45, 3 }
 0x2f0   :  { %v3036_v18 = vpop.f32.mrb[20].mxu1  ;;  %5108 = vrot.lane.b32.xlu1 %v10535_v36, %s7189_s18  ;;  %v5872_v36 = vrot.slane %v10536_v50, 4 }
 0x2f1   :  { %v3037_v17 = vadd.f32 %v8717_v51, %v3036_v18  ;;  %v3038_v10 = vpop.f32.mrb[21].mxu1  ;;  %v1635_v35 = vpop.permute.xlu0 %1634  ;;  %v2789_v24 = vld [vmem:[#allocation3 + $0x1b0] sm:$0xff] }
 0x2f2   :  { %v2019_v47 = vpop.permute.xlu1 %2018  ;;  %1702 = vst.msk [vmem:[#allocation3 + $0x1d0] sm:$0xff] %vm1672_vm7, %v1635_v35  ;;  %3120 = vmatmul.mubr.f32.gmra.mrb[54].mxu1 %v2789_v24  ;;  %v5865_v35 = vrot.slane %v10538_v2, 4  ;;  %v5859_v24 = vrot.slane %v10534_v19, 5 }
 0x2f3   :  { %v3155_v37 = vmul.f32 0.1, %v3037_v17  ;;  %2087 = vst.msk [vmem:[#allocation3 + $0x1c0] sm:$0xff] %vm2058_vm9, %v2019_v47  ;;  %6374 = vmatprep.mubr.msk.f32.mxu1 %vm1138_vm3, %v2792_v7  ;;  %5917 = vrot.lane.b32.xlu0 %v5869_v62, %s7189_s18  ;;  %v5879_v7 = vrot.slane %v10539_v45, 4 }
 0x2f4   :  { %5110 = vrot.lane.b32.xlu1 %v10537_v12, %s7189_s18  ;;  %v5873_v12 = vrot.slane %v10536_v50, 5 }
 0x2f5   :  { %v3187_v31 = vmax.f32 %v3037_v17, %v3155_v37  ;;  %v1828_v20 = vpop.permute.xlu0 %1827 }
 0x2f6   :  { %v2212_v52 = vpop.permute.xlu1 %2211  ;;  %1895 = vst.msk [vmem:[#allocation3 + $0x1d0] sm:$0xff] %vm1865_vm8, %v1828_v20 }
 0x2f7   :  { %3219 = vst.msk [vmem:[%s10435_s12 + $0x50] sm:$0xff] %vm1138_vm3, %v3187_v31  ;;  %6742 = vmatprep.mubr.msk.f32.mxu0 %vm1138_vm3, %v3187_v31  ;;  %5887 = vrot.lane.b32.xlu0 %v5856_v46, %s7189_s18 }
 0x2f8   :  { %2280 = vst.msk [vmem:[#allocation3 + $0x1c0] sm:$0xff] %vm2251_vm10, %v2212_v52  ;;  %5901 = vrot.lane.b32.xlu1 %v5862_v11, %s7189_s18  ;;  %v2798_v11 = vld [vmem:[#allocation3 + $0x1f8] sm:$0xff] }
 0x2f9   :  { %v3041_v63 = vpop.f32.mrb[22].mxu1  ;;  %v2021_v48 = vpop.permute.xlu0 %2020 }
 0x2fa   :  { %v3042_v60 = vadd.f32 %v8717_v51, %v3041_v63  ;;  %v2406_v8 = vpop.permute.xlu1 %2405  ;;  %2088 = vst.msk [vmem:[#allocation3 + $0x1d0] sm:$0xff] %vm2058_vm9, %v2021_v48  ;;  %v3043_v55 = vpop.f32.mrb[23].mxu1  ;;  %v5860_v48 = vrot.slane %v10534_v19, 6 }
 0x2fb   :  { %2474 = vst.msk [vmem:[#allocation3 + $0x1c0] sm:$0xff] %vm2445_vm11, %v2406_v8  ;;  %5919 = vrot.lane.b32.xlu0 %v5870_v38, %s7189_s18 }
 0x2fc   :  { %v3156_v40 = vmul.f32 0.1, %v3042_v60  ;;  %5933 = vrot.lane.b32.xlu1 %v5876_v27, %s7189_s18 }
 0x2fd   :  { %v2214_v14 = vpop.permute.xlu0 %2213 }
 0x2fe   :  { %v3188_v25 = vmax.f32 %v3042_v60, %v3156_v40  ;;  %v2599_v61 = vpop.permute.xlu1 %2598  ;;  %2281 = vst.msk [vmem:[#allocation3 + $0x1d0] sm:$0xff] %vm2251_vm10, %v2214_v14  ;;  %v5866_v60 = vrot.slane %v10538_v2, 5  ;;  %v5874_v14 = vrot.slane %v10536_v50, 6 }
 0x2ff   :  { %2667 = vst.msk [vmem:[#allocation3 + $0x1c0] sm:$0xff] %vm2638_vm12, %v2599_v61  ;;  %5096 = vrot.lane.b32.xlu0 %v10540_v44, %s7189_s18 }
 0x300   :  { %3220 = vst.msk [vmem:[%s10435_s12 + $0x58] sm:$0xff] %vm1138_vm3, %v3188_v25  ;;  %5903 = vrot.lane.b32.xlu1 %v5863_v16, %s7189_s18  ;;  %6743 = vmatmul.mubr.msk.f32.gmra.mrb[50].mxu0 %vm1138_vm3, %v3188_v25  ;;  %v5880_v25 = vrot.slane %v10539_v45, 5 }
 0x301   :  { %v2408_v1 = vpop.permute.xlu0 %2407 }
 0x302   :  { %v1444_v28 = vpop.permute.xlu1 %1443  ;;  %2475 = vst.msk [vmem:[#allocation3 + $0x1d0] sm:$0xff] %vm2445_vm11, %v2408_v1  ;;  %v5861_v1 = vrot.slane %v10534_v19, 7 }
 0x303   :  { %1510 = vst.msk [vmem:[#allocation3 + $0x1e0] sm:$0xff] %vm1479_vm6, %v1444_v28  ;;  %5883 = vrot.lane.b32.xlu0 %v10534_v19, %s7189_s18  ;;  %v5867_v28 = vrot.slane %v10538_v2, 6 }
 0x304   :  { %5935 = vrot.lane.b32.xlu1 %v5877_v43, %s7189_s18  ;;  %v5881_v43 = vrot.slane %v10539_v45, 6 }
 0x305   :  { %v2601_v22 = vpop.permute.xlu0 %2600 }
 0x306   :  { %v1637_v4 = vpop.permute.xlu1 %1636  ;;  %v2791_v23 = vld [vmem:[#allocation3 + $0x1c0] sm:$0xff]  ;;  %2668 = vst.msk [vmem:[#allocation3 + $0x1d0] sm:$0xff] %vm2638_vm12, %v2601_v22  ;;  %v5868_v22 = vrot.slane %v10538_v2, 7 }
 0x307   :  { %1703 = vst.msk [vmem:[#allocation3 + $0x1e0] sm:$0xff] %vm1672_vm7, %v1637_v4  ;;  %3125 = vmatmul.mubr.f32.gmra.mrb[56].mxu1 %v2791_v23  ;;  %5899 = vrot.lane.b32.xlu0 %v10538_v2, %s7189_s18  ;;  %v5875_v4 = vrot.slane %v10536_v50, 7  ;;  %v5882_v23 = vrot.slane %v10539_v45, 7  ;;  %v9121_v2 = vld [vmem:[%s10433_s10] sm:$0xf] }
 0x308   :  { %6375 = vmatprep.mubr.msk.f32.mxu1 %vm1138_vm3, %v2794_v56  ;;  %5112 = vrot.lane.b32.xlu1 %v10541_v3, %s7189_s18 }
 0x309   :  { %v1446_v54 = vpop.permute.xlu0 %1445  ;;  %6825 = vmatprep.subr.msk.mxu1 %vm382_vm1, %v9121_v2  ;;  %6775 = vmatprep.subr.msk.mxu0 %vm382_vm1, %v9121_v2 }
 0x30a   :  { %v1830_v30 = vpop.permute.xlu1 %1829  ;;  %1511 = vst.msk [vmem:[#allocation3 + $0x1f0] sm:$0xff] %vm1479_vm6, %v1446_v54  ;;  %6826 = vmatpush3.msk.msra.mxu1 %vm382_vm1, %v9121_v2  ;;  %6776 = vmatpush3.msk.msra.mxu0 %vm382_vm1, %v9121_v2  ;;  %vm5538_vm6 = vcmask 1047559  }
 0x30b   :  { %1896 = vst.msk [vmem:[#allocation3 + $0x1e0] sm:$0xff] %vm1865_vm8, %v1830_v30  ;;  %5915 = vrot.lane.b32.xlu0 %v10536_v50, %s7189_s18  ;;  %6875 = vmatprep.subr.msk.mxu0 %vm382_vm1, %v9121_v2 }
 0x30c   :  { %v3046_v39 = vpop.f32.mrb[24].mxu1  ;;  %5889 = vrot.lane.b32.xlu1 %v5857_v32, %s7189_s18 }
 0x30d   :  { %v3047_v59 = vadd.f32 %v8717_v51, %v3046_v39  ;;  %v3048_v21 = vpop.f32.mrb[25].mxu1  ;;  %v1639_v33 = vpop.permute.xlu0 %1638  ;;  %v2793_v53 = vld [vmem:[#allocation3 + $0x1d0] sm:$0xff] }
 0x30e   :  { %v2023_v34 = vpop.permute.xlu1 %2022  ;;  %1704 = vst.msk [vmem:[#allocation3 + $0x1f0] sm:$0xff] %vm1672_vm7, %v1639_v33  ;;  %3130 = vmatmul.mubr.f32.gmra.mrb[58].mxu1 %v2793_v53  ;;  %v9142_v33 = vld [vmem:[%s10431_s8] ss:$0 sm:$0xff] }
 0x30f   :  { %v3157_v5 = vmul.f32 0.1, %v3047_v59  ;;  %2089 = vst.msk [vmem:[#allocation3 + $0x1e0] sm:$0xff] %vm2058_vm9, %v2023_v34  ;;  %6376 = vmatprep.mubr.msk.f32.mxu1 %vm1138_vm3, %v2796_v49  ;;  %5931 = vrot.lane.b32.xlu0 %v10539_v45, %s7189_s18 }
 0x310   :  { %5905 = vrot.lane.b32.xlu1 %v5864_v6, %s7189_s18 }
 0x311   :  { %v3189_v41 = vmax.f32 %v3047_v59, %v3157_v5  ;;  %v1832_v42 = vpop.permute.xlu0 %1831 }
 0x312   :  { %v2216_v29 = vpop.permute.xlu1 %2215  ;;  %1897 = vst.msk [vmem:[#allocation3 + $0x1f0] sm:$0xff] %vm1865_vm8, %v1832_v42 }
 0x313   :  { %3221 = vst.msk [vmem:[%s10435_s12 + $0x60] sm:$0xff] %vm1138_vm3, %v3189_v41  ;;  %6745 = vmatprep.mubr.msk.f32.mxu0 %vm1138_vm3, %v3189_v41  ;;  %5891 = vrot.lane.b32.xlu0 %v5858_v9, %s7189_s18 }
 0x314   :  { %2282 = vst.msk [vmem:[#allocation3 + $0x1e0] sm:$0xff] %vm2251_vm10, %v2216_v29  ;;  %5921 = vrot.lane.b32.xlu1 %v5871_v13, %s7189_s18 }
 0x315   :  { %v3051_v15 = vpop.f32.mrb[26].mxu1  ;;  %v2025_v58 = vpop.permute.xlu0 %2024 }
 0x316   :  { %v3052_v0 = vadd.f32 %v8717_v51, %v3051_v15  ;;  %v2410_v26 = vpop.permute.xlu1 %2409  ;;  %2090 = vst.msk [vmem:[#allocation3 + $0x1f0] sm:$0xff] %vm2058_vm9, %v2025_v58  ;;  %v3053_v18 = vpop.f32.mrb[27].mxu1 }
 0x317   :  { %2476 = vst.msk [vmem:[#allocation3 + $0x1e0] sm:$0xff] %vm2445_vm11, %v2410_v26  ;;  %5923 = vrot.lane.b32.xlu0 %v5872_v36, %s7189_s18 }
 0x318   :  { %v3158_v17 = vmul.f32 0.1, %v3052_v0  ;;  %5937 = vrot.lane.b32.xlu1 %v5878_v57, %s7189_s18 }
 0x319   :  { %v2412_v62 = vpop.permute.xlu0 %2411 }
 0x31a   :  { %v3190_v10 = vmax.f32 %v3052_v0, %v3158_v17  ;;  %v2603_v47 = vpop.permute.xlu1 %2602 }
 0x31b   :  { %2669 = vst.msk [vmem:[#allocation3 + $0x1e0] sm:$0xff] %vm2638_vm12, %v2603_v47  ;;  %5893 = vrot.lane.b32.xlu0 %v5859_v24, %s7189_s18 }
 0x31c   :  { %3222 = vst.msk [vmem:[%s10435_s12 + $0x68] sm:$0xff] %vm1138_vm3, %v3190_v10  ;;  %5907 = vrot.lane.b32.xlu1 %v5865_v35, %s7189_s18  ;;  %6746 = vmatmul.mubr.msk.f32.gmra.mrb[52].mxu0 %vm1138_vm3, %v3190_v10 }
 0x31e   :  { %v2218_v37 = vpop.permute.xlu1 %2217 }
 0x31f   :  { %2283 = vst.msk [vmem:[#allocation3 + $0x1f0] sm:$0xff] %vm2251_vm10, %v2218_v37  ;;  %5925 = vrot.lane.b32.xlu0 %v5873_v12, %s7189_s18 }
 0x320   :  { %2477 = vst.msk [vmem:[#allocation3 + $0x1f0] sm:$0xff] %vm2445_vm11, %v2412_v62  ;;  %5939 = vrot.lane.b32.xlu1 %v5879_v7, %s7189_s18 }
 0x322   :  { %v3056_v31 = vpop.f32.mrb[28].mxu1  ;;  %v2605_v46 = vpop.permute.xlu1 %2604  ;;  %v2795_v63 = vld [vmem:[#allocation3 + $0x1e0] sm:$0xff] }
 0x323   :  { %v3057_v52 = vadd.f32 %v8717_v51, %v3056_v31  ;;  %v3058_v20 = vpop.f32.mrb[29].mxu1  ;;  %2670 = vst.msk [vmem:[#allocation3 + $0x1f0] sm:$0xff] %vm2638_vm12, %v2605_v46  ;;  %3135 = vmatmul.mubr.f32.gmra.mrb[60].mxu1 %v2795_v63  ;;  %5895 = vrot.lane.b32.xlu0 %v5860_v48, %s7189_s18 }
 0x324   :  { %5909 = vrot.lane.b32.xlu1 %v5866_v60, %s7189_s18  ;;  %6377 = vmatprep.mubr.msk.f32.mxu1 %vm1138_vm3, %v2798_v11 }
 0x325   :  { %v3159_v8 = vmul.f32 0.1, %v3057_v52 }
 0x326   :  { %v3061_v27 = vpop.f32.mrb[30].mxu1 }
 0x327   :  { %v3191_v55 = vmax.f32 %v3057_v52, %v3159_v8  ;;  %v3062_v38 = vadd.f32 %v8717_v51, %v3061_v27  ;;  %v3063_v40 = vpop.f32.mrb[31].mxu1  ;;  %5927 = vrot.lane.b32.xlu0 %v5874_v14, %s7189_s18 }
 0x328   :  { %5941 = vrot.lane.b32.xlu1 %v5880_v25, %s7189_s18 }
 0x329   :  { %3223 = vst.msk [vmem:[%s10435_s12 + $0x70] sm:$0xff] %vm1138_vm3, %v3191_v55  ;;  %v3160_v61 = vmul.f32 0.1, %v3062_v38  ;;  %6748 = vmatprep.mubr.msk.f32.mxu0 %vm1138_vm3, %v3191_v55 }
 0x32a   :  { %v2797_v44 = vld [vmem:[#allocation3 + $0x1f0] sm:$0xff] }
 0x32b   :  { %v3192_v16 = vmax.f32 %v3062_v38, %v3160_v61  ;;  %3140 = vmatmul.mubr.f32.gmra.mrb[62].mxu1 %v2797_v44  ;;  %5897 = vrot.lane.b32.xlu0 %v5861_v1, %s7189_s18 }
 0x32c   :  { %5911 = vrot.lane.b32.xlu1 %v5867_v28, %s7189_s18 }
 0x32d   :  { %3224 = vst.msk [vmem:[%s10435_s12 + $0x78] sm:$0xff] %vm1138_vm3, %v3192_v16  ;;  %6749 = vmatmul.mubr.msk.f32.gmra.mrb[54].mxu0 %vm1138_vm3, %v3192_v16 }
 0x32f   :  { %5929 = vrot.lane.b32.xlu0 %v5875_v4, %s7189_s18 }
 0x330   :  { %5943 = vrot.lane.b32.xlu1 %v5881_v43, %s7189_s18 }
 0x334   :  { %5913 = vrot.lane.b32.xlu1 %v5868_v22, %s7189_s18 }
 0x338   :  { %5945 = vrot.lane.b32.xlu1 %v5882_v23, %s7189_s18 }
 0x33c   :  { %v3066_v19 = vpop.f32.mrb[32].mxu1 }
 0x33d   :  { %v3067_v56 = vadd.f32 %v8717_v51, %v3066_v19  ;;  %v3068_v3 = vpop.f32.mrb[33].mxu1 }
 0x33f   :  { %v3161_v30 = vmul.f32 0.1, %v3067_v56 }
 0x341   :  { %v3193_v54 = vmax.f32 %v3067_v56, %v3161_v30 }
 0x343   :  { %3225 = vst.msk [vmem:[%s10435_s12 + $0x80] sm:$0xff] %vm1138_vm3, %v3193_v54  ;;  %6751 = vmatprep.mubr.msk.f32.mxu0 %vm1138_vm3, %v3193_v54 }
 0x345   :  { %v3071_v50 = vpop.f32.mrb[34].mxu1 }
 0x346   :  { %v3072_v45 = vadd.f32 %v8717_v51, %v3071_v50  ;;  %v3073_v32 = vpop.f32.mrb[35].mxu1 }
 0x348   :  { %v3162_v39 = vmul.f32 0.1, %v3072_v45 }
 0x34a   :  { %v3194_v59 = vmax.f32 %v3072_v45, %v3162_v39 }
 0x34c   :  { %3226 = vst.msk [vmem:[%s10435_s12 + $0x88] sm:$0xff] %vm1138_vm3, %v3194_v59  ;;  %6752 = vmatmul.mubr.msk.f32.gmra.mrb[56].mxu0 %vm1138_vm3, %v3194_v59 }
 0x34f   :  { %v6729_v51 = vpop.f32.mrb[40].mxu0 }
 0x350   :  { %v3405_v21 = vpop.f32.mrb[41].mxu0  ;;  %v3565_v15 = vmul.f32 0.1, %v6729_v51 }
 0x351   :  { %v3564_v0 = vmul.f32 0.1, %v3405_v21 }
 0x352   :  { %v9156_v26 = vmax.f32 %v6729_v51, %v3565_v15 }
 0x353   :  { %v9158_v58 = vmax.f32 %v3405_v21, %v3564_v0 }
 0x354   :  { %v9163_v35 = vsel %vm285_vm2, %v9156_v26, -inf }
 0x355   :  { %v9167_v24 = vsel %vm285_vm2, %v9158_v58, -inf }
 0x356   :  { %v3948_v31 = vmax.f32 %v9167_v24, %v9163_v35 }
 0x359   :  { %v3076_v34 = vpop.f32.mrb[36].mxu1 }
 0x35a   :  { %v3077_v53 = vadd.f32 %v9142_v33, %v3076_v34  ;;  %v3078_v6 = vpop.f32.mrb[37].mxu1 }
 0x35c   :  { %v3163_v5 = vmul.f32 0.1, %v3077_v53 }
 0x35d   :  { %v3081_v49 = vpop.f32.mrb[38].mxu1 }
 0x35e   :  { %v3195_v41 = vmax.f32 %v3077_v53, %v3163_v5  ;;  %v3082_v29 = vadd.f32 %v9142_v33, %v3081_v49  ;;  %v3083_v42 = vpop.f32.mrb[39].mxu1 }
 0x360   :  { %3227 = vst.msk [vmem:[%s10435_s12 + $0x90] sm:$0xff] %vm1138_vm3, %v3195_v41  ;;  %v3164_v13 = vmul.f32 0.1, %v3082_v29  ;;  %6754 = vmatprep.mubr.msk.f32.mxu0 %vm1138_vm3, %v3195_v41 }
 0x362   :  { %v3196_v9 = vmax.f32 %v3082_v29, %v3164_v13 }
 0x364   :  { %3228 = vst.msk [vmem:[%s10435_s12 + $0x98] sm:$0xff] %vm1138_vm3, %v3196_v9  ;;  %6755 = vmatmul.mubr.msk.f32.gmra.mrb[58].mxu0 %vm1138_vm3, %v3196_v9 }
 0x36b   :  { %v6732_v18 = vpop.f32.mrb[42].mxu0 }
 0x36c   :  { %v3567_v17 = vmul.f32 0.1, %v6732_v18  ;;  %v3415_v47 = vpop.f32.mrb[43].mxu0 }
 0x36d   :  { %v3086_v57 = vpop.f32.mrb[40].mxu1  ;;  %v3566_v37 = vmul.f32 0.1, %v3415_v47 }
 0x36e   :  { %v3087_v36 = vadd.f32 %v9142_v33, %v3086_v57  ;;  %v3088_v10 = vpop.f32.mrb[41].mxu1  ;;  %v9169_v62 = vmax.f32 %v6732_v18, %v3567_v17 }
 0x36f   :  { %v9171_v12 = vmax.f32 %v3415_v47, %v3566_v37 }
 0x370   :  { %v3165_v7 = vmul.f32 0.1, %v3087_v36  ;;  %v3649_v20 = vsel %vm285_vm2, %v9169_v62, -inf }
 0x371   :  { %v3091_v11 = vpop.f32.mrb[42].mxu1  ;;  %v3650_v46 = vrot.slane %v3649_v20, 4  ;;  %v3642_v63 = vsel %vm285_vm2, %v9171_v12, -inf }
 0x372   :  { %v3197_v52 = vmax.f32 %v3087_v36, %v3165_v7  ;;  %v3093_v60 = vpop.f32.mrb[43].mxu1  ;;  %v3643_v8 = vrot.slane %v3642_v63, 4  ;;  %v3949_v48 = vmax.f32 %v3948_v31, %v3642_v63  ;;  %v3092_v27 = vadd.f32 %v9142_v33, %v3091_v11 }
 0x373   :  { %v3651_v55 = vmax.f32 %v3649_v20, %v3650_v46 }
 0x374   :  { %3229 = vst.msk [vmem:[%s10435_s12 + $0xa0] sm:$0xff] %vm1138_vm3, %v3197_v52  ;;  %6757 = vmatprep.mubr.msk.f32.mxu0 %vm1138_vm3, %v3197_v52  ;;  %v3644_v38 = vmax.f32 %v3642_v63, %v3643_v8  ;;  %v3166_v40 = vmul.f32 0.1, %v3092_v27  ;;  %v3950_v25 = vmax.f32 %v3949_v48, %v3649_v20 }
 0x375   :  { %v3652_v61 = vrot.slane %v3651_v55, 2 }
 0x376   :  { %v3645_v14 = vrot.slane %v3644_v38, 2  ;;  %v3198_v16 = vmax.f32 %v3092_v27, %v3166_v40 }
 0x377   :  { %v3653_v44 = vmax.f32 %v3651_v55, %v3652_v61 }
 0x378   :  { %v3646_v28 = vmax.f32 %v3644_v38, %v3645_v14  ;;  %3230 = vst.msk [vmem:[%s10435_s12 + $0xa8] sm:$0xff] %vm1138_vm3, %v3198_v16  ;;  %6758 = vmatmul.mubr.msk.f32.gmra.mrb[60].mxu0 %vm1138_vm3, %v3198_v16 }
 0x379   :  { %v3654_v1 = vrot.slane %v3653_v44, 1 }
 0x37a   :  { %v3647_v43 = vrot.slane %v3646_v28, 1 }
 0x37b   :  { %v9190_v4 = vmax.f32 %v3653_v44, %v3654_v1 }
 0x37c   :  { %v9192_v22 = vmax.f32 %v3646_v28, %v3647_v43 }
 0x37d   :  { %v3855_v23 = vsub.f32 %v9169_v62, %v9190_v4 }
 0x37e   :  { %v3854_v19 = vsub.f32 %v9171_v12, %v9192_v22 }
 0x387   :  { %v3096_v56 = vpop.f32.mrb[44].mxu1 }
 0x388   :  { %v3097_v3 = vadd.f32 %v9142_v33, %v3096_v56  ;;  %v3098_v30 = vpop.f32.mrb[45].mxu1  ;;  %v6735_v54 = vpop.f32.mrb[44].mxu0 }
 0x389   :  { %v3569_v45 = vmul.f32 0.1, %v6735_v54  ;;  %v3425_v32 = vpop.f32.mrb[45].mxu0 }
 0x38a   :  { %v3167_v50 = vmul.f32 0.1, %v3097_v3  ;;  %v3568_v39 = vmul.f32 0.1, %v3425_v32 }
 0x38b   :  { %v9199_v51 = vmax.f32 %v6735_v54, %v3569_v45 }
 0x38c   :  { %v3199_v59 = vmax.f32 %v3097_v3, %v3167_v50  ;;  %v9201_v21 = vmax.f32 %v3425_v32, %v3568_v39 }
 0x38d   :  { %v3663_v34 = vsel %vm285_vm2, %v9199_v51, -inf  ;;  %v3101_v53 = vpop.f32.mrb[46].mxu1 }
 0x38e   :  { %3231 = vst.msk [vmem:[%s10435_s12 + $0xb0] sm:$0xff] %vm1138_vm3, %v3199_v59  ;;  %6760 = vmatprep.mubr.msk.f32.mxu0 %vm1138_vm3, %v3199_v59  ;;  %v3664_v6 = vrot.slane %v3663_v34, 4  ;;  %v3656_v5 = vsel %vm285_vm2, %v9201_v21, -inf  ;;  %v3103_v49 = vpop.f32.mrb[47].mxu1  ;;  %v3102_v42 = vadd.f32 %v9142_v33, %v3101_v53 }
 0x38f   :  { %v3657_v41 = vrot.slane %v3656_v5, 4  ;;  %v3951_v29 = vmax.f32 %v3950_v25, %v3656_v5 }
 0x390   :  { %v3665_v13 = vmax.f32 %v3663_v34, %v3664_v6  ;;  %v3168_v15 = vmul.f32 0.1, %v3102_v42 }
 0x391   :  { %v3658_v9 = vmax.f32 %v3656_v5, %v3657_v41  ;;  %v3952_v0 = vmax.f32 %v3951_v29, %v3663_v34 }
 0x392   :  { %v3666_v57 = vrot.slane %v3665_v13, 2  ;;  %v3200_v36 = vmax.f32 %v3102_v42, %v3168_v15 }
 0x393   :  { %v3659_v18 = vrot.slane %v3658_v9, 2 }
 0x394   :  { %v3667_v17 = vmax.f32 %v3665_v13, %v3666_v57  ;;  %3232 = vst.msk [vmem:[%s10435_s12 + $0xb8] sm:$0xff] %vm1138_vm3, %v3200_v36  ;;  %6761 = vmatmul.mubr.msk.f32.gmra.mrb[62].mxu0 %vm1138_vm3, %v3200_v36 }
 0x395   :  { %v3660_v10 = vmax.f32 %v3658_v9, %v3659_v18 }
 0x396   :  { %v3668_v47 = vrot.slane %v3667_v17, 1 }
 0x397   :  { %v3661_v7 = vrot.slane %v3660_v10, 1 }
 0x398   :  { %v6738_v37 = vpop.f32.mrb[46].mxu0  ;;  %v9218_v20 = vmax.f32 %v3667_v17, %v3668_v47 }
 0x399   :  { %v3571_v31 = vmul.f32 0.1, %v6738_v37  ;;  %v3435_v52 = vpop.f32.mrb[47].mxu0  ;;  %v9220_v46 = vmax.f32 %v3660_v10, %v3661_v7 }
 0x39a   :  { %v3570_v11 = vmul.f32 0.1, %v3435_v52  ;;  %v3857_v60 = vsub.f32 %v9199_v51, %v9218_v20 }
 0x39b   :  { %v9222_v63 = vmax.f32 %v6738_v37, %v3571_v31  ;;  %v3856_v48 = vsub.f32 %v9201_v21, %v9220_v46 }
 0x39c   :  { %v9226_v8 = vmax.f32 %v3435_v52, %v3570_v11 }
 0x39d   :  { %v3677_v27 = vsel %vm285_vm2, %v9222_v63, -inf }
 0x39e   :  { %v3678_v55 = vrot.slane %v3677_v27, 4  ;;  %v3670_v38 = vsel %vm285_vm2, %v9226_v8, -inf }
 0x39f   :  { %v3671_v40 = vrot.slane %v3670_v38, 4  ;;  %v3953_v25 = vmax.f32 %v3952_v0, %v3670_v38 }
 0x3a0   :  { %v3679_v61 = vmax.f32 %v3677_v27, %v3678_v55 }
 0x3a1   :  { %v3672_v14 = vmax.f32 %v3670_v38, %v3671_v40  ;;  %v3954_v16 = vmax.f32 %v3953_v25, %v3677_v27 }
 0x3a2   :  { %v3680_v44 = vrot.slane %v3679_v61, 2  ;;  %v3106_v45 = vpop.f32.mrb[48].mxu1 }
 0x3a3   :  { %v3673_v28 = vrot.slane %v3672_v14, 2  ;;  %v3976_v1 = vsub.f32 %v9158_v58, %v3954_v16  ;;  %v3977_v43 = vsub.f32 %v9156_v26, %v3954_v16  ;;  %v3978_v56 = vsub.f32 %v9171_v12, %v3954_v16  ;;  %v3108_v53 = vpop.f32.mrb[49].mxu1 }
 0x3a4   :  { %v3681_v3 = vmax.f32 %v3679_v61, %v3680_v44  ;;  %v3979_v30 = vsub.f32 %v9169_v62, %v3954_v16  ;;  %v3980_v54 = vsub.f32 %v9201_v21, %v3954_v16  ;;  %v3981_v50 = vsub.f32 %v9199_v51, %v3954_v16 }
 0x3a5   :  { %v3674_v32 = vmax.f32 %v3672_v14, %v3673_v28  ;;  %v3982_v39 = vsub.f32 %v9226_v8, %v3954_v16  ;;  %v3983_v59 = vsub.f32 %v9222_v63, %v3954_v16  ;;  %v4008_v34 = vmul.f32 1.442695, %v3976_v1 }
 0x3a6   :  { %v3682_v6 = vrot.slane %v3681_v3, 1  ;;  %v4010_v5 = vmul.f32 1.442695, %v3977_v43  ;;  %v4012_v49 = vmul.f32 1.442695, %v3978_v56  ;;  %v3107_v41 = vadd.f32 %v9142_v33, %v3106_v45 }
 0x3a7   :  { %v3675_v29 = vrot.slane %v3674_v32, 1  ;;  %6951 = vpow2.f32 %v4008_v34  ;;  %v4014_v42 = vmul.f32 1.442695, %v3979_v30  ;;  %v4016_v9 = vmul.f32 1.442695, %v3980_v54 }
 0x3a8   :  { %v9243_v13 = vmax.f32 %v3681_v3, %v3682_v6  ;;  %6953 = vpow2.f32 %v4010_v5  ;;  %v3169_v0 = vmul.f32 0.1, %v3107_v41  ;;  %v4018_v18 = vmul.f32 1.442695, %v3981_v50 }
 0x3a9   :  { %v9245_v15 = vmax.f32 %v3674_v32, %v3675_v29  ;;  %6955 = vpow2.f32 %v4012_v49  ;;  %v3111_v10 = vpop.f32.mrb[50].mxu1  ;;  %v4020_v47 = vmul.f32 1.442695, %v3982_v39  ;;  %v4022_v31 = vmul.f32 1.442695, %v3983_v59 }
 0x3aa   :  { %v3859_v57 = vsub.f32 %v9222_v63, %v9243_v13  ;;  %6957 = vpow2.f32 %v4014_v42  ;;  %v3201_v17 = vmax.f32 %v3107_v41, %v3169_v0  ;;  %v3113_v37 = vpop.f32.mrb[51].mxu1  ;;  %v3112_v7 = vadd.f32 %v9142_v33, %v3111_v10 }
 0x3ab   :  { %v3858_v36 = vsub.f32 %v9226_v8, %v9245_v15  ;;  %6959 = vpow2.f32 %v4016_v9  ;;  %v3888_v62 = vmul.f32 1.442695, %v3854_v19  ;;  %v3894_v12 = vmul.f32 1.442695, %v3857_v60 }
 0x3ac   :  { %3233 = vst.msk [vmem:[%s10435_s12 + $0xc0] sm:$0xff] %vm1138_vm3, %v3201_v17  ;;  %6763 = vmatprep.mubr.msk.f32.mxu0 %vm1138_vm3, %v3201_v17  ;;  %6961 = vpow2.f32 %v4018_v18  ;;  %v3170_v52 = vmul.f32 0.1, %v3112_v7 }
 0x3ad   :  { %6963 = vpow2.f32 %v4020_v47 }
 0x3ae   :  { %v3202_v27 = vmax.f32 %v3112_v7, %v3170_v52  ;;  %6965 = vpow2.f32 %v4022_v31 }
 0x3b0   :  { %3234 = vst.msk [vmem:[%s10435_s12 + $0xc8] sm:$0xff] %vm1138_vm3, %v3202_v27  ;;  %6764 = vmatmul.mubr.msk.f32.gmra.mrb[64].mxu0 %vm1138_vm3, %v3202_v27 }
 0x3b1   :  { %v6952_v11 = vpop.eup %6951 }
 0x3b2   :  { %v6954_v55 = vpop.eup %6953  ;;  %v4296_v38 = vsel %vm285_vm2, %v6952_v11, 0.0  ;;  %6827 = vmatprep.mubr.msk.f32.mxu1 %vm285_vm2, %v6952_v11 }
 0x3b3   :  { %v6956_v40 = vpop.eup %6955  ;;  %v4297_v25 = vsel %vm285_vm2, %v6954_v55, 0.0  ;;  %6828 = vmatmul.mubr.msk.f32.vlgmr.msra.gmra.mrb[64].mxu1 %vm285_vm2, %v6954_v55 }
 0x3b4   :  { %v6958_v61 = vpop.eup %6957  ;;  %v4298_v14 = vadd.f32 %v4297_v25, %v4296_v38  ;;  %6830 = vmatprep.mubr.msk.f32.mxu1 %vm285_vm2, %v6956_v40  ;;  %v4299_v16 = vsel %vm285_vm2, %v6956_v40, 0.0 }
 0x3b5   :  { %v6960_v44 = vpop.eup %6959  ;;  %v4301_v1 = vsel %vm285_vm2, %v6958_v61, 0.0 }
 0x3b6   :  { %v4300_v28 = vadd.f32 %v4299_v16, %v4298_v14  ;;  %v6962_v43 = vpop.eup %6961  ;;  %v4303_v3 = vsel %vm285_vm2, %v6960_v44, 0.0 }
 0x3b7   :  { %6831 = vmatmul.mubr.msk.f32.gmra.mrb[66].mxu1 %vm285_vm2, %v6958_v61  ;;  %v6741_v30 = vpop.f32.mrb[48].mxu0  ;;  %v6964_v54 = vpop.eup %6963  ;;  %v4305_v39 = vsel %vm285_vm2, %v6962_v43, 0.0 }
 0x3b8   :  { %v4302_v56 = vadd.f32 %v4301_v1, %v4300_v28  ;;  %6833 = vmatprep.mubr.msk.f32.mxu1 %vm285_vm2, %v6960_v44  ;;  %v3573_v45 = vmul.f32 0.1, %v6741_v30  ;;  %v3445_v32 = vpop.f32.mrb[49].mxu0  ;;  %v6966_v34 = vpop.eup %6965  ;;  %v4307_v5 = vsel %vm285_vm2, %v6964_v54, 0.0 }
 0x3b9   :  { %v3572_v59 = vmul.f32 0.1, %v3445_v32  ;;  %v4309_v42 = vsel %vm285_vm2, %v6966_v34, 0.0 }
 0x3ba   :  { %v4304_v50 = vadd.f32 %v4303_v3, %v4302_v56  ;;  %v9274_v6 = vmax.f32 %v6741_v30, %v3573_v45  ;;  %v3629_v45 = vrot.slane %v9167_v24, 4 }
 0x3bb   :  { %6834 = vmatmul.mubr.msk.f32.gmra.mrb[68].mxu1 %vm285_vm2, %v6962_v43  ;;  %v9278_v49 = vmax.f32 %v3445_v32, %v3572_v59 }
 0x3bc   :  { %v4306_v53 = vadd.f32 %v4305_v39, %v4304_v50  ;;  %6836 = vmatprep.mubr.msk.f32.mxu1 %vm285_vm2, %v6964_v54  ;;  %v3691_v29 = vsel %vm285_vm2, %v9274_v6, -inf  ;;  %v3636_v50 = vrot.slane %v9163_v35, 4 }
 0x3bd   :  { %v3692_v9 = vrot.slane %v3691_v29, 4  ;;  %v3684_v0 = vsel %vm285_vm2, %v9278_v49, -inf }
 0x3be   :  { %v4308_v41 = vadd.f32 %v4307_v5, %v4306_v53  ;;  %v3685_v17 = vrot.slane %v3684_v0, 4  ;;  %v3955_v10 = vmax.f32 %v3684_v0, %v3691_v29  ;;  %v3116_v47 = vpop.f32.mrb[52].mxu1 }
 0x3bf   :  { %6837 = vmatmul.mubr.msk.f32.gmra.mrb[70].mxu1 %vm285_vm2, %v6966_v34  ;;  %v3693_v37 = vmax.f32 %v3691_v29, %v3692_v9  ;;  %v3117_v7 = vadd.f32 %v9142_v33, %v3116_v47  ;;  %v3118_v31 = vpop.f32.mrb[53].mxu1 }
 0x3c0   :  { %v9286_v18 = vadd.f32 %v4309_v42, %v4308_v41  ;;  %v3686_v52 = vmax.f32 %v3684_v0, %v3685_v17  ;;  %v3637_v41 = vmax.f32 %v9163_v35, %v3636_v50  ;;  %v3630_v42 = vmax.f32 %v9167_v24, %v3629_v45 }
 0x3c1   :  { %v3694_v11 = vrot.slane %v3693_v37, 2  ;;  %v3171_v27 = vmul.f32 0.1, %v3117_v7 }
 0x3c2   :  { %v3687_v55 = vrot.slane %v3686_v52, 2 }
 0x3c3   :  { %v3695_v38 = vmax.f32 %v3693_v37, %v3694_v11  ;;  %v3203_v40 = vmax.f32 %v3117_v7, %v3171_v27  ;;  %v3638_v37 = vrot.slane %v3637_v41, 2 }
 0x3c4   :  { %v3688_v25 = vmax.f32 %v3686_v52, %v3687_v55  ;;  %v3631_v52 = vrot.slane %v3630_v42, 2 }
 0x3c5   :  { %3235 = vst.msk [vmem:[%s10435_s12 + $0xd0] sm:$0xff] %vm1138_vm3, %v3203_v40  ;;  %6766 = vmatprep.mubr.msk.f32.mxu0 %vm1138_vm3, %v3203_v40  ;;  %v3121_v61 = vpop.f32.mrb[54].mxu1  ;;  %v3696_v14 = vrot.slane %v3695_v38, 1 }
 0x3c6   :  { %v3122_v16 = vadd.f32 %v9142_v33, %v3121_v61  ;;  %v3123_v44 = vpop.f32.mrb[55].mxu1  ;;  %v3689_v28 = vrot.slane %v3688_v25, 1  ;;  %v3639_v61 = vmax.f32 %v3637_v41, %v3638_v37 }
 0x3c7   :  { %v3697_v43 = vmax.f32 %v3695_v38, %v3696_v14 }
 0x3c8   :  { %v3172_v1 = vmul.f32 0.1, %v3122_v16  ;;  %v3690_v3 = vmax.f32 %v3688_v25, %v3689_v28 }
 0x3c9   :  { %v3861_v30 = vsub.f32 %v9274_v6, %v3697_v43 }
 0x3ca   :  { %v3204_v56 = vmax.f32 %v3122_v16, %v3172_v1  ;;  %v3860_v54 = vsub.f32 %v9278_v49, %v3690_v3  ;;  %v3632_v16 = vmax.f32 %v3630_v42, %v3631_v52  ;;  %v3640_v3 = vrot.slane %v3639_v61, 1 }
 0x3cb   :  { %v3902_v32 = vmul.f32 1.442695, %v3861_v30 }
 0x3cc   :  { %3236 = vst.msk [vmem:[%s10435_s12 + $0xd8] sm:$0xff] %vm1138_vm3, %v3204_v56  ;;  %6767 = vmatmul.mubr.msk.f32.gmra.mrb[66].mxu0 %vm1138_vm3, %v3204_v56  ;;  %v3900_v59 = vmul.f32 1.442695, %v3860_v54  ;;  %v3633_v50 = vrot.slane %v3632_v16, 1  ;;  %v3641_v42 = vmax.f32 %v3639_v61, %v3640_v3 }
 0x3cd   :  { %6967 = vpow2.f32 %v3902_v32 }
 0x3ce   :  { %6969 = vpow2.f32 %v3900_v59 }
 0x3d3   :  { %v6744_v39 = vpop.f32.mrb[50].mxu0 }
 0x3d4   :  { %v3575_v34 = vmul.f32 0.1, %v6744_v39  ;;  %v3455_v53 = vpop.f32.mrb[51].mxu0 }
 0x3d5   :  { %v3574_v5 = vmul.f32 0.1, %v3455_v53 }
 0x3d6   :  { %v9305_v29 = vmax.f32 %v6744_v39, %v3575_v34 }
 0x3d7   :  { %v9308_v9 = vmax.f32 %v3455_v53, %v3574_v5  ;;  %v9323_v1 = vpop.eup %6967 }
 0x3d8   :  { %v9312_v0 = vsel %vm285_vm2, %v9305_v29, -inf  ;;  %v9330_v56 = vpop.eup %6969  ;;  %v4135_v59 = vsel %vm285_vm2, %v9323_v1, 0.0 }
 0x3d9   :  { %v3706_v17 = vrot.slane %v9312_v0, 4  ;;  %v3698_v47 = vsel %vm285_vm2, %v9308_v9, -inf  ;;  %v4128_v53 = vsel %vm285_vm2, %v9330_v56, 0.0  ;;  %v4136_v37 = vrot.slane %v4135_v59, 4 }
 0x3da   :  { %v3699_v7 = vrot.slane %v3698_v47, 4  ;;  %v9317_v35 = vmax.f32 %v3955_v10, %v3698_v47  ;;  %v3126_v31 = vpop.f32.mrb[56].mxu1  ;;  %v4129_v52 = vrot.slane %v4128_v53, 4 }
 0x3db   :  { %v3707_v24 = vmax.f32 %v9312_v0, %v3706_v17  ;;  %v3127_v11 = vadd.f32 %v9142_v33, %v3126_v31  ;;  %v3128_v27 = vpop.f32.mrb[57].mxu1 }
 0x3dc   :  { %v3700_v55 = vmax.f32 %v3698_v47, %v3699_v7  ;;  %v3957_v38 = vmax.f32 %v9317_v35, %v9312_v0  ;;  %v3634_v47 = vmax.f32 %v3632_v16, %v3633_v50  ;;  %v3890_v50 = vmul.f32 1.442695, %v3855_v23 }
 0x3dd   :  { %v3708_v40 = vrot.slane %v3707_v24, 2  ;;  %v3173_v25 = vmul.f32 0.1, %v3127_v11 }
 0x3de   :  { %v3701_v14 = vrot.slane %v3700_v55, 2  ;;  %v3852_v27 = vsub.f32 %v9158_v58, %v3634_v47 }
 0x3df   :  { %v3709_v44 = vmax.f32 %v3707_v24, %v3708_v40  ;;  %v3205_v28 = vmax.f32 %v3127_v11, %v3173_v25  ;;  %v3853_v11 = vsub.f32 %v9156_v26, %v3641_v42  ;;  %v4130_v40 = vadd.f32 %v4129_v52, %v4128_v53 }
 0x3e0   :  { %v3702_v10 = vmax.f32 %v3700_v55, %v3701_v14  ;;  %v4137_v55 = vadd.f32 %v4136_v37, %v4135_v59  ;;  %v3884_v61 = vmul.f32 1.442695, %v3852_v27 }
 0x3e1   :  { %v3710_v43 = vrot.slane %v3709_v44, 1  ;;  %3237 = vst.msk [vmem:[%s10435_s12 + $0xe0] sm:$0xff] %vm1138_vm3, %v3205_v28  ;;  %6769 = vmatprep.mubr.msk.f32.mxu0 %vm1138_vm3, %v3205_v28  ;;  %v3131_v54 = vpop.f32.mrb[58].mxu1  ;;  %v3886_v25 = vmul.f32 1.442695, %v3853_v11 }
 0x3e2   :  { %v3703_v30 = vrot.slane %v3702_v10, 1  ;;  %v3132_v32 = vadd.f32 %v9142_v33, %v3131_v54  ;;  %v3133_v39 = vpop.f32.mrb[59].mxu1  ;;  %v4138_v14 = vrot.slane %v4137_v55, 2  ;;  %v3892_v11 = vmul.f32 1.442695, %v3856_v48 }
 0x3e3   :  { %v3711_v45 = vmax.f32 %v3709_v44, %v3710_v43  ;;  %v4131_v44 = vrot.slane %v4130_v40, 2 }
 0x3e4   :  { %v3704_v34 = vmax.f32 %v3702_v10, %v3703_v30  ;;  %v3174_v41 = vmul.f32 0.1, %v3132_v32  ;;  %v4139_v26 = vadd.f32 %v4138_v14, %v4137_v55 }
 0x3e5   :  { %v3863_v5 = vsub.f32 %v9305_v29, %v3711_v45  ;;  %v4132_v45 = vadd.f32 %v4131_v44, %v4130_v40 }
 0x3e6   :  { %v3862_v17 = vsub.f32 %v9308_v9, %v3704_v34  ;;  %v3206_v31 = vmax.f32 %v3132_v32, %v3174_v41 }
 0x3e7   :  { %v3906_v7 = vmul.f32 1.442695, %v3863_v5  ;;  %v4133_v0 = vrot.slane %v4132_v45, 1 }
 0x3e8   :  { %v3904_v24 = vmul.f32 1.442695, %v3862_v17  ;;  %3238 = vst.msk [vmem:[%s10435_s12 + $0xe8] sm:$0xff] %vm1138_vm3, %v3206_v31  ;;  %6770 = vmatmul.mubr.msk.f32.gmra.mrb[68].mxu0 %vm1138_vm3, %v3206_v31  ;;  %v4140_v17 = vrot.slane %v4139_v26, 1 }
 0x3e9   :  { %6971 = vpow2.f32 %v3906_v7  ;;  %v4134_v44 = vadd.f32 %v4133_v0, %v4132_v45 }
 0x3ea   :  { %6973 = vpow2.f32 %v3904_v24  ;;  %v4141_v40 = vadd.f32 %v4140_v17, %v4139_v26  ;;  %v3896_v17 = vmul.f32 1.442695, %v3858_v36 }
 0x3eb   :  { %6975 = vpow2.f32 %v3886_v25 }
 0x3ec   :  { %6977 = vpow2.f32 %v3884_v61 }
 0x3ed   :  { %6979 = vpow2.f32 %v3890_v50 }
 0x3ee   :  { %6981 = vpow2.f32 %v3888_v62 }
 0x3ef   :  { %v6747_v16 = vpop.f32.mrb[52].mxu0  ;;  %6983 = vpow2.f32 %v3894_v12 }
 0x3f0   :  { %v3577_v28 = vmul.f32 0.1, %v6747_v16  ;;  %v3465_v10 = vpop.f32.mrb[53].mxu0  ;;  %6985 = vpow2.f32 %v3892_v11 }
 0x3f1   :  { %v3576_v43 = vmul.f32 0.1, %v3465_v10  ;;  %6987 = vrcp.f32 %v4141_v40 }
 0x3f2   :  { %v9346_v3 = vmax.f32 %v6747_v16, %v3577_v28  ;;  %6989 = vrcp.f32 %v4134_v44 }
 0x3f3   :  { %v9348_v30 = vpop.eup %6971  ;;  %v9350_v54 = vmax.f32 %v3465_v10, %v3576_v43 }
 0x3f4   :  { %v9352_v58 = vpop.eup %6973  ;;  %v4149_v32 = vsel %vm285_vm2, %v9348_v30, 0.0  ;;  %v9361_v39 = vsel %vm285_vm2, %v9346_v3, -inf }
 0x3f5   :  { %v4150_v59 = vrot.slane %v4149_v32, 4  ;;  %v4142_v34 = vsel %vm285_vm2, %v9352_v58, 0.0  ;;  %v3720_v53 = vrot.slane %v9361_v39, 4  ;;  %v3712_v5 = vsel %vm285_vm2, %v9350_v54, -inf  ;;  %v9386_v60 = vpop.eup %6975 }
 0x3f6   :  { %v4143_v4 = vrot.slane %v4142_v34, 4  ;;  %v3713_v23 = vrot.slane %v3712_v5, 4  ;;  %v9374_v41 = vmax.f32 %v3957_v38, %v3712_v5  ;;  %v3136_v42 = vpop.f32.mrb[60].mxu1  ;;  %v9388_v16 = vpop.eup %6977 }
 0x3f7   :  { %v4151_v47 = vadd.f32 %v4150_v59, %v4149_v32  ;;  %v3721_v37 = vmax.f32 %v9361_v39, %v3720_v53  ;;  %v3137_v7 = vadd.f32 %v9142_v33, %v3136_v42  ;;  %v3138_v31 = vpop.f32.mrb[61].mxu1 }
 0x3f8   :  { %v4144_v22 = vadd.f32 %v4143_v4, %v4142_v34  ;;  %v3714_v19 = vmax.f32 %v3712_v5, %v3713_v23  ;;  %v3959_v52 = vmax.f32 %v9374_v41, %v9361_v39  ;;  %v3898_v41 = vmul.f32 1.442695, %v3859_v57  ;;  %v9410_v31 = vpop.eup %6979 }
 0x3f9   :  { %v4152_v35 = vrot.slane %v4151_v47, 2  ;;  %v3722_v38 = vrot.slane %v3721_v37, 2  ;;  %v3175_v24 = vmul.f32 0.1, %v3137_v7  ;;  %v9419_v57 = vpop.eup %6981 }
 0x3fa   :  { %v4145_v27 = vrot.slane %v4144_v22, 2  ;;  %v3715_v55 = vrot.slane %v3714_v19, 2 }
 0x3fb   :  { %v4153_v25 = vadd.f32 %v4152_v35, %v4151_v47  ;;  %v3723_v51 = vmax.f32 %v3721_v37, %v3722_v38  ;;  %v3207_v20 = vmax.f32 %v3137_v7, %v3175_v24 }
 0x3fc   :  { %v4146_v61 = vadd.f32 %v4145_v27, %v4144_v22  ;;  %v3716_v14 = vmax.f32 %v3714_v19, %v3715_v55  ;;  %v9423_v22 = vpop.eup %6983 }
 0x3fd   :  { %v4154_v28 = vrot.slane %v4153_v25, 1  ;;  %v3724_v10 = vrot.slane %v3723_v51, 1  ;;  %3239 = vst.msk [vmem:[%s10435_s12 + $0xf0] sm:$0xff] %vm1138_vm3, %v3207_v20  ;;  %6772 = vmatprep.mubr.msk.f32.mxu0 %vm1138_vm3, %v3207_v20  ;;  %v9427_v35 = vpop.eup %6985 }
 0x3fe   :  { %v4147_v21 = vrot.slane %v4146_v61, 1  ;;  %v3717_v46 = vrot.slane %v3716_v14, 1  ;;  %v3141_v48 = vpop.f32.mrb[62].mxu1 }
 0x3ff   :  { %v3725_v26 = vmax.f32 %v3723_v51, %v3724_v10  ;;  %v3142_v50 = vadd.f32 %v9142_v33, %v3141_v48  ;;  %v3143_v45 = vpop.f32.mrb[63].mxu1  ;;  %v4155_v59 = vadd.f32 %v4154_v28, %v4153_v25 }
 0x400   :  { %v6750_v43 = vpop.f32.mrb[54].mxu0  ;;  %v4148_v34 = vadd.f32 %v4147_v21, %v4146_v61  ;;  %v3718_v53 = vmax.f32 %v3716_v14, %v3717_v46 }
 0x401   :  { %v3579_v32 = vmul.f32 0.1, %v6750_v43  ;;  %v3475_v39 = vpop.f32.mrb[55].mxu0  ;;  %v3865_v62 = vsub.f32 %v9346_v3, %v3725_v26  ;;  %v3176_v4 = vmul.f32 0.1, %v3142_v50 }
 0x402   :  { %v3578_v5 = vmul.f32 0.1, %v3475_v39  ;;  %6991 = vrcp.f32 %v4148_v34  ;;  %v3864_v33 = vsub.f32 %v9350_v54, %v3718_v53 }
 0x403   :  { %v9397_v23 = vmax.f32 %v6750_v43, %v3579_v32  ;;  %v3910_v47 = vmul.f32 1.442695, %v3865_v62  ;;  %v3208_v37 = vmax.f32 %v3142_v50, %v3176_v4  ;;  %6993 = vrcp.f32 %v4155_v59 }
 0x404   :  { %v9403_v42 = vmax.f32 %v3475_v39, %v3578_v5  ;;  %v3908_v12 = vmul.f32 1.442695, %v3864_v33 }
 0x405   :  { %v3733_v7 = vsel %vm285_vm2, %v9397_v23, -inf  ;;  %6995 = vpow2.f32 %v3910_v47  ;;  %3240 = vst.msk [vmem:[%s10435_s12 + $0xf8] sm:$0xff] %vm1138_vm3, %v3208_v37  ;;  %6773 = vmatmul.mubr.msk.f32.gmra.mrb[70].mxu0 %vm1138_vm3, %v3208_v37  ;;  %vm5532_vm3 = vcmask 1044484  }
 0x406   :  { %v3734_v63 = vrot.slane %v3733_v7, 4  ;;  %v3726_v13 = vsel %vm285_vm2, %v9403_v42, -inf  ;;  %6997 = vpow2.f32 %v3908_v12  ;;  %6777 = vmatprep.mubr.msk.f32.mxu0 %vm285_vm2, %v9388_v16 }
 0x407   :  { %v3727_v8 = vrot.slane %v3726_v13, 4  ;;  %v3960_v15 = vmax.f32 %v3959_v52, %v3726_v13  ;;  %6999 = vpow2.f32 %v3896_v17  ;;  %v6988_v52 = vpop.eup %6987 }
 0x408   :  { %v3735_v36 = vmax.f32 %v3733_v7, %v3734_v63  ;;  %7001 = vpow2.f32 %v3898_v41 }
 0x409   :  { %v3728_v19 = vmax.f32 %v3726_v13, %v3727_v8  ;;  %v9425_v0 = vmax.f32 %v3960_v15, %v3733_v7  ;;  %6778 = vmatmul.mubr.msk.f32.vlgmr.msra.gmra.mrb[72].mxu0 %vm285_vm2, %v9386_v60 }
 0x40a   :  { %v3736_v38 = vrot.slane %v3735_v36, 2  ;;  %6780 = vmatprep.mubr.msk.f32.mxu0 %vm285_vm2, %v9419_v57  ;;  %6876 = vmatpush3.msk.msra.mxu0 %vm382_vm1, %v9121_v2 }
 0x40b   :  { %v3729_v24 = vrot.slane %v3728_v19, 2  ;;  %v3984_v11 = vsub.f32 %v9278_v49, %v9425_v0  ;;  %v3985_v27 = vsub.f32 %v9274_v6, %v9425_v0  ;;  %v3986_v55 = vsub.f32 %v9308_v9, %v9425_v0  ;;  %v6990_v6 = vpop.eup %6989  ;;  %6883 = vmatprep.subr.msk.mxu0 %vm382_vm1, %v9121_v2 }
 0x40c   :  { %v3737_v40 = vmax.f32 %v3735_v36, %v3736_v38  ;;  %v3987_v25 = vsub.f32 %v9305_v29, %v9425_v0  ;;  %v3988_v51 = vsub.f32 %v9350_v54, %v9425_v0  ;;  %v3989_v20 = vsub.f32 %v9346_v3, %v9425_v0  ;;  %v6992_v29 = vpop.eup %6991 }
 0x40d   :  { %v3730_v49 = vmax.f32 %v3728_v19, %v3729_v24  ;;  %v3990_v9 = vsub.f32 %v9403_v42, %v9425_v0  ;;  %v3991_v61 = vsub.f32 %v9397_v23, %v9425_v0  ;;  %v4024_v14 = vmul.f32 1.442695, %v3984_v11  ;;  %6781 = vmatmul.mubr.msk.f32.gmra.mrb[74].mxu0 %vm285_vm2, %v9410_v31  ;;  %v6994_v21 = vpop.eup %6993 }
 0x40e   :  { %v3738_v54 = vrot.slane %v3737_v40, 1  ;;  %v4026_v44 = vmul.f32 1.442695, %v3985_v27  ;;  %v4028_v28 = vmul.f32 1.442695, %v3986_v55  ;;  %6783 = vmatprep.mubr.msk.f32.mxu0 %vm285_vm2, %v9427_v35  ;;  %v5540_v43 = vsel %vm5526_vm13, %v6988_v52, %v6990_v6 }
 0x40f   :  { %v3731_v3 = vrot.slane %v3730_v49, 1  ;;  %7003 = vpow2.f32 %v4024_v14  ;;  %v4030_v10 = vmul.f32 1.442695, %v3987_v25  ;;  %v4032_v48 = vmul.f32 1.442695, %v3988_v51  ;;  %v9458_v26 = vpop.eup %6995 }
 0x410   :  { %v3739_v46 = vmax.f32 %v3737_v40, %v3738_v54  ;;  %7005 = vpow2.f32 %v4026_v44  ;;  %v4034_v2 = vmul.f32 1.442695, %v3989_v20  ;;  %v5541_v32 = vsel %vm5528_vm14, %v6992_v29, %v5540_v43  ;;  %v6998_v45 = vpop.eup %6997 }
 0x411   :  { %v3732_v50 = vmax.f32 %v3730_v49, %v3731_v3  ;;  %7007 = vpow2.f32 %v4028_v28  ;;  %v4163_v39 = vsel %vm285_vm2, %v9458_v26, 0.0  ;;  %v9465_v34 = vsel %vm5530_vm15, %v6994_v21, %v5541_v32  ;;  %v9467_v53 = vpop.eup %6999  ;;  %6784 = vmatmul.mubr.msk.f32.gmra.mrb[76].mxu0 %vm285_vm2, %v9423_v22 }
 0x412   :  { %v3867_v59 = vsub.f32 %v9397_v23, %v3739_v46  ;;  %7009 = vpow2.f32 %v4030_v10  ;;  %v4164_v5 = vrot.slane %v4163_v39, 4  ;;  %v4156_v62 = vsel %vm285_vm2, %v6998_v45, 0.0  ;;  %v9473_v41 = vpop.eup %7001  ;;  %6786 = vmatprep.mubr.msk.f32.mxu0 %vm285_vm2, %v9467_v53 }
 0x413   :  { %v3866_v4 = vsub.f32 %v9403_v42, %v3732_v50  ;;  %v4157_v33 = vrot.slane %v4156_v62, 4  ;;  %7011 = vpow2.f32 %v4032_v48  ;;  %v4036_v23 = vmul.f32 1.442695, %v3990_v9 }
 0x414   :  { %v3914_v17 = vmul.f32 1.442695, %v3867_v59  ;;  %v4165_v47 = vadd.f32 %v4164_v5, %v4163_v39  ;;  %7013 = vpow2.f32 %v4034_v2  ;;  %v4038_v12 = vmul.f32 1.442695, %v3991_v61 }
 0x415   :  { %v3912_v37 = vmul.f32 1.442695, %v3866_v4  ;;  %v4158_v7 = vadd.f32 %v4157_v33, %v4156_v62  ;;  %6787 = vmatmul.mubr.msk.f32.gmra.mrb[78].mxu0 %vm285_vm2, %v9473_v41 }
 0x416   :  { %7015 = vpow2.f32 %v3914_v17  ;;  %v4166_v63 = vrot.slane %v4165_v47, 2  ;;  %6789 = vmatprep.mubr.msk.f32.mxu0 %vm285_vm2, %v9330_v56 }
 0x417   :  { %7017 = vpow2.f32 %v3912_v37  ;;  %v4159_v42 = vrot.slane %v4158_v7, 2 }
 0x418   :  { %7019 = vpow2.f32 %v4036_v23  ;;  %v4167_v8 = vadd.f32 %v4166_v63, %v4165_v47 }
 0x419   :  { %v7004_v13 = vpop.eup %7003  ;;  %v4160_v36 = vadd.f32 %v4159_v42, %v4158_v7  ;;  %7021 = vpow2.f32 %v4038_v12  ;;  %6790 = vmatmul.mubr.msk.f32.gmra.mrb[80].mxu0 %vm285_vm2, %v9323_v1 }
 0x41a   :  { %v7006_v15 = vpop.eup %7005  ;;  %v4311_v19 = vsel %vm285_vm2, %v7004_v13, 0.0  ;;  %6839 = vmatprep.mubr.msk.f32.mxu1 %vm285_vm2, %v7004_v13  ;;  %v4168_v38 = vrot.slane %v4167_v8, 1  ;;  %6792 = vmatprep.mubr.msk.f32.mxu0 %vm285_vm2, %v9352_v58 }
 0x41b   :  { %v7008_v0 = vpop.eup %7007  ;;  %v4312_v52 = vsel %vm285_vm2, %v7006_v15, 0.0  ;;  %6840 = vmatmul.mubr.msk.f32.gmra.mrb[72].mxu1 %vm285_vm2, %v7006_v15  ;;  %v4161_v56 = vrot.slane %v4160_v36, 1 }
 0x41c   :  { %v7010_v24 = vpop.eup %7009  ;;  %v4313_v11 = vadd.f32 %v4312_v52, %v4311_v19  ;;  %6842 = vmatprep.mubr.msk.f32.mxu1 %vm285_vm2, %v7008_v0  ;;  %v4169_v27 = vadd.f32 %v4168_v38, %v4167_v8  ;;  %v4314_v55 = vsel %vm285_vm2, %v7008_v0, 0.0 }
 0x41d   :  { %v7012_v40 = vpop.eup %7011  ;;  %v4162_v25 = vadd.f32 %v4161_v56, %v4160_v36  ;;  %v4316_v6 = vsel %vm285_vm2, %v7010_v24, 0.0  ;;  %6793 = vmatmul.mubr.msk.f32.gmra.mrb[82].mxu0 %vm285_vm2, %v9348_v30 }
 0x41e   :  { %v4315_v51 = vadd.f32 %v4314_v55, %v4313_v11  ;;  %v7014_v20 = vpop.eup %7013  ;;  %6795 = vmatprep.mubr.msk.f32.mxu0 %vm285_vm2, %v6998_v45  ;;  %v4318_v61 = vsel %vm285_vm2, %v7012_v40, 0.0 }
 0x41f   :  { %6843 = vmatmul.mubr.msk.f32.gmra.mrb[74].mxu1 %vm285_vm2, %v7010_v24  ;;  %7023 = vrcp.f32 %v4162_v25  ;;  %v6753_v14 = vpop.f32.mrb[56].mxu0  ;;  %v4320_v21 = vsel %vm285_vm2, %v7014_v20, 0.0 }
 0x420   :  { %v7016_v1 = vpop.eup %7015  ;;  %v4317_v49 = vadd.f32 %v4316_v6, %v4315_v51  ;;  %6845 = vmatprep.mubr.msk.f32.mxu1 %vm285_vm2, %v7012_v40  ;;  %7025 = vrcp.f32 %v4169_v27  ;;  %v3581_v28 = vmul.f32 0.1, %v6753_v14  ;;  %v3485_v3 = vpop.f32.mrb[57].mxu0 }
 0x421   :  { %v7018_v58 = vpop.eup %7017  ;;  %v4177_v9 = vsel %vm285_vm2, %v7016_v1, 0.0  ;;  %v3580_v46 = vmul.f32 0.1, %v3485_v3  ;;  %6796 = vmatmul.mubr.msk.f32.gmra.mrb[84].mxu0 %vm285_vm2, %v9458_v26 }
 0x422   :  { %v7020_v29 = vpop.eup %7019  ;;  %v4178_v54 = vrot.slane %v4177_v9, 4  ;;  %v4170_v30 = vsel %vm285_vm2, %v7018_v58, 0.0  ;;  %v4319_v44 = vadd.f32 %v4318_v61, %v4317_v49  ;;  %v9504_v2 = vmax.f32 %v6753_v14, %v3581_v28  ;;  %6798 = vmatprep.mubr.msk.f32.mxu0 %vm285_vm2, %v7018_v58 }
 0x423   :  { %v4171_v10 = vrot.slane %v4170_v30, 4  ;;  %6846 = vmatmul.mubr.msk.f32.gmra.mrb[76].mxu1 %vm285_vm2, %v7014_v20  ;;  %v7022_v48 = vpop.eup %7021  ;;  %v4322_v45 = vsel %vm285_vm2, %v7020_v29, 0.0  ;;  %v9509_v39 = vmax.f32 %v3485_v3, %v3580_v46 }
 0x424   :  { %v4179_v43 = vadd.f32 %v4178_v54, %v4177_v9  ;;  %v4321_v50 = vadd.f32 %v4320_v21, %v4319_v44  ;;  %6848 = vmatprep.mubr.msk.f32.mxu1 %vm285_vm2, %v7020_v29  ;;  %v3747_v26 = vsel %vm285_vm2, %v9504_v2, -inf  ;;  %v4324_v4 = vsel %vm285_vm2, %v7022_v48, 0.0 }
 0x425   :  { %v4172_v32 = vadd.f32 %v4171_v10, %v4170_v30  ;;  %v3748_v33 = vrot.slane %v3747_v26, 4  ;;  %v3740_v17 = vsel %vm285_vm2, %v9509_v39, -inf  ;;  %6799 = vmatmul.mubr.msk.f32.gmra.mrb[86].mxu0 %vm285_vm2, %v7016_v1 }
 0x426   :  { %v4180_v59 = vrot.slane %v4179_v43, 2  ;;  %v4323_v5 = vadd.f32 %v4322_v45, %v4321_v50  ;;  %v3741_v37 = vrot.slane %v3740_v17, 4  ;;  %v3962_v7 = vmax.f32 %v3740_v17, %v3747_v26 }
 0x427   :  { %v4173_v62 = vrot.slane %v4172_v32, 2  ;;  %6849 = vmatmul.mubr.msk.f32.gmra.mrb[78].mxu1 %vm285_vm2, %v7022_v48  ;;  %v3749_v63 = vmax.f32 %v3747_v26, %v3748_v33 }
 0x428   :  { %v4181_v23 = vadd.f32 %v4180_v59, %v4179_v43  ;;  %v9518_v47 = vadd.f32 %v4324_v4, %v4323_v5  ;;  %v3742_v8 = vmax.f32 %v3740_v17, %v3741_v37 }
 0x429   :  { %v4174_v12 = vadd.f32 %v4173_v62, %v4172_v32  ;;  %v7024_v42 = vpop.eup %7023  ;;  %v3750_v19 = vrot.slane %v3749_v63, 2 }
 0x42a   :  { %v4182_v13 = vrot.slane %v4181_v23, 1  ;;  %v7026_v15 = vpop.eup %7025  ;;  %v5543_v0 = vsel %vm5532_vm3, %v7024_v42, %v9465_v34  ;;  %v3743_v52 = vrot.slane %v3742_v8, 2 }
 0x42b   :  { %v4175_v36 = vrot.slane %v4174_v12, 1  ;;  %v5544_v24 = vsel %vm5534_vm4, %v7026_v15, %v5543_v0  ;;  %v3751_v11 = vmax.f32 %v3749_v63, %v3750_v19 }
 0x42c   :  { %v4183_v38 = vadd.f32 %v4182_v13, %v4181_v23  ;;  %v3744_v27 = vmax.f32 %v3742_v8, %v3743_v52 }
 0x42d   :  { %v4176_v56 = vadd.f32 %v4175_v36, %v4174_v12  ;;  %v3752_v55 = vrot.slane %v3751_v11, 1 }
 0x42e   :  { %v3745_v40 = vrot.slane %v3744_v27, 1 }
 0x42f   :  { %7027 = vrcp.f32 %v4176_v56  ;;  %v3753_v25 = vmax.f32 %v3751_v11, %v3752_v55 }
 0x430   :  { %7029 = vrcp.f32 %v4183_v38  ;;  %v3746_v51 = vmax.f32 %v3744_v27, %v3745_v40 }
 0x431   :  { %v3869_v20 = vsub.f32 %v9504_v2, %v3753_v25 }
 0x432   :  { %v3868_v6 = vsub.f32 %v9509_v39, %v3746_v51 }
 0x433   :  { %v3918_v1 = vmul.f32 1.442695, %v3869_v20 }
 0x434   :  { %v3916_v49 = vmul.f32 1.442695, %v3868_v6 }
 0x435   :  { %7031 = vpow2.f32 %v3918_v1 }
 0x436   :  { %7033 = vpow2.f32 %v3916_v49 }
 0x437   :  { %v6756_v34 = vpop.f32.mrb[58].mxu0 }
 0x438   :  { %v3583_v9 = vmul.f32 0.1, %v6756_v34  ;;  %v3495_v61 = vpop.f32.mrb[59].mxu0 }
 0x439   :  { %v7028_v58 = vpop.eup %7027  ;;  %v3582_v29 = vmul.f32 0.1, %v3495_v61 }
 0x43a   :  { %v7030_v14 = vpop.eup %7029  ;;  %v5545_v54 = vsel %vm5536_vm5, %v7028_v58, %v5544_v24  ;;  %v9526_v30 = vmax.f32 %v6756_v34, %v3583_v9 }
 0x43b   :  { %v9529_v44 = vsel %vm5538_vm6, %v7030_v14, %v5545_v54  ;;  %v9531_v28 = vmax.f32 %v3495_v61, %v3582_v29 }
 0x43c   :  { %v3761_v3 = vsel %vm285_vm2, %v9526_v30, -inf }
 0x43d   :  { %v3762_v10 = vrot.slane %v3761_v3, 4  ;;  %v3754_v21 = vsel %vm285_vm2, %v9531_v28, -inf }
 0x43e   :  { %v3755_v46 = vrot.slane %v3754_v21, 4  ;;  %v3963_v48 = vmax.f32 %v3962_v7, %v3754_v21 }
 0x43f   :  { %v3763_v43 = vmax.f32 %v3761_v3, %v3762_v10  ;;  %v7032_v50 = vpop.eup %7031 }
 0x440   :  { %v3756_v32 = vmax.f32 %v3754_v21, %v3755_v46  ;;  %v3964_v45 = vmax.f32 %v3963_v48, %v3761_v3  ;;  %v7034_v59 = vpop.eup %7033  ;;  %v4191_v5 = vsel %vm285_vm2, %v7032_v50, 0.0 }
 0x441   :  { %v3764_v26 = vrot.slane %v3763_v43, 2  ;;  %v4192_v62 = vrot.slane %v4191_v5, 4  ;;  %v4184_v4 = vsel %vm285_vm2, %v7034_v59, 0.0  ;;  %6801 = vmatprep.mubr.msk.f32.mxu0 %vm285_vm2, %v7034_v59 }
 0x442   :  { %v3757_v33 = vrot.slane %v3756_v32, 2  ;;  %v4185_v17 = vrot.slane %v4184_v4, 4  ;;  %6802 = vmatmul.mubr.msk.f32.gmra.mrb[88].mxu0 %vm285_vm2, %v7032_v50 }
 0x443   :  { %v3765_v23 = vmax.f32 %v3763_v43, %v3764_v26  ;;  %v4193_v37 = vadd.f32 %v4192_v62, %v4191_v5 }
 0x444   :  { %v3758_v7 = vmax.f32 %v3756_v32, %v3757_v33  ;;  %v4186_v12 = vadd.f32 %v4185_v17, %v4184_v4 }
 0x445   :  { %v3766_v63 = vrot.slane %v3765_v23, 1  ;;  %v4194_v42 = vrot.slane %v4193_v37, 2 }
 0x446   :  { %v3759_v13 = vrot.slane %v3758_v7, 1  ;;  %v4187_v8 = vrot.slane %v4186_v12, 2 }
 0x447   :  { %v3767_v15 = vmax.f32 %v3765_v23, %v3766_v63  ;;  %v4195_v36 = vadd.f32 %v4194_v42, %v4193_v37 }
 0x448   :  { %v3760_v19 = vmax.f32 %v3758_v7, %v3759_v13  ;;  %v4188_v0 = vadd.f32 %v4187_v8, %v4186_v12 }
 0x449   :  { %v3871_v38 = vsub.f32 %v9526_v30, %v3767_v15  ;;  %v4196_v52 = vrot.slane %v4195_v36, 1 }
 0x44a   :  { %v3870_v24 = vsub.f32 %v9531_v28, %v3760_v19  ;;  %v4189_v56 = vrot.slane %v4188_v0, 1 }
 0x44b   :  { %v3922_v11 = vmul.f32 1.442695, %v3871_v38  ;;  %v4197_v27 = vadd.f32 %v4196_v52, %v4195_v36  ;;  %v6759_v25 = vpop.f32.mrb[60].mxu0 }
 0x44c   :  { %v3920_v55 = vmul.f32 1.442695, %v3870_v24  ;;  %v4190_v40 = vadd.f32 %v4189_v56, %v4188_v0  ;;  %v3585_v51 = vmul.f32 0.1, %v6759_v25  ;;  %v3505_v20 = vpop.f32.mrb[61].mxu0 }
 0x44d   :  { %7035 = vpow2.f32 %v3922_v11  ;;  %v3584_v6 = vmul.f32 0.1, %v3505_v20 }
 0x44e   :  { %7037 = vrcp.f32 %v4197_v27  ;;  %v9543_v1 = vmax.f32 %v6759_v25, %v3585_v51 }
 0x44f   :  { %7039 = vrcp.f32 %v4190_v40  ;;  %v9545_v49 = vmax.f32 %v3505_v20, %v3584_v6 }
 0x450   :  { %7041 = vpow2.f32 %v3920_v55  ;;  %v3775_v34 = vsel %vm285_vm2, %v9543_v1, -inf }
 0x451   :  { %v3776_v58 = vrot.slane %v3775_v34, 4  ;;  %v3768_v9 = vsel %vm285_vm2, %v9545_v49, -inf }
 0x452   :  { %v3769_v61 = vrot.slane %v3768_v9, 4  ;;  %v3965_v14 = vmax.f32 %v3964_v45, %v3768_v9 }
 0x453   :  { %v3777_v29 = vmax.f32 %v3775_v34, %v3776_v58 }
 0x454   :  { %v3770_v54 = vmax.f32 %v3768_v9, %v3769_v61  ;;  %v3966_v3 = vmax.f32 %v3965_v14, %v3775_v34 }
 0x455   :  { %v3778_v21 = vrot.slane %v3777_v29, 2 }
 0x456   :  { %v3771_v43 = vrot.slane %v3770_v54, 2 }
 0x457   :  { %v7036_v10 = vpop.eup %7035  ;;  %v3779_v59 = vmax.f32 %v3777_v29, %v3778_v21 }
 0x458   :  { %v7038_v46 = vpop.eup %7037  ;;  %v4205_v48 = vsel %vm285_vm2, %v7036_v10, 0.0  ;;  %v3772_v26 = vmax.f32 %v3770_v54, %v3771_v43 }
 0x459   :  { %v7040_v50 = vpop.eup %7039  ;;  %v4206_v32 = vrot.slane %v4205_v48, 4  ;;  %v3780_v33 = vrot.slane %v3779_v59, 1 }
 0x45a   :  { %v7042_v5 = vpop.eup %7041  ;;  %v5547_v62 = vsel %vm5526_vm13, %v7038_v46, %v7040_v50  ;;  %v3773_v17 = vrot.slane %v3772_v26, 1 }
 0x45b   :  { %v4198_v4 = vsel %vm285_vm2, %v7042_v5, 0.0  ;;  %6804 = vmatprep.mubr.msk.f32.mxu0 %vm285_vm2, %v7042_v5  ;;  %v4207_v23 = vadd.f32 %v4206_v32, %v4205_v48  ;;  %v3781_v37 = vmax.f32 %v3779_v59, %v3780_v33 }
 0x45c   :  { %v4199_v45 = vrot.slane %v4198_v4, 4  ;;  %6805 = vmatmul.mubr.msk.f32.gmra.mrb[90].mxu0 %vm285_vm2, %v7036_v10  ;;  %v3774_v12 = vmax.f32 %v3772_v26, %v3773_v17 }
 0x45d   :  { %v3873_v63 = vsub.f32 %v9543_v1, %v3781_v37  ;;  %v4208_v8 = vrot.slane %v4207_v23, 2 }
 0x45e   :  { %v4200_v7 = vadd.f32 %v4199_v45, %v4198_v4  ;;  %v3872_v13 = vsub.f32 %v9545_v49, %v3774_v12 }
 0x45f   :  { %v3926_v15 = vmul.f32 1.442695, %v3873_v63  ;;  %v4209_v38 = vadd.f32 %v4208_v8, %v4207_v23  ;;  %v9575_v63 = vpop.permute.xlu0 %4685 }
 0x460   :  { %v4201_v42 = vrot.slane %v4200_v7, 2  ;;  %v3924_v19 = vmul.f32 1.442695, %v3872_v13  ;;  %10542 = vst [vmem:[#allocation11_spill] sm:$0xff] %v9575_v63 }
 0x461   :  { %7043 = vpow2.f32 %v3926_v15  ;;  %v4210_v24 = vrot.slane %v4209_v38, 1  ;;  %v9579_v15 = vpop.permute.xlu1 %4687 }
 0x462   :  { %v4202_v36 = vadd.f32 %v4201_v42, %v4200_v7  ;;  %7045 = vpow2.f32 %v3924_v19  ;;  %10543 = vst [vmem:[#allocation14_spill] sm:$0xff] %v9579_v15 }
 0x463   :  { %v4211_v51 = vadd.f32 %v4210_v24, %v4209_v38 }
 0x464   :  { %v4203_v0 = vrot.slane %v4202_v36, 1 }
 0x466   :  { %v4204_v52 = vadd.f32 %v4203_v0, %v4202_v36 }
 0x467   :  { %v6762_v56 = vpop.f32.mrb[62].mxu0 }
 0x468   :  { %7047 = vrcp.f32 %v4204_v52  ;;  %v3587_v11 = vmul.f32 0.1, %v6762_v56  ;;  %v3515_v27 = vpop.f32.mrb[63].mxu0 }
 0x469   :  { %v3586_v55 = vmul.f32 0.1, %v3515_v27  ;;  %7049 = vrcp.f32 %v4211_v51 }
 0x46a   :  { %v9558_v40 = vmax.f32 %v6762_v56, %v3587_v11 }
 0x46b   :  { %v7044_v25 = vpop.eup %7043  ;;  %v9560_v20 = vmax.f32 %v3515_v27, %v3586_v55  ;;  %v9584_v55 = vpop.permute.xlu0 %4689 }
 0x46c   :  { %v7046_v6 = vpop.eup %7045  ;;  %v4219_v34 = vsel %vm285_vm2, %v7044_v25, 0.0  ;;  %v3789_v58 = vsel %vm285_vm2, %v9558_v40, -inf  ;;  %10544 = vst [vmem:[#allocation12_spill] sm:$0xff] %v9584_v55 }
 0x46d   :  { %v4220_v9 = vrot.slane %v4219_v34, 4  ;;  %v4212_v61 = vsel %vm285_vm2, %v7046_v6, 0.0  ;;  %v3790_v14 = vrot.slane %v3789_v58, 4  ;;  %v3782_v29 = vsel %vm285_vm2, %v9560_v20, -inf  ;;  %6807 = vmatprep.mubr.msk.f32.mxu0 %vm285_vm2, %v7046_v6  ;;  %v9588_v6 = vpop.permute.xlu1 %4691 }
 0x46e   :  { %v4213_v54 = vrot.slane %v4212_v61, 4  ;;  %v3783_v10 = vrot.slane %v3782_v29, 4  ;;  %v3967_v21 = vmax.f32 %v3966_v3, %v3782_v29  ;;  %6808 = vmatmul.mubr.msk.f32.gmra.mrb[92].mxu0 %vm285_vm2, %v7044_v25  ;;  %10545 = vst [vmem:[#allocation17_spill] sm:$0xff] %v9588_v6 }
 0x46f   :  { %v4221_v46 = vadd.f32 %v4220_v9, %v4219_v34  ;;  %v3791_v48 = vmax.f32 %v3789_v58, %v3790_v14 }
 0x470   :  { %v4214_v50 = vadd.f32 %v4213_v54, %v4212_v61  ;;  %v3784_v32 = vmax.f32 %v3782_v29, %v3783_v10  ;;  %v3968_v59 = vmax.f32 %v3967_v21, %v3789_v58 }
 0x471   :  { %v4222_v5 = vrot.slane %v4221_v46, 2  ;;  %v3792_v26 = vrot.slane %v3791_v48, 2  ;;  %v5053_v54 = vpop.permute.xlu1 %5052 }
 0x472   :  { %v7048_v43 = vpop.eup %7047  ;;  %v4215_v33 = vrot.slane %v4214_v50, 2  ;;  %v3785_v45 = vrot.slane %v3784_v32, 2  ;;  %v3992_v17 = vsub.f32 %v9509_v39, %v3968_v59  ;;  %v3993_v23 = vsub.f32 %v9504_v2, %v3968_v59 }
 0x473   :  { %v5548_v4 = vsel %vm5528_vm14, %v7048_v43, %v5547_v62  ;;  %v4223_v3 = vadd.f32 %v4222_v5, %v4221_v46  ;;  %v3793_v37 = vmax.f32 %v3791_v48, %v3792_v26  ;;  %v3994_v7 = vsub.f32 %v9531_v28, %v3968_v59  ;;  %v7050_v27 = vpop.eup %7049 }
 0x474   :  { %v3995_v12 = vsub.f32 %v9526_v30, %v3968_v59  ;;  %v4216_v42 = vadd.f32 %v4215_v33, %v4214_v50  ;;  %v3786_v13 = vmax.f32 %v3784_v32, %v3785_v45  ;;  %v3996_v8 = vsub.f32 %v9545_v49, %v3968_v59 }
 0x475   :  { %v3997_v62 = vsub.f32 %v9543_v1, %v3968_v59  ;;  %v4224_v36 = vrot.slane %v4223_v3, 1  ;;  %v3794_v39 = vrot.slane %v3793_v37, 1  ;;  %v3998_v2 = vsub.f32 %v9560_v20, %v3968_v59 }
 0x476   :  { %v3999_v19 = vsub.f32 %v9558_v40, %v3968_v59  ;;  %v4217_v0 = vrot.slane %v4216_v42, 1  ;;  %v3787_v28 = vrot.slane %v3786_v13, 1  ;;  %v4040_v38 = vmul.f32 1.442695, %v3992_v17 }
 0x477   :  { %v4225_v30 = vadd.f32 %v4224_v36, %v4223_v3  ;;  %v3795_v52 = vmax.f32 %v3793_v37, %v3794_v39  ;;  %v4042_v24 = vmul.f32 1.442695, %v3993_v23  ;;  %v4044_v49 = vmul.f32 1.442695, %v3994_v7 }
 0x478   :  { %v4218_v56 = vadd.f32 %v4217_v0, %v4216_v42  ;;  %v3788_v11 = vmax.f32 %v3786_v13, %v3787_v28  ;;  %7051 = vpow2.f32 %v4040_v38  ;;  %v5549_v51 = vsel %vm5530_vm15, %v7050_v27, %v5548_v4 }
 0x479   :  { %7053 = vrcp.f32 %v4225_v30  ;;  %v3875_v1 = vsub.f32 %v9558_v40, %v3795_v52  ;;  %v4046_v58 = vmul.f32 1.442695, %v3995_v12  ;;  %v4048_v61 = vmul.f32 1.442695, %v3996_v8  ;;  %v5051_v40 = vpop.permute.xlu0 %5050  ;;  %v5057_v8 = vpop.permute.xlu1 %5056 }
 0x47a   :  { %7055 = vrcp.f32 %v4218_v56  ;;  %v3874_v25 = vsub.f32 %v9560_v20, %v3788_v11  ;;  %v4050_v14 = vmul.f32 1.442695, %v3997_v62  ;;  %v4052_v29 = vmul.f32 1.442695, %v3998_v2 }
 0x47b   :  { %v3930_v34 = vmul.f32 1.442695, %v3875_v1  ;;  %7057 = vpow2.f32 %v4042_v24  ;;  %v4054_v20 = vmul.f32 1.442695, %v3999_v19 }
 0x47c   :  { %v3928_v9 = vmul.f32 1.442695, %v3874_v25  ;;  %7059 = vpow2.f32 %v4044_v49 }
 0x47d   :  { %7061 = vpow2.f32 %v3930_v34  ;;  %v5055_v3 = vpop.permute.xlu0 %5054 }
 0x47e   :  { %7063 = vpow2.f32 %v3928_v9 }
 0x47f   :  { %7065 = vpow2.f32 %v4046_v58 }
 0x480   :  { %7067 = vpow2.f32 %v4048_v61 }
 0x481   :  { %7069 = vpow2.f32 %v4050_v14 }
 0x482   :  { %v7052_v10 = vpop.eup %7051  ;;  %7071 = vpow2.f32 %v4052_v29 }
 0x483   :  { %v7054_v21 = vpop.eup %7053  ;;  %6851 = vmatprep.mubr.msk.f32.mxu1 %vm285_vm2, %v7052_v10  ;;  %v6765_v46 = vpop.f32.mrb[64].mxu0  ;;  %v4326_v50 = vsel %vm285_vm2, %v7052_v10, 0.0  ;;  %7073 = vpow2.f32 %v4054_v20 }
 0x484   :  { %v7056_v43 = vpop.eup %7055  ;;  %v3589_v32 = vmul.f32 0.1, %v6765_v46  ;;  %v3525_v5 = vpop.f32.mrb[65].mxu0 }
 0x485   :  { %v7058_v4 = vpop.eup %7057  ;;  %v3588_v33 = vmul.f32 0.1, %v3525_v5  ;;  %v5550_v17 = vsel %vm5532_vm3, %v7056_v43, %v5549_v51 }
 0x486   :  { %v6829_v48 = vpop.f32.mrb[64].mxu1  ;;  %v7060_v23 = vpop.eup %7059  ;;  %v4327_v37 = vsel %vm285_vm2, %v7058_v4, 0.0  ;;  %6852 = vmatmul.mubr.msk.f32.gmra.mrb[80].mxu1 %vm285_vm2, %v7058_v4  ;;  %v9595_v7 = vmax.f32 %v6765_v46, %v3589_v32  ;;  %v9599_v42 = vsel %vm5534_vm4, %v7054_v21, %v5550_v17 }
 0x487   :  { %v5147_v59 = vmul.f32 %v6829_v48, %v5053_v54  ;;  %v4891_v26 = vpop.f32.mrb[65].mxu1  ;;  %v7062_v13 = vpop.eup %7061  ;;  %v4328_v62 = vadd.f32 %v4327_v37, %v4326_v50  ;;  %v4329_v36 = vsel %vm285_vm2, %v7060_v23, 0.0  ;;  %6854 = vmatprep.mubr.msk.f32.mxu1 %vm285_vm2, %v7060_v23  ;;  %v9603_v39 = vmax.f32 %v3525_v5, %v3588_v33 }
 0x488   :  { %v5146_v45 = vmul.f32 %v5051_v40, %v4891_v26  ;;  %v7064_v0 = vpop.eup %7063  ;;  %v4233_v28 = vsel %vm285_vm2, %v7062_v13, 0.0  ;;  %v9609_v38 = vsel %vm285_vm2, %v9595_v7, -inf  ;;  %v5059_v50 = vpop.permute.xlu0 %5058 }
 0x489   :  { %v5403_v12 = vsel %vm85_vm0, %v5147_v59, 0.0  ;;  %v7066_v56 = vpop.eup %7065  ;;  %v4234_v11 = vrot.slane %v4233_v28, 4  ;;  %v4226_v49 = vsel %vm285_vm2, %v7064_v0, 0.0  ;;  %v4330_v27 = vadd.f32 %v4329_v36, %v4328_v62  ;;  %6810 = vmatprep.mubr.msk.f32.mxu0 %vm285_vm2, %v7064_v0  ;;  %v5061_v4 = vpop.permute.xlu1 %5060 }
 0x48a   :  { %v5402_v2 = vsel %vm85_vm0, %v5146_v45, 0.0  ;;  %v6832_v19 = vpop.f32.mrb[66].mxu1  ;;  %v3804_v1 = vrot.slane %v9609_v38, 4  ;;  %v7068_v25 = vpop.eup %7067  ;;  %v4227_v51 = vrot.slane %v4226_v49, 4  ;;  %v4331_v34 = vsel %vm285_vm2, %v7066_v56, 0.0  ;;  %6855 = vmatmul.mubr.msk.f32.gmra.mrb[82].mxu1 %vm285_vm2, %v7066_v56  ;;  %6811 = vmatmul.mubr.msk.f32.gmra.mrb[94].mxu0 %vm285_vm2, %v7062_v13 }
 0x48b   :  { %v5404_v30 = vadd.f32 %v5403_v12, %v5402_v2  ;;  %v5149_v52 = vmul.f32 %v6832_v19, %v5057_v8  ;;  %v4901_v24 = vpop.f32.mrb[67].mxu1  ;;  %v9617_v58 = vsel %vm285_vm2, %v9603_v39, -inf  ;;  %v7070_v9 = vpop.eup %7069  ;;  %v4235_v61 = vadd.f32 %v4234_v11, %v4233_v28  ;;  %6857 = vmatprep.mubr.msk.f32.mxu1 %vm285_vm2, %v7068_v25 }
 0x48c   :  { %v4332_v14 = vadd.f32 %v4331_v34, %v4330_v27  ;;  %v3805_v29 = vmax.f32 %v9609_v38, %v3804_v1  ;;  %v7072_v20 = vpop.eup %7071  ;;  %v4228_v10 = vadd.f32 %v4227_v51, %v4226_v49  ;;  %v4333_v21 = vsel %vm285_vm2, %v7068_v25, 0.0  ;;  %v5063_v51 = vpop.permute.xlu0 %5062 }
 0x48d   :  { %v5407_v40 = vsel %vm85_vm0, %v5149_v52, 0.0  ;;  %v3797_v46 = vrot.slane %v9617_v58, 4  ;;  %v3969_v48 = vmax.f32 %v9617_v58, %v9609_v38  ;;  %v4236_v32 = vrot.slane %v4235_v61, 2  ;;  %v7074_v37 = vpop.eup %7073 }
 0x48e   :  { %v6835_v54 = vpop.f32.mrb[68].mxu1  ;;  %v4334_v59 = vadd.f32 %v4333_v21, %v4332_v14  ;;  %v4335_v5 = vsel %vm285_vm2, %v7070_v9, 0.0  ;;  %v3806_v26 = vrot.slane %v3805_v29, 2  ;;  %v4229_v33 = vrot.slane %v4228_v10, 2  ;;  %6858 = vmatmul.mubr.msk.f32.gmra.mrb[84].mxu1 %vm285_vm2, %v7070_v9 }
 0x48f   :  { %v4911_v43 = vpop.f32.mrb[69].mxu1  ;;  %v4337_v45 = vsel %vm285_vm2, %v7072_v20, 0.0  ;;  %v3798_v17 = vmax.f32 %v9617_v58, %v3797_v46  ;;  %v5148_v23 = vmul.f32 %v5055_v3, %v4901_v24  ;;  %v4237_v12 = vadd.f32 %v4236_v32, %v4235_v61  ;;  %6860 = vmatprep.mubr.msk.f32.mxu1 %vm285_vm2, %v7072_v20 }
 0x490   :  { %v4336_v13 = vadd.f32 %v4335_v5, %v4334_v59  ;;  %v3807_v8 = vmax.f32 %v3805_v29, %v3806_v26  ;;  %v5151_v62 = vmul.f32 %v6835_v54, %v5061_v4  ;;  %v4230_v2 = vadd.f32 %v4229_v33, %v4228_v10  ;;  %v5065_v10 = vpop.permute.xlu1 %5064 }
 0x491   :  { %v3799_v19 = vrot.slane %v3798_v17, 2  ;;  %v5405_v0 = vsel %vm85_vm0, %v5148_v23, 0.0  ;;  %v5150_v28 = vmul.f32 %v5059_v50, %v4911_v43  ;;  %v4238_v56 = vrot.slane %v4237_v12, 1 }
 0x492   :  { %v6838_v36 = vpop.f32.mrb[70].mxu1  ;;  %v4338_v11 = vadd.f32 %v4337_v45, %v4336_v13  ;;  %v3808_v49 = vrot.slane %v3807_v8, 1  ;;  %v5406_v3 = vadd.f32 %v5405_v0, %v5404_v30  ;;  %v4231_v24 = vrot.slane %v4230_v2, 1  ;;  %6861 = vmatmul.mubr.msk.f32.gmra.mrb[86].mxu1 %vm285_vm2, %v7074_v37 }
 0x493   :  { %v4921_v52 = vpop.f32.mrb[71].mxu1  ;;  %v4339_v27 = vsel %vm285_vm2, %v7074_v37, 0.0  ;;  %v3800_v1 = vmax.f32 %v3798_v17, %v3799_v19  ;;  %v5409_v25 = vsel %vm85_vm0, %v5150_v28, 0.0  ;;  %v4239_v34 = vadd.f32 %v4238_v56, %v4237_v12 }
 0x494   :  { %v9637_v9 = vadd.f32 %v4339_v27, %v4338_v11  ;;  %v3809_v61 = vmax.f32 %v3807_v8, %v3808_v49  ;;  %v5408_v14 = vadd.f32 %v5407_v40, %v5406_v3  ;;  %v4232_v29 = vadd.f32 %v4231_v24, %v4230_v2 }
 0x495   :  { %v3801_v54 = vrot.slane %v3800_v1, 1  ;;  %v5152_v20 = vmul.f32 %v5063_v51, %v4921_v52  ;;  %v5411_v21 = vsel %vm85_vm0, %v5151_v62, 0.0  ;;  %v5153_v50 = vmul.f32 %v6838_v36, %v5065_v10 }
 0x496   :  { %v3877_v30 = vsub.f32 %v9595_v7, %v3809_v61  ;;  %v5410_v46 = vadd.f32 %v5409_v25, %v5408_v14  ;;  %7075 = vrcp.f32 %v4232_v29 }
 0x497   :  { %v3802_v43 = vmax.f32 %v3800_v1, %v3801_v54  ;;  %v5413_v32 = vsel %vm85_vm0, %v5152_v20, 0.0  ;;  %7077 = vrcp.f32 %v4239_v34  ;;  %v5415_v33 = vsel %vm85_vm0, %v5153_v50, 0.0 }
 0x498   :  { %v3934_v59 = vmul.f32 1.442695, %v3877_v30  ;;  %v5412_v5 = vadd.f32 %v5411_v21, %v5410_v46 }
 0x499   :  { %v3876_v26 = vsub.f32 %v9603_v39, %v3802_v43 }
 0x49a   :  { %7079 = vpow2.f32 %v3934_v59  ;;  %v5414_v40 = vadd.f32 %v5413_v32, %v5412_v5 }
 0x49b   :  { %v3932_v4 = vmul.f32 1.442695, %v3876_v26 }
 0x49c   :  { %v9644_v45 = vadd.f32 %v5415_v33, %v5414_v40 }
 0x49d   :  { %7081 = vpow2.f32 %v3932_v4 }
 0x49e   :  { %10546 = vst [vmem:[#allocation13_spill] sm:$0xff] %v9644_v45 }
 0x49f   :  { %v6768_v17 = vpop.f32.mrb[66].mxu0 }
 0x4a0   :  { %v7076_v23 = vpop.eup %7075  ;;  %v3591_v37 = vmul.f32 0.1, %v6768_v17  ;;  %v3535_v12 = vpop.f32.mrb[67].mxu0 }
 0x4a1   :  { %v7078_v13 = vpop.eup %7077  ;;  %v3590_v8 = vmul.f32 0.1, %v3535_v12  ;;  %v5552_v62 = vsel %vm5536_vm5, %v7076_v23, %v9599_v42 }
 0x4a2   :  { %v9648_v36 = vmax.f32 %v6768_v17, %v3591_v37  ;;  %v9651_v2 = vsel %vm5538_vm6, %v7078_v13, %v5552_v62 }
 0x4a3   :  { %v9653_v0 = vmax.f32 %v3535_v12, %v3590_v8 }
 0x4a4   :  { %v7080_v19 = vpop.eup %7079  ;;  %v3817_v52 = vsel %vm285_vm2, %v9648_v36, -inf }
 0x4a5   :  { %v4247_v28 = vsel %vm285_vm2, %v7080_v19, 0.0  ;;  %v3818_v11 = vrot.slane %v3817_v52, 4  ;;  %v3810_v49 = vsel %vm285_vm2, %v9653_v0, -inf }
 0x4a6   :  { %v4248_v56 = vrot.slane %v4247_v28, 4  ;;  %v3811_v42 = vrot.slane %v3810_v49, 4  ;;  %v3970_v24 = vmax.f32 %v3969_v48, %v3810_v49 }
 0x4a7   :  { %v7082_v3 = vpop.eup %7081  ;;  %v3819_v25 = vmax.f32 %v3817_v52, %v3818_v11 }
 0x4a8   :  { %v4249_v27 = vadd.f32 %v4248_v56, %v4247_v28  ;;  %v4240_v1 = vsel %vm285_vm2, %v7082_v3, 0.0  ;;  %6813 = vmatprep.mubr.msk.f32.mxu0 %vm285_vm2, %v7082_v3  ;;  %v3812_v34 = vmax.f32 %v3810_v49, %v3811_v42  ;;  %v3971_v61 = vmax.f32 %v3970_v24, %v3817_v52 }
 0x4a9   :  { %v4241_v51 = vrot.slane %v4240_v1, 4  ;;  %6814 = vmatmul.mubr.msk.f32.gmra.mrb[96].mxu0 %vm285_vm2, %v7080_v19  ;;  %v3820_v29 = vrot.slane %v3819_v25, 2 }
 0x4aa   :  { %v4250_v14 = vrot.slane %v4249_v27, 2  ;;  %v3813_v20 = vrot.slane %v3812_v34, 2 }
 0x4ab   :  { %v4242_v54 = vadd.f32 %v4241_v51, %v4240_v1  ;;  %v3821_v30 = vmax.f32 %v3819_v25, %v3820_v29 }
 0x4ac   :  { %v4251_v10 = vadd.f32 %v4250_v14, %v4249_v27  ;;  %v3814_v38 = vmax.f32 %v3812_v34, %v3813_v20  ;;  %v4079_v14 = vsel %vm285_vm2, %v9386_v60, 0.0  ;;  %v4072_v20 = vsel %vm285_vm2, %v9388_v16, 0.0 }
 0x4ad   :  { %v4243_v21 = vrot.slane %v4242_v54, 2  ;;  %v3822_v48 = vrot.slane %v3821_v30, 1  ;;  %v4073_v60 = vrot.slane %v4072_v20, 4  ;;  %v4093_v16 = vsel %vm285_vm2, %v9410_v31, 0.0 }
 0x4ae   :  { %v4252_v58 = vrot.slane %v4251_v10, 1  ;;  %v3815_v43 = vrot.slane %v3814_v38, 1 }
 0x4af   :  { %v4244_v46 = vadd.f32 %v4243_v21, %v4242_v54  ;;  %v3823_v32 = vmax.f32 %v3821_v30, %v3822_v48  ;;  %v4080_v48 = vrot.slane %v4079_v14, 4 }
 0x4b0   :  { %v4253_v50 = vadd.f32 %v4252_v58, %v4251_v10  ;;  %v3816_v5 = vmax.f32 %v3814_v38, %v3815_v43 }
 0x4b1   :  { %v4245_v59 = vrot.slane %v4244_v46, 1  ;;  %v3879_v26 = vsub.f32 %v9648_v36, %v3823_v32 }
 0x4b2   :  { %7083 = vrcp.f32 %v4253_v50  ;;  %v3878_v4 = vsub.f32 %v9653_v0, %v3816_v5 }
 0x4b3   :  { %v4246_v40 = vadd.f32 %v4245_v59, %v4244_v46  ;;  %v3938_v33 = vmul.f32 1.442695, %v3879_v26 }
 0x4b4   :  { %v3936_v17 = vmul.f32 1.442695, %v3878_v4 }
 0x4b5   :  { %7085 = vrcp.f32 %v4246_v40 }
 0x4b6   :  { %7087 = vpow2.f32 %v3938_v33  ;;  %v4081_v33 = vadd.f32 %v4080_v48, %v4079_v14 }
 0x4b7   :  { %7089 = vpow2.f32 %v3936_v17 }
 0x4bb   :  { %v6771_v23 = vpop.f32.mrb[68].mxu0 }
 0x4bc   :  { %v7084_v37 = vpop.eup %7083  ;;  %v3593_v12 = vmul.f32 0.1, %v6771_v23  ;;  %v3545_v13 = vpop.f32.mrb[69].mxu0 }
 0x4bd   :  { %v3592_v8 = vmul.f32 0.1, %v3545_v13 }
 0x4be   :  { %v9668_v19 = vmax.f32 %v6771_v23, %v3593_v12  ;;  %v4100_v12 = vsel %vm285_vm2, %v9427_v35, 0.0  ;;  %v4114_v35 = vsel %vm285_vm2, %v9467_v53, 0.0 }
 0x4bf   :  { %v7086_v62 = vpop.eup %7085  ;;  %v9670_v52 = vmax.f32 %v3545_v13, %v3592_v8 }
 0x4c0   :  { %v7088_v28 = vpop.eup %7087  ;;  %v9673_v56 = vsel %vm5526_vm13, %v7084_v37, %v7086_v62  ;;  %v9678_v3 = vsel %vm285_vm2, %v9668_v19, -inf  ;;  %v4074_v37 = vadd.f32 %v4073_v60, %v4072_v20  ;;  %v4094_v62 = vrot.slane %v4093_v16, 4 }
 0x4c1   :  { %v7090_v11 = vpop.eup %7089  ;;  %v4261_v49 = vsel %vm285_vm2, %v7088_v28, 0.0  ;;  %v3832_v27 = vrot.slane %v9678_v3, 4  ;;  %v3824_v1 = vsel %vm285_vm2, %v9670_v52, -inf }
 0x4c2   :  { %v4262_v42 = vrot.slane %v4261_v49, 4  ;;  %v4254_v24 = vsel %vm285_vm2, %v7090_v11, 0.0  ;;  %6816 = vmatprep.mubr.msk.f32.mxu0 %vm285_vm2, %v7090_v11  ;;  %v3825_v51 = vrot.slane %v3824_v1, 4  ;;  %v9685_v34 = vmax.f32 %v3971_v61, %v3824_v1 }
 0x4c3   :  { %v4255_v25 = vrot.slane %v4254_v24, 4  ;;  %6817 = vmatmul.mubr.msk.f32.gmra.mrb[98].mxu0 %vm285_vm2, %v7088_v28  ;;  %v3833_v54 = vmax.f32 %v9678_v3, %v3832_v27  ;;  %v4086_v61 = vsel %vm285_vm2, %v9419_v57, 0.0  ;;  %v4107_v57 = vsel %vm285_vm2, %v9423_v22, 0.0 }
 0x4c4   :  { %v4263_v29 = vadd.f32 %v4262_v42, %v4261_v49  ;;  %v3826_v30 = vmax.f32 %v3824_v1, %v3825_v51  ;;  %v3973_v21 = vmax.f32 %v9685_v34, %v9678_v3  ;;  %v4087_v59 = vrot.slane %v4086_v61, 4 }
 0x4c5   :  { %v4256_v10 = vadd.f32 %v4255_v25, %v4254_v24  ;;  %v3834_v58 = vrot.slane %v3833_v54, 2  ;;  %v4108_v42 = vrot.slane %v4107_v57, 4  ;;  %v4101_v24 = vrot.slane %v4100_v12, 4 }
 0x4c6   :  { %v4264_v38 = vrot.slane %v4263_v29, 2  ;;  %v3827_v43 = vrot.slane %v3826_v30, 2  ;;  %v4088_v28 = vadd.f32 %v4087_v59, %v4086_v61  ;;  %v4121_v27 = vsel %vm285_vm2, %v9473_v41, 0.0 }
 0x4c7   :  { %v4257_v46 = vrot.slane %v4256_v10, 2  ;;  %v3835_v32 = vmax.f32 %v3833_v54, %v3834_v58  ;;  %v4082_v1 = vrot.slane %v4081_v33, 2  ;;  %v4075_v51 = vrot.slane %v4074_v37, 2 }
 0x4c8   :  { %v4265_v50 = vadd.f32 %v4264_v38, %v4263_v29  ;;  %v3828_v26 = vmax.f32 %v3826_v30, %v3827_v43  ;;  %v4095_v14 = vadd.f32 %v4094_v62, %v4093_v16  ;;  %v4089_v29 = vrot.slane %v4088_v28, 2 }
 0x4c9   :  { %v4258_v5 = vadd.f32 %v4257_v46, %v4256_v10  ;;  %v3836_v4 = vrot.slane %v3835_v32, 1  ;;  %v4109_v20 = vadd.f32 %v4108_v42, %v4107_v57  ;;  %v4122_v10 = vrot.slane %v4121_v27, 4 }
 0x4ca   :  { %v4266_v40 = vrot.slane %v4265_v50, 1  ;;  %v3829_v23 = vrot.slane %v3828_v26, 1  ;;  %v4102_v30 = vadd.f32 %v4101_v24, %v4100_v12  ;;  %v4115_v61 = vrot.slane %v4114_v35, 4 }
 0x4cb   :  { %v4259_v17 = vrot.slane %v4258_v5, 1  ;;  %v3837_v8 = vmax.f32 %v3835_v32, %v3836_v4  ;;  %v4083_v38 = vadd.f32 %v4082_v1, %v4081_v33  ;;  %v4076_v41 = vadd.f32 %v4075_v51, %v4074_v37 }
 0x4cc   :  { %v4267_v13 = vadd.f32 %v4266_v40, %v4265_v50  ;;  %v3830_v49 = vmax.f32 %v3828_v26, %v3829_v23  ;;  %v4096_v58 = vrot.slane %v4095_v14, 2  ;;  %v4090_v48 = vadd.f32 %v4089_v29, %v4088_v28 }
 0x4cd   :  { %v4260_v11 = vadd.f32 %v4259_v17, %v4258_v5  ;;  %v3881_v31 = vsub.f32 %v9668_v19, %v3837_v8  ;;  %v4110_v46 = vrot.slane %v4109_v20, 2  ;;  %v4123_v43 = vadd.f32 %v4122_v10, %v4121_v27 }
 0x4ce   :  { %v3880_v22 = vsub.f32 %v9670_v52, %v3830_v49  ;;  %v4103_v60 = vrot.slane %v4102_v30, 2  ;;  %v4116_v53 = vadd.f32 %v4115_v61, %v4114_v35  ;;  %v4084_v50 = vrot.slane %v4083_v38, 1 }
 0x4cf   :  { %7091 = vrcp.f32 %v4260_v11  ;;  %v3942_v25 = vmul.f32 1.442695, %v3881_v31  ;;  %v4077_v5 = vrot.slane %v4076_v41, 1  ;;  %v4097_v26 = vadd.f32 %v4096_v58, %v4095_v14 }
 0x4d0   :  { %7093 = vrcp.f32 %v4267_v13  ;;  %v3940_v54 = vmul.f32 1.442695, %v3880_v22  ;;  %v4091_v16 = vrot.slane %v4090_v48, 1  ;;  %v4111_v17 = vadd.f32 %v4110_v46, %v4109_v20 }
 0x4d1   :  { %v4124_v23 = vrot.slane %v4123_v43, 2  ;;  %v4104_v12 = vadd.f32 %v4103_v60, %v4102_v30  ;;  %v4117_v13 = vrot.slane %v4116_v53, 2  ;;  %v4085_v28 = vadd.f32 %v4084_v50, %v4083_v38 }
 0x4d2   :  { %7095 = vpow2.f32 %v3940_v54  ;;  %v4078_v31 = vadd.f32 %v4077_v5, %v4076_v41  ;;  %v4098_v24 = vrot.slane %v4097_v26, 1  ;;  %v4092_v27 = vadd.f32 %v4091_v16, %v4090_v48 }
 0x4d3   :  { %7097 = vpow2.f32 %v3942_v25  ;;  %v4112_v35 = vrot.slane %v4111_v17, 1  ;;  %v4125_v25 = vadd.f32 %v4124_v23, %v4123_v43  ;;  %v4105_v29 = vrot.slane %v4104_v12, 1 }
 0x4d4   :  { %v4118_v54 = vadd.f32 %v4117_v13, %v4116_v53  ;;  %7099 = vrcp.f32 %v4085_v28  ;;  %v4099_v38 = vadd.f32 %v4098_v24, %v4097_v26 }
 0x4d5   :  { %7101 = vrcp.f32 %v4078_v31  ;;  %v4113_v46 = vadd.f32 %v4112_v35, %v4111_v17  ;;  %v4126_v43 = vrot.slane %v4125_v25, 1  ;;  %v4106_v3 = vadd.f32 %v4105_v29, %v4104_v12 }
 0x4d6   :  { %7103 = vrcp.f32 %v4092_v27  ;;  %v4119_v34 = vrot.slane %v4118_v54, 1 }
 0x4d7   :  { %7105 = vrcp.f32 %v4099_v38 }
 0x4d8   :  { %v6774_v32 = vpop.f32.mrb[70].mxu0  ;;  %7107 = vrcp.f32 %v4106_v3  ;;  %v4120_v17 = vadd.f32 %v4119_v34, %v4118_v54 }
 0x4d9   :  { %v7092_v59 = vpop.eup %7091  ;;  %v3595_v40 = vmul.f32 0.1, %v6774_v32  ;;  %v3555_v4 = vpop.f32.mrb[71].mxu0  ;;  %7109 = vrcp.f32 %v4113_v46 }
 0x4da   :  { %v7094_v57 = vpop.eup %7093  ;;  %v3594_v33 = vmul.f32 0.1, %v3555_v4  ;;  %v5555_v37 = vsel %vm5528_vm14, %v7092_v59, %v9673_v56 }
 0x4db   :  { %v9711_v8 = vmax.f32 %v6774_v32, %v3595_v40  ;;  %v9714_v62 = vsel %vm5530_vm15, %v7094_v57, %v5555_v37  ;;  %v4127_v57 = vadd.f32 %v4126_v43, %v4125_v25 }
 0x4dc   :  { %v9716_v11 = vmax.f32 %v3555_v4, %v3594_v33  ;;  %v9718_v49 = vpop.f32.mrb[72].mxu0  ;;  %v9720_v42 = vpop.eup %7095 }
 0x4dd   :  { %v3845_v56 = vsel %vm285_vm2, %v9711_v8, -inf  ;;  %v9724_v22 = vpop.f32.mrb[73].mxu0  ;;  %v9726_v1 = vpop.eup %7097  ;;  %6819 = vmatprep.mubr.msk.f32.mxu0 %vm285_vm2, %v9720_v42 }
 0x4de   :  { %v3846_v51 = vrot.slane %v3845_v56, 4  ;;  %v3838_v14 = vsel %vm285_vm2, %v9716_v11, -inf  ;;  %6820 = vmatmul.mubr.msk.f32.gmra.mrb[100].mxu0 %vm285_vm2, %v9726_v1  ;;  %v7100_v31 = vpop.eup %7099 }
 0x4df   :  { %v3839_v20 = vrot.slane %v3838_v14, 4  ;;  %v3974_v10 = vmax.f32 %v3973_v21, %v3838_v14  ;;  %v7102_v27 = vpop.eup %7101 }
 0x4e0   :  { %v3847_v30 = vmax.f32 %v3845_v56, %v3846_v51  ;;  %v9737_v61 = vpop.f32.mrb[74].mxu0  ;;  %v7104_v35 = vpop.eup %7103 }
 0x4e1   :  { %v3840_v41 = vmax.f32 %v3838_v14, %v3839_v20  ;;  %v9739_v58 = vmax.f32 %v3974_v10, %v3845_v56  ;;  %v9741_v48 = vpop.f32.mrb[75].mxu0  ;;  %v7106_v38 = vpop.eup %7105 }
 0x4e2   :  { %v3848_v60 = vrot.slane %v3847_v30, 2  ;;  %v7108_v3 = vpop.eup %7107 }
 0x4e3   :  { %v3841_v21 = vrot.slane %v3840_v41, 2  ;;  %v4000_v53 = vsub.f32 %v9603_v39, %v9739_v58  ;;  %v4001_v32 = vsub.f32 %v9595_v7, %v9739_v58  ;;  %v4002_v59 = vsub.f32 %v9653_v0, %v9739_v58 }
 0x4e4   :  { %v3849_v50 = vmax.f32 %v3847_v30, %v3848_v60  ;;  %v4003_v5 = vsub.f32 %v9648_v36, %v9739_v58  ;;  %v9751_v26 = vpop.f32.mrb[76].mxu0  ;;  %v4004_v40 = vsub.f32 %v9670_v52, %v9739_v58  ;;  %v4005_v39 = vsub.f32 %v9668_v19, %v9739_v58 }
 0x4e5   :  { %v3842_v16 = vmax.f32 %v3840_v41, %v3841_v21  ;;  %v9757_v4 = vpop.f32.mrb[77].mxu0  ;;  %v4006_v0 = vsub.f32 %v9716_v11, %v9739_v58  ;;  %v4007_v36 = vsub.f32 %v9711_v8, %v9739_v58  ;;  %v4056_v33 = vmul.f32 1.442695, %v4000_v53  ;;  %v7110_v53 = vpop.eup %7109 }
 0x4e6   :  { %v3850_v7 = vrot.slane %v3849_v50, 1  ;;  %v4058_v52 = vmul.f32 1.442695, %v4001_v32  ;;  %v4060_v13 = vmul.f32 1.442695, %v4002_v59  ;;  %v5527_v41 = vsel %vm5526_vm13, %v7100_v31, %v7102_v27 }
 0x4e7   :  { %v3843_v23 = vrot.slane %v3842_v16, 1  ;;  %7111 = vpow2.f32 %v4056_v33  ;;  %v4062_v51 = vmul.f32 1.442695, %v4003_v5  ;;  %v4064_v20 = vmul.f32 1.442695, %v4004_v40 }
 0x4e8   :  { %v3851_v37 = vmax.f32 %v3849_v50, %v3850_v7  ;;  %v9763_v12 = vpop.f32.mrb[78].mxu0  ;;  %7113 = vrcp.f32 %v4127_v57  ;;  %v4068_v58 = vmul.f32 1.442695, %v4006_v0  ;;  %v5529_v60 = vsel %vm5528_vm14, %v7104_v35, %v5527_v41 }
 0x4e9   :  { %v3844_v19 = vmax.f32 %v3842_v16, %v3843_v23  ;;  %v9765_v28 = vpop.f32.mrb[79].mxu0  ;;  %7115 = vrcp.f32 %v4120_v17  ;;  %v4275_v50 = vsel %vm285_vm2, %v9726_v1, 0.0  ;;  %v4070_v32 = vmul.f32 1.442695, %v4007_v36 }
 0x4ea   :  { %v3883_v24 = vsub.f32 %v9711_v8, %v3851_v37  ;;  %7117 = vpow2.f32 %v4058_v52  ;;  %v4268_v8 = vsel %vm285_vm2, %v9720_v42, 0.0  ;;  %v5531_v5 = vsel %vm5530_vm15, %v7106_v38, %v5529_v60 }
 0x4eb   :  { %v3882_v56 = vsub.f32 %v9716_v11, %v3844_v19  ;;  %7119 = vpow2.f32 %v4060_v13  ;;  %v4066_v11 = vmul.f32 1.442695, %v4005_v39  ;;  %v4269_v34 = vrot.slane %v4268_v8, 4 }
 0x4ec   :  { %v3946_v25 = vmul.f32 1.442695, %v3883_v24  ;;  %v9769_v14 = vpop.f32.mrb[80].mxu0  ;;  %v5533_v57 = vsel %vm5532_vm3, %v7108_v3, %v5531_v5  ;;  %v4276_v0 = vrot.slane %v4275_v50, 4 }
 0x4ed   :  { %v3944_v54 = vmul.f32 1.442695, %v3882_v56  ;;  %v9773_v10 = vpop.f32.mrb[81].mxu0  ;;  %v4270_v17 = vadd.f32 %v4269_v34, %v4268_v8  ;;  %v5535_v19 = vsel %vm5534_vm4, %v7110_v53, %v5533_v57 }
 0x4ee   :  { %v9771_v29 = vpop.f32.mrb[72].mxu1  ;;  %7121 = vpow2.f32 %v3946_v25  ;;  %v4277_v25 = vadd.f32 %v4276_v0, %v4275_v50 }
 0x4ef   :  { %v9775_v30 = vpop.f32.mrb[73].mxu1  ;;  %7123 = vpow2.f32 %v3944_v54 }
 0x4f0   :  { %7125 = vpow2.f32 %v4062_v51  ;;  %v9780_v46 = vpop.f32.mrb[82].mxu0  ;;  %v4271_v51 = vrot.slane %v4270_v17, 2  ;;  %v4278_v57 = vrot.slane %v4277_v25, 2 }
 0x4f1   :  { %7127 = vpow2.f32 %v4064_v20  ;;  %v9785_v21 = vpop.f32.mrb[83].mxu0  ;;  %v7112_v59 = vpop.eup %7111 }
 0x4f2   :  { %v9782_v43 = vpop.f32.mrb[74].mxu1  ;;  %7129 = vpow2.f32 %v4066_v11  ;;  %v7114_v16 = vpop.eup %7113  ;;  %6863 = vmatprep.mubr.msk.f32.mxu1 %vm285_vm2, %v7112_v59  ;;  %v4341_v1 = vsel %vm285_vm2, %v7112_v59, 0.0 }
 0x4f3   :  { %v9787_v42 = vpop.f32.mrb[75].mxu1  ;;  %7131 = vpow2.f32 %v4068_v58  ;;  %v7116_v7 = vpop.eup %7115 }
 0x4f4   :  { %v9793_v40 = vpop.f32.mrb[84].mxu0  ;;  %v7118_v33 = vpop.eup %7117  ;;  %7133 = vpow2.f32 %v4070_v32  ;;  %v5537_v56 = vsel %vm5536_vm5, %v7116_v7, %v5535_v19  ;;  %v4272_v7 = vadd.f32 %v4271_v51, %v4270_v17  ;;  %v4279_v51 = vadd.f32 %v4278_v57, %v4277_v25 }
 0x4f5   :  { %v9799_v23 = vpop.f32.mrb[85].mxu0  ;;  %v7120_v37 = vpop.eup %7119  ;;  %v4342_v52 = vsel %vm285_vm2, %v7118_v33, 0.0  ;;  %6864 = vmatmul.mubr.msk.f32.gmra.mrb[88].mxu1 %vm285_vm2, %v7118_v33  ;;  %v5539_v50 = vsel %vm5538_vm6, %v7114_v16, %v5537_v56 }
 0x4f6   :  { %v9795_v39 = vpop.f32.mrb[76].mxu1  ;;  %v4343_v31 = vadd.f32 %v4342_v52, %v4341_v1  ;;  %6866 = vmatprep.mubr.msk.f32.mxu1 %vm285_vm2, %v7120_v37  ;;  %v4344_v20 = vsel %vm285_vm2, %v7120_v37, 0.0  ;;  %v5069_v52 = vpop.permute.xlu1 %5068 }
 0x4f7   :  { %v9801_v36 = vpop.f32.mrb[77].mxu1  ;;  %v5067_v17 = vpop.permute.xlu0 %5066 }
 0x4f8   :  { %v7122_v13 = vpop.eup %7121  ;;  %v9807_v24 = vpop.f32.mrb[86].mxu0  ;;  %v4345_v60 = vadd.f32 %v4344_v20, %v4343_v31 }
 0x4f9   :  { %v7124_v35 = vpop.eup %7123  ;;  %v4289_v54 = vsel %vm285_vm2, %v7122_v13, 0.0  ;;  %v9814_v8 = vpop.f32.mrb[87].mxu0 }
 0x4fa   :  { %v9809_v27 = vpop.f32.mrb[78].mxu1  ;;  %v7126_v38 = vpop.eup %7125  ;;  %v4290_v41 = vrot.slane %v4289_v54, 4  ;;  %v4282_v58 = vsel %vm285_vm2, %v7124_v35, 0.0  ;;  %6822 = vmatprep.mubr.msk.f32.mxu0 %vm285_vm2, %v7124_v35  ;;  %v5155_v35 = vmul.f32 %v9771_v29, %v5069_v52 }
 0x4fb   :  { %v9816_v11 = vpop.f32.mrb[79].mxu1  ;;  %v7128_v3 = vpop.eup %7127  ;;  %v4283_v34 = vrot.slane %v4282_v58, 4  ;;  %v4346_v53 = vsel %vm285_vm2, %v7126_v38, 0.0  ;;  %6867 = vmatmul.mubr.msk.f32.gmra.mrb[90].mxu1 %vm285_vm2, %v7126_v38  ;;  %6823 = vmatmul.mubr.msk.f32.gmra.mrb[102].mxu0 %vm285_vm2, %v7122_v13 }
 0x4fc   :  { %v7130_v32 = vpop.eup %7129  ;;  %v4291_v59 = vadd.f32 %v4290_v41, %v4289_v54  ;;  %v4347_v5 = vadd.f32 %v4346_v53, %v4345_v60  ;;  %6869 = vmatprep.mubr.msk.f32.mxu1 %vm285_vm2, %v7128_v3  ;;  %6877 = vmatprep.mubr.msk.f32.mxu0 %vm285_vm2, %v5539_v50  ;;  %v4348_v1 = vsel %vm285_vm2, %v7128_v3, 0.0  ;;  %v4273_v54 = vrot.slane %v4272_v7, 1  ;;  %v7152_v41 = vld [vmem:[%s10433_s10] sm:$0xf] }
 0x4fd   :  { %v4284_v0 = vadd.f32 %v4283_v34, %v4282_v58  ;;  %v7132_v33 = vpop.eup %7131  ;;  %v4350_v13 = vsel %vm285_vm2, %v7130_v32, 0.0  ;;  %v5418_v25 = vsel %vm85_vm0, %v5155_v35, 0.0  ;;  %v5154_v3 = vmul.f32 %v5067_v17, %v9775_v30 }
 0x4fe   :  { %v4349_v37 = vadd.f32 %v4348_v1, %v4347_v5  ;;  %v4292_v19 = vrot.slane %v4291_v59, 2  ;;  %v7134_v16 = vpop.eup %7133  ;;  %v4352_v38 = vsel %vm285_vm2, %v7132_v33, 0.0  ;;  %v4280_v34 = vrot.slane %v4279_v51, 1 }
 0x4ff   :  { %v4285_v31 = vrot.slane %v4284_v0, 2  ;;  %6870 = vmatmul.mubr.msk.f32.gmra.mrb[92].mxu1 %vm285_vm2, %v7130_v32  ;;  %6878 = vmatmul.mubr.msk.f32.vlgmr.msra.gmra.mrb[104].mxu0 %vm285_vm2, %v9529_v44  ;;  %v4354_v29 = vsel %vm285_vm2, %v7134_v16, 0.0  ;;  %v4274_v53 = vadd.f32 %v4273_v54, %v4272_v7  ;;  %v5417_v50 = vsel %vm85_vm0, %v5154_v3, 0.0  ;;  %v5071_v32 = vpop.permute.xlu0 %5070 }
 0x500   :  { %v4351_v56 = vadd.f32 %v4350_v13, %v4349_v37  ;;  %6872 = vmatprep.mubr.msk.f32.mxu1 %vm285_vm2, %v7132_v33  ;;  %6880 = vmatprep.mubr.msk.f32.mxu0 %vm285_vm2, %v9651_v2  ;;  %v4293_v58 = vadd.f32 %v4292_v19, %v4291_v59  ;;  %v5419_v57 = vadd.f32 %v5418_v25, %v5417_v50 }
 0x501   :  { %v4286_v20 = vadd.f32 %v4285_v31, %v4284_v0  ;;  %6884 = vmatpush3.msk.msra.mxu0 %vm382_vm1, %v7152_v41  ;;  %v5073_v0 = vpop.permute.xlu1 %5072  ;;  %v4281_v59 = vadd.f32 %v4280_v34, %v4279_v51  ;;  %7135 = vrcp.f32 %v4274_v53  ;;  %v5156_v37 = vmul.f32 %v5071_v32, %v9787_v42 }
 0x502   :  { %v4353_v44 = vadd.f32 %v4352_v38, %v4351_v56  ;;  %v4294_v5 = vrot.slane %v4293_v58, 1  ;;  %v5157_v33 = vmul.f32 %v9782_v43, %v5073_v0 }
 0x503   :  { %6873 = vmatmul.mubr.msk.f32.gmra.mrb[94].mxu1 %vm285_vm2, %v7134_v16  ;;  %v4287_v60 = vrot.slane %v4286_v20, 1  ;;  %v5420_v19 = vsel %vm85_vm0, %v5156_v37, 0.0  ;;  %v5075_v30 = vpop.permute.xlu0 %5074 }
 0x504   :  { %v4355_v2 = vadd.f32 %v4354_v29, %v4353_v44  ;;  %v4295_v52 = vadd.f32 %v4294_v5, %v4293_v58  ;;  %v5421_v7 = vadd.f32 %v5420_v19, %v5419_v57  ;;  %v5422_v13 = vsel %vm85_vm0, %v5157_v33, 0.0 }
 0x505   :  { %v4288_v1 = vadd.f32 %v4287_v60, %v4286_v20  ;;  %v5077_v31 = vpop.permute.xlu1 %5076  ;;  %v5158_v16 = vmul.f32 %v5075_v30, %v9801_v36 }
 0x506   :  { %v5423_v56 = vadd.f32 %v5422_v13, %v5421_v7  ;;  %v5159_v43 = vmul.f32 %v9795_v39, %v5077_v31 }
 0x507   :  { %7137 = vrcp.f32 %v4288_v1  ;;  %v5424_v35 = vsel %vm85_vm0, %v5158_v16, 0.0  ;;  %v5079_v51 = vpop.permute.xlu0 %5078 }
 0x508   :  { %7139 = vrcp.f32 %v4281_v59  ;;  %v5425_v42 = vadd.f32 %v5424_v35, %v5423_v56  ;;  %v5160_v20 = vmul.f32 %v5079_v51, %v9816_v11  ;;  %v5426_v36 = vsel %vm85_vm0, %v5159_v43, 0.0 }
 0x509   :  { %7141 = vrcp.f32 %v4295_v52  ;;  %v5081_v54 = vpop.permute.xlu1 %5080 }
 0x50a   :  { %7143 = vrcp.f32 %v9286_v18  ;;  %v5161_v38 = vmul.f32 %v9809_v27, %v5081_v54  ;;  %v5427_v18 = vadd.f32 %v5426_v36, %v5425_v42  ;;  %v5428_v39 = vsel %vm85_vm0, %v5160_v20, 0.0 }
 0x50b   :  { %v7136_v17 = vpop.eup %7135  ;;  %7145 = vrcp.f32 %v9518_v47  ;;  %v5083_v32 = vpop.permute.xlu0 %5082 }
 0x50c   :  { %7147 = vrcp.f32 %v9637_v9  ;;  %v5557_v58 = vsel %vm5532_vm3, %v7136_v17, %v9714_v62  ;;  %v5429_v11 = vadd.f32 %v5428_v39, %v5427_v18  ;;  %v5430_v25 = vsel %vm85_vm0, %v5161_v38, 0.0 }
 0x50d   :  { %7149 = vrcp.f32 %v4355_v2  ;;  %v5085_v13 = vpop.permute.xlu1 %5084 }
 0x50e   :  { %v9869_v34 = vadd.f32 %v5430_v25, %v5429_v11 }
 0x50f   :  { %v5087_v5 = vpop.permute.xlu0 %5086 }
 0x510   :  { %10547 = vst [vmem:[#allocation16_spill] sm:$0xff] %v9869_v34 }
 0x511   :  { %v7138_v44 = vpop.eup %7137  ;;  %v5089_v17 = vpop.permute.xlu1 %5088 }
 0x512   :  { %v7140_v47 = vpop.eup %7139 }
 0x513   :  { %v5558_v9 = vsel %vm5534_vm4, %v7140_v47, %v5557_v58  ;;  %v7142_v60 = vpop.eup %7141  ;;  %v5091_v1 = vpop.permute.xlu0 %5090 }
 0x514   :  { %v5559_v27 = vsel %vm5536_vm5, %v7138_v44, %v5558_v9  ;;  %v7144_v53 = vpop.eup %7143 }
 0x515   :  { %v9858_v41 = vpop.f32.mrb[88].mxu0  ;;  %v5560_v3 = vsel %vm5538_vm6, %v7142_v60, %v5559_v27  ;;  %v7146_v62 = vpop.eup %7145 }
 0x516   :  { %v9863_v29 = vpop.f32.mrb[89].mxu0  ;;  %6881 = vmatmul.mubr.msk.f32.gmra.mrb[106].mxu0 %vm285_vm2, %v5560_v3  ;;  %v7148_v50 = vpop.eup %7147 }
 0x517   :  { %6885 = vmatprep.mubr.msk.f32.mxu0 %vm285_vm2, %v7144_v53  ;;  %v7150_v2 = vpop.eup %7149  ;;  %v9880_v59 = vpop.permute.xlu0 %5100 }
 0x518   :  { %v9903_v27 = vpop.permute.xlu1 %5098 }
 0x51a   :  { %6886 = vmatmul.mubr.msk.f32.vlgmr.msra.gmra.mrb[108].mxu0 %vm285_vm2, %v7146_v62 }
 0x51b   :  { %6888 = vmatprep.mubr.msk.f32.mxu0 %vm285_vm2, %v7148_v50  ;;  %v9882_v33 = vpop.permute.xlu0 %5104 }
 0x51e   :  { %6889 = vmatmul.mubr.msk.f32.gmra.mrb[110].mxu0 %vm285_vm2, %v7150_v2 }
 0x51f   :  { %v5093_v52 = vpop.permute.xlu0 %5092 }
 0x523   :  { %v5095_v30 = vpop.permute.xlu0 %5094 }
 0x527   :  { %v9888_v7 = vpop.permute.xlu0 %5885 }
 0x528   :  { %10548 = vst [vmem:[#allocation15_spill] sm:$0xff] %v9888_v7 }
 0x52b   :  { %v9890_v31 = vpop.permute.xlu0 %5917 }
 0x52c   :  { %10549 = vst [vmem:[#allocation20_spill] sm:$0xff] %v9890_v31 }
 0x52f   :  { %v9876_v57 = vpop.f32.mrb[90].mxu0  ;;  %v9892_v56 = vpop.permute.xlu0 %5887 }
 0x530   :  { %v9878_v0 = vpop.f32.mrb[91].mxu0  ;;  %10550 = vst [vmem:[#allocation18_spill] sm:$0xff] %v9892_v56 }
 0x533   :  { %v9900_v47 = vpop.permute.xlu0 %5919 }
 0x534   :  { %10551 = vst [vmem:[#allocation22_spill] sm:$0xff] %v9900_v47 }
 0x541   :  { %v9884_v37 = vpop.f32.mrb[92].mxu0 }
 0x542   :  { %v9886_v19 = vpop.f32.mrb[93].mxu0 }
 0x559   :  { %v6853_v16 = vpop.f32.mrb[80].mxu1 }
 0x55a   :  { %v5163_v35 = vmul.f32 %v6853_v16, %v5085_v13  ;;  %v4971_v43 = vpop.f32.mrb[81].mxu1  ;;  %v5097_v13 = vpop.permute.xlu0 %5096 }
 0x55b   :  { %v5162_v42 = vmul.f32 %v5083_v32, %v4971_v43 }
 0x55c   :  { %v5433_v51 = vsel %vm85_vm0, %v5163_v35, 0.0 }
 0x55d   :  { %v5432_v54 = vsel %vm85_vm0, %v5162_v42, 0.0  ;;  %v6856_v20 = vpop.f32.mrb[82].mxu1  ;;  %v9896_v36 = vpop.f32.mrb[94].mxu0 }
 0x55e   :  { %v5434_v38 = vadd.f32 %v5433_v51, %v5432_v54  ;;  %v4981_v44 = vpop.f32.mrb[83].mxu1  ;;  %v9898_v18 = vpop.f32.mrb[95].mxu0  ;;  %v5165_v39 = vmul.f32 %v6856_v20, %v5089_v17 }
 0x55f   :  { %v5164_v58 = vmul.f32 %v5087_v5, %v4981_v44  ;;  %v9908_v51 = vpop.permute.xlu1 %5102 }
 0x560   :  { %v5437_v3 = vsel %vm85_vm0, %v5165_v39, 0.0 }
 0x561   :  { %v5435_v11 = vsel %vm85_vm0, %v5164_v58, 0.0  ;;  %v6859_v9 = vpop.f32.mrb[84].mxu1 }
 0x562   :  { %v5436_v60 = vadd.f32 %v5435_v11, %v5434_v38  ;;  %v4991_v25 = vpop.f32.mrb[85].mxu1  ;;  %v5167_v53 = vmul.f32 %v6859_v9, %v5093_v52  ;;  %v4698_v9 = vmul.f32 %v9718_v49, %v9575_v63 }
 0x563   :  { %v5166_v62 = vmul.f32 %v5091_v1, %v4991_v25  ;;  %v9914_v38 = vpop.permute.xlu1 %5106  ;;  %v4700_v25 = vmul.f32 %v9737_v61, %v9575_v63 }
 0x564   :  { %v5438_v50 = vadd.f32 %v5437_v3, %v5436_v60  ;;  %v5441_v35 = vsel %vm85_vm0, %v5167_v53, 0.0  ;;  %v4697_v60 = vmul.f32 %v9575_v63, %v9724_v22  ;;  %v4699_v3 = vmul.f32 %v9575_v63, %v9741_v48 }
 0x565   :  { %v5439_v2 = vsel %vm85_vm0, %v5166_v62, 0.0  ;;  %v6862_v32 = vpop.f32.mrb[86].mxu1  ;;  %v4702_v53 = vmul.f32 %v9751_v26, %v9575_v63  ;;  %v4701_v62 = vmul.f32 %v9575_v63, %v9757_v4  ;;  %v5199_v22 = vsel %vm85_vm0, %v4700_v25, 0.0 }
 0x566   :  { %v5440_v16 = vadd.f32 %v5439_v2, %v5438_v50  ;;  %v5001_v5 = vpop.f32.mrb[87].mxu1  ;;  %v5169_v43 = vmul.f32 %v6862_v32, %v5097_v13  ;;  %v5185_v2 = vsel %vm85_vm0, %v4698_v9, 0.0  ;;  %v5178_v49 = vsel %vm85_vm0, %v4697_v60, 0.0 }
 0x567   :  { %v5168_v42 = vmul.f32 %v5095_v30, %v5001_v5  ;;  %v9916_v44 = vpop.permute.xlu1 %5108  ;;  %v5192_v32 = vsel %vm85_vm0, %v4699_v3, 0.0  ;;  %v5213_v61 = vsel %vm85_vm0, %v4702_v53, 0.0  ;;  %v4704_v48 = vmul.f32 %v9763_v12, %v9575_v63 }
 0x568   :  { %v5442_v17 = vadd.f32 %v5441_v35, %v5440_v16  ;;  %v5445_v52 = vsel %vm85_vm0, %v5169_v43, 0.0  ;;  %v5186_v13 = vrot.slane %v5185_v2, 4  ;;  %v5179_v26 = vrot.slane %v5178_v49, 4 }
 0x569   :  { %v5443_v54 = vsel %vm85_vm0, %v5168_v42, 0.0  ;;  %v5206_v16 = vsel %vm85_vm0, %v4701_v62, 0.0  ;;  %v4703_v4 = vmul.f32 %v9575_v63, %v9765_v28  ;;  %v5200_v5 = vrot.slane %v5199_v22, 4 }
 0x56a   :  { %v5444_v20 = vadd.f32 %v5443_v54, %v5442_v17  ;;  %v5193_v35 = vrot.slane %v5192_v32, 4  ;;  %v5214_v43 = vrot.slane %v5213_v61, 4  ;;  %v5207_v17 = vrot.slane %v5206_v16, 4 }
 0x56b   :  { %v9918_v39 = vpop.permute.xlu1 %5110  ;;  %v5227_v54 = vsel %vm85_vm0, %v4704_v48, 0.0  ;;  %v5220_v9 = vsel %vm85_vm0, %v4703_v4, 0.0  ;;  %v5201_v12 = vadd.f32 %v5200_v5, %v5199_v22  ;;  %v4706_v25 = vmul.f32 %v9769_v14, %v9579_v15 }
 0x56c   :  { %v9912_v1 = vadd.f32 %v5445_v52, %v5444_v20  ;;  %10553 = vst [vmem:[#allocation23_spill] sm:$0xff] %v9918_v39  ;;  %v5187_v20 = vadd.f32 %v5186_v13, %v5185_v2  ;;  %v5180_v52 = vadd.f32 %v5179_v26, %v5178_v49  ;;  %v5194_v60 = vadd.f32 %v5193_v35, %v5192_v32 }
 0x56d   :  { %v4705_v28 = vmul.f32 %v9579_v15, %v9773_v10  ;;  %v5215_v3 = vadd.f32 %v5214_v43, %v5213_v61  ;;  %v5228_v53 = vrot.slane %v5227_v54, 4  ;;  %v5208_v62 = vadd.f32 %v5207_v17, %v5206_v16 }
 0x56e   :  { %10552 = vst [vmem:[#allocation19_spill] sm:$0xff] %v9912_v1  ;;  %v5221_v1 = vrot.slane %v5220_v9, 4  ;;  %v5188_v63 = vrot.slane %v5187_v20, 2  ;;  %v5181_v45 = vrot.slane %v5180_v52, 2  ;;  %v5202_v2 = vrot.slane %v5201_v12, 2 }
 0x56f   :  { %v9924_v30 = vpop.permute.xlu1 %5901  ;;  %v5195_v49 = vrot.slane %v5194_v60, 2  ;;  %v5241_v48 = vsel %vm85_vm0, %v4706_v25, 0.0  ;;  %v5234_v22 = vsel %vm85_vm0, %v4705_v28, 0.0  ;;  %v5216_v32 = vrot.slane %v5215_v3, 2 }
 0x570   :  { %v5229_v13 = vadd.f32 %v5228_v53, %v5227_v54  ;;  %v4708_v14 = vmul.f32 %v9780_v46, %v9579_v15  ;;  %v4707_v10 = vmul.f32 %v9579_v15, %v9785_v21  ;;  %v5209_v61 = vrot.slane %v5208_v62, 2 }
 0x571   :  { %v5222_v26 = vadd.f32 %v5221_v1, %v5220_v9  ;;  %v5189_v4 = vadd.f32 %v5188_v63, %v5187_v20  ;;  %v5242_v5 = vrot.slane %v5241_v48, 4  ;;  %v5235_v35 = vrot.slane %v5234_v22, 4 }
 0x572   :  { %v4710_v43 = vmul.f32 %v9793_v40, %v9579_v15  ;;  %v5182_v25 = vadd.f32 %v5181_v45, %v5180_v52  ;;  %v5203_v54 = vadd.f32 %v5202_v2, %v5201_v12  ;;  %v5196_v28 = vadd.f32 %v5195_v49, %v5194_v60 }
 0x573   :  { %v9938_v50 = vpop.permute.xlu1 %5933  ;;  %v4709_v46 = vmul.f32 %v9579_v15, %v9799_v23  ;;  %v5217_v53 = vadd.f32 %v5216_v32, %v5215_v3  ;;  %v5230_v21 = vrot.slane %v5229_v13, 2  ;;  %v5255_v1 = vsel %vm85_vm0, %v4708_v14, 0.0 }
 0x574   :  { %10554 = vst [vmem:[#allocation21_spill] sm:$0xff] %v9938_v50  ;;  %v5248_v9 = vsel %vm85_vm0, %v4707_v10, 0.0  ;;  %v5210_v20 = vadd.f32 %v5209_v61, %v5208_v62  ;;  %v5223_v47 = vrot.slane %v5222_v26, 2  ;;  %v5190_v31 = vrot.slane %v5189_v4, 1 }
 0x575   :  { %v5243_v40 = vadd.f32 %v5242_v5, %v5241_v48  ;;  %v5269_v45 = vsel %vm85_vm0, %v4710_v43, 0.0  ;;  %v5183_v52 = vrot.slane %v5182_v25, 1  ;;  %v5256_v12 = vrot.slane %v5255_v1, 4 }
 0x576   :  { %v5249_v60 = vrot.slane %v5248_v9, 4  ;;  %v5262_v23 = vsel %vm85_vm0, %v4709_v46, 0.0  ;;  %v5204_v3 = vrot.slane %v5203_v54, 1  ;;  %v5197_v2 = vrot.slane %v5196_v28, 1 }
 0x577   :  { %v9950_v42 = vpop.permute.xlu1 %5903  ;;  %v5218_v49 = vrot.slane %v5217_v53, 1  ;;  %v5231_v32 = vadd.f32 %v5230_v21, %v5229_v13  ;;  %v5211_v14 = vrot.slane %v5210_v20, 1  ;;  %v5224_v10 = vadd.f32 %v5223_v47, %v5222_v26 }
 0x578   :  { %10555 = vst [vmem:[#allocation25_spill] sm:$0xff] %v9950_v42  ;;  %v5270_v50 = vrot.slane %v5269_v45, 4  ;;  %v5244_v56 = vrot.slane %v5243_v40, 2  ;;  %v5263_v61 = vrot.slane %v5262_v23, 4  ;;  %v4712_v48 = vmul.f32 %v9807_v24, %v9579_v15 }
 0x579   :  { %v9984_v5 = vadd.f32 %v5190_v31, %v5189_v4  ;;  %v5257_v43 = vadd.f32 %v5256_v12, %v5255_v1  ;;  %v5250_v46 = vadd.f32 %v5249_v60, %v5248_v9  ;;  %v9988_v7 = vadd.f32 %v5204_v3, %v5203_v54 }
 0x57a   :  { %v9990_v13 = vadd.f32 %v5197_v2, %v5196_v28  ;;  %v9992_v47 = vadd.f32 %v5218_v49, %v5217_v53  ;;  %v5232_v26 = vrot.slane %v5231_v32, 1  ;;  %v9994_v21 = vadd.f32 %v5211_v14, %v5210_v20 }
 0x57b   :  { %v9958_v34 = vpop.permute.xlu1 %5935  ;;  %v5225_v39 = vrot.slane %v5224_v10, 1  ;;  %v5271_v42 = vadd.f32 %v5270_v50, %v5269_v45  ;;  %v4711_v24 = vmul.f32 %v9579_v15, %v9814_v8  ;;  %v5245_v31 = vadd.f32 %v5244_v56, %v5243_v40 }
 0x57c   :  { %v9920_v58 = vpop.f32.mrb[96].mxu0  ;;  %10556 = vst [vmem:[#allocation24_spill] sm:$0xff] %v9958_v34  ;;  %v5236_v34 = vadd.f32 %v5235_v35, %v5234_v22  ;;  %v9986_v35 = vadd.f32 %v5183_v52, %v5182_v25  ;;  %10558 = vst [vmem:[#allocation26_spill] sm:$0xff] %v9992_v47  ;;  %v5264_v25 = vadd.f32 %v5263_v61, %v5262_v23  ;;  %v5283_v1 = vsel %vm85_vm0, %v4712_v48, 0.0 }
 0x57d   :  { %v9922_v11 = vpop.f32.mrb[97].mxu0  ;;  %v5258_v9 = vrot.slane %v5257_v43, 2  ;;  %v5251_v54 = vrot.slane %v5250_v46, 2  ;;  %v4714_v28 = vmul.f32 %v9858_v41, %v9584_v55  ;;  %v4713_v53 = vmul.f32 %v9584_v55, %v9863_v29 }
 0x57e   :  { %v5237_v62 = vrot.slane %v5236_v34, 2  ;;  %v10003_v20 = vadd.f32 %v5232_v26, %v5231_v32  ;;  %v4716_v50 = vmul.f32 %v9876_v57, %v9584_v55  ;;  %v4715_v8 = vmul.f32 %v9584_v55, %v9878_v0 }
 0x57f   :  { %v9976_v63 = vpop.permute.xlu1 %5112  ;;  %v5272_v40 = vrot.slane %v5271_v42, 2  ;;  %v5284_v45 = vrot.slane %v5283_v1, 4  ;;  %v5276_v41 = vsel %vm85_vm0, %v4711_v24, 0.0  ;;  %v4717_v29 = vmul.f32 %v9584_v55, %v9886_v19 }
 0x580   :  { %v5238_v4 = vadd.f32 %v5237_v62, %v5236_v34  ;;  %10559 = vst [vmem:[#allocation31_spill] sm:$0xff] %v10003_v20  ;;  %v4718_v34 = vmul.f32 %v9884_v37, %v9584_v55  ;;  %v10016_v52 = vadd.f32 %v5225_v39, %v5224_v10  ;;  %v5246_v12 = vrot.slane %v5245_v31, 1 }
 0x581   :  { %v5265_v57 = vrot.slane %v5264_v25, 2  ;;  %v5259_v23 = vadd.f32 %v5258_v9, %v5257_v43  ;;  %v5252_v3 = vadd.f32 %v5251_v54, %v5250_v46  ;;  %v5297_v0 = vsel %vm85_vm0, %v4714_v28, 0.0 }
 0x582   :  { %10560 = vst [vmem:[#allocation32_spill] sm:$0xff] %v10016_v52  ;;  %v5239_v60 = vrot.slane %v5238_v4, 1  ;;  %v5290_v37 = vsel %vm85_vm0, %v4713_v53, 0.0  ;;  %v5277_v2 = vrot.slane %v5276_v41, 4  ;;  %v5311_v49 = vsel %vm85_vm0, %v4716_v50, 0.0 }
 0x583   :  { %v9982_v22 = vpop.permute.xlu1 %5889  ;;  %v5304_v32 = vsel %vm85_vm0, %v4715_v8, 0.0  ;;  %v5325_v14 = vsel %vm85_vm0, %v4718_v34, 0.0  ;;  %v5273_v62 = vadd.f32 %v5272_v40, %v5271_v42  ;;  %v5285_v19 = vadd.f32 %v5284_v45, %v5283_v1  ;;  %v10035_v40 = vpop.permute.xlu0 %5883 }
 0x584   :  { %10557 = vst [vmem:[#allocation28_spill] sm:$0xff] %v9982_v22  ;;  %v5318_v39 = vsel %vm85_vm0, %v4717_v29, 0.0  ;;  %v4720_v10 = vmul.f32 %v9896_v36, %v9584_v55  ;;  %v5266_v61 = vadd.f32 %v5265_v57, %v5264_v25  ;;  %v5298_v48 = vrot.slane %v5297_v0, 4  ;;  %10562 = vst [vmem:[#allocation33_spill] sm:$0xff] %v10035_v40 }
 0x585   :  { %v5291_v43 = vrot.slane %v5290_v37, 4  ;;  %v4719_v46 = vmul.f32 %v9584_v55, %v9898_v18  ;;  %v10030_v24 = vadd.f32 %v5246_v12, %v5245_v31  ;;  %v5312_v9 = vrot.slane %v5311_v49, 4 }
 0x586   :  { %v5305_v54 = vrot.slane %v5304_v32, 4  ;;  %v5326_v28 = vrot.slane %v5325_v14, 4  ;;  %v10032_v42 = vadd.f32 %v5239_v60, %v5238_v4  ;;  %v5260_v1 = vrot.slane %v5259_v23, 1 }
 0x587   :  { %v10011_v56 = vpop.permute.xlu1 %5905  ;;  %v5278_v53 = vadd.f32 %v5277_v2, %v5276_v41  ;;  %v5319_v50 = vrot.slane %v5318_v39, 4  ;;  %v5253_v8 = vrot.slane %v5252_v3, 1  ;;  %v5274_v36 = vrot.slane %v5273_v62, 1 }
 0x588   :  { %v5286_v25 = vrot.slane %v5285_v19, 2  ;;  %v5339_v34 = vsel %vm85_vm0, %v4720_v10, 0.0  ;;  %v5267_v18 = vrot.slane %v5266_v61, 1  ;;  %v5299_v45 = vadd.f32 %v5298_v48, %v5297_v0 }
 0x589   :  { %v5292_v29 = vadd.f32 %v5291_v43, %v5290_v37  ;;  %v5332_v31 = vsel %vm85_vm0, %v4719_v46, 0.0  ;;  %v5313_v12 = vadd.f32 %v5312_v9, %v5311_v49  ;;  %v5306_v57 = vadd.f32 %v5305_v54, %v5304_v32 }
 0x58a   :  { %v5327_v55 = vadd.f32 %v5326_v28, %v5325_v14  ;;  %v4722_v4 = vmul.f32 %v9920_v58, %v9588_v6  ;;  %v5279_v41 = vrot.slane %v5278_v53, 2  ;;  %v5320_v60 = vadd.f32 %v5319_v50, %v5318_v39  ;;  %v10053_v28 = vpop.permute.xlu0 %5899 }
 0x58b   :  { %v10028_v26 = vpop.permute.xlu1 %5921  ;;  %v5340_v2 = vrot.slane %v5339_v34, 4  ;;  %v4721_v15 = vmul.f32 %v9588_v6, %v9922_v11  ;;  %v10046_v0 = vadd.f32 %v5253_v8, %v5252_v3  ;;  %v10048_v37 = vadd.f32 %v5274_v36, %v5273_v62 }
 0x58c   :  { %10561 = vst [vmem:[#allocation34_spill] sm:$0xff] %v10028_v26  ;;  %v10044_v26 = vadd.f32 %v5260_v1, %v5259_v23  ;;  %v5333_v49 = vrot.slane %v5332_v31, 4  ;;  %v10050_v14 = vadd.f32 %v5267_v18, %v5266_v61  ;;  %v5287_v48 = vadd.f32 %v5286_v25, %v5285_v19 }
 0x58d   :  { %v5300_v58 = vrot.slane %v5299_v45, 2  ;;  %v5293_v43 = vrot.slane %v5292_v29, 2  ;;  %v5314_v46 = vrot.slane %v5313_v12, 2  ;;  %v5307_v9 = vrot.slane %v5306_v57, 2 }
 0x58e   :  { %v5328_v54 = vrot.slane %v5327_v55, 2  ;;  %v5353_v11 = vsel %vm85_vm0, %v4722_v4, 0.0  ;;  %v5280_v23 = vadd.f32 %v5279_v41, %v5278_v53  ;;  %v5321_v3 = vrot.slane %v5320_v60, 2 }
 0x58f   :  { %v10042_v10 = vpop.permute.xlu1 %5937  ;;  %v5341_v1 = vadd.f32 %v5340_v2, %v5339_v34  ;;  %v5346_v62 = vsel %vm85_vm0, %v4721_v15, 0.0  ;;  %v5334_v50 = vadd.f32 %v5333_v49, %v5332_v31  ;;  %v5301_v36 = vadd.f32 %v5300_v58, %v5299_v45 }
 0x590   :  { %10563 = vst [vmem:[#allocation27_spill] sm:$0xff] %v10042_v10  ;;  %v5294_v25 = vadd.f32 %v5293_v43, %v5292_v29  ;;  %v5354_v18 = vrot.slane %v5353_v11, 4  ;;  %v5315_v53 = vadd.f32 %v5314_v46, %v5313_v12  ;;  %v5308_v34 = vadd.f32 %v5307_v9, %v5306_v57  ;;  %v10067_v29 = vpop.permute.xlu0 %5915 }
 0x591   :  { %v5329_v41 = vadd.f32 %v5328_v54, %v5327_v55  ;;  %v5347_v15 = vrot.slane %v5346_v62, 4  ;;  %v5288_v31 = vrot.slane %v5287_v48, 1  ;;  %v5281_v2 = vrot.slane %v5280_v23, 1  ;;  %10564 = vst [vmem:[#allocation30_spill] sm:$0xff] %v10067_v29 }
 0x592   :  { %v5322_v49 = vadd.f32 %v5321_v3, %v5320_v60  ;;  %v5335_v22 = vrot.slane %v5334_v50, 2  ;;  %v5302_v58 = vrot.slane %v5301_v36, 1  ;;  %v5295_v43 = vrot.slane %v5294_v25, 1 }
 0x593   :  { %v10062_v10 = vpop.permute.xlu1 %5907  ;;  %v5316_v55 = vrot.slane %v5315_v53, 1  ;;  %v5309_v57 = vrot.slane %v5308_v34, 1  ;;  %v5330_v46 = vrot.slane %v5329_v41, 1  ;;  %v5348_v9 = vadd.f32 %v5347_v15, %v5346_v62 }
 0x594   :  { %v5336_v20 = vadd.f32 %v5335_v22, %v5334_v50  ;;  %v10074_v52 = vadd.f32 %v5281_v2, %v5280_v23 }
 0x595   :  { %v10080_v47 = vadd.f32 %v5316_v55, %v5315_v53  ;;  %v10084_v62 = vadd.f32 %v5330_v46, %v5329_v41  ;;  %v5349_v15 = vrot.slane %v5348_v9, 2 }
 0x596   :  { %v9966_v16 = vpop.f32.mrb[98].mxu0 }
 0x597   :  { %v9970_v17 = vpop.f32.mrb[99].mxu0  ;;  %v4724_v61 = vmul.f32 %v9966_v16, %v9588_v6  ;;  %v5342_v16 = vrot.slane %v5341_v1, 2  ;;  %10566 = vst [vmem:[#allocation35_spill] sm:$0xff] %v10080_v47  ;;  %10568 = vst [vmem:[#allocation37_spill] sm:$0xff] %v10084_v62 }
 0x598   :  { %v4723_v19 = vmul.f32 %v9588_v6, %v9970_v17 }
 0x599   :  { %v5367_v17 = vsel %vm85_vm0, %v4724_v61, 0.0  ;;  %v5343_v60 = vadd.f32 %v5342_v16, %v5341_v1  ;;  %v10070_v61 = vpop.permute.xlu1 %5939  ;;  %v10082_v1 = vadd.f32 %v5309_v57, %v5308_v34  ;;  %v10086_v16 = vpop.permute.xlu0 %5931 }
 0x59a   :  { %v5368_v54 = vrot.slane %v5367_v17, 4 }
 0x59b   :  { %10567 = vst [vmem:[#allocation10_spill] sm:$0xff] %v10082_v1 }
 0x5b1   :  { %v6821_v32 = vpop.f32.mrb[100].mxu0 }
 0x5b2   :  { %v4662_v39 = vpop.f32.mrb[101].mxu0  ;;  %v4726_v8 = vmul.f32 %v6821_v32, %v9588_v6  ;;  %v5360_v32 = vsel %vm85_vm0, %v4723_v19, 0.0  ;;  %v10072_v19 = vadd.f32 %v5288_v31, %v5287_v48  ;;  %v5344_v48 = vrot.slane %v5343_v60, 1 }
 0x5b3   :  { %v4725_v4 = vmul.f32 %v9588_v6, %v4662_v39  ;;  %v5355_v39 = vadd.f32 %v5354_v18, %v5353_v11  ;;  %v5361_v3 = vrot.slane %v5360_v32, 4  ;;  %v10076_v11 = vadd.f32 %v5302_v58, %v5301_v36 }
 0x5b4   :  { %v5381_v45 = vsel %vm85_vm0, %v4726_v8, 0.0  ;;  %v5323_v8 = vrot.slane %v5322_v49, 1  ;;  %v10078_v18 = vadd.f32 %v5295_v43, %v5294_v25  ;;  %v5369_v31 = vadd.f32 %v5368_v54, %v5367_v17  ;;  %v10093_v25 = vld [vmem:[%s10423_s0 + $0x8] sm:$0xff]  ;;  %v10111_v54 = vld [vmem:[%s10423_s0] sm:$0xff] }
 0x5b5   :  { %v5374_v12 = vsel %vm85_vm0, %v4725_v4, 0.0  ;;  %v5382_v40 = vrot.slane %v5381_v45, 4  ;;  %10565 = vst [vmem:[#allocation8_spill] sm:$0xff] %v10076_v11  ;;  %v5356_v4 = vrot.slane %v5355_v39, 2  ;;  %v5362_v22 = vadd.f32 %v5361_v3, %v5360_v32  ;;  %v10099_v32 = vpop.permute.xlu1 %5909 }
 0x5b6   :  { %v5375_v29 = vrot.slane %v5374_v12, 4  ;;  %v10088_v23 = vadd.f32 %v5323_v8, %v5322_v49  ;;  %v5337_v36 = vrot.slane %v5336_v20, 1  ;;  %v10104_v43 = vadd.f32 %v5344_v48, %v5343_v60  ;;  %v10115_v8 = vpop.permute.xlu0 %5891 }
 0x5b7   :  { %v5383_v50 = vadd.f32 %v5382_v40, %v5381_v45  ;;  %v5357_v34 = vadd.f32 %v5356_v4, %v5355_v39  ;;  %v5350_v40 = vadd.f32 %v5349_v15, %v5348_v9  ;;  %v5363_v55 = vrot.slane %v5362_v22, 2  ;;  %v10125_v9 = vld [vmem:[%s10423_s0 + $0x18] sm:$0xff] }
 0x5b8   :  { %10569 = vst [vmem:[#allocation7_spill] sm:$0xff] %v10088_v23  ;;  %v5376_v2 = vadd.f32 %v5375_v29, %v5374_v12  ;;  %10570 = vst [vmem:[#allocation9_spill] sm:$0xff] %v10104_v43  ;;  %v5370_v12 = vrot.slane %v5369_v31, 2  ;;  %v10106_v57 = vadd.f32 %v5337_v36, %v5336_v20 }
 0x5b9   :  { %v5384_v39 = vrot.slane %v5383_v50, 2  ;;  %v5358_v4 = vrot.slane %v5357_v34, 1  ;;  %v5351_v48 = vrot.slane %v5350_v40, 1  ;;  %v5364_v49 = vadd.f32 %v5363_v55, %v5362_v22  ;;  %v10129_v15 = vpop.permute.xlu1 %5941 }
 0x5ba   :  { %10571 = vst [vmem:[#allocation29_spill] sm:$0xff] %v10106_v57  ;;  %v5377_v46 = vrot.slane %v5376_v2, 2  ;;  %v5371_v45 = vadd.f32 %v5370_v12, %v5369_v31  ;;  %v10145_v12 = vld [vmem:[%s10423_s0 + $0x10] sm:$0xff] }
 0x5bb   :  { %v5385_v17 = vadd.f32 %v5384_v39, %v5383_v50  ;;  %v10134_v53 = vadd.f32 %v5358_v4, %v5357_v34  ;;  %v10139_v50 = vadd.f32 %v5351_v48, %v5350_v40  ;;  %10572 = vst [vmem:[#allocation36_spill] sm:$0xff] %v10145_v12  ;;  %v10149_v39 = vpop.permute.xlu0 %5923 }
 0x5bc   :  { %v5378_v20 = vadd.f32 %v5377_v46, %v5376_v2  ;;  %10573 = vst [vmem:[#allocation38_spill] sm:$0xff] %v10149_v39 }
 0x5bd   :  { %v5386_v46 = vrot.slane %v5385_v17, 1  ;;  %v10158_v39 = vpop.permute.xlu1 %5911 }
 0x5be   :  { %v5379_v40 = vrot.slane %v5378_v20, 1 }
 0x5c1   :  { %v10182_v62 = vpop.permute.xlu1 %5943 }
 0x5c8   :  { %v6865_v58 = vpop.f32.mrb[88].mxu1 }
 0x5c9   :  { %v5171_v43 = vmul.f32 %v6865_v58, %v9880_v59  ;;  %v5011_v3 = vpop.f32.mrb[89].mxu1  ;;  %v5372_v59 = vrot.slane %v5371_v45, 1  ;;  %v5365_v58 = vrot.slane %v5364_v49, 1 }
 0x5ca   :  { %v5170_v2 = vmul.f32 %v9903_v27, %v5011_v3 }
 0x5cb   :  { %v5448_v4 = vsel %vm85_vm0, %v5171_v43, 0.0  ;;  %v10164_v31 = vadd.f32 %v5372_v59, %v5371_v45 }
 0x5cc   :  { %v5447_v48 = vsel %vm85_vm0, %v5170_v2, 0.0 }
 0x5cd   :  { %v5449_v41 = vadd.f32 %v5448_v4, %v5447_v48  ;;  %v10166_v4 = vadd.f32 %v5365_v58, %v5364_v49  ;;  %v10179_v58 = vpop.permute.xlu0 %5893 }
 0x5ce   :  { %v6868_v27 = vpop.f32.mrb[90].mxu1  ;;  %v6824_v3 = vpop.f32.mrb[102].mxu0 }
 0x5cf   :  { %v5173_v55 = vmul.f32 %v6868_v27, %v9882_v33  ;;  %v5021_v34 = vpop.f32.mrb[91].mxu1  ;;  %v4728_v29 = vmul.f32 %v6824_v3, %v9588_v6  ;;  %v4672_v36 = vpop.f32.mrb[103].mxu0  ;;  %v10168_v33 = vadd.f32 %v5386_v46, %v5385_v17  ;;  %v10171_v27 = vadd.f32 %v5379_v40, %v5378_v20 }
 0x5d0   :  { %v5172_v43 = vmul.f32 %v9908_v51, %v5021_v34  ;;  %v4727_v2 = vmul.f32 %v9588_v6, %v4672_v36 }
 0x5d1   :  { %v5395_v48 = vsel %vm85_vm0, %v4728_v29, 0.0  ;;  %v5452_v57 = vsel %vm85_vm0, %v5173_v55, 0.0 }
 0x5d2   :  { %v5450_v3 = vsel %vm85_vm0, %v5172_v43, 0.0  ;;  %v5396_v60 = vrot.slane %v5395_v48, 4  ;;  %v6871_v51 = vpop.f32.mrb[92].mxu1  ;;  %v5388_v36 = vsel %vm85_vm0, %v4727_v2, 0.0  ;;  %v6879_v34 = vpop.f32.mrb[104].mxu0 }
 0x5d3   :  { %v5451_v22 = vadd.f32 %v5450_v3, %v5449_v41  ;;  %v5175_v45 = vmul.f32 %v6871_v51, %v9916_v44  ;;  %v5389_v49 = vrot.slane %v5388_v36, 4  ;;  %v5031_v59 = vpop.f32.mrb[93].mxu1  ;;  %v10177_v17 = vpop.f32.mrb[105].mxu0  ;;  %v5766_v46 = vrot.slane %v6879_v34, 1 }
 0x5d4   :  { %v5397_v29 = vadd.f32 %v5396_v60, %v5395_v48  ;;  %v5174_v20 = vmul.f32 %v9914_v38, %v5031_v59  ;;  %v5767_v40 = vrot.slane %v6879_v34, 2  ;;  %v5768_v2 = vrot.slane %v6879_v34, 3 }
 0x5d5   :  { %v5390_v43 = vadd.f32 %v5389_v49, %v5388_v36  ;;  %v5453_v6 = vadd.f32 %v5452_v57, %v5451_v22  ;;  %v5769_v12 = vrot.slane %v6879_v34, 4  ;;  %v5770_v3 = vrot.slane %v6879_v34, 5 }
 0x5d6   :  { %v5398_v41 = vrot.slane %v5397_v29, 2  ;;  %v5454_v44 = vsel %vm85_vm0, %v5174_v20, 0.0  ;;  %v6874_v55 = vpop.f32.mrb[94].mxu1  ;;  %v5771_v51 = vrot.slane %v6879_v34, 6  ;;  %v5772_v48 = vrot.slane %v6879_v34, 7 }
 0x5d7   :  { %v5391_v23 = vrot.slane %v5390_v43, 2  ;;  %v5455_v47 = vadd.f32 %v5454_v44, %v5453_v6  ;;  %v5177_v60 = vmul.f32 %v6874_v55, %v9976_v63  ;;  %v5041_v38 = vpop.f32.mrb[95].mxu1  ;;  %v5827_v36 = vmul.f32 %v6879_v34, %v10032_v42  ;;  %v10194_v6 = vpop.permute.xlu0 %5925  ;;  %v10574_v34 = vld [vmem:[#allocation25_spill] sm:$0xff] }
 0x5d8   :  { %v5399_v59 = vadd.f32 %v5398_v41, %v5397_v29  ;;  %v5828_v57 = vmul.f32 %v5766_v46, %v10030_v24  ;;  %v5829_v22 = vmul.f32 %v5767_v40, %v10046_v0  ;;  %v5456_v49 = vsel %vm85_vm0, %v5175_v45, 0.0  ;;  %v5914_v45 = vpop.permute.xlu1 %5913  ;;  %v10575_v41 = vld [vmem:[#allocation23_spill] sm:$0xff] }
 0x5d9   :  { %v10190_v1 = vadd.f32 %v5391_v23, %v5390_v43  ;;  %v5830_v20 = vmul.f32 %v5768_v2, %v10044_v26  ;;  %v5831_v11 = vmul.f32 %v5769_v12, %v10050_v14  ;;  %v5832_v44 = vmul.f32 %v5770_v3, %v10048_v37 }
 0x5da   :  { %v5400_v63 = vrot.slane %v5399_v59, 1  ;;  %v5833_v29 = vmul.f32 %v5771_v51, %v10074_v52  ;;  %v5834_v42 = vmul.f32 %v5772_v48, %v10072_v19  ;;  %v10200_v24 = vsel %vm85_vm0, %v5177_v60, 0.0 }
 0x5db   :  { %v5987_v0 = vadd.f32 %v10053_v28, %v5827_v36  ;;  %v5988_v23 = vadd.f32 %v9924_v30, %v5828_v57  ;;  %v5989_v26 = vadd.f32 %v10574_v34, %v5829_v22  ;;  %v5393_v14 = vrot.slane %v10190_v1, 1 }
 0x5dc   :  { %v5990_v12 = vadd.f32 %v10011_v56, %v5830_v20  ;;  %v5991_v37 = vadd.f32 %v10062_v10, %v5831_v11  ;;  %v5992_v52 = vadd.f32 %v10099_v32, %v5832_v44  ;;  %v10209_v46 = vadd.f32 %v5400_v63, %v5399_v59  ;;  %v5896_v56 = vpop.permute.xlu0 %5895 }
 0x5dd   :  { %v5993_v19 = vadd.f32 %v10158_v39, %v5833_v29  ;;  %v5994_v40 = vadd.f32 %v5914_v45, %v5834_v42  ;;  %v6019_v43 = vmul.f32 0.1, %v5987_v0  ;;  %v6020_v28 = vmul.f32 0.1, %v5988_v23 }
 0x5de   :  { %v6021_v2 = vmul.f32 0.1, %v5989_v26  ;;  %v6022_v30 = vmul.f32 0.1, %v5990_v12  ;;  %v5176_v55 = vmul.f32 %v10575_v41, %v5041_v38  ;;  %v6023_v3 = vmul.f32 0.1, %v5991_v37 }
 0x5df   :  { %v6024_v51 = vmul.f32 0.1, %v5992_v52  ;;  %v6025_v60 = vmul.f32 0.1, %v5993_v19  ;;  %v6051_v48 = vmax.f32 %v5987_v0, %v6019_v43  ;;  %v6026_v36 = vmul.f32 0.1, %v5994_v40 }
 0x5e0   :  { %v6052_v10 = vmax.f32 %v5988_v23, %v6020_v28  ;;  %v6053_v11 = vmax.f32 %v5989_v26, %v6021_v2  ;;  %v6054_v32 = vmax.f32 %v5990_v12, %v6022_v30  ;;  %v6055_v59 = vmax.f32 %v5991_v37, %v6023_v3 }
 0x5e1   :  { %v6056_v57 = vmax.f32 %v5992_v52, %v6024_v51  ;;  %v6057_v22 = vmax.f32 %v5993_v19, %v6025_v60  ;;  %v6143_v39 = vadd.f32 %v10093_v25, %v6051_v48  ;;  %v6058_v20 = vmax.f32 %v5994_v40, %v6026_v36  ;;  %v10229_v60 = vpop.permute.xlu0 %5927 }
 0x5e2   :  { %v10576_v63 = vrot.slane %v10093_v25, 1  ;;  %v10577_v38 = vrot.slane %v10093_v25, 2  ;;  %v10578_v42 = vrot.slane %v10093_v25, 3  ;;  %v10579_v34 = vrot.slane %v10093_v25, 4 }
 0x5e3   :  { %v10580_v26 = vrot.slane %v10093_v25, 5  ;;  %v10581_v12 = vrot.slane %v10093_v25, 6  ;;  %v5457_v52 = vadd.f32 %v5456_v49, %v5455_v47  ;;  %v10582_v19 = vrot.slane %v10093_v25, 7 }
 0x5e4   :  { %v6144_v44 = vadd.f32 %v10576_v63, %v6052_v10  ;;  %v6145_v29 = vadd.f32 %v10577_v38, %v6053_v11  ;;  %v6146_v0 = vadd.f32 %v10578_v42, %v6054_v32  ;;  %v6147_v23 = vadd.f32 %v10579_v34, %v6055_v59 }
 0x5e5   :  { %v6148_v45 = vadd.f32 %v10580_v26, %v6056_v57  ;;  %v6149_v37 = vadd.f32 %v10581_v12, %v6057_v22  ;;  %v6150_v40 = vadd.f32 %v10582_v19, %v6058_v20  ;;  %v5458_v51 = vsel %vm85_vm0, %v5176_v55, 0.0  ;;  %v10584_v26 = vld [vmem:[#allocation32_spill] sm:$0xff]  ;;  %v10585_v12 = vld [vmem:[#allocation31_spill] sm:$0xff] }
 0x5e6   :  { %v6229_v43 = vrot.slane %v6144_v44, 7  ;;  %v6231_v28 = vrot.slane %v6145_v29, 6  ;;  %v6233_v2 = vrot.slane %v6146_v0, 5  ;;  %v6235_v30 = vrot.slane %v6147_v23, 4  ;;  %v10583_v0 = vld [vmem:[#allocation26_spill] sm:$0xff] }
 0x5e7   :  { %v6237_v41 = vrot.slane %v6148_v45, 3  ;;  %v6239_v3 = vrot.slane %v6149_v37, 2  ;;  %v6241_v36 = vrot.slane %v6150_v40, 1  ;;  %v5459_v10 = vadd.f32 %v5458_v51, %v5457_v52  ;;  %v10586_v52 = vld [vmem:[#allocation33_spill] sm:$0xff]  ;;  %v10588_v40 = vld [vmem:[#allocation18_spill] sm:$0xff] }
 0x5e8   :  { %v6230_v48 = vsel %vm5526_vm13, %v6229_v43, %v6143_v39  ;;  %v5759_v11 = vrot.slane %v10177_v17, 1  ;;  %v5760_v25 = vrot.slane %v10177_v17, 2  ;;  %v5761_v49 = vrot.slane %v10177_v17, 3 }
 0x5e9   :  { %v6232_v47 = vsel %vm5528_vm14, %v6231_v28, %v6230_v48  ;;  %v5762_v32 = vrot.slane %v10177_v17, 4  ;;  %v5763_v55 = vrot.slane %v10177_v17, 5  ;;  %v5764_v57 = vrot.slane %v10177_v17, 6 }
 0x5ea   :  { %v6234_v59 = vsel %vm5530_vm15, %v6233_v2, %v6232_v47  ;;  %v5765_v22 = vrot.slane %v10177_v17, 7  ;;  %v5819_v20 = vmul.f32 %v10177_v17, %v9986_v35  ;;  %v5820_v63 = vmul.f32 %v5759_v11, %v9984_v5  ;;  %v5898_v17 = vpop.permute.xlu0 %5897 }
 0x5eb   :  { %v6236_v39 = vsel %vm5532_vm3, %v6235_v30, %v6234_v59  ;;  %v5821_v44 = vmul.f32 %v5760_v25, %v9990_v13  ;;  %v5822_v29 = vmul.f32 %v5761_v49, %v9988_v7  ;;  %v5823_v42 = vmul.f32 %v5762_v32, %v9994_v21  ;;  %v10587_v13 = vld [vmem:[#allocation15_spill] sm:$0xff]  ;;  %v10589_v7 = vld [vmem:[#allocation28_spill] sm:$0xff] }
 0x5ec   :  { %v6238_v38 = vsel %vm5534_vm4, %v6237_v41, %v6236_v39  ;;  %v5824_v34 = vmul.f32 %v5763_v55, %v10583_v0  ;;  %v5825_v45 = vmul.f32 %v5764_v57, %v10584_v26  ;;  %v5826_v37 = vmul.f32 %v5765_v22, %v10585_v12 }
 0x5ed   :  { %v6240_v23 = vsel %vm5536_vm5, %v6239_v3, %v6238_v38  ;;  %v5979_v35 = vadd.f32 %v10586_v52, %v5819_v20  ;;  %v5980_v19 = vadd.f32 %v10587_v13, %v5820_v63  ;;  %v5981_v43 = vadd.f32 %v10588_v40, %v5821_v44 }
 0x5ee   :  { %v6242_v5 = vsel %vm5538_vm6, %v6241_v36, %v6240_v23  ;;  %v5982_v28 = vadd.f32 %v10589_v7, %v5822_v29  ;;  %v5983_v21 = vadd.f32 %v10115_v8, %v5823_v42  ;;  %v5984_v2 = vadd.f32 %v10179_v58, %v5824_v34  ;;  %v6882_v58 = vpop.f32.mrb[106].mxu0 }
 0x5ef   :  { %6276 = vst.msk [vmem:[#allocation4 + $0x10] sm:$0xff] %vm85_vm0, %v6242_v5  ;;  %v5985_v30 = vadd.f32 %v5896_v56, %v5825_v45  ;;  %v5986_v41 = vadd.f32 %v5898_v17, %v5826_v37  ;;  %v6011_v3 = vmul.f32 0.1, %v5979_v35  ;;  %v6012_v51 = vmul.f32 0.1, %v5980_v19  ;;  %v10267_v20 = vpop.f32.mrb[107].mxu0 }
 0x5f0   :  { %v6013_v48 = vmul.f32 0.1, %v5981_v43  ;;  %v10262_v11 = vadd.f32 %v10200_v24, %v5459_v10  ;;  %v5394_v36 = vadd.f32 %v5393_v14, %v10190_v1  ;;  %v6014_v47 = vmul.f32 0.1, %v5982_v28  ;;  %v10272_v44 = vpop.f32.mrb[108].mxu0 }
 0x5f1   :  { %v6015_v25 = vmul.f32 0.1, %v5983_v21  ;;  %v6016_v49 = vmul.f32 0.1, %v5984_v2  ;;  %v6017_v32 = vmul.f32 0.1, %v5985_v30  ;;  %v6043_v8 = vmax.f32 %v5979_v35, %v6011_v3 }
 0x5f2   :  { %v6018_v59 = vmul.f32 0.1, %v5986_v41  ;;  %v6044_v55 = vmax.f32 %v5980_v19, %v6012_v51  ;;  %v6045_v56 = vmax.f32 %v5981_v43, %v6013_v48  ;;  %v6046_v57 = vmax.f32 %v5982_v28, %v6014_v47  ;;  %v10282_v12 = vpop.f32.mrb[109].mxu0 }
 0x5f3   :  { %v6047_v22 = vmax.f32 %v5983_v21, %v6015_v25  ;;  %v6048_v39 = vmax.f32 %v5984_v2, %v6016_v49  ;;  %v6049_v24 = vmax.f32 %v5985_v30, %v6017_v32  ;;  %v6135_v63 = vadd.f32 %v10111_v54, %v6043_v8 }
 0x5f4   :  { %v6050_v10 = vmax.f32 %v5986_v41, %v6018_v59  ;;  %v10590_v1 = vrot.slane %v10111_v54, 1  ;;  %v10591_v38 = vrot.slane %v10111_v54, 2  ;;  %v10592_v42 = vrot.slane %v10111_v54, 3  ;;  %v10289_v41 = vpop.f32.mrb[110].mxu0 }
 0x5f5   :  { %v10593_v34 = vrot.slane %v10111_v54, 4  ;;  %v10594_v26 = vrot.slane %v10111_v54, 5  ;;  %v10595_v37 = vrot.slane %v10111_v54, 6  ;;  %v10596_v35 = vrot.slane %v10111_v54, 7  ;;  %v10292_v54 = vpop.f32.mrb[111].mxu0 }
 0x5f6   :  { %v6136_v14 = vadd.f32 %v10590_v1, %v6044_v55  ;;  %v6137_v29 = vadd.f32 %v10591_v38, %v6045_v56  ;;  %v6138_v0 = vadd.f32 %v10592_v42, %v6046_v57  ;;  %v5780_v13 = vrot.slane %v6882_v58, 1  ;;  %v10598_v38 = vld [vmem:[#allocation24_spill] sm:$0xff] }
 0x5f7   :  { %v6139_v23 = vadd.f32 %v10593_v34, %v6047_v22  ;;  %v6140_v45 = vadd.f32 %v10594_v26, %v6048_v39  ;;  %v6141_v52 = vadd.f32 %v10595_v37, %v6049_v24  ;;  %v6142_v17 = vadd.f32 %v10596_v35, %v6050_v10 }
 0x5f8   :  { %v6215_v5 = vrot.slane %v6136_v14, 7  ;;  %v6217_v19 = vrot.slane %v6137_v29, 6  ;;  %v6219_v40 = vrot.slane %v6138_v0, 5  ;;  %v5781_v30 = vrot.slane %v6882_v58, 2  ;;  %v10599_v29 = vld [vmem:[#allocation27_spill] sm:$0xff] }
 0x5f9   :  { %v6221_v43 = vrot.slane %v6139_v23, 4  ;;  %v6223_v7 = vrot.slane %v6140_v45, 3  ;;  %v6225_v21 = vrot.slane %v6141_v52, 2  ;;  %v6227_v2 = vrot.slane %v6142_v17, 1 }
 0x5fa   :  { %v6216_v28 = vsel %vm5526_vm13, %v6215_v5, %v6135_v63  ;;  %v5782_v51 = vrot.slane %v6882_v58, 3  ;;  %v5783_v48 = vrot.slane %v6882_v58, 4  ;;  %v5784_v47 = vrot.slane %v6882_v58, 5 }
 0x5fb   :  { %v6218_v3 = vsel %vm5528_vm14, %v6217_v19, %v6216_v28  ;;  %v5785_v49 = vrot.slane %v6882_v58, 6  ;;  %v5786_v32 = vrot.slane %v6882_v58, 7  ;;  %v5843_v59 = vmul.f32 %v6882_v58, %v10139_v50  ;;  %v10597_v58 = vld [vmem:[#allocation21_spill] sm:$0xff] }
 0x5fc   :  { %v6220_v25 = vsel %vm5530_vm15, %v6219_v40, %v6218_v3  ;;  %v5844_v55 = vmul.f32 %v5780_v13, %v10134_v53  ;;  %v5845_v56 = vmul.f32 %v5781_v30, %v10166_v4  ;;  %v5846_v57 = vmul.f32 %v5782_v51, %v10164_v31  ;;  %v5946_v53 = vpop.permute.xlu1 %5945 }
 0x5fd   :  { %v6222_v8 = vsel %vm5532_vm3, %v6221_v43, %v6220_v25  ;;  %v5847_v39 = vmul.f32 %v5783_v48, %v10171_v27  ;;  %v5848_v24 = vmul.f32 %v5784_v47, %v10168_v33  ;;  %v5849_v10 = vmul.f32 %v5785_v49, %v5394_v36 }
 0x5fe   :  { %v6224_v22 = vsel %vm5534_vm4, %v6223_v7, %v6222_v8  ;;  %v5850_v1 = vmul.f32 %v5786_v32, %v10209_v46  ;;  %v6003_v50 = vadd.f32 %v10086_v16, %v5843_v59  ;;  %v6004_v14 = vadd.f32 %v10597_v58, %v5844_v55 }
 0x5ff   :  { %v6226_v63 = vsel %vm5536_vm5, %v6225_v21, %v6224_v22  ;;  %v6005_v31 = vadd.f32 %v10598_v38, %v5845_v56  ;;  %v6006_v42 = vadd.f32 %v10599_v29, %v5846_v57  ;;  %v6007_v27 = vadd.f32 %v10070_v61, %v5847_v39 }
 0x600   :  { %v6228_v4 = vsel %vm5538_vm6, %v6227_v2, %v6226_v63  ;;  %v6008_v33 = vadd.f32 %v10129_v15, %v5848_v24  ;;  %v6009_v36 = vadd.f32 %v10182_v62, %v5849_v10  ;;  %v6010_v46 = vadd.f32 %v5946_v53, %v5850_v1 }
 0x601   :  { %6275 = vst.msk [vmem:[#allocation4] sm:$0xff] %vm85_vm0, %v6228_v4  ;;  %v6035_v0 = vmul.f32 0.1, %v6003_v50  ;;  %v6036_v16 = vmul.f32 0.1, %v6004_v14  ;;  %v5835_v26 = vmul.f32 %v10267_v20, %v10078_v18  ;;  %v10600_v7 = vrot.slane %v10125_v9, 1 }
 0x602   :  { %v6037_v34 = vmul.f32 0.1, %v6005_v31  ;;  %v6038_v23 = vmul.f32 0.1, %v6006_v42  ;;  %v6039_v45 = vmul.f32 0.1, %v6007_v27 }
 0x603   :  { %v6040_v37 = vmul.f32 0.1, %v6008_v33  ;;  %v6041_v52 = vmul.f32 0.1, %v6009_v36  ;;  %v6067_v35 = vmax.f32 %v6003_v50, %v6035_v0  ;;  %v6042_v17 = vmul.f32 0.1, %v6010_v46 }
 0x604   :  { %v6068_v61 = vmax.f32 %v6004_v14, %v6036_v16  ;;  %v6069_v5 = vmax.f32 %v6005_v31, %v6037_v34  ;;  %v6070_v13 = vmax.f32 %v6006_v42, %v6038_v23  ;;  %v6071_v19 = vmax.f32 %v6007_v27, %v6039_v45  ;;  %v10607_v31 = vld [vmem:[#allocation8_spill] sm:$0xff]  ;;  %v10608_v42 = vld [vmem:[#allocation10_spill] sm:$0xff]  ;;  %v10610_v0 = vld [vmem:[#allocation7_spill] sm:$0xff] }
 0x605   :  { %v6072_v15 = vmax.f32 %v6008_v33, %v6040_v37  ;;  %v6073_v40 = vmax.f32 %v6009_v36, %v6041_v52  ;;  %v6159_v62 = vadd.f32 %v10125_v9, %v6067_v35  ;;  %v6074_v43 = vmax.f32 %v6010_v46, %v6042_v17  ;;  %v10609_v33 = vld [vmem:[#allocation35_spill] sm:$0xff]  ;;  %v10611_v34 = vld [vmem:[#allocation37_spill] sm:$0xff]  ;;  %v10614_v17 = vld [vmem:[#allocation30_spill] sm:$0xff] }
 0x606   :  { %v6160_v28 = vadd.f32 %v10600_v7, %v6068_v61  ;;  %v10601_v21 = vrot.slane %v10125_v9, 2  ;;  %v10602_v2 = vrot.slane %v10125_v9, 3  ;;  %v10603_v3 = vrot.slane %v10125_v9, 4  ;;  %v10612_v45 = vld [vmem:[#allocation29_spill] sm:$0xff] }
 0x607   :  { %v10604_v48 = vrot.slane %v10125_v9, 5  ;;  %v10605_v25 = vrot.slane %v10125_v9, 6  ;;  %v5773_v32 = vrot.slane %v10267_v20, 1  ;;  %v10606_v59 = vrot.slane %v10125_v9, 7  ;;  %v10613_v35 = vld [vmem:[#allocation9_spill] sm:$0xff] }
 0x608   :  { %v6161_v18 = vadd.f32 %v10601_v21, %v6069_v5  ;;  %v6162_v30 = vadd.f32 %v10602_v2, %v6070_v13  ;;  %v6163_v51 = vadd.f32 %v10603_v3, %v6071_v19  ;;  %v6257_v55 = vrot.slane %v6160_v28, 7  ;;  %v10615_v5 = vld [vmem:[#allocation20_spill] sm:$0xff]  ;;  %v5930_v19 = vpop.permute.xlu0 %5929  ;;  %v10618_v28 = vld [vmem:[#allocation38_spill] sm:$0xff] }
 0x609   :  { %v6164_v47 = vadd.f32 %v10604_v48, %v6072_v15  ;;  %v6165_v49 = vadd.f32 %v10605_v25, %v6073_v40  ;;  %v6166_v8 = vadd.f32 %v10606_v59, %v6074_v43  ;;  %v5774_v10 = vrot.slane %v10267_v20, 2  ;;  %v10616_v40 = vld [vmem:[#allocation22_spill] sm:$0xff] }
 0x60a   :  { %v6259_v56 = vrot.slane %v6161_v18, 6  ;;  %v6261_v57 = vrot.slane %v6162_v30, 5  ;;  %v6263_v22 = vrot.slane %v6163_v51, 4  ;;  %v6258_v63 = vsel %vm5526_vm13, %v6257_v55, %v6159_v62  ;;  %v10617_v43 = vld [vmem:[#allocation34_spill] sm:$0xff] }
 0x60b   :  { %v6265_v39 = vrot.slane %v6164_v47, 3  ;;  %v6267_v24 = vrot.slane %v6165_v49, 2  ;;  %v6269_v1 = vrot.slane %v6166_v8, 1  ;;  %v5775_v50 = vrot.slane %v10267_v20, 3  ;;  %v10619_v47 = vld [vmem:[#allocation16_spill] sm:$0xff]  ;;  %v10620_v8 = vld [vmem:[#allocation13_spill] sm:$0xff] }
 0x60c   :  { %v5776_v58 = vrot.slane %v10267_v20, 4  ;;  %v6260_v14 = vsel %vm5528_vm14, %v6259_v56, %v6258_v63  ;;  %v5777_v9 = vrot.slane %v10267_v20, 5  ;;  %v5778_v53 = vrot.slane %v10267_v20, 6 }
 0x60d   :  { %v5779_v4 = vrot.slane %v10267_v20, 7  ;;  %v6262_v38 = vsel %vm5530_vm15, %v6261_v57, %v6260_v14  ;;  %v5836_v29 = vmul.f32 %v5773_v32, %v10607_v31  ;;  %v5837_v27 = vmul.f32 %v5774_v10, %v10608_v42 }
 0x60e   :  { %v5838_v36 = vmul.f32 %v5775_v50, %v10609_v33  ;;  %v6264_v46 = vsel %vm5532_vm3, %v6263_v22, %v6262_v38  ;;  %v5839_v16 = vmul.f32 %v5776_v58, %v10610_v0  ;;  %v5840_v23 = vmul.f32 %v5777_v9, %v10611_v34  ;;  %v10621_v50 = vld [vmem:[#allocation36_spill] sm:$0xff] }
 0x60f   :  { %v5841_v37 = vmul.f32 %v5778_v53, %v10612_v45  ;;  %v6266_v52 = vsel %vm5534_vm4, %v6265_v39, %v6264_v46  ;;  %v5842_v20 = vmul.f32 %v5779_v4, %v10613_v35  ;;  %v5995_v61 = vadd.f32 %v10614_v17, %v5835_v26  ;;  %v10628_v46 = vld [vmem:[#allocation14_spill] sm:$0xff]  ;;  %v10630_v17 = vld [vmem:[#allocation11_spill] sm:$0xff] }
 0x610   :  { %v5996_v13 = vadd.f32 %v10615_v5, %v5836_v29  ;;  %v6268_v15 = vsel %vm5536_vm5, %v6267_v24, %v6266_v52  ;;  %v5997_v62 = vadd.f32 %v10616_v40, %v5837_v27  ;;  %v5998_v7 = vadd.f32 %v10617_v43, %v5838_v36 }
 0x611   :  { %v5999_v21 = vadd.f32 %v10618_v28, %v5839_v16  ;;  %v6270_v18 = vsel %vm5538_vm6, %v6269_v1, %v6268_v15  ;;  %v6000_v2 = vadd.f32 %v10194_v6, %v5840_v23  ;;  %v6001_v30 = vadd.f32 %v10229_v60, %v5841_v37 }
 0x612   :  { %v6002_v3 = vadd.f32 %v5930_v19, %v5842_v20  ;;  %6278 = vst.msk [vmem:[#allocation4 + $0x30] sm:$0xff] %vm85_vm0, %v6270_v18  ;;  %v6027_v26 = vmul.f32 0.1, %v5995_v61  ;;  %v6028_v51 = vmul.f32 0.1, %v5996_v13  ;;  %v5852_v25 = vmul.f32 %v10272_v44, %v10619_v47 }
 0x613   :  { %v6029_v48 = vmul.f32 0.1, %v5997_v62  ;;  %v6030_v49 = vmul.f32 0.1, %v5998_v7  ;;  %v6031_v32 = vmul.f32 0.1, %v5999_v21  ;;  %v5851_v55 = vmul.f32 %v10282_v12, %v10620_v8 }
 0x614   :  { %v6032_v59 = vmul.f32 0.1, %v6000_v2  ;;  %v6033_v56 = vmul.f32 0.1, %v6001_v30  ;;  %v6034_v57 = vmul.f32 0.1, %v6002_v3  ;;  %v6059_v6 = vmax.f32 %v5995_v61, %v6027_v26 }
 0x615   :  { %v6060_v22 = vmax.f32 %v5996_v13, %v6028_v51  ;;  %v6061_v60 = vmax.f32 %v5997_v62, %v6029_v48  ;;  %v6062_v39 = vmax.f32 %v5998_v7, %v6030_v49  ;;  %v6063_v24 = vmax.f32 %v5999_v21, %v6031_v32  ;;  %v10631_v13 = vld [vmem:[#allocation19_spill] sm:$0xff]  ;;  %v10632_v21 = vld [vmem:[#allocation17_spill] sm:$0xff] }
 0x616   :  { %v6064_v10 = vmax.f32 %v6000_v2, %v6032_v59  ;;  %v6065_v63 = vmax.f32 %v6001_v30, %v6033_v56  ;;  %v6066_v1 = vmax.f32 %v6002_v3, %v6034_v57  ;;  %v10622_v58 = vrot.slane %v10621_v50, 1  ;;  %v10633_v2 = vld [vmem:[#allocation12_spill] sm:$0xff]  ;;  %v7158_v49 = vld [vmem:[%s10424_s1] sm:$0xff]  ;;  %v7160_v57 = vld [vmem:[%s10424_s1 + $0x10] sm:$0xff] }
 0x617   :  { %v6151_v44 = vadd.f32 %v10621_v50, %v6059_v6  ;;  %v10623_v9 = vrot.slane %v10621_v50, 2  ;;  %v10624_v12 = vrot.slane %v10621_v50, 3  ;;  %v10625_v38 = vrot.slane %v10621_v50, 4 }
 0x618   :  { %v6152_v14 = vadd.f32 %v10622_v58, %v6060_v22  ;;  %v10626_v29 = vrot.slane %v10621_v50, 5  ;;  %v10627_v27 = vrot.slane %v10621_v50, 6  ;;  %v6168_v0 = vadd.f32 %v5852_v25, %v10628_v46 }
 0x619   :  { %v6153_v53 = vadd.f32 %v10623_v9, %v6061_v60  ;;  %v6154_v4 = vadd.f32 %v10624_v12, %v6062_v39  ;;  %v6155_v31 = vadd.f32 %v10625_v38, %v6063_v24  ;;  %v10629_v16 = vrot.slane %v10621_v50, 7 }
 0x61a   :  { %v6156_v42 = vadd.f32 %v10626_v29, %v6064_v10  ;;  %v6157_v33 = vadd.f32 %v10627_v27, %v6065_v63  ;;  %v6243_v36 = vrot.slane %v6152_v14, 7  ;;  %v6172_v35 = vmul.f32 0.1, %v6168_v0 }
 0x61b   :  { %v6158_v34 = vadd.f32 %v10629_v16, %v6066_v1  ;;  %v6245_v23 = vrot.slane %v6153_v53, 6  ;;  %v6247_v37 = vrot.slane %v6154_v4, 5  ;;  %v6249_v52 = vrot.slane %v6155_v31, 4 }
 0x61c   :  { %v6244_v45 = vsel %vm5526_vm13, %v6243_v36, %v6151_v44  ;;  %v6167_v61 = vadd.f32 %v5851_v55, %v10630_v17  ;;  %v5854_v5 = vmul.f32 %v10289_v41, %v10262_v11  ;;  %v5853_v19 = vmul.f32 %v10292_v54, %v10631_v13  ;;  %v7157_v11 = vld [vmem:[%s10424_s1 + $0x8] sm:$0xff]  ;;  %v7159_v55 = vld [vmem:[%s10424_s1 + $0x18] sm:$0xff] }
 0x61d   :  { %v6246_v20 = vsel %vm5528_vm14, %v6245_v23, %v6244_v45  ;;  %v6251_v40 = vrot.slane %v6156_v42, 3  ;;  %v6253_v62 = vrot.slane %v6157_v33, 2  ;;  %v6176_v43 = vmax.f32 %v6168_v0, %v6172_v35 }
 0x61e   :  { %v6248_v15 = vsel %vm5530_vm15, %v6247_v37, %v6246_v20  ;;  %v6171_v28 = vmul.f32 0.1, %v6167_v61  ;;  %v6170_v18 = vadd.f32 %v5854_v5, %v10632_v21  ;;  %v6169_v30 = vadd.f32 %v5853_v19, %v10633_v2 }
 0x61f   :  { %v6250_v7 = vsel %vm5532_vm3, %v6249_v52, %v6248_v15  ;;  %v6255_v26 = vrot.slane %v6158_v34, 1  ;;  %v6180_v41 = vadd.f32 %v7157_v11, %v6176_v43 }
 0x620   :  { %v6252_v3 = vsel %vm5534_vm4, %v6251_v40, %v6250_v7  ;;  %v6175_v51 = vmax.f32 %v6167_v61, %v6171_v28  ;;  %v6174_v48 = vmul.f32 0.1, %v6170_v18  ;;  %v6173_v47 = vmul.f32 0.1, %v6169_v30 }
 0x621   :  { %v6254_v54 = vsel %vm5536_vm5, %v6253_v62, %v6252_v3  ;;  %6280 = vst.msk [vmem:[#allocation4 + $0x18] sm:$0xff] %vm85_vm0, %v6180_v41 }
 0x622   :  { %v6256_v25 = vsel %vm5538_vm6, %v6255_v26, %v6254_v54  ;;  %v6179_v32 = vadd.f32 %v7158_v49, %v6175_v51  ;;  %v6178_v59 = vmax.f32 %v6170_v18, %v6174_v48  ;;  %v6177_v8 = vmax.f32 %v6169_v30, %v6173_v47 }
 0x623   :  { %6277 = vst.msk [vmem:[#allocation4 + $0x20] sm:$0xff] %vm85_vm0, %v6256_v25 }
 0x624   :  { %6279 = vst.msk [vmem:[#allocation4 + $0x8] sm:$0xff] %vm85_vm0, %v6179_v32  ;;  %v6182_v56 = vadd.f32 %v7159_v55, %v6178_v59  ;;  %v6181_v6 = vadd.f32 %v7160_v57, %v6177_v8 }
 0x626   :  { %6282 = vst.msk [vmem:[#allocation4 + $0x38] sm:$0xff] %vm85_vm0, %v6182_v56  ;;  %6281 = vst.msk [vmem:[#allocation4 + $0x28] sm:$0xff] %vm85_vm0, %v6181_v6 }
 0x627   :  { %7172 = shalt.err (!%p7169_p4)
}
 0x628   :  { %s7173_s18 = scalar_lea.hbm %s10434_s11, 1024 }
 0x629   :  { %p7174_p5 = scmp.ne.s32.totalorder %s10434_s11, %s7173_s18  ;;  %p7177_p6 = scmp.lt.u32.totalorder %s7173_s18, %s10434_s11 }
 0x62b   :  { %p7179_p7 = pnand %p7177_p6, %p7174_p5 }
 0x62d   :  { %7182 = shalt.err (!%p7179_p7)
}
 0x62e   :  { %s7196_s22 = smov 128   ;;  %s7197_s23 = smov 8  }
 0x62f   :  { %6294 = dma.vmem_to_hbm [thread:$0]  %s6289_s14, 1024, %s10434_s11, [#allocation5], %s7196_s22, %s7196_s22, %s7197_s23  }
 0x630   :  { %7183 = dma.done.wait [#allocation5], 1024  }
 0x631   :  { %7184 = vsyncadd [#allocation5], 4294966272 }
 0x632   :  { %6302 = vsyncpa [#allocation5], 1 }

</bundles_post_ra>
